<compile_context>
chip_gen: v5e
topology: v5e:2x2
jax: 0.10.0
libtpu: 0.0.40
codegen_flags: <defaults>
</compile_context>

<pallas_src>
import functools
import math

import jax
import jax.numpy as jnp
from jax.experimental import pallas as pl
from jax.experimental.pallas import tpu as pltpu


# -----------------------------------------------------------------------------
# Config (lane-dense: every matmul dim is a multiple of 128)
# -----------------------------------------------------------------------------
VOCAB = 1024
HIDDEN = 256
NUM_LAYERS = 2
NUM_HEADS = 2
HEAD_DIM = 128          # NUM_HEADS * HEAD_DIM == HIDDEN
INTERMEDIATE = 512
MAX_POS = 128
LN_EPS = 1e-12
GELU_C = 0.7978845608028654  # sqrt(2/pi)


# -----------------------------------------------------------------------------
# Kernel 1: fused linear  out = act(X @ W + b)
# -----------------------------------------------------------------------------
def _linear_kernel(x_ref, w_ref, b_ref, o_ref, *, activation):
    acc = jnp.dot(x_ref[...], w_ref[...], preferred_element_type=jnp.float32)
    acc = acc + b_ref[...]
    if activation == "gelu":
        acc = 0.5 * acc * (1.0 + jnp.tanh(GELU_C * (acc + 0.044715 * acc * acc * acc)))
    elif activation == "tanh":
        acc = jnp.tanh(acc)
    o_ref[...] = acc.astype(o_ref.dtype)


def linear(x, w, b, *, activation="none", out_dtype=jnp.bfloat16):
    m, k = x.shape
    n = w.shape[1]
    tm = 128 if (m % 128 == 0) else m  # row-tile when possible, else single block
    kernel = functools.partial(_linear_kernel, activation=activation)
    return pl.pallas_call(
        kernel,
        out_shape=jax.ShapeDtypeStruct((m, n), out_dtype),
        grid=(m // tm,),
        in_specs=[
            pl.BlockSpec((tm, k), lambda i: (i, 0)),
            pl.BlockSpec((k, n), lambda i: (0, 0)),
            pl.BlockSpec((1, n), lambda i: (0, 0)),
        ],
        out_specs=pl.BlockSpec((tm, n), lambda i: (i, 0)),
        compiler_params=pltpu.CompilerParams(dimension_semantics=("parallel",)),
    )(x.astype(jnp.bfloat16), w.astype(jnp.bfloat16), b.astype(jnp.float32))


# -----------------------------------------------------------------------------
# Kernel 2: fused (residual add +) LayerNorm
# -----------------------------------------------------------------------------
def _ln_kernel(*refs, has_residual, eps):
    if has_residual:
        x_ref, res_ref, g_ref, b_ref, o_ref = refs
    else:
        x_ref, g_ref, b_ref, o_ref = refs
    x = x_ref[...].astype(jnp.float32)
    if has_residual:
        x = x + res_ref[...].astype(jnp.float32)
    mean = jnp.mean(x, axis=-1, keepdims=True)
    xc = x - mean
    var = jnp.mean(xc * xc, axis=-1, keepdims=True)
    inv = jax.lax.rsqrt(var + eps)
    y = xc * inv * g_ref[...] + b_ref[...]
    o_ref[...] = y.astype(o_ref.dtype)


def layernorm(x, gamma, beta, residual=None, *, eps=LN_EPS, out_dtype=jnp.bfloat16):
    m, h = x.shape
    tm = 128 if (m % 128 == 0) else m
    has_res = residual is not None
    kernel = functools.partial(_ln_kernel, has_residual=has_res, eps=eps)
    in_specs = [pl.BlockSpec((tm, h), lambda i: (i, 0))]
    args = [x.astype(jnp.bfloat16)]
    if has_res:
        in_specs.append(pl.BlockSpec((tm, h), lambda i: (i, 0)))
        args.append(residual.astype(jnp.bfloat16))
    in_specs += [
        pl.BlockSpec((1, h), lambda i: (0, 0)),
        pl.BlockSpec((1, h), lambda i: (0, 0)),
    ]
    args += [gamma.astype(jnp.float32), beta.astype(jnp.float32)]
    return pl.pallas_call(
        kernel,
        out_shape=jax.ShapeDtypeStruct((m, h), out_dtype),
        grid=(m // tm,),
        in_specs=in_specs,
        out_specs=pl.BlockSpec((tm, h), lambda i: (i, 0)),
        compiler_params=pltpu.CompilerParams(dimension_semantics=("parallel",)),
    )(*args)


# -----------------------------------------------------------------------------
# Kernel 3: fused masked attention for one (batch, head):
#   softmax( (Q K^T) * scale + mask_bias ) @ V
# -----------------------------------------------------------------------------
def _attention_kernel(q_ref, k_ref, v_ref, m_ref, o_ref, *, scale):
    q = q_ref[0, 0]            # (S, D) bf16
    k = k_ref[0, 0]            # (S, D) bf16
    v = v_ref[0, 0]            # (S, D) bf16
    s = jax.lax.dot_general(
        q, k, (((1,), (1,)), ((), ())), preferred_element_type=jnp.float32
    )                          # (S, S) f32
    s = s * scale + m_ref[0]   # mask bias (1, S) broadcast over query rows
    s_max = jnp.max(s, axis=-1, keepdims=True)
    p = jnp.exp(s - s_max)
    denom = jnp.sum(p, axis=-1, keepdims=True)
    p = p * pl.reciprocal(denom, approx=True)
    o = jnp.dot(p.astype(jnp.bfloat16), v, preferred_element_type=jnp.float32)
    o_ref[0, 0] = o.astype(o_ref.dtype)


def multihead_attention(q, k, v, mask_bias, *, out_dtype=jnp.bfloat16):
    b, h, s, d = q.shape
    kernel = functools.partial(_attention_kernel, scale=1.0 / math.sqrt(d))
    qkv_spec = pl.BlockSpec((1, 1, s, d), lambda bi, hi: (bi, hi, 0, 0))
    return pl.pallas_call(
        kernel,
        out_shape=jax.ShapeDtypeStruct((b, h, s, d), out_dtype),
        grid=(b, h),
        in_specs=[
            qkv_spec,
            qkv_spec,
            qkv_spec,
            pl.BlockSpec((1, 1, s), lambda bi, hi: (bi, 0, 0)),
        ],
        out_specs=pl.BlockSpec((1, 1, s, d), lambda bi, hi: (bi, hi, 0, 0)),
        compiler_params=pltpu.CompilerParams(
            dimension_semantics=("parallel", "parallel")
        ),
    )(
        q.astype(jnp.bfloat16),
        k.astype(jnp.bfloat16),
        v.astype(jnp.bfloat16),
        mask_bias.astype(jnp.float32),
    )


# -----------------------------------------------------------------------------
# Model forward == self.fc(self.bert(input_ids, attention_mask).pooler_output)
# -----------------------------------------------------------------------------
def drug_interaction_transformer_forward(params, input_ids, attention_mask):
    b, s = input_ids.shape
    h_dim = HIDDEN

    # Embeddings (token gather done in XLA; not worth a Pallas DMA-gather here)
    tok = jnp.take(params["word_emb"], input_ids, axis=0)            # (B,S,H)
    pos = params["pos_emb"][:s][None, :, :]                          # (1,S,H)
    typ = params["type_emb"][0][None, None, :]                       # token_type_ids = 0
    emb = (tok + pos + typ).reshape(b * s, h_dim)
    h = layernorm(emb, params["emb_ln_g"], params["emb_ln_b"])       # (B*S,H) bf16

    # BERT-style additive attention mask: 0 for keep, -10000 for padding
    mask_bias = ((1.0 - attention_mask.astype(jnp.float32)) * -10000.0).reshape(b, 1, s)

    def split_heads(t):  # (B*S, H) -> (B, heads, S, D)
        return t.reshape(b, s, NUM_HEADS, HEAD_DIM).transpose(0, 2, 1, 3)

    for layer in params["layers"]:
        q = linear(h, layer["wq"], layer["bq"])
        k = linear(h, layer["wk"], layer["bk"])
        v = linear(h, layer["wv"], layer["bv"])
        ctx = multihead_attention(split_heads(q), split_heads(k), split_heads(v),
                                  mask_bias)                          # (B,heads,S,D)
        ctx = ctx.transpose(0, 2, 1, 3).reshape(b * s, h_dim)
        attn_out = linear(ctx, layer["wo"], layer["bo"])
        h = layernorm(attn_out, layer["ln1_g"], layer["ln1_b"], residual=h)
        ff = linear(h, layer["w_in"], layer["b_in"], activation="gelu")
        ff = linear(ff, layer["w_out"], layer["b_out"])
        h = layernorm(ff, layer["ln2_g"], layer["ln2_b"], residual=h)

    # Pooler: tanh(W_p @ h[CLS] + b_p)
    cls = h.reshape(b, s, h_dim)[:, 0, :]                             # (B, H)
    pooled = linear(cls, params["pool_w"], params["pool_b"], activation="tanh")

    # Final fc (H -> 1): lane-padded to 128 output columns, sliced after.
    logits = linear(pooled, params["fc_w_pad"], params["fc_b_pad"],
                    out_dtype=jnp.float32)[:, :1]                     # (B, 1)
    return logits


# -----------------------------------------------------------------------------
# Parameter init (deterministic; pretrained weights not available in-script)
# -----------------------------------------------------------------------------
def init_params(key):
    kit = iter(jax.random.split(key, 64))

    def nrm(shape, scale=0.02):
        return scale * jax.random.normal(next(kit), shape, jnp.float32)

    layers = []
    for _ in range(NUM_LAYERS):
        layers.append({
            "wq": nrm((HIDDEN, HIDDEN)), "bq": jnp.zeros((1, HIDDEN), jnp.float32),
            "wk": nrm((HIDDEN, HIDDEN)), "bk": jnp.zeros((1, HIDDEN), jnp.float32),
            "wv": nrm((HIDDEN, HIDDEN)), "bv": jnp.zeros((1, HIDDEN), jnp.float32),
            "wo": nrm((HIDDEN, HIDDEN)), "bo": jnp.zeros((1, HIDDEN), jnp.float32),
            "ln1_g": jnp.ones((1, HIDDEN), jnp.float32),
            "ln1_b": jnp.zeros((1, HIDDEN), jnp.float32),
            "w_in": nrm((HIDDEN, INTERMEDIATE)),
            "b_in": jnp.zeros((1, INTERMEDIATE), jnp.float32),
            "w_out": nrm((INTERMEDIATE, HIDDEN)),
            "b_out": jnp.zeros((1, HIDDEN), jnp.float32),
            "ln2_g": jnp.ones((1, HIDDEN), jnp.float32),
            "ln2_b": jnp.zeros((1, HIDDEN), jnp.float32),
        })

    fc_w = nrm((HIDDEN, 1))
    fc_w_pad = jnp.zeros((HIDDEN, 128), jnp.float32).at[:, 0].set(fc_w[:, 0])
    fc_b_pad = jnp.zeros((1, 128), jnp.float32)

    return {
        "word_emb": nrm((VOCAB, HIDDEN)),
        "pos_emb": nrm((MAX_POS, HIDDEN)),
        "type_emb": nrm((2, HIDDEN)),
        "emb_ln_g": jnp.ones((1, HIDDEN), jnp.float32),
        "emb_ln_b": jnp.zeros((1, HIDDEN), jnp.float32),
        "layers": layers,
        "pool_w": nrm((HIDDEN, HIDDEN)),
        "pool_b": jnp.zeros((1, HIDDEN), jnp.float32),
        "fc_w_pad": fc_w_pad,
        "fc_b_pad": fc_b_pad,
    }


if __name__ == "__main__":
    key = jax.random.PRNGKey(0)
    k_ids, k_params = jax.random.split(key)

    batch, seq = 2, 128
    input_ids = jax.random.randint(k_ids, (batch, seq), 0, VOCAB, dtype=jnp.int32)
    # attention_mask: batch element 1 has 16 padding tokens at the end
    attention_mask = jnp.ones((batch, seq), jnp.int32)
    attention_mask = attention_mask.at[1, seq - 16:].set(0)

    params = init_params(k_params)

    fwd = jax.jit(drug_interaction_transformer_forward)
    out = fwd(params, input_ids, attention_mask)
    jax.block_until_ready(out)

    assert out.shape == (batch, 1)
    assert bool(jnp.all(jnp.isfinite(out)))
    print("KERNEL_OK")
</pallas_src>

<mosaic_0001>
module attributes {stable_mosaic.version = 11 : i64} {
  func.func @_ln_kernel(%arg0: i32, %arg1: memref<128x256xbf16, #tpu.memory_space<vmem>>, %arg2: memref<1x256xf32, #tpu.memory_space<vmem>>, %arg3: memref<1x256xf32, #tpu.memory_space<vmem>>, %arg4: memref<128x256xbf16, #tpu.memory_space<vmem>>) attributes {dimension_semantics = [#tpu.dimension_semantics<parallel>], iteration_bounds = array<i64: 2>, scalar_prefetch = 0 : i64, scratch_operands = 0 : i64, tpu.core_type = #tpu.core_type<tc>, window_params = [{transform_indices = @transform_0, window_bounds = array<i64: 128, 256>}, {pipeline_mode = #tpu.pipeline_mode<synchronous>, transform_indices = @transform_1, window_bounds = array<i64: 1, 256>}, {pipeline_mode = #tpu.pipeline_mode<synchronous>, transform_indices = @transform_2, window_bounds = array<i64: 1, 256>}, {transform_indices = @transform_3, window_bounds = array<i64: 128, 256>}]} {
    %c0 = arith.constant 0 : index
    %c0_0 = arith.constant 0 : index
    %0 = vector.load %arg1[%c0, %c0_0] : memref<128x256xbf16, #tpu.memory_space<vmem>>, vector<128x256xbf16>
    %1 = arith.extf %0 : vector<128x256xbf16> to vector<128x256xf32>
    %cst = arith.constant dense<0.000000e+00> : vector<128xf32>
    %2 = vector.multi_reduction <add>, %1, %cst [1] : vector<128x256xf32> to vector<128xf32>
    %3 = vector.shape_cast %2 : vector<128xf32> to vector<128x1xf32>
    %cst_1 = arith.constant 2.560000e+02 : f32
    %4 = vector.broadcast %cst_1 : f32 to vector<128x1xf32>
    %5 = arith.divf %3, %4 : vector<128x1xf32>
    %6 = vector.broadcast %5 : vector<128x1xf32> to vector<128x256xf32>
    %7 = arith.subf %1, %6 : vector<128x256xf32>
    %8 = arith.mulf %7, %7 : vector<128x256xf32>
    %cst_2 = arith.constant dense<0.000000e+00> : vector<128xf32>
    %9 = vector.multi_reduction <add>, %8, %cst_2 [1] : vector<128x256xf32> to vector<128xf32>
    %10 = vector.shape_cast %9 : vector<128xf32> to vector<128x1xf32>
    %cst_3 = arith.constant 2.560000e+02 : f32
    %11 = vector.broadcast %cst_3 : f32 to vector<128x1xf32>
    %12 = arith.divf %10, %11 : vector<128x1xf32>
    %cst_4 = arith.constant 9.99999996E-13 : f32
    %13 = vector.broadcast %cst_4 : f32 to vector<128x1xf32>
    %14 = arith.addf %12, %13 : vector<128x1xf32>
    %15 = math.rsqrt %14 : vector<128x1xf32>
    %16 = vector.broadcast %15 : vector<128x1xf32> to vector<128x256xf32>
    %17 = arith.mulf %7, %16 : vector<128x256xf32>
    %c0_5 = arith.constant 0 : index
    %c0_6 = arith.constant 0 : index
    %18 = vector.load %arg2[%c0_5, %c0_6] : memref<1x256xf32, #tpu.memory_space<vmem>>, vector<1x256xf32>
    %19 = vector.broadcast %18 : vector<1x256xf32> to vector<128x256xf32>
    %20 = arith.mulf %17, %19 : vector<128x256xf32>
    %c0_7 = arith.constant 0 : index
    %c0_8 = arith.constant 0 : index
    %21 = vector.load %arg3[%c0_7, %c0_8] : memref<1x256xf32, #tpu.memory_space<vmem>>, vector<1x256xf32>
    %22 = vector.broadcast %21 : vector<1x256xf32> to vector<128x256xf32>
    %23 = arith.addf %20, %22 : vector<128x256xf32>
    %24 = arith.truncf %23 : vector<128x256xf32> to vector<128x256xbf16>
    %c0_9 = arith.constant 0 : index
    %c0_10 = arith.constant 0 : index
    %25 = vector.load %arg4[%c0_9, %c0_10] : memref<128x256xbf16, #tpu.memory_space<vmem>>, vector<128x256xbf16>
    tpu.vector_store %arg4[%c0_9, %c0_10], %24 {strides = array<i32>} : memref<128x256xbf16, #tpu.memory_space<vmem>>, vector<128x256xbf16>,
    return
  }
  func.func @transform_0(%arg0: i32) -> (i32, i32) {
    %c0_i32 = arith.constant 0 : i32
    %c0_i32_0 = arith.constant 0 : i32
    return %arg0, %c0_i32 : i32, i32
  }
  func.func @transform_1(%arg0: i32) -> (i32, i32) {
    %c0_i32 = arith.constant 0 : i32
    %c0_i32_0 = arith.constant 0 : i32
    %c0_i32_1 = arith.constant 0 : i32
    return %c0_i32, %c0_i32_0 : i32, i32
  }
  func.func @transform_2(%arg0: i32) -> (i32, i32) {
    %c0_i32 = arith.constant 0 : i32
    %c0_i32_0 = arith.constant 0 : i32
    %c0_i32_1 = arith.constant 0 : i32
    return %c0_i32, %c0_i32_0 : i32, i32
  }
  func.func @transform_3(%arg0: i32) -> (i32, i32) {
    %c0_i32 = arith.constant 0 : i32
    %c0_i32_0 = arith.constant 0 : i32
    return %arg0, %c0_i32 : i32, i32
  }
}

module attributes {stable_mosaic.version = 11 : i64} {
  func.func @_linear_kernel(%arg0: i32, %arg1: memref<128x256xbf16, #tpu.memory_space<vmem>>, %arg2: memref<256x256xbf16, #tpu.memory_space<vmem>>, %arg3: memref<1x256xf32, #tpu.memory_space<vmem>>, %arg4: memref<128x256xbf16, #tpu.memory_space<vmem>>) attributes {dimension_semantics = [#tpu.dimension_semantics<parallel>], iteration_bounds = array<i64: 2>, scalar_prefetch = 0 : i64, scratch_operands = 0 : i64, tpu.core_type = #tpu.core_type<tc>, window_params = [{transform_indices = @transform_0, window_bounds = array<i64: 128, 256>}, {pipeline_mode = #tpu.pipeline_mode<synchronous>, transform_indices = @transform_1, window_bounds = array<i64: 256, 256>}, {pipeline_mode = #tpu.pipeline_mode<synchronous>, transform_indices = @transform_2, window_bounds = array<i64: 1, 256>}, {transform_indices = @transform_3, window_bounds = array<i64: 128, 256>}]} {
    %c0 = arith.constant 0 : index
    %c0_0 = arith.constant 0 : index
    %0 = vector.load %arg1[%c0, %c0_0] : memref<128x256xbf16, #tpu.memory_space<vmem>>, vector<128x256xbf16>
    %c0_1 = arith.constant 0 : index
    %c0_2 = arith.constant 0 : index
    %1 = vector.load %arg2[%c0_1, %c0_2] : memref<256x256xbf16, #tpu.memory_space<vmem>>, vector<256x256xbf16>
    %cst = arith.constant dense<0.000000e+00> : vector<128x256xf32>
    %2 = tpu.matmul %0, %1, %cst {dimension_numbers = #tpu.dot_dimension_numbers<[1], [0], [0], [1], [0, 0, 1, 1], [], []>} : vector<128x256xbf16>, vector<256x256xbf16>, vector<128x256xf32> -> vector<128x256xf32>
    %c0_3 = arith.constant 0 : index
    %c0_4 = arith.constant 0 : index
    %3 = vector.load %arg3[%c0_3, %c0_4] : memref<1x256xf32, #tpu.memory_space<vmem>>, vector<1x256xf32>
    %4 = vector.broadcast %3 : vector<1x256xf32> to vector<128x256xf32>
    %5 = arith.addf %2, %4 : vector<128x256xf32>
    %6 = arith.truncf %5 : vector<128x256xf32> to vector<128x256xbf16>
    %c0_5 = arith.constant 0 : index
    %c0_6 = arith.constant 0 : index
    %7 = vector.load %arg4[%c0_5, %c0_6] : memref<128x256xbf16, #tpu.memory_space<vmem>>, vector<128x256xbf16>
    tpu.vector_store %arg4[%c0_5, %c0_6], %6 {strides = array<i32>} : memref<128x256xbf16, #tpu.memory_space<vmem>>, vector<128x256xbf16>,
    return
  }
  func.func @transform_0(%arg0: i32) -> (i32, i32) {
    %c0_i32 = arith.constant 0 : i32
    %c0_i32_0 = arith.constant 0 : i32
    return %arg0, %c0_i32 : i32, i32
  }
  func.func @transform_1(%arg0: i32) -> (i32, i32) {
    %c0_i32 = arith.constant 0 : i32
    %c0_i32_0 = arith.constant 0 : i32
    %c0_i32_1 = arith.constant 0 : i32
    return %c0_i32, %c0_i32_0 : i32, i32
  }
  func.func @transform_2(%arg0: i32) -> (i32, i32) {
    %c0_i32 = arith.constant 0 : i32
    %c0_i32_0 = arith.constant 0 : i32
    %c0_i32_1 = arith.constant 0 : i32
    return %c0_i32, %c0_i32_0 : i32, i32
  }
  func.func @transform_3(%arg0: i32) -> (i32, i32) {
    %c0_i32 = arith.constant 0 : i32
    %c0_i32_0 = arith.constant 0 : i32
    return %arg0, %c0_i32 : i32, i32
  }
}

module attributes {stable_mosaic.version = 11 : i64} {
  func.func @_attention_kernel(%arg0: i32, %arg1: i32, %arg2: memref<1x1x128x128xbf16, #tpu.memory_space<vmem>>, %arg3: memref<1x1x128x128xbf16, #tpu.memory_space<vmem>>, %arg4: memref<1x1x128x128xbf16, #tpu.memory_space<vmem>>, %arg5: memref<1x1x128xf32, #tpu.memory_space<vmem>>, %arg6: memref<1x1x128x128xbf16, #tpu.memory_space<vmem>>) attributes {dimension_semantics = [#tpu.dimension_semantics<parallel>, #tpu.dimension_semantics<parallel>], iteration_bounds = array<i64: 2, 2>, scalar_prefetch = 0 : i64, scratch_operands = 0 : i64, tpu.core_type = #tpu.core_type<tc>, window_params = [{transform_indices = @transform_0, window_bounds = array<i64: 1, 1, 128, 128>}, {transform_indices = @transform_1, window_bounds = array<i64: 1, 1, 128, 128>}, {transform_indices = @transform_2, window_bounds = array<i64: 1, 1, 128, 128>}, {transform_indices = @transform_3, window_bounds = array<i64: 1, 1, 128>}, {transform_indices = @transform_4, window_bounds = array<i64: 1, 1, 128, 128>}]} {
    %c0 = arith.constant 0 : index
    %c0_0 = arith.constant 0 : index
    %c0_1 = arith.constant 0 : index
    %c0_2 = arith.constant 0 : index
    %0 = vector.load %arg2[%c0, %c0_0, %c0_1, %c0_2] : memref<1x1x128x128xbf16, #tpu.memory_space<vmem>>, vector<1x1x128x128xbf16>
    %1 = vector.shape_cast %0 : vector<1x1x128x128xbf16> to vector<128x128xbf16>
    %c0_3 = arith.constant 0 : index
    %c0_4 = arith.constant 0 : index
    %c0_5 = arith.constant 0 : index
    %c0_6 = arith.constant 0 : index
    %2 = vector.load %arg3[%c0_3, %c0_4, %c0_5, %c0_6] : memref<1x1x128x128xbf16, #tpu.memory_space<vmem>>, vector<1x1x128x128xbf16>
    %3 = vector.shape_cast %2 : vector<1x1x128x128xbf16> to vector<128x128xbf16>
    %c0_7 = arith.constant 0 : index
    %c0_8 = arith.constant 0 : index
    %c0_9 = arith.constant 0 : index
    %c0_10 = arith.constant 0 : index
    %4 = vector.load %arg4[%c0_7, %c0_8, %c0_9, %c0_10] : memref<1x1x128x128xbf16, #tpu.memory_space<vmem>>, vector<1x1x128x128xbf16>
    %5 = vector.shape_cast %4 : vector<1x1x128x128xbf16> to vector<128x128xbf16>
    %cst = arith.constant dense<0.000000e+00> : vector<128x128xf32>
    %6 = tpu.matmul %1, %3, %cst {dimension_numbers = #tpu.dot_dimension_numbers<[1], [1], [0], [0], [0, 0, 1, 0], [], []>} : vector<128x128xbf16>, vector<128x128xbf16>, vector<128x128xf32> -> vector<128x128xf32>
    %cst_11 = arith.constant 0.0883883461 : f32
    %7 = vector.broadcast %cst_11 : f32 to vector<128x128xf32>
    %8 = arith.mulf %6, %7 : vector<128x128xf32>
    %c0_12 = arith.constant 0 : index
    %c0_13 = arith.constant 0 : index
    %c0_14 = arith.constant 0 : index
    %9 = vector.load %arg5[%c0_12, %c0_13, %c0_14] : memref<1x1x128xf32, #tpu.memory_space<vmem>>, vector<1x1x128xf32>
    %10 = vector.shape_cast %9 : vector<1x1x128xf32> to vector<1x128xf32>
    %11 = vector.broadcast %10 : vector<1x128xf32> to vector<128x128xf32>
    %12 = arith.addf %8, %11 : vector<128x128xf32>
    %cst_15 = arith.constant dense<0xFF800000> : vector<128xf32>
    %13 = vector.multi_reduction <maximumf>, %12, %cst_15 [1] : vector<128x128xf32> to vector<128xf32>
    %14 = vector.shape_cast %13 : vector<128xf32> to vector<128x1xf32>
    %15 = vector.broadcast %14 : vector<128x1xf32> to vector<128x128xf32>
    %16 = arith.subf %12, %15 : vector<128x128xf32>
    %17 = math.exp %16 : vector<128x128xf32>
    %cst_16 = arith.constant dense<0.000000e+00> : vector<128xf32>
    %18 = vector.multi_reduction <add>, %17, %cst_16 [1] : vector<128x128xf32> to vector<128xf32>
    %19 = vector.shape_cast %18 : vector<128xf32> to vector<128x1xf32>
    %20 = tpu.reciprocal %19 {approx = true} : vector<128x1xf32> -> vector<128x1xf32>
    %21 = vector.broadcast %20 : vector<128x1xf32> to vector<128x128xf32>
    %22 = arith.mulf %17, %21 : vector<128x128xf32>
    %23 = arith.truncf %22 : vector<128x128xf32> to vector<128x128xbf16>
    %cst_17 = arith.constant dense<0.000000e+00> : vector<128x128xf32>
    %24 = tpu.matmul %23, %5, %cst_17 {dimension_numbers = #tpu.dot_dimension_numbers<[1], [0], [0], [1], [0, 0, 1, 1], [], []>} : vector<128x128xbf16>, vector<128x128xbf16>, vector<128x128xf32> -> vector<128x128xf32>
    %25 = arith.truncf %24 : vector<128x128xf32> to vector<128x128xbf16>
    %c0_18 = arith.constant 0 : index
    %c0_19 = arith.constant 0 : index
    %c0_20 = arith.constant 0 : index
    %c0_21 = arith.constant 0 : index
    %26 = vector.load %arg6[%c0_18, %c0_19, %c0_20, %c0_21] : memref<1x1x128x128xbf16, #tpu.memory_space<vmem>>, vector<1x1x128x128xbf16>
    %27 = vector.shape_cast %26 : vector<1x1x128x128xbf16> to vector<128x128xbf16>
    %28 = vector.shape_cast %25 : vector<128x128xbf16> to vector<1x1x128x128xbf16>
    tpu.vector_store %arg6[%c0_18, %c0_19, %c0_20, %c0_21], %28 {strides = array<i32>} : memref<1x1x128x128xbf16, #tpu.memory_space<vmem>>, vector<1x1x128x128xbf16>,
    return
  }
  func.func @transform_0(%arg0: i32, %arg1: i32) -> (i32, i32, i32, i32) {
    %c0_i32 = arith.constant 0 : i32
    %c0_i32_0 = arith.constant 0 : i32
    %c0_i32_1 = arith.constant 0 : i32
    return %arg0, %arg1, %c0_i32, %c0_i32_0 : i32, i32, i32, i32
  }
  func.func @transform_1(%arg0: i32, %arg1: i32) -> (i32, i32, i32, i32) {
    %c0_i32 = arith.constant 0 : i32
    %c0_i32_0 = arith.constant 0 : i32
    %c0_i32_1 = arith.constant 0 : i32
    return %arg0, %arg1, %c0_i32, %c0_i32_0 : i32, i32, i32, i32
  }
  func.func @transform_2(%arg0: i32, %arg1: i32) -> (i32, i32, i32, i32) {
    %c0_i32 = arith.constant 0 : i32
    %c0_i32_0 = arith.constant 0 : i32
    %c0_i32_1 = arith.constant 0 : i32
    return %arg0, %arg1, %c0_i32, %c0_i32_0 : i32, i32, i32, i32
  }
  func.func @transform_3(%arg0: i32, %arg1: i32) -> (i32, i32, i32) {
    %c0_i32 = arith.constant 0 : i32
    %c0_i32_0 = arith.constant 0 : i32
    %c0_i32_1 = arith.constant 0 : i32
    return %arg0, %c0_i32, %c0_i32_0 : i32, i32, i32
  }
  func.func @transform_4(%arg0: i32, %arg1: i32) -> (i32, i32, i32, i32) {
    %c0_i32 = arith.constant 0 : i32
    %c0_i32_0 = arith.constant 0 : i32
    %c0_i32_1 = arith.constant 0 : i32
    return %arg0, %arg1, %c0_i32, %c0_i32_0 : i32, i32, i32, i32
  }
}

module attributes {stable_mosaic.version = 11 : i64} {
  func.func @_ln_kernel(%arg0: i32, %arg1: memref<128x256xbf16, #tpu.memory_space<vmem>>, %arg2: memref<128x256xbf16, #tpu.memory_space<vmem>>, %arg3: memref<1x256xf32, #tpu.memory_space<vmem>>, %arg4: memref<1x256xf32, #tpu.memory_space<vmem>>, %arg5: memref<128x256xbf16, #tpu.memory_space<vmem>>) attributes {dimension_semantics = [#tpu.dimension_semantics<parallel>], iteration_bounds = array<i64: 2>, scalar_prefetch = 0 : i64, scratch_operands = 0 : i64, tpu.core_type = #tpu.core_type<tc>, window_params = [{transform_indices = @transform_0, window_bounds = array<i64: 128, 256>}, {transform_indices = @transform_1, window_bounds = array<i64: 128, 256>}, {pipeline_mode = #tpu.pipeline_mode<synchronous>, transform_indices = @transform_2, window_bounds = array<i64: 1, 256>}, {pipeline_mode = #tpu.pipeline_mode<synchronous>, transform_indices = @transform_3, window_bounds = array<i64: 1, 256>}, {transform_indices = @transform_4, window_bounds = array<i64: 128, 256>}]} {
    %c0 = arith.constant 0 : index
    %c0_0 = arith.constant 0 : index
    %0 = vector.load %arg1[%c0, %c0_0] : memref<128x256xbf16, #tpu.memory_space<vmem>>, vector<128x256xbf16>
    %1 = arith.extf %0 : vector<128x256xbf16> to vector<128x256xf32>
    %c0_1 = arith.constant 0 : index
    %c0_2 = arith.constant 0 : index
    %2 = vector.load %arg2[%c0_1, %c0_2] : memref<128x256xbf16, #tpu.memory_space<vmem>>, vector<128x256xbf16>
    %3 = arith.extf %2 : vector<128x256xbf16> to vector<128x256xf32>
    %4 = arith.addf %1, %3 : vector<128x256xf32>
    %cst = arith.constant dense<0.000000e+00> : vector<128xf32>
    %5 = vector.multi_reduction <add>, %4, %cst [1] : vector<128x256xf32> to vector<128xf32>
    %6 = vector.shape_cast %5 : vector<128xf32> to vector<128x1xf32>
    %cst_3 = arith.constant 2.560000e+02 : f32
    %7 = vector.broadcast %cst_3 : f32 to vector<128x1xf32>
    %8 = arith.divf %6, %7 : vector<128x1xf32>
    %9 = vector.broadcast %8 : vector<128x1xf32> to vector<128x256xf32>
    %10 = arith.subf %4, %9 : vector<128x256xf32>
    %11 = arith.mulf %10, %10 : vector<128x256xf32>
    %cst_4 = arith.constant dense<0.000000e+00> : vector<128xf32>
    %12 = vector.multi_reduction <add>, %11, %cst_4 [1] : vector<128x256xf32> to vector<128xf32>
    %13 = vector.shape_cast %12 : vector<128xf32> to vector<128x1xf32>
    %cst_5 = arith.constant 2.560000e+02 : f32
    %14 = vector.broadcast %cst_5 : f32 to vector<128x1xf32>
    %15 = arith.divf %13, %14 : vector<128x1xf32>
    %cst_6 = arith.constant 9.99999996E-13 : f32
    %16 = vector.broadcast %cst_6 : f32 to vector<128x1xf32>
    %17 = arith.addf %15, %16 : vector<128x1xf32>
    %18 = math.rsqrt %17 : vector<128x1xf32>
    %19 = vector.broadcast %18 : vector<128x1xf32> to vector<128x256xf32>
    %20 = arith.mulf %10, %19 : vector<128x256xf32>
    %c0_7 = arith.constant 0 : index
    %c0_8 = arith.constant 0 : index
    %21 = vector.load %arg3[%c0_7, %c0_8] : memref<1x256xf32, #tpu.memory_space<vmem>>, vector<1x256xf32>
    %22 = vector.broadcast %21 : vector<1x256xf32> to vector<128x256xf32>
    %23 = arith.mulf %20, %22 : vector<128x256xf32>
    %c0_9 = arith.constant 0 : index
    %c0_10 = arith.constant 0 : index
    %24 = vector.load %arg4[%c0_9, %c0_10] : memref<1x256xf32, #tpu.memory_space<vmem>>, vector<1x256xf32>
    %25 = vector.broadcast %24 : vector<1x256xf32> to vector<128x256xf32>
    %26 = arith.addf %23, %25 : vector<128x256xf32>
    %27 = arith.truncf %26 : vector<128x256xf32> to vector<128x256xbf16>
    %c0_11 = arith.constant 0 : index
    %c0_12 = arith.constant 0 : index
    %28 = vector.load %arg5[%c0_11, %c0_12] : memref<128x256xbf16, #tpu.memory_space<vmem>>, vector<128x256xbf16>
    tpu.vector_store %arg5[%c0_11, %c0_12], %27 {strides = array<i32>} : memref<128x256xbf16, #tpu.memory_space<vmem>>, vector<128x256xbf16>,
    return
  }
  func.func @transform_0(%arg0: i32) -> (i32, i32) {
    %c0_i32 = arith.constant 0 : i32
    %c0_i32_0 = arith.constant 0 : i32
    return %arg0, %c0_i32 : i32, i32
  }
  func.func @transform_1(%arg0: i32) -> (i32, i32) {
    %c0_i32 = arith.constant 0 : i32
    %c0_i32_0 = arith.constant 0 : i32
    return %arg0, %c0_i32 : i32, i32
  }
  func.func @transform_2(%arg0: i32) -> (i32, i32) {
    %c0_i32 = arith.constant 0 : i32
    %c0_i32_0 = arith.constant 0 : i32
    %c0_i32_1 = arith.constant 0 : i32
    return %c0_i32, %c0_i32_0 : i32, i32
  }
  func.func @transform_3(%arg0: i32) -> (i32, i32) {
    %c0_i32 = arith.constant 0 : i32
    %c0_i32_0 = arith.constant 0 : i32
    %c0_i32_1 = arith.constant 0 : i32
    return %c0_i32, %c0_i32_0 : i32, i32
  }
  func.func @transform_4(%arg0: i32) -> (i32, i32) {
    %c0_i32 = arith.constant 0 : i32
    %c0_i32_0 = arith.constant 0 : i32
    return %arg0, %c0_i32 : i32, i32
  }
}

module attributes {stable_mosaic.version = 11 : i64} {
  func.func @_linear_kernel(%arg0: i32, %arg1: memref<128x256xbf16, #tpu.memory_space<vmem>>, %arg2: memref<256x512xbf16, #tpu.memory_space<vmem>>, %arg3: memref<1x512xf32, #tpu.memory_space<vmem>>, %arg4: memref<128x512xbf16, #tpu.memory_space<vmem>>) attributes {dimension_semantics = [#tpu.dimension_semantics<parallel>], iteration_bounds = array<i64: 2>, scalar_prefetch = 0 : i64, scratch_operands = 0 : i64, tpu.core_type = #tpu.core_type<tc>, window_params = [{transform_indices = @transform_0, window_bounds = array<i64: 128, 256>}, {pipeline_mode = #tpu.pipeline_mode<synchronous>, transform_indices = @transform_1, window_bounds = array<i64: 256, 512>}, {pipeline_mode = #tpu.pipeline_mode<synchronous>, transform_indices = @transform_2, window_bounds = array<i64: 1, 512>}, {transform_indices = @transform_3, window_bounds = array<i64: 128, 512>}]} {
    %c0 = arith.constant 0 : index
    %c0_0 = arith.constant 0 : index
    %0 = vector.load %arg1[%c0, %c0_0] : memref<128x256xbf16, #tpu.memory_space<vmem>>, vector<128x256xbf16>
    %c0_1 = arith.constant 0 : index
    %c0_2 = arith.constant 0 : index
    %1 = vector.load %arg2[%c0_1, %c0_2] : memref<256x512xbf16, #tpu.memory_space<vmem>>, vector<256x512xbf16>
    %cst = arith.constant dense<0.000000e+00> : vector<128x512xf32>
    %2 = tpu.matmul %0, %1, %cst {dimension_numbers = #tpu.dot_dimension_numbers<[1], [0], [0], [1], [0, 0, 1, 1], [], []>} : vector<128x256xbf16>, vector<256x512xbf16>, vector<128x512xf32> -> vector<128x512xf32>
    %c0_3 = arith.constant 0 : index
    %c0_4 = arith.constant 0 : index
    %3 = vector.load %arg3[%c0_3, %c0_4] : memref<1x512xf32, #tpu.memory_space<vmem>>, vector<1x512xf32>
    %4 = vector.broadcast %3 : vector<1x512xf32> to vector<128x512xf32>
    %5 = arith.addf %2, %4 : vector<128x512xf32>
    %cst_5 = arith.constant 5.000000e-01 : f32
    %6 = vector.broadcast %cst_5 : f32 to vector<128x512xf32>
    %7 = arith.mulf %6, %5 : vector<128x512xf32>
    %cst_6 = arith.constant 4.471500e-02 : f32
    %8 = vector.broadcast %cst_6 : f32 to vector<128x512xf32>
    %9 = arith.mulf %8, %5 : vector<128x512xf32>
    %10 = arith.mulf %9, %5 : vector<128x512xf32>
    %11 = arith.mulf %10, %5 : vector<128x512xf32>
    %12 = arith.addf %5, %11 : vector<128x512xf32>
    %cst_7 = arith.constant 0.797884583 : f32
    %13 = vector.broadcast %cst_7 : f32 to vector<128x512xf32>
    %14 = arith.mulf %13, %12 : vector<128x512xf32>
    %15 = math.tanh %14 : vector<128x512xf32>
    %cst_8 = arith.constant 1.000000e+00 : f32
    %16 = vector.broadcast %cst_8 : f32 to vector<128x512xf32>
    %17 = arith.addf %16, %15 : vector<128x512xf32>
    %18 = arith.mulf %7, %17 : vector<128x512xf32>
    %19 = arith.truncf %18 : vector<128x512xf32> to vector<128x512xbf16>
    %c0_9 = arith.constant 0 : index
    %c0_10 = arith.constant 0 : index
    %20 = vector.load %arg4[%c0_9, %c0_10] : memref<128x512xbf16, #tpu.memory_space<vmem>>, vector<128x512xbf16>
    tpu.vector_store %arg4[%c0_9, %c0_10], %19 {strides = array<i32>} : memref<128x512xbf16, #tpu.memory_space<vmem>>, vector<128x512xbf16>,
    return
  }
  func.func @transform_0(%arg0: i32) -> (i32, i32) {
    %c0_i32 = arith.constant 0 : i32
    %c0_i32_0 = arith.constant 0 : i32
    return %arg0, %c0_i32 : i32, i32
  }
  func.func @transform_1(%arg0: i32) -> (i32, i32) {
    %c0_i32 = arith.constant 0 : i32
    %c0_i32_0 = arith.constant 0 : i32
    %c0_i32_1 = arith.constant 0 : i32
    return %c0_i32, %c0_i32_0 : i32, i32
  }
  func.func @transform_2(%arg0: i32) -> (i32, i32) {
    %c0_i32 = arith.constant 0 : i32
    %c0_i32_0 = arith.constant 0 : i32
    %c0_i32_1 = arith.constant 0 : i32
    return %c0_i32, %c0_i32_0 : i32, i32
  }
  func.func @transform_3(%arg0: i32) -> (i32, i32) {
    %c0_i32 = arith.constant 0 : i32
    %c0_i32_0 = arith.constant 0 : i32
    return %arg0, %c0_i32 : i32, i32
  }
}

module attributes {stable_mosaic.version = 11 : i64} {
  func.func @_linear_kernel(%arg0: i32, %arg1: memref<128x512xbf16, #tpu.memory_space<vmem>>, %arg2: memref<512x256xbf16, #tpu.memory_space<vmem>>, %arg3: memref<1x256xf32, #tpu.memory_space<vmem>>, %arg4: memref<128x256xbf16, #tpu.memory_space<vmem>>) attributes {dimension_semantics = [#tpu.dimension_semantics<parallel>], iteration_bounds = array<i64: 2>, scalar_prefetch = 0 : i64, scratch_operands = 0 : i64, tpu.core_type = #tpu.core_type<tc>, window_params = [{transform_indices = @transform_0, window_bounds = array<i64: 128, 512>}, {pipeline_mode = #tpu.pipeline_mode<synchronous>, transform_indices = @transform_1, window_bounds = array<i64: 512, 256>}, {pipeline_mode = #tpu.pipeline_mode<synchronous>, transform_indices = @transform_2, window_bounds = array<i64: 1, 256>}, {transform_indices = @transform_3, window_bounds = array<i64: 128, 256>}]} {
    %c0 = arith.constant 0 : index
    %c0_0 = arith.constant 0 : index
    %0 = vector.load %arg1[%c0, %c0_0] : memref<128x512xbf16, #tpu.memory_space<vmem>>, vector<128x512xbf16>
    %c0_1 = arith.constant 0 : index
    %c0_2 = arith.constant 0 : index
    %1 = vector.load %arg2[%c0_1, %c0_2] : memref<512x256xbf16, #tpu.memory_space<vmem>>, vector<512x256xbf16>
    %cst = arith.constant dense<0.000000e+00> : vector<128x256xf32>
    %2 = tpu.matmul %0, %1, %cst {dimension_numbers = #tpu.dot_dimension_numbers<[1], [0], [0], [1], [0, 0, 1, 1], [], []>} : vector<128x512xbf16>, vector<512x256xbf16>, vector<128x256xf32> -> vector<128x256xf32>
    %c0_3 = arith.constant 0 : index
    %c0_4 = arith.constant 0 : index
    %3 = vector.load %arg3[%c0_3, %c0_4] : memref<1x256xf32, #tpu.memory_space<vmem>>, vector<1x256xf32>
    %4 = vector.broadcast %3 : vector<1x256xf32> to vector<128x256xf32>
    %5 = arith.addf %2, %4 : vector<128x256xf32>
    %6 = arith.truncf %5 : vector<128x256xf32> to vector<128x256xbf16>
    %c0_5 = arith.constant 0 : index
    %c0_6 = arith.constant 0 : index
    %7 = vector.load %arg4[%c0_5, %c0_6] : memref<128x256xbf16, #tpu.memory_space<vmem>>, vector<128x256xbf16>
    tpu.vector_store %arg4[%c0_5, %c0_6], %6 {strides = array<i32>} : memref<128x256xbf16, #tpu.memory_space<vmem>>, vector<128x256xbf16>,
    return
  }
  func.func @transform_0(%arg0: i32) -> (i32, i32) {
    %c0_i32 = arith.constant 0 : i32
    %c0_i32_0 = arith.constant 0 : i32
    return %arg0, %c0_i32 : i32, i32
  }
  func.func @transform_1(%arg0: i32) -> (i32, i32) {
    %c0_i32 = arith.constant 0 : i32
    %c0_i32_0 = arith.constant 0 : i32
    %c0_i32_1 = arith.constant 0 : i32
    return %c0_i32, %c0_i32_0 : i32, i32
  }
  func.func @transform_2(%arg0: i32) -> (i32, i32) {
    %c0_i32 = arith.constant 0 : i32
    %c0_i32_0 = arith.constant 0 : i32
    %c0_i32_1 = arith.constant 0 : i32
    return %c0_i32, %c0_i32_0 : i32, i32
  }
  func.func @transform_3(%arg0: i32) -> (i32, i32) {
    %c0_i32 = arith.constant 0 : i32
    %c0_i32_0 = arith.constant 0 : i32
    return %arg0, %c0_i32 : i32, i32
  }
}

module attributes {stable_mosaic.version = 11 : i64} {
  func.func @_linear_kernel(%arg0: i32, %arg1: memref<2x256xbf16, #tpu.memory_space<vmem>>, %arg2: memref<256x256xbf16, #tpu.memory_space<vmem>>, %arg3: memref<1x256xf32, #tpu.memory_space<vmem>>, %arg4: memref<2x256xbf16, #tpu.memory_space<vmem>>) attributes {dimension_semantics = [#tpu.dimension_semantics<parallel>], iteration_bounds = array<i64: 1>, scalar_prefetch = 0 : i64, scratch_operands = 0 : i64, tpu.core_type = #tpu.core_type<tc>, window_params = [{transform_indices = @transform_0, window_bounds = array<i64: 2, 256>}, {pipeline_mode = #tpu.pipeline_mode<synchronous>, transform_indices = @transform_1, window_bounds = array<i64: 256, 256>}, {pipeline_mode = #tpu.pipeline_mode<synchronous>, transform_indices = @transform_2, window_bounds = array<i64: 1, 256>}, {transform_indices = @transform_3, window_bounds = array<i64: 2, 256>}]} {
    %c0 = arith.constant 0 : index
    %c0_0 = arith.constant 0 : index
    %0 = vector.load %arg1[%c0, %c0_0] : memref<2x256xbf16, #tpu.memory_space<vmem>>, vector<2x256xbf16>
    %c0_1 = arith.constant 0 : index
    %c0_2 = arith.constant 0 : index
    %1 = vector.load %arg2[%c0_1, %c0_2] : memref<256x256xbf16, #tpu.memory_space<vmem>>, vector<256x256xbf16>
    %cst = arith.constant dense<0.000000e+00> : vector<2x256xf32>
    %2 = tpu.matmul %0, %1, %cst {dimension_numbers = #tpu.dot_dimension_numbers<[1], [0], [0], [1], [0, 0, 1, 1], [], []>} : vector<2x256xbf16>, vector<256x256xbf16>, vector<2x256xf32> -> vector<2x256xf32>
    %c0_3 = arith.constant 0 : index
    %c0_4 = arith.constant 0 : index
    %3 = vector.load %arg3[%c0_3, %c0_4] : memref<1x256xf32, #tpu.memory_space<vmem>>, vector<1x256xf32>
    %4 = vector.broadcast %3 : vector<1x256xf32> to vector<2x256xf32>
    %5 = arith.addf %2, %4 : vector<2x256xf32>
    %6 = math.tanh %5 : vector<2x256xf32>
    %7 = arith.truncf %6 : vector<2x256xf32> to vector<2x256xbf16>
    %c0_5 = arith.constant 0 : index
    %c0_6 = arith.constant 0 : index
    %8 = vector.load %arg4[%c0_5, %c0_6] : memref<2x256xbf16, #tpu.memory_space<vmem>>, vector<2x256xbf16>
    tpu.vector_store %arg4[%c0_5, %c0_6], %7 {strides = array<i32>} : memref<2x256xbf16, #tpu.memory_space<vmem>>, vector<2x256xbf16>,
    return
  }
  func.func @transform_0(%arg0: i32) -> (i32, i32) {
    %c0_i32 = arith.constant 0 : i32
    %c0_i32_0 = arith.constant 0 : i32
    return %arg0, %c0_i32 : i32, i32
  }
  func.func @transform_1(%arg0: i32) -> (i32, i32) {
    %c0_i32 = arith.constant 0 : i32
    %c0_i32_0 = arith.constant 0 : i32
    %c0_i32_1 = arith.constant 0 : i32
    return %c0_i32, %c0_i32_0 : i32, i32
  }
  func.func @transform_2(%arg0: i32) -> (i32, i32) {
    %c0_i32 = arith.constant 0 : i32
    %c0_i32_0 = arith.constant 0 : i32
    %c0_i32_1 = arith.constant 0 : i32
    return %c0_i32, %c0_i32_0 : i32, i32
  }
  func.func @transform_3(%arg0: i32) -> (i32, i32) {
    %c0_i32 = arith.constant 0 : i32
    %c0_i32_0 = arith.constant 0 : i32
    return %arg0, %c0_i32 : i32, i32
  }
}

module attributes {stable_mosaic.version = 11 : i64} {
  func.func @_linear_kernel(%arg0: i32, %arg1: memref<2x256xbf16, #tpu.memory_space<vmem>>, %arg2: memref<256x128xbf16, #tpu.memory_space<vmem>>, %arg3: memref<1x128xf32, #tpu.memory_space<vmem>>, %arg4: memref<2x128xf32, #tpu.memory_space<vmem>>) attributes {dimension_semantics = [#tpu.dimension_semantics<parallel>], iteration_bounds = array<i64: 1>, scalar_prefetch = 0 : i64, scratch_operands = 0 : i64, tpu.core_type = #tpu.core_type<tc>, window_params = [{transform_indices = @transform_0, window_bounds = array<i64: 2, 256>}, {pipeline_mode = #tpu.pipeline_mode<synchronous>, transform_indices = @transform_1, window_bounds = array<i64: 256, 128>}, {pipeline_mode = #tpu.pipeline_mode<synchronous>, transform_indices = @transform_2, window_bounds = array<i64: 1, 128>}, {transform_indices = @transform_3, window_bounds = array<i64: 2, 128>}]} {
    %c0 = arith.constant 0 : index
    %c0_0 = arith.constant 0 : index
    %0 = vector.load %arg1[%c0, %c0_0] : memref<2x256xbf16, #tpu.memory_space<vmem>>, vector<2x256xbf16>
    %c0_1 = arith.constant 0 : index
    %c0_2 = arith.constant 0 : index
    %1 = vector.load %arg2[%c0_1, %c0_2] : memref<256x128xbf16, #tpu.memory_space<vmem>>, vector<256x128xbf16>
    %cst = arith.constant dense<0.000000e+00> : vector<2x128xf32>
    %2 = tpu.matmul %0, %1, %cst {dimension_numbers = #tpu.dot_dimension_numbers<[1], [0], [0], [1], [0, 0, 1, 1], [], []>} : vector<2x256xbf16>, vector<256x128xbf16>, vector<2x128xf32> -> vector<2x128xf32>
    %c0_3 = arith.constant 0 : index
    %c0_4 = arith.constant 0 : index
    %3 = vector.load %arg3[%c0_3, %c0_4] : memref<1x128xf32, #tpu.memory_space<vmem>>, vector<1x128xf32>
    %4 = vector.broadcast %3 : vector<1x128xf32> to vector<2x128xf32>
    %5 = arith.addf %2, %4 : vector<2x128xf32>
    %c0_5 = arith.constant 0 : index
    %c0_6 = arith.constant 0 : index
    %6 = vector.load %arg4[%c0_5, %c0_6] : memref<2x128xf32, #tpu.memory_space<vmem>>, vector<2x128xf32>
    tpu.vector_store %arg4[%c0_5, %c0_6], %5 {strides = array<i32>} : memref<2x128xf32, #tpu.memory_space<vmem>>, vector<2x128xf32>,
    return
  }
  func.func @transform_0(%arg0: i32) -> (i32, i32) {
    %c0_i32 = arith.constant 0 : i32
    %c0_i32_0 = arith.constant 0 : i32
    return %arg0, %c0_i32 : i32, i32
  }
  func.func @transform_1(%arg0: i32) -> (i32, i32) {
    %c0_i32 = arith.constant 0 : i32
    %c0_i32_0 = arith.constant 0 : i32
    %c0_i32_1 = arith.constant 0 : i32
    return %c0_i32, %c0_i32_0 : i32, i32
  }
  func.func @transform_2(%arg0: i32) -> (i32, i32) {
    %c0_i32 = arith.constant 0 : i32
    %c0_i32_0 = arith.constant 0 : i32
    %c0_i32_1 = arith.constant 0 : i32
    return %c0_i32, %c0_i32_0 : i32, i32
  }
  func.func @transform_3(%arg0: i32) -> (i32, i32) {
    %c0_i32 = arith.constant 0 : i32
    %c0_i32_0 = arith.constant 0 : i32
    return %arg0, %c0_i32 : i32, i32
  }
}

</mosaic_0001>

<bundles_post_ra>
// kernel: drug_interaction_transformer_forward.21
= control target key start
LH: loop header
LB: loop body
LE: loop exit
PB: predicated region body
PF: predicated region fallthrough
CT: control target
= control target key end

     0   :  { %s887_s12 = smov 0   ;;  %s1517_s0 = inlined_call_operand.vmem [shape: bf16[256,256], index: 0, kind: input, shape index: {}]   ;;  %s1518_s1 = inlined_call_operand.vmem [shape: f32[1,256], index: 1, kind: input, shape index: {}]   ;;  %s1519_s2 = inlined_call_operand.vmem [shape: f32[1,256], index: 2, kind: input, shape index: {}]   ;;  %s1520_s3 = inlined_call_operand.vmem [shape: bf16[256,256], index: 3, kind: output, shape index: {}]  }
   0x1 LB: > { %s800_s13 = sadd.s32 4294967295, %s864_s12   ;;  %p804_p0 = scmp.ge.s32.totalorder %s864_s12, 1  ;;  %s864_s12 = sphi %s887_s12, %s13_s12  }
   0x2   : > { %p139_p1 = scmp.lt.s32.totalorder %s864_s12, 3 }
   0x4   : > { %p140_p2 = pnand %p804_p0, %p139_p1 }
   0x5   : > { %s805_s14 = sshll.u32 (!%p140_p2), %s800_s13, 4 }
   0x6   : > { %143 = sbr.rel (%p140_p2) target bundleno = 357 (0x165), region = 32  ;;  %p166_p3 = scmp.lt.s32.totalorder (!%p140_p2), %s805_s14, 31 }
   0xb   : > { %s1522_s14 = smov (!%p166_p3, %s805_s14), 31 }
   0xc   : > { %s813_s15 = sshll.u32 %s1522_s14, 3 }
   0xd   : > { %s903_s18 = scalar_lea.vmem %s1517_s0, %s813_s15  ;;  %s1320_s25 = scalar_lea.vmem %s1520_s3, %s813_s15 }
   0xe   : > { %v906_v0 = vld [vmem:[%s903_s18 + $0x20] sm:$0xff]  ;;  %v909_v1 = vld [vmem:[%s903_s18 + $0x10] sm:$0xff]  ;;  %v921_v9 = vld [vmem:[%s903_s18 + $0x28] sm:$0xff] }
   0xf   : > { %v912_v2 = vld [vmem:[%s903_s18] sm:$0xff]  ;;  %v203_v3 = vunpack.c.l.bf16 %v906_v0  ;;  %v204_v4 = vunpack.c.h.bf16 %v906_v0  ;;  %v199_v5 = vunpack.c.l.bf16 %v909_v1  ;;  %v200_v6 = vunpack.c.h.bf16 %v909_v1  ;;  %v924_v10 = vld [vmem:[%s903_s18 + $0x18] sm:$0xff]  ;;  %v935_v13 = vld [vmem:[%s903_s18 + $0x8] sm:$0xff] }
  0x10   : > { %v195_v7 = vunpack.c.l.bf16 %v912_v2  ;;  %v196_v8 = vunpack.c.h.bf16 %v912_v2  ;;  %v205_v15 = vunpack.c.l.bf16 %v921_v9  ;;  %v206_v16 = vunpack.c.h.bf16 %v921_v9  ;;  %v960_v24 = vld [vmem:[%s903_s18 + $0x40] sm:$0xff]  ;;  %v963_v25 = vld [vmem:[%s903_s18 + $0x38] sm:$0xff]  ;;  %v966_v26 = vld [vmem:[%s903_s18 + $0x30] sm:$0xff] }
  0x11   : > { %v239_v11 = vadd.f32 %v204_v4, %v203_v3  ;;  %v233_v12 = vadd.f32 %v200_v6, %v199_v5  ;;  %v201_v17 = vunpack.c.l.bf16 %v924_v10  ;;  %v202_v18 = vunpack.c.h.bf16 %v924_v10  ;;  %v987_v36 = vld [vmem:[%s903_s18 + $0x58] sm:$0xff]  ;;  %v990_v37 = vld [vmem:[%s903_s18 + $0x50] sm:$0xff]  ;;  %v993_v38 = vld [vmem:[%s903_s18 + $0x48] sm:$0xff] }
  0x12   : > { %v227_v14 = vadd.f32 %v196_v8, %v195_v7  ;;  %v197_v19 = vunpack.c.l.bf16 %v935_v13  ;;  %v198_v20 = vunpack.c.h.bf16 %v935_v13  ;;  %v242_v21 = vadd.f32 %v206_v16, %v205_v15  ;;  %v1014_v48 = vld [vmem:[%s903_s18 + $0x70] sm:$0xff]  ;;  %v1017_v49 = vld [vmem:[%s903_s18 + $0x68] sm:$0xff]  ;;  %v1020_v50 = vld [vmem:[%s903_s18 + $0x60] sm:$0xff] }
  0x13   : > { %240 = vadd.xlane.f32.xlu2 %v239_v11  ;;  %234 = vadd.xlane.f32.xlu1 %v233_v12  ;;  %v236_v22 = vadd.f32 %v202_v18, %v201_v17  ;;  %v211_v27 = vunpack.c.l.bf16 %v960_v24  ;;  %v212_v28 = vunpack.c.h.bf16 %v960_v24  ;;  %v209_v29 = vunpack.c.l.bf16 %v963_v25  ;;  %v1041_v60 = vld [vmem:[%s903_s18 + $0x78] sm:$0xff] }
  0x14   : > { %228 = vadd.xlane.f32.xlu0 %v227_v14  ;;  %v230_v23 = vadd.f32 %v198_v20, %v197_v19  ;;  %v210_v30 = vunpack.c.h.bf16 %v963_v25  ;;  %v207_v31 = vunpack.c.l.bf16 %v966_v26  ;;  %v208_v32 = vunpack.c.h.bf16 %v966_v26 }
  0x15   : > { %v251_v33 = vadd.f32 %v212_v28, %v211_v27  ;;  %v217_v39 = vunpack.c.l.bf16 %v987_v36  ;;  %v218_v40 = vunpack.c.h.bf16 %v987_v36  ;;  %v215_v41 = vunpack.c.l.bf16 %v990_v37 }
  0x16   : > { %v248_v34 = vadd.f32 %v210_v30, %v209_v29  ;;  %v245_v35 = vadd.f32 %v208_v32, %v207_v31  ;;  %v216_v42 = vunpack.c.h.bf16 %v990_v37  ;;  %v213_v43 = vunpack.c.l.bf16 %v993_v38 }
  0x17   : > { %v214_v44 = vunpack.c.h.bf16 %v993_v38  ;;  %v260_v45 = vadd.f32 %v218_v40, %v217_v39  ;;  %v223_v51 = vunpack.c.l.bf16 %v1014_v48  ;;  %v224_v52 = vunpack.c.h.bf16 %v1014_v48 }
  0x18   : > { %v257_v46 = vadd.f32 %v216_v42, %v215_v41  ;;  %v221_v53 = vunpack.c.l.bf16 %v1017_v49  ;;  %v222_v54 = vunpack.c.h.bf16 %v1017_v49  ;;  %v219_v55 = vunpack.c.l.bf16 %v1020_v50 }
  0x19   : > { %v254_v47 = vadd.f32 %v214_v44, %v213_v43  ;;  %v220_v56 = vunpack.c.h.bf16 %v1020_v50  ;;  %v269_v57 = vadd.f32 %v224_v52, %v223_v51  ;;  %v225_v61 = vunpack.c.l.bf16 %v1041_v60 }
  0x1a   : > { %v266_v58 = vadd.f32 %v222_v54, %v221_v53  ;;  %v226_v62 = vunpack.c.h.bf16 %v1041_v60  ;;  %v866_v11 = vmov 256.0  }
  0x1b   : > { %243 = vadd.xlane.f32.xlu2 %v242_v21  ;;  %237 = vadd.xlane.f32.xlu1 %v236_v22  ;;  %v263_v59 = vadd.f32 %v220_v56, %v219_v55  ;;  %824 = vrcp.f32 %v866_v11 }
  0x1c   : > { %231 = vadd.xlane.f32.xlu0 %v230_v23  ;;  %v272_v63 = vadd.f32 %v226_v62, %v225_v61 }
  0x21   : > { %v825_v12 = vpop.eup %824 }
  0x22   : > { %v276_v14 = vmul.f32 256.0, %v825_v12  ;;  %vm280_vm0 = vweird.f32 %v825_v12 }
  0x23   : > { %252 = vadd.xlane.f32.xlu2 %v251_v33  ;;  %249 = vadd.xlane.f32.xlu1 %v248_v34 }
  0x24   : > { %246 = vadd.xlane.f32.xlu0 %v245_v35  ;;  %v277_v21 = vsub.f32 1.0, %v276_v14 }
  0x26   : > { %v278_v22 = vmul.f32 %v825_v12, %v277_v21 }
  0x28   : > { %v279_v23 = vadd.f32 %v825_v12, %v278_v22 }
  0x2a   : > { %v1049_v33 = vsel %vm280_vm0, %v825_v12, %v279_v23 }
  0x2b   : > { %261 = vadd.xlane.f32.xlu2 %v260_v45  ;;  %258 = vadd.xlane.f32.xlu1 %v257_v46 }
  0x2c   : > { %255 = vadd.xlane.f32.xlu0 %v254_v47 }
  0x33   : > { %270 = vadd.xlane.f32.xlu2 %v269_v57  ;;  %267 = vadd.xlane.f32.xlu1 %v266_v58 }
  0x34   : > { %264 = vadd.xlane.f32.xlu0 %v263_v59 }
  0x3c   : > { %273 = vadd.xlane.f32.xlu0 %v272_v63 }
  0x86   : > { %v241_v34 = vpop.xlane.xlu2 %240  ;;  %v235_v35 = vpop.xlane.xlu1 %234 }
  0x87   : > { %v284_v45 = vmul.f32 %v1049_v33, %v235_v35  ;;  %v229_v46 = vpop.xlane.xlu0 %228 }
  0x88   : > { %v282_v47 = vmul.f32 %v1049_v33, %v229_v46 }
  0x89   : > { %v1055_v57 = vsub.f32 %v199_v5, %v284_v45  ;;  %v1059_v58 = vsub.f32 %v200_v6, %v284_v45 }
  0x8a   : > { %v1063_v59 = vsub.f32 %v195_v7, %v282_v47  ;;  %v1067_v63 = vsub.f32 %v196_v8, %v282_v47 }
  0x8b   : > { %v334_v11 = vmul.f32 %v1055_v57, %v1055_v57  ;;  %v335_v12 = vmul.f32 %v1059_v58, %v1059_v58 }
  0x8c   : > { %v330_v5 = vmul.f32 %v1063_v59, %v1063_v59  ;;  %v331_v1 = vmul.f32 %v1067_v63, %v1067_v63 }
  0x8d   : > { %v368_v6 = vadd.f32 %v335_v12, %v334_v11  ;;  %v286_v11 = vmul.f32 %v1049_v33, %v241_v34 }
  0x8e   : > { %v244_v14 = vpop.xlane.xlu2 %243  ;;  %v238_v7 = vpop.xlane.xlu1 %237  ;;  %v362_v21 = vadd.f32 %v331_v1, %v330_v5 }
  0x8f   : > { %v287_v2 = vmul.f32 %v1049_v33, %v244_v14  ;;  %v285_v8 = vmul.f32 %v1049_v33, %v238_v7  ;;  %v232_v22 = vpop.xlane.xlu0 %231  ;;  %369 = vadd.xlane.f32.xlu0 %v368_v6  ;;  %v1119_v34 = vsub.f32 %v203_v3, %v286_v11  ;;  %v1123_v5 = vsub.f32 %v204_v4, %v286_v11 }
  0x90   : > { %v283_v23 = vmul.f32 %v1049_v33, %v232_v22  ;;  %363 = vadd.xlane.f32.xlu1 %v362_v21 }
  0x91   : > { %v1082_v35 = vsub.f32 %v205_v15, %v287_v2  ;;  %v1086_v45 = vsub.f32 %v206_v16, %v287_v2  ;;  %v1090_v46 = vsub.f32 %v201_v17, %v285_v8  ;;  %v1094_v47 = vsub.f32 %v202_v18, %v285_v8 }
  0x92   : > { %v1099_v12 = vsub.f32 %v197_v19, %v283_v23  ;;  %v1103_v15 = vsub.f32 %v198_v20, %v283_v23  ;;  %v338_v23 = vmul.f32 %v1119_v34, %v1119_v34  ;;  %v339_v11 = vmul.f32 %v1123_v5, %v1123_v5 }
  0x93   : > { %v340_v9 = vmul.f32 %v1082_v35, %v1082_v35  ;;  %v341_v16 = vmul.f32 %v1086_v45, %v1086_v45  ;;  %v336_v10 = vmul.f32 %v1090_v46, %v1090_v46  ;;  %v337_v17 = vmul.f32 %v1094_v47, %v1094_v47 }
  0x94   : > { %v332_v18 = vmul.f32 %v1099_v12, %v1099_v12  ;;  %v333_v13 = vmul.f32 %v1103_v15, %v1103_v15 }
  0x95   : > { %v377_v19 = vadd.f32 %v341_v16, %v340_v9  ;;  %v371_v20 = vadd.f32 %v337_v17, %v336_v10  ;;  %v374_v10 = vadd.f32 %v339_v11, %v338_v23 }
  0x96   : > { %v253_v1 = vpop.xlane.xlu2 %252  ;;  %v365_v6 = vadd.f32 %v333_v13, %v332_v18  ;;  %v250_v14 = vpop.xlane.xlu1 %249 }
  0x97   : > { %v290_v7 = vmul.f32 %v1049_v33, %v253_v1  ;;  %v247_v21 = vpop.xlane.xlu0 %246  ;;  %378 = vadd.xlane.f32.xlu0 %v377_v19  ;;  %v289_v8 = vmul.f32 %v1049_v33, %v250_v14 }
  0x98   : > { %v288_v2 = vmul.f32 %v1049_v33, %v247_v21  ;;  %372 = vadd.xlane.f32.xlu1 %v371_v20  ;;  %366 = vadd.xlane.f32.xlu2 %v365_v6 }
  0x99   : > { %v1130_v3 = vsub.f32 %v211_v27, %v290_v7  ;;  %v1134_v0 = vsub.f32 %v212_v28, %v290_v7  ;;  %v1154_v28 = vsub.f32 %v209_v29, %v289_v8  ;;  %v1158_v26 = vsub.f32 %v210_v30, %v289_v8 }
  0x9a   : > { %v1138_v4 = vsub.f32 %v207_v31, %v288_v2  ;;  %v1142_v22 = vsub.f32 %v208_v32, %v288_v2 }
  0x9b   : > { %v346_v27 = vmul.f32 %v1130_v3, %v1130_v3  ;;  %v347_v24 = vmul.f32 %v1134_v0, %v1134_v0  ;;  %v344_v30 = vmul.f32 %v1154_v28, %v1154_v28  ;;  %v345_v20 = vmul.f32 %v1158_v26, %v1158_v26 }
  0x9c   : > { %v342_v31 = vmul.f32 %v1138_v4, %v1138_v4  ;;  %v343_v32 = vmul.f32 %v1142_v22, %v1142_v22 }
  0x9d   : > { %v386_v9 = vadd.f32 %v347_v24, %v346_v27 }
  0x9e   : > { %v262_v16 = vpop.xlane.xlu2 %261  ;;  %v380_v17 = vadd.f32 %v343_v32, %v342_v31  ;;  %v259_v18 = vpop.xlane.xlu1 %258 }
  0x9f   : > { %v293_v13 = vmul.f32 %v1049_v33, %v262_v16  ;;  %v256_v19 = vpop.xlane.xlu0 %255  ;;  %387 = vadd.xlane.f32.xlu0 %v386_v9  ;;  %v292_v29 = vmul.f32 %v1049_v33, %v259_v18 }
  0xa0   : > { %v291_v25 = vmul.f32 %v1049_v33, %v256_v19  ;;  %375 = vadd.xlane.f32.xlu2 %v374_v10  ;;  %381 = vadd.xlane.f32.xlu1 %v380_v17 }
  0xa1   : > { %v1173_v1 = vsub.f32 %v217_v39, %v293_v13  ;;  %v1177_v6 = vsub.f32 %v218_v40, %v293_v13  ;;  %v1189_v21 = vsub.f32 %v215_v41, %v292_v29  ;;  %v1193_v39 = vsub.f32 %v216_v42, %v292_v29 }
  0xa2   : > { %v1181_v14 = vsub.f32 %v213_v43, %v291_v25  ;;  %v1185_v7 = vsub.f32 %v214_v44, %v291_v25  ;;  %v383_v43 = vadd.f32 %v345_v20, %v344_v30 }
  0xa3   : > { %v352_v36 = vmul.f32 %v1173_v1, %v1173_v1  ;;  %v353_v40 = vmul.f32 %v1177_v6, %v1177_v6  ;;  %v350_v11 = vmul.f32 %v1189_v21, %v1189_v21  ;;  %v351_v27 = vmul.f32 %v1193_v39, %v1193_v39 }
  0xa4   : > { %v348_v38 = vmul.f32 %v1181_v14, %v1181_v14  ;;  %v349_v44 = vmul.f32 %v1185_v7, %v1185_v7 }
  0xa5   : > { %v395_v2 = vadd.f32 %v353_v40, %v352_v36 }
  0xa6   : > { %v271_v41 = vpop.xlane.xlu2 %270  ;;  %v389_v8 = vadd.f32 %v349_v44, %v348_v38  ;;  %v268_v23 = vpop.xlane.xlu1 %267 }
  0xa7   : > { %v296_v37 = vmul.f32 %v1049_v33, %v271_v41  ;;  %v265_v42 = vpop.xlane.xlu0 %264  ;;  %396 = vadd.xlane.f32.xlu0 %v395_v2  ;;  %v295_v31 = vmul.f32 %v1049_v33, %v268_v23 }
  0xa8   : > { %v294_v24 = vmul.f32 %v1049_v33, %v265_v42  ;;  %384 = vadd.xlane.f32.xlu2 %v383_v43  ;;  %390 = vadd.xlane.f32.xlu1 %v389_v8 }
  0xa9   : > { %v1212_v32 = vsub.f32 %v223_v51, %v296_v37  ;;  %v1216_v9 = vsub.f32 %v224_v52, %v296_v37  ;;  %v392_v51 = vadd.f32 %v351_v27, %v350_v11  ;;  %v1232_v48 = vsub.f32 %v221_v53, %v295_v31 }
  0xaa   : > { %v1220_v16 = vsub.f32 %v219_v55, %v294_v24  ;;  %v1224_v10 = vsub.f32 %v220_v56, %v294_v24  ;;  %v1236_v52 = vsub.f32 %v222_v54, %v295_v31 }
  0xab   : > { %v358_v17 = vmul.f32 %v1212_v32, %v1212_v32  ;;  %v359_v18 = vmul.f32 %v1216_v9, %v1216_v9  ;;  %v356_v53 = vmul.f32 %v1232_v48, %v1232_v48 }
  0xac   : > { %v354_v50 = vmul.f32 %v1220_v16, %v1220_v16  ;;  %v355_v55 = vmul.f32 %v1224_v10, %v1224_v10  ;;  %v357_v49 = vmul.f32 %v1236_v52, %v1236_v52 }
  0xad   : > { %v404_v56 = vadd.f32 %v359_v18, %v358_v17 }
  0xae   : > { %v398_v13 = vadd.f32 %v355_v55, %v354_v50  ;;  %v401_v30 = vadd.f32 %v357_v49, %v356_v53  ;;  %v672_v50 = vld [vmem:[%s1519_s2] sm:$0x3] }
  0xaf   : > { %v274_v19 = vpop.xlane.xlu0 %273  ;;  %405 = vadd.xlane.f32.xlu0 %v404_v56  ;;  %v1283_v53 = vperm.slane %v672_v50, 0 }
  0xb0   : > { %v297_v29 = vmul.f32 %v1049_v33, %v274_v19  ;;  %393 = vadd.xlane.f32.xlu2 %v392_v51  ;;  %399 = vadd.xlane.f32.xlu1 %v398_v13  ;;  %v634_v51 = vld [vmem:[%s1518_s1] sm:$0x3] }
  0xb1   : > { %v1279_v19 = vperm.slane %v634_v51, 0 }
  0xb2   : > { %v1249_v54 = vsub.f32 %v225_v61, %v297_v29  ;;  %v1253_v25 = vsub.f32 %v226_v62, %v297_v29  ;;  %v1281_v29 = vperm.slane %v634_v51, 1 }
  0xb4   : > { %v360_v20 = vmul.f32 %v1249_v54, %v1249_v54  ;;  %v361_v36 = vmul.f32 %v1253_v25, %v1253_v25 }
  0xb6   : > { %v407_v40 = vadd.f32 %v361_v36, %v360_v20  ;;  %v1285_v20 = vperm.slane %v672_v50, 1 }
  0xb8   : > { %402 = vadd.xlane.f32.xlu2 %v401_v30  ;;  %408 = vadd.xlane.f32.xlu1 %v407_v40 }
 0x102   : > { %v370_v43 = vpop.xlane.xlu0 %369 }
 0x103   : > { %v364_v38 = vpop.xlane.xlu1 %363  ;;  %v412_v44 = vmul.f32 %v370_v43, %v1049_v33 }
 0x104   : > { %v410_v61 = vmul.f32 %v364_v38, %v1049_v33 }
 0x105   : > { %v428_v2 = vadd.f32 1e-12, %v412_v44 }
 0x106   : > { %v426_v60 = vadd.f32 1e-12, %v410_v61 }
 0x107   : > { %826 = vrsqrt.f32 %v428_v2  ;;  %vm468_vm1 = vweird.f32 %v428_v2 }
 0x108   : > { %828 = vrsqrt.f32 %v426_v60  ;;  %vm448_vm3 = vweird.f32 %v426_v60 }
 0x10a   : > { %v379_v62 = vpop.xlane.xlu0 %378 }
 0x10b   : > { %v373_v41 = vpop.xlane.xlu1 %372  ;;  %v367_v8 = vpop.xlane.xlu2 %366  ;;  %v415_v23 = vmul.f32 %v379_v62, %v1049_v33 }
 0x10c   : > { %v413_v37 = vmul.f32 %v373_v41, %v1049_v33  ;;  %v411_v42 = vmul.f32 %v367_v8, %v1049_v33 }
 0x10d   : > { %v827_v11 = vpop.eup %826  ;;  %v1264_v27 = vadd.f32 1e-12, %v415_v23 }
 0x10e   : > { %v829_v24 = vpop.eup %828  ;;  %v463_v31 = vmul.f32 %v827_v11, %v428_v2  ;;  %v1266_v17 = vadd.f32 1e-12, %v413_v37  ;;  %v1268_v18 = vadd.f32 1e-12, %v411_v42  ;;  %vm469_vm2 = vweird.f32 %v827_v11 }
 0x10f   : > { %v443_v55 = vmul.f32 %v829_v24, %v426_v60  ;;  %830 = vrsqrt.f32 %v1264_v27  ;;  %vm449_vm4 = vweird.f32 %v829_v24  ;;  %vm498_vm5 = vweird.f32 %v1264_v27  ;;  %vm470_vm7 = vmor %vm468_vm1, %vm469_vm2 }
 0x110   : > { %v464_v56 = vmul.f32 %v827_v11, %v463_v31  ;;  %832 = vrsqrt.f32 %v1266_v17  ;;  %vm478_vm8 = vweird.f32 %v1266_v17  ;;  %vm450_vm10 = vmor %vm448_vm3, %vm449_vm4  ;;  %vm458_vm12 = vweird.f32 %v1268_v18 }
 0x111   : > { %v444_v13 = vmul.f32 %v829_v24, %v443_v55  ;;  %834 = vrsqrt.f32 %v1268_v18 }
 0x112   : > { %v465_v49 = vmul.f32 0.5, %v464_v56  ;;  %v388_v30 = vpop.xlane.xlu0 %387 }
 0x113   : > { %v445_v36 = vmul.f32 0.5, %v444_v13  ;;  %v376_v40 = vpop.xlane.xlu2 %375  ;;  %v382_v43 = vpop.xlane.xlu1 %381  ;;  %v418_v38 = vmul.f32 %v388_v30, %v1049_v33 }
 0x114   : > { %v466_v44 = vsub.f32 1.5, %v465_v49  ;;  %v414_v61 = vmul.f32 %v376_v40, %v1049_v33  ;;  %v416_v62 = vmul.f32 %v382_v43, %v1049_v33 }
 0x115   : > { %v831_v41 = vpop.eup %830  ;;  %v446_v8 = vsub.f32 1.5, %v445_v36  ;;  %v1292_v31 = vadd.f32 1e-12, %v418_v38 }
 0x116   : > { %v833_v23 = vpop.eup %832  ;;  %v467_v37 = vmul.f32 %v827_v11, %v466_v44  ;;  %v493_v42 = vmul.f32 %v831_v41, %v1264_v27  ;;  %vm499_vm6 = vweird.f32 %v831_v41  ;;  %v1298_v56 = vadd.f32 1e-12, %v414_v61 }
 0x117   : > { %v835_v51 = vpop.eup %834  ;;  %v447_v50 = vmul.f32 %v829_v24, %v446_v8  ;;  %v473_v55 = vmul.f32 %v833_v23, %v1266_v17  ;;  %vm479_vm9 = vweird.f32 %v833_v23  ;;  %v1302_v36 = vadd.f32 1e-12, %v416_v62  ;;  %vm500_vm13 = vmor %vm498_vm5, %vm499_vm6 }
 0x118   : > { %v471_v13 = vsel %vm470_vm7, %v827_v11, %v467_v37  ;;  %v453_v49 = vmul.f32 %v835_v51, %v1268_v18  ;;  %v494_v30 = vmul.f32 %v831_v41, %v493_v42  ;;  %836 = vrsqrt.f32 %v1298_v56  ;;  %vm480_vm14 = vmor %vm478_vm8, %vm479_vm9 }
 0x119   : > { %v451_v40 = vsel %vm450_vm10, %v829_v24, %v447_v50  ;;  %v606_v43 = vmul.f32 %v471_v13, %v1055_v57  ;;  %v607_v2 = vmul.f32 %v471_v13, %v1059_v58  ;;  %v474_v38 = vmul.f32 %v833_v23, %v473_v55 }
 0x11a   : > { %v602_v44 = vmul.f32 %v451_v40, %v1063_v59  ;;  %v603_v61 = vmul.f32 %v451_v40, %v1067_v63  ;;  %v454_v8 = vmul.f32 %v835_v51, %v453_v49  ;;  %v495_v60 = vmul.f32 0.5, %v494_v30 }
 0x11b   : > { %v644_v11 = vmul.f32 %v1279_v19, %v606_v43  ;;  %v645_v37 = vmul.f32 %v1281_v29, %v607_v2  ;;  %v475_v42 = vmul.f32 0.5, %v474_v38  ;;  %vm459_vm11 = vweird.f32 %v835_v51  ;;  %v385_v40 = vpop.xlane.xlu2 %384  ;;  %v391_v43 = vpop.xlane.xlu1 %390 }
 0x11c   : > { %v640_v24 = vmul.f32 %v1279_v19, %v602_v44  ;;  %v641_v57 = vmul.f32 %v1281_v29, %v603_v61  ;;  %v455_v58 = vmul.f32 0.5, %v454_v8  ;;  %v496_v62 = vsub.f32 1.5, %v495_v60  ;;  %vm460_vm15 = vmor %vm458_vm12, %vm459_vm11 }
 0x11d   : > { %v682_v59 = vadd.f32 %v1283_v53, %v644_v11  ;;  %v683_v50 = vadd.f32 %v1285_v20, %v645_v37  ;;  %v476_v63 = vsub.f32 1.5, %v475_v42  ;;  %838 = vrsqrt.f32 %v1302_v36 }
 0x11e   : > { %v678_v55 = vadd.f32 %v1283_v53, %v640_v24  ;;  %v679_v13 = vadd.f32 %v1285_v20, %v641_v57  ;;  %v456_v49 = vsub.f32 1.5, %v455_v58  ;;  %v497_v30 = vmul.f32 %v831_v41, %v496_v62  ;;  %v837_v60 = vpop.eup %836 }
 0x11f   : > { %v712_v2 = vpack.c.bf16 %v683_v50, %v682_v59  ;;  %v477_v38 = vmul.f32 %v833_v23, %v476_v63  ;;  %840 = vrsqrt.f32 %v1292_v31  ;;  %v483_v24 = vmul.f32 %v837_v60, %v1298_v56 }
 0x120   : > { %v710_v44 = vpack.c.bf16 %v679_v13, %v678_v55  ;;  %v457_v61 = vmul.f32 %v835_v51, %v456_v49  ;;  %v501_v8 = vsel %vm500_vm13, %v831_v41, %v497_v30  ;;  %vm488_vm0 = vweird.f32 %v1298_v56 }
 0x121   : > { %728 = vst [vmem:[%s1320_s25 + $0x10] sm:$0xff] %v712_v2  ;;  %v481_v11 = vsel %vm480_vm14, %v833_v23, %v477_v38  ;;  %v612_v18 = vmul.f32 %v501_v8, %v1082_v35  ;;  %v613_v27 = vmul.f32 %v501_v8, %v1086_v45  ;;  %v484_v62 = vmul.f32 %v837_v60, %v483_v24  ;;  %v397_v38 = vpop.xlane.xlu0 %396 }
 0x122   : > { %726 = vst [vmem:[%s1320_s25] sm:$0xff] %v710_v44  ;;  %v608_v37 = vmul.f32 %v481_v11, %v1090_v46  ;;  %v609_v42 = vmul.f32 %v481_v11, %v1094_v47  ;;  %v461_v17 = vsel %vm460_vm15, %v835_v51, %v457_v61  ;;  %vm508_vm1 = vweird.f32 %v1302_v36 }
 0x123   : > { %v604_v41 = vmul.f32 %v461_v17, %v1099_v12  ;;  %v605_v57 = vmul.f32 %v461_v17, %v1103_v15  ;;  %v650_v23 = vmul.f32 %v1279_v19, %v612_v18  ;;  %v651_v58 = vmul.f32 %v1281_v29, %v613_v27  ;;  %v839_v46 = vpop.eup %838  ;;  %v394_v18 = vpop.xlane.xlu2 %393 }
 0x124   : > { %v646_v35 = vmul.f32 %v1279_v19, %v608_v37  ;;  %v647_v45 = vmul.f32 %v1281_v29, %v609_v42  ;;  %v485_v55 = vmul.f32 0.5, %v484_v62  ;;  %v503_v13 = vmul.f32 %v839_v46, %v1302_v36  ;;  %v400_v27 = vpop.xlane.xlu1 %399 }
 0x125   : > { %v642_v47 = vmul.f32 %v1279_v19, %v604_v41  ;;  %v643_v51 = vmul.f32 %v1281_v29, %v605_v57  ;;  %v688_v12 = vadd.f32 %v1283_v53, %v650_v23  ;;  %v689_v15 = vadd.f32 %v1285_v20, %v651_v58  ;;  %v841_v59 = vpop.eup %840 }
 0x126   : > { %v684_v50 = vadd.f32 %v1283_v53, %v646_v35  ;;  %v685_v63 = vadd.f32 %v1285_v20, %v647_v45  ;;  %vm489_vm2 = vweird.f32 %v837_v60  ;;  %v486_v61 = vsub.f32 1.5, %v485_v55 }
 0x127   : > { %v680_v49 = vadd.f32 %v1283_v53, %v642_v47  ;;  %v681_v30 = vadd.f32 %v1285_v20, %v643_v51  ;;  %v715_v2 = vpack.c.bf16 %v689_v15, %v688_v12  ;;  %v504_v8 = vmul.f32 %v839_v46, %v503_v13  ;;  %vm490_vm4 = vmor %vm488_vm0, %vm489_vm2 }
 0x128   : > { %v713_v44 = vpack.c.bf16 %v685_v63, %v684_v50  ;;  %v523_v11 = vmul.f32 %v841_v59, %v1292_v31  ;;  %vm509_vm3 = vweird.f32 %v839_v46  ;;  %v417_v42 = vmul.f32 %v385_v40, %v1049_v33 }
 0x129   : > { %v711_v37 = vpack.c.bf16 %v681_v30, %v680_v49  ;;  %731 = vst [vmem:[%s1320_s25 + $0x28] sm:$0xff] %v715_v2  ;;  %v419_v17 = vmul.f32 %v391_v43, %v1049_v33  ;;  %v487_v24 = vmul.f32 %v837_v60, %v486_v61  ;;  %v505_v41 = vmul.f32 0.5, %v504_v8  ;;  %vm510_vm7 = vmor %vm508_vm1, %vm509_vm3 }
 0x12a   : > { %729 = vst [vmem:[%s1320_s25 + $0x18] sm:$0xff] %v713_v44  ;;  %v524_v57 = vmul.f32 %v841_v59, %v523_v11  ;;  %v421_v23 = vmul.f32 %v397_v38, %v1049_v33  ;;  %v1368_v58 = vadd.f32 1e-12, %v417_v42  ;;  %v420_v45 = vmul.f32 %v394_v18, %v1049_v33 }
 0x12b   : > { %727 = vst [vmem:[%s1320_s25 + $0x8] sm:$0xff] %v711_v37  ;;  %v1370_v35 = vadd.f32 1e-12, %v419_v17  ;;  %v422_v40 = vmul.f32 %v400_v27, %v1049_v33  ;;  %v491_v43 = vsel %vm490_vm4, %v837_v60, %v487_v24  ;;  %v506_v62 = vsub.f32 1.5, %v505_v41  ;;  %v403_v41 = vpop.xlane.xlu2 %402 }
 0x12c   : > { %v525_v47 = vmul.f32 0.5, %v524_v57  ;;  %v1374_v51 = vadd.f32 1e-12, %v421_v23  ;;  %v610_v12 = vmul.f32 %v491_v43, %v1119_v34  ;;  %v611_v15 = vmul.f32 %v491_v43, %v1123_v5 }
 0x12d   : > { %vm528_vm5 = vweird.f32 %v1292_v31  ;;  %842 = vrsqrt.f32 %v1368_v58  ;;  %v507_v56 = vmul.f32 %v839_v46, %v506_v62  ;;  %vm529_vm6 = vweird.f32 %v841_v59 }
 0x12e   : > { %v526_v50 = vsub.f32 1.5, %v525_v47  ;;  %844 = vrsqrt.f32 %v1370_v35  ;;  %v648_v63 = vmul.f32 %v1279_v19, %v610_v12  ;;  %v649_v60 = vmul.f32 %v1281_v29, %v611_v15  ;;  %vm530_vm8 = vmor %vm528_vm5, %vm529_vm6 }
 0x12f   : > { %846 = vrsqrt.f32 %v1374_v51  ;;  %v511_v34 = vsel %vm510_vm7, %v839_v46, %v507_v56  ;;  %v1387_v55 = vadd.f32 1e-12, %v420_v45  ;;  %v1389_v13 = vadd.f32 1e-12, %v422_v40 }
 0x130   : > { %v527_v5 = vmul.f32 %v841_v59, %v526_v50  ;;  %v686_v49 = vadd.f32 %v1283_v53, %v648_v63  ;;  %v687_v30 = vadd.f32 %v1285_v20, %v649_v60  ;;  %v614_v2 = vmul.f32 %v511_v34, %v1138_v4 }
 0x131   : > { %v615_v38 = vmul.f32 %v511_v34, %v1142_v22  ;;  %848 = vrsqrt.f32 %v1387_v55  ;;  %vm518_vm9 = vweird.f32 %v1368_v58  ;;  %vm538_vm10 = vweird.f32 %v1370_v35 }
 0x132   : > { %v531_v36 = vsel %vm530_vm8, %v841_v59, %v527_v5  ;;  %v714_v44 = vpack.c.bf16 %v687_v30, %v686_v49  ;;  %v652_v61 = vmul.f32 %v1279_v19, %v614_v2  ;;  %850 = vrsqrt.f32 %v1389_v13 }
 0x133   : > { %v843_v46 = vpop.eup %842  ;;  %v653_v8 = vmul.f32 %v1281_v29, %v615_v38  ;;  %v618_v11 = vmul.f32 %v531_v36, %v1130_v3  ;;  %v619_v4 = vmul.f32 %v531_v36, %v1134_v0  ;;  %v406_v3 = vpop.xlane.xlu0 %405  ;;  %vm558_vm11 = vweird.f32 %v1374_v51 }
 0x134   : > { %v845_v18 = vpop.eup %844  ;;  %v513_v27 = vmul.f32 %v843_v46, %v1368_v58  ;;  %730 = vst [vmem:[%s1320_s25 + $0x20] sm:$0xff] %v714_v44  ;;  %v690_v31 = vadd.f32 %v1283_v53, %v652_v61  ;;  %vm519_vm12 = vweird.f32 %v843_v46  ;;  %v424_v12 = vmul.f32 %v406_v3, %v1049_v33  ;;  %v409_v36 = vpop.xlane.xlu1 %408 }
 0x135   : > { %v847_v22 = vpop.eup %846  ;;  %v691_v59 = vadd.f32 %v1285_v20, %v653_v8  ;;  %v656_v37 = vmul.f32 %v1279_v19, %v618_v11  ;;  %v533_v42 = vmul.f32 %v845_v18, %v1370_v35  ;;  %v657_v0 = vmul.f32 %v1281_v29, %v619_v4  ;;  %vm520_vm3 = vmor %vm518_vm9, %vm519_vm12 }
 0x136   : > { %v514_v17 = vmul.f32 %v843_v46, %v513_v27  ;;  %v553_v24 = vmul.f32 %v847_v22, %v1374_v51  ;;  %vm539_vm13 = vweird.f32 %v845_v18  ;;  %v423_v50 = vmul.f32 %v403_v41, %v1049_v33 }
 0x137   : > { %v716_v57 = vpack.c.bf16 %v691_v59, %v690_v31  ;;  %v694_v23 = vadd.f32 %v1283_v53, %v656_v37  ;;  %v534_v45 = vmul.f32 %v845_v18, %v533_v42  ;;  %v1415_v40 = vpop.eup %848  ;;  %v695_v43 = vadd.f32 %v1285_v20, %v657_v0  ;;  %vm540_vm4 = vmor %vm538_vm10, %vm539_vm13 }
 0x138   : > { %v515_v62 = vmul.f32 0.5, %v514_v17  ;;  %v554_v47 = vmul.f32 %v847_v22, %v553_v24  ;;  %v543_v56 = vmul.f32 %v1415_v40, %v1387_v55  ;;  %v851_v63 = vpop.eup %850  ;;  %vm548_vm14 = vweird.f32 %v1387_v55 }
 0x139   : > { %732 = vst [vmem:[%s1320_s25 + $0x30] sm:$0xff] %v716_v57  ;;  %v535_v15 = vmul.f32 0.5, %v534_v45  ;;  %v718_v60 = vpack.c.bf16 %v695_v43, %v694_v23  ;;  %v1424_v49 = vadd.f32 1e-12, %v424_v12  ;;  %vm559_vm15 = vweird.f32 %v847_v22 }
 0x13a   : > { %v516_v34 = vsub.f32 1.5, %v515_v62  ;;  %v555_v5 = vmul.f32 0.5, %v554_v47  ;;  %v544_v2 = vmul.f32 %v1415_v40, %v543_v56  ;;  %v563_v38 = vmul.f32 %v851_v63, %v1389_v13  ;;  %vm560_vm5 = vmor %vm558_vm11, %vm559_vm15 }
 0x13b   : > { %v536_v30 = vsub.f32 1.5, %v535_v15  ;;  %734 = vst [vmem:[%s1320_s25 + $0x40] sm:$0xff] %v718_v60  ;;  %vm549_vm0 = vweird.f32 %v1415_v40  ;;  %vm568_vm1 = vweird.f32 %v1389_v13  ;;  %vm569_vm2 = vweird.f32 %v851_v63 }
 0x13c   : > { %v517_v44 = vmul.f32 %v843_v46, %v516_v34  ;;  %v556_v61 = vsub.f32 1.5, %v555_v5  ;;  %v545_v11 = vmul.f32 0.5, %v544_v2  ;;  %v564_v4 = vmul.f32 %v851_v63, %v563_v38  ;;  %vm550_vm6 = vmor %vm548_vm14, %vm549_vm0 }
 0x13d   : > { %v537_v8 = vmul.f32 %v845_v18, %v536_v30  ;;  %852 = vrsqrt.f32 %v1424_v49  ;;  %v1438_v59 = vadd.f32 1e-12, %v423_v50  ;;  %v425_v37 = vmul.f32 %v409_v36, %v1049_v33  ;;  %vm570_vm7 = vmor %vm568_vm1, %vm569_vm2 }
 0x13e   : > { %v521_v27 = vsel %vm520_vm3, %v843_v46, %v517_v44  ;;  %v557_v31 = vmul.f32 %v847_v22, %v556_v61  ;;  %v546_v0 = vsub.f32 1.5, %v545_v11  ;;  %v565_v24 = vmul.f32 0.5, %v564_v4 }
 0x13f   : > { %v616_v42 = vmul.f32 %v521_v27, %v1154_v28  ;;  %v617_v58 = vmul.f32 %v521_v27, %v1158_v26  ;;  %v541_v3 = vsel %vm540_vm4, %v845_v18, %v537_v8  ;;  %854 = vrsqrt.f32 %v1438_v59 }
 0x140   : > { %v620_v46 = vmul.f32 %v541_v3, %v1181_v14  ;;  %v621_v35 = vmul.f32 %v541_v3, %v1185_v7  ;;  %v561_v17 = vsel %vm560_vm5, %v847_v22, %v557_v31  ;;  %v547_v57 = vmul.f32 %v1415_v40, %v546_v0 }
 0x141   : > { %v654_v41 = vmul.f32 %v1279_v19, %v616_v42  ;;  %v655_v33 = vmul.f32 %v1281_v29, %v617_v58  ;;  %v624_v28 = vmul.f32 %v561_v17, %v1173_v1  ;;  %v625_v26 = vmul.f32 %v561_v17, %v1177_v6 }
 0x142   : > { %v658_v18 = vmul.f32 %v1279_v19, %v620_v46  ;;  %v659_v51 = vmul.f32 %v1281_v29, %v621_v35  ;;  %v566_v23 = vsub.f32 1.5, %v565_v24  ;;  %v551_v62 = vsel %vm550_vm6, %v1415_v40, %v547_v57 }
 0x143   : > { %v853_v14 = vpop.eup %852  ;;  %v692_v7 = vadd.f32 %v1283_v53, %v654_v41  ;;  %v693_v22 = vadd.f32 %v1285_v20, %v655_v33  ;;  %v662_v45 = vmul.f32 %v1279_v19, %v624_v28  ;;  %v663_v43 = vmul.f32 %v1281_v29, %v625_v26 }
 0x144   : > { %v696_v1 = vadd.f32 %v1283_v53, %v658_v18  ;;  %v697_v6 = vadd.f32 %v1285_v20, %v659_v51  ;;  %v567_v47 = vmul.f32 %v851_v63, %v566_v23  ;;  %v622_v50 = vmul.f32 %v551_v62, %v1189_v21 }
 0x145   : > { %v717_v12 = vpack.c.bf16 %v693_v22, %v692_v7  ;;  %v700_v15 = vadd.f32 %v1283_v53, %v662_v45  ;;  %v701_v56 = vadd.f32 %v1285_v20, %v663_v43  ;;  %v623_v60 = vmul.f32 %v551_v62, %v1193_v39  ;;  %v855_v31 = vpop.eup %854 }
 0x146   : > { %v719_v55 = vpack.c.bf16 %v697_v6, %v696_v1  ;;  %v571_v34 = vsel %vm570_vm7, %v851_v63, %v567_v47  ;;  %v583_v40 = vmul.f32 %v853_v14, %v1424_v49  ;;  %v660_v30 = vmul.f32 %v1279_v19, %v622_v50 }
 0x147   : > { %733 = vst [vmem:[%s1320_s25 + $0x38] sm:$0xff] %v717_v12  ;;  %v721_v5 = vpack.c.bf16 %v701_v56, %v700_v15  ;;  %v626_v2 = vmul.f32 %v571_v34, %v1220_v16  ;;  %v627_v38 = vmul.f32 %v571_v34, %v1224_v10  ;;  %v661_v21 = vmul.f32 %v1281_v29, %v623_v60 }
 0x148   : > { %735 = vst [vmem:[%s1320_s25 + $0x48] sm:$0xff] %v719_v55  ;;  %v584_v36 = vmul.f32 %v853_v14, %v583_v40  ;;  %v698_v39 = vadd.f32 %v1283_v53, %v660_v30  ;;  %v441_v61 = vadd.f32 1e-12, %v425_v37  ;;  %vm588_vm8 = vweird.f32 %v1424_v49 }
 0x149   : > { %737 = vst [vmem:[%s1320_s25 + $0x58] sm:$0xff] %v721_v5  ;;  %v664_v13 = vmul.f32 %v1279_v19, %v626_v2  ;;  %v665_v63 = vmul.f32 %v1281_v29, %v627_v38  ;;  %v699_v44 = vadd.f32 %v1285_v20, %v661_v21  ;;  %vm589_vm9 = vweird.f32 %v853_v14 }
 0x14a   : > { %v585_v16 = vmul.f32 0.5, %v584_v36  ;;  %856 = vrsqrt.f32 %v441_v61  ;;  %vm590_vm10 = vmor %vm588_vm8, %vm589_vm9  ;;  %v573_v58 = vmul.f32 %v855_v31, %v1438_v59  ;;  %vm579_vm11 = vweird.f32 %v855_v31 }
 0x14b   : > { %v702_v10 = vadd.f32 %v1283_v53, %v664_v13  ;;  %v703_v8 = vadd.f32 %v1285_v20, %v665_v63  ;;  %v720_v11 = vpack.c.bf16 %v699_v44, %v698_v39  ;;  %vm578_vm12 = vweird.f32 %v1438_v59 }
 0x14c   : > { %v586_v4 = vsub.f32 1.5, %v585_v16  ;;  %v574_v46 = vmul.f32 %v855_v31, %v573_v58  ;;  %vm580_vm13 = vmor %vm578_vm12, %vm579_vm11  ;;  %vm598_vm15 = vweird.f32 %v441_v61 }
 0x14d   : > { %v722_v27 = vpack.c.bf16 %v703_v8, %v702_v10  ;;  %736 = vst [vmem:[%s1320_s25 + $0x50] sm:$0xff] %v720_v11 }
 0x14e   : > { %v587_v42 = vmul.f32 %v853_v14, %v586_v4  ;;  %v575_v24 = vmul.f32 0.5, %v574_v46 }
 0x14f   : > { %738 = vst [vmem:[%s1320_s25 + $0x60] sm:$0xff] %v722_v27 }
 0x150   : > { %v591_v3 = vsel %vm590_vm10, %v853_v14, %v587_v42  ;;  %v857_v49 = vpop.eup %856  ;;  %v576_v26 = vsub.f32 1.5, %v575_v24 }
 0x151   : > { %v630_v37 = vmul.f32 %v591_v3, %v1212_v32  ;;  %v631_v0 = vmul.f32 %v591_v3, %v1216_v9  ;;  %v593_v41 = vmul.f32 %v857_v49, %v441_v61  ;;  %vm599_vm14 = vweird.f32 %v857_v49 }
 0x152   : > { %v577_v32 = vmul.f32 %v855_v31, %v576_v26  ;;  %vm600_vm0 = vmor %vm598_vm15, %vm599_vm14 }
 0x153   : > { %v668_v35 = vmul.f32 %v1279_v19, %v630_v37  ;;  %v669_v17 = vmul.f32 %v1281_v29, %v631_v0  ;;  %v594_v18 = vmul.f32 %v857_v49, %v593_v41 }
 0x154   : > { %v581_v57 = vsel %vm580_vm13, %v855_v31, %v577_v32 }
 0x155   : > { %v706_v33 = vadd.f32 %v1283_v53, %v668_v35  ;;  %v707_v28 = vadd.f32 %v1285_v20, %v669_v17  ;;  %v595_v9 = vmul.f32 0.5, %v594_v18  ;;  %v628_v14 = vmul.f32 %v581_v57, %v1232_v48 }
 0x156   : > { %v629_v7 = vmul.f32 %v581_v57, %v1236_v52 }
 0x157   : > { %v724_v51 = vpack.c.bf16 %v707_v28, %v706_v33  ;;  %v596_v23 = vsub.f32 1.5, %v595_v9  ;;  %v666_v45 = vmul.f32 %v1279_v19, %v628_v14 }
 0x158   : > { %v667_v43 = vmul.f32 %v1281_v29, %v629_v7 }
 0x159   : > { %740 = vst [vmem:[%s1320_s25 + $0x70] sm:$0xff] %v724_v51  ;;  %v597_v22 = vmul.f32 %v857_v49, %v596_v23  ;;  %v704_v1 = vadd.f32 %v1283_v53, %v666_v45 }
 0x15a   : > { %v705_v6 = vadd.f32 %v1285_v20, %v667_v43 }
 0x15b   : > { %v601_v59 = vsel %vm600_vm0, %v857_v49, %v597_v22 }
 0x15c   : > { %v632_v62 = vmul.f32 %v601_v59, %v1249_v54  ;;  %v633_v47 = vmul.f32 %v601_v59, %v1253_v25  ;;  %v723_v48 = vpack.c.bf16 %v705_v6, %v704_v1 }
 0x15e   : > { %v670_v52 = vmul.f32 %v1279_v19, %v632_v62  ;;  %v671_v12 = vmul.f32 %v1281_v29, %v633_v47  ;;  %739 = vst [vmem:[%s1320_s25 + $0x68] sm:$0xff] %v723_v48 }
 0x160   : > { %v708_v15 = vadd.f32 %v1283_v53, %v670_v52  ;;  %v709_v56 = vadd.f32 %v1285_v20, %v671_v12 }
 0x162   : > { %v725_v50 = vpack.c.bf16 %v709_v56, %v708_v15 }
 0x164   : > { %741 = vst [vmem:[%s1320_s25 + $0x78] sm:$0xff] %v725_v50 }
 0x165 PF: > { %s13_s12 = sadd.s32 1, %s864_s12  }
 0x166   : > { %p10_p4 = scmp.ge.s32.totalorder %s13_s12, 4  }
 0x168   :  { %12 = sbr.rel (!%p10_p4) target bundleno = 1 (0x1), region = 62 }

// kernel: drug_interaction_transformer_forward.24
= control target key start
LH: loop header
LB: loop body
LE: loop exit
PB: predicated region body
PF: predicated region fallthrough
CT: control target
= control target key end

     0   :  { %s1050_s12 = smov 0   ;;  %s1359_s0 = inlined_call_operand.vmem [shape: bf16[256,256], index: 0, kind: input, shape index: {}]   ;;  %s1360_s1 = inlined_call_operand.vmem [shape: bf16[256,256], index: 1, kind: input, shape index: {}]   ;;  %s1361_s2 = inlined_call_operand.vmem [shape: f32[1,256], index: 2, kind: input, shape index: {}]   ;;  %s1362_s3 = inlined_call_operand.vmem [shape: bf16[256,256], index: 3, kind: output, shape index: {}]  }
   0x1 LB: > { %s759_s13 = sadd.s32 4294967295, %s1028_s12   ;;  %p763_p0 = scmp.ge.s32.totalorder %s1028_s12, 1  ;;  %s1028_s12 = sphi %s1050_s12, %s13_s12  }
   0x2   : > { %p139_p1 = scmp.lt.s32.totalorder %s1028_s12, 3 }
   0x4   : > { %p140_p2 = pnand %p763_p0, %p139_p1 }
   0x5   : > { %s764_s22 = sshll.u32 (!%p140_p2), %s759_s13, 4 }
   0x6   : > { %143 = sbr.rel (%p140_p2) target bundleno = 305 (0x131), region = 32  ;;  %p166_p3 = scmp.lt.s32.totalorder (!%p140_p2), %s764_s22, 31 }
   0xb   : > { %v892_v0 = vld [vmem:[%s1360_s1 + $0x70] sm:$0xf]  ;;  %v997_v1 = vld [vmem:[%s1360_s1 + $0x74] sm:$0xf0]  ;;  %v996_v5 = vld [vmem:[%s1360_s1 + $0x74] sm:$0xf] }
   0xc   : > { %v956_v2 = vld [vmem:[%s1360_s1 + $0xf0] sm:$0xf]  ;;  %v893_v3 = vor.u32 %v997_v1, %v892_v0  ;;  %v1013_v4 = vld [vmem:[%s1360_s1 + $0xf4] sm:$0xf0]  ;;  %v894_v6 = vld [vmem:[%s1360_s1 + $0x78] sm:$0xf0] }
   0xd   : > { %v957_v7 = vor.u32 %v1013_v4, %v956_v2  ;;  %v897_v8 = vor.u32 %v996_v5, %v894_v6  ;;  %v1012_v9 = vld [vmem:[%s1360_s1 + $0xf4] sm:$0xf]  ;;  %v958_v10 = vld [vmem:[%s1360_s1 + $0xf8] sm:$0xf0]  ;;  %v884_v11 = vld [vmem:[%s1360_s1 + $0x60] sm:$0xf] }
   0xe   : > { %473 = vmatpush.bf16.msra.mxu0 %v893_v3  ;;  %v961_v12 = vor.u32 %v1012_v9, %v958_v10  ;;  %v995_v13 = vld [vmem:[%s1360_s1 + $0x64] sm:$0xf0]  ;;  %v948_v14 = vld [vmem:[%s1360_s1 + $0xe0] sm:$0xf]  ;;  %v994_v18 = vld [vmem:[%s1360_s1 + $0x64] sm:$0xf] }
   0xf   : > { %v1011_v15 = vld [vmem:[%s1360_s1 + $0xe4] sm:$0xf0]  ;;  %522 = vmatpush.bf16.msra.mxu1 %v957_v7  ;;  %571 = vmatpush.bf16.msra.mxu2 %v897_v8  ;;  %v885_v16 = vor.u32 %v995_v13, %v884_v11  ;;  %v886_v19 = vld [vmem:[%s1360_s1 + $0x68] sm:$0xf0]  ;;  %v1010_v20 = vld [vmem:[%s1360_s1 + $0xe4] sm:$0xf] }
  0x10   : > { %v949_v17 = vor.u32 %v1011_v15, %v948_v14  ;;  %620 = vmatpush.bf16.msra.mxu3 %v961_v12  ;;  %v889_v21 = vor.u32 %v994_v18, %v886_v19  ;;  %v950_v22 = vld [vmem:[%s1360_s1 + $0xe8] sm:$0xf0]  ;;  %v876_v23 = vld [vmem:[%s1360_s1 + $0x50] sm:$0xf]  ;;  %v993_v24 = vld [vmem:[%s1360_s1 + $0x54] sm:$0xf0] }
  0x11   : > { %v953_v25 = vor.u32 %v1010_v20, %v950_v22  ;;  %v940_v26 = vld [vmem:[%s1360_s1 + $0xd0] sm:$0xf]  ;;  %v1009_v27 = vld [vmem:[%s1360_s1 + $0xd4] sm:$0xf0]  ;;  %v992_v28 = vld [vmem:[%s1360_s1 + $0x54] sm:$0xf]  ;;  %v877_v29 = vor.u32 %v993_v24, %v876_v23 }
  0x12   : > { %474 = vmatpush.bf16.msra.mxu0 %v885_v16  ;;  %v878_v30 = vld [vmem:[%s1360_s1 + $0x58] sm:$0xf0]  ;;  %v1008_v31 = vld [vmem:[%s1360_s1 + $0xd4] sm:$0xf]  ;;  %v941_v33 = vor.u32 %v1009_v27, %v940_v26  ;;  %v868_v35 = vld [vmem:[%s1360_s1 + $0x40] sm:$0xf] }
  0x13   : > { %v942_v32 = vld [vmem:[%s1360_s1 + $0xd8] sm:$0xf0]  ;;  %523 = vmatpush.bf16.msra.mxu1 %v949_v17  ;;  %572 = vmatpush.bf16.msra.mxu2 %v889_v21  ;;  %v881_v34 = vor.u32 %v992_v28, %v878_v30  ;;  %v991_v36 = vld [vmem:[%s1360_s1 + $0x44] sm:$0xf0]  ;;  %v932_v37 = vld [vmem:[%s1360_s1 + $0xc0] sm:$0xf] }
  0x14   : > { %621 = vmatpush.bf16.msra.mxu3 %v953_v25  ;;  %v945_v38 = vor.u32 %v1008_v31, %v942_v32  ;;  %v1007_v39 = vld [vmem:[%s1360_s1 + $0xc4] sm:$0xf0]  ;;  %v990_v40 = vld [vmem:[%s1360_s1 + $0x44] sm:$0xf]  ;;  %v870_v41 = vld [vmem:[%s1360_s1 + $0x48] sm:$0xf0]  ;;  %v869_v44 = vor.u32 %v991_v36, %v868_v35 }
  0x15   : > { %v1006_v42 = vld [vmem:[%s1360_s1 + $0xc4] sm:$0xf]  ;;  %v934_v43 = vld [vmem:[%s1360_s1 + $0xc8] sm:$0xf0]  ;;  %v933_v45 = vor.u32 %v1007_v39, %v932_v37  ;;  %v873_v46 = vor.u32 %v990_v40, %v870_v41  ;;  %v860_v47 = vld [vmem:[%s1360_s1 + $0x30] sm:$0xf] }
  0x16   : > { %475 = vmatpush.bf16.msra.mxu0 %v877_v29  ;;  %v989_v48 = vld [vmem:[%s1360_s1 + $0x34] sm:$0xf0]  ;;  %v924_v49 = vld [vmem:[%s1360_s1 + $0xb0] sm:$0xf]  ;;  %v937_v50 = vor.u32 %v1006_v42, %v934_v43  ;;  %v988_v52 = vld [vmem:[%s1360_s1 + $0x34] sm:$0xf] }
  0x17   : > { %524 = vmatpush.bf16.msra.mxu1 %v941_v33  ;;  %573 = vmatpush.bf16.msra.mxu2 %v881_v34  ;;  %v1005_v51 = vld [vmem:[%s1360_s1 + $0xb4] sm:$0xf0]  ;;  %v862_v53 = vld [vmem:[%s1360_s1 + $0x38] sm:$0xf0]  ;;  %v1004_v54 = vld [vmem:[%s1360_s1 + $0xb4] sm:$0xf]  ;;  %v861_v56 = vor.u32 %v989_v48, %v860_v47 }
  0x18   : > { %622 = vmatpush.bf16.msra.mxu3 %v945_v38  ;;  %v926_v55 = vld [vmem:[%s1360_s1 + $0xb8] sm:$0xf0]  ;;  %v925_v57 = vor.u32 %v1005_v51, %v924_v49  ;;  %v865_v58 = vor.u32 %v988_v52, %v862_v53  ;;  %v852_v59 = vld [vmem:[%s1360_s1 + $0x20] sm:$0xf]  ;;  %v987_v60 = vld [vmem:[%s1360_s1 + $0x24] sm:$0xf0] }
  0x19   : > { %v916_v61 = vld [vmem:[%s1360_s1 + $0xa0] sm:$0xf]  ;;  %v929_v62 = vor.u32 %v1004_v54, %v926_v55  ;;  %v1003_v63 = vld [vmem:[%s1360_s1 + $0xa4] sm:$0xf0]  ;;  %v986_v0 = vld [vmem:[%s1360_s1 + $0x24] sm:$0xf]  ;;  %v853_v4 = vor.u32 %v987_v60, %v852_v59 }
  0x1a   : > { %476 = vmatpush.bf16.msra.mxu0 %v869_v44  ;;  %v854_v1 = vld [vmem:[%s1360_s1 + $0x28] sm:$0xf0]  ;;  %v1002_v2 = vld [vmem:[%s1360_s1 + $0xa4] sm:$0xf]  ;;  %v844_v5 = vld [vmem:[%s1360_s1 + $0x10] sm:$0xf]  ;;  %v917_v6 = vor.u32 %v1003_v63, %v916_v61 }
  0x1b   : > { %525 = vmatpush.bf16.msra.mxu1 %v933_v45  ;;  %574 = vmatpush.bf16.msra.mxu2 %v873_v46  ;;  %v918_v3 = vld [vmem:[%s1360_s1 + $0xa8] sm:$0xf0]  ;;  %v857_v7 = vor.u32 %v986_v0, %v854_v1  ;;  %v985_v8 = vld [vmem:[%s1360_s1 + $0x14] sm:$0xf0]  ;;  %v908_v9 = vld [vmem:[%s1360_s1 + $0x90] sm:$0xf] }
  0x1c   : > { %623 = vmatpush.bf16.msra.mxu3 %v937_v50  ;;  %v1001_v10 = vld [vmem:[%s1360_s1 + $0x94] sm:$0xf0]  ;;  %v921_v11 = vor.u32 %v1002_v2, %v918_v3  ;;  %v984_v12 = vld [vmem:[%s1360_s1 + $0x14] sm:$0xf]  ;;  %v846_v13 = vld [vmem:[%s1360_s1 + $0x18] sm:$0xf0]  ;;  %v845_v16 = vor.u32 %v985_v8, %v844_v5 }
  0x1d   : > { %v1000_v14 = vld [vmem:[%s1360_s1 + $0x94] sm:$0xf]  ;;  %v910_v15 = vld [vmem:[%s1360_s1 + $0x98] sm:$0xf0]  ;;  %v836_v17 = vld [vmem:[%s1360_s1] sm:$0xf]  ;;  %v909_v18 = vor.u32 %v1001_v10, %v908_v9  ;;  %v849_v19 = vor.u32 %v984_v12, %v846_v13 }
  0x1e   : > { %477 = vmatpush.bf16.msra.mxu0 %v861_v56  ;;  %v983_v20 = vld [vmem:[%s1360_s1 + $0x4] sm:$0xf0]  ;;  %v900_v21 = vld [vmem:[%s1360_s1 + $0x80] sm:$0xf]  ;;  %s1364_s22 = smov (!%p166_p3, %s764_s22), 31  ;;  %v913_v22 = vor.u32 %v1000_v14, %v910_v15 }
  0x1f   : > { %526 = vmatpush.bf16.msra.mxu1 %v925_v57  ;;  %575 = vmatpush.bf16.msra.mxu2 %v865_v58  ;;  %v999_v23 = vld [vmem:[%s1360_s1 + $0x84] sm:$0xf0]  ;;  %v982_v24 = vld [vmem:[%s1360_s1 + $0x4] sm:$0xf]  ;;  %v838_v25 = vld [vmem:[%s1360_s1 + $0x8] sm:$0xf0]  ;;  %v837_v28 = vor.u32 %v983_v20, %v836_v17 }
  0x20   : > { %624 = vmatpush.bf16.msra.mxu3 %v929_v62  ;;  %v998_v26 = vld [vmem:[%s1360_s1 + $0x84] sm:$0xf]  ;;  %v902_v27 = vld [vmem:[%s1360_s1 + $0x88] sm:$0xf0]  ;;  %s964_s17 = sshll.u32 %s1364_s22, 3  ;;  %v901_v29 = vor.u32 %v999_v23, %v900_v21  ;;  %v841_v30 = vor.u32 %v982_v24, %v838_v25 }
  0x21   : > { %s1260_s20 = scalar_lea.vmem %s1359_s0, %s964_s17  ;;  %v905_v34 = vor.u32 %v998_v26, %v902_v27  ;;  %s1308_s26 = scalar_lea.vmem %s1362_s3, %s964_s17 }
  0x22   : > { %478 = vmatpush.bf16.msra.mxu0 %v853_v4  ;;  %v772_v31 = vld [vmem:[%s1260_s20] sm:$0xf]  ;;  %v967_v32 = vld [vmem:[%s1260_s20 + $0x4] sm:$0xf0]  ;;  %v966_v33 = vld [vmem:[%s1260_s20 + $0x4] sm:$0xf] }
  0x23   : > { %527 = vmatpush.bf16.msra.mxu1 %v917_v6  ;;  %576 = vmatpush.bf16.msra.mxu2 %v857_v7  ;;  %v774_v35 = vld [vmem:[%s1260_s20 + $0x8] sm:$0xf0]  ;;  %v773_v36 = vor.u32 %v967_v32, %v772_v31  ;;  %v780_v38 = vld [vmem:[%s1260_s20 + $0x10] sm:$0xf]  ;;  %v969_v39 = vld [vmem:[%s1260_s20 + $0x14] sm:$0xf0] }
  0x24   : > { %625 = vmatpush.bf16.msra.mxu3 %v921_v11  ;;  %v777_v37 = vor.u32 %v966_v33, %v774_v35  ;;  %v968_v40 = vld [vmem:[%s1260_s20 + $0x14] sm:$0xf]  ;;  %v782_v41 = vld [vmem:[%s1260_s20 + $0x18] sm:$0xf0]  ;;  %v781_v42 = vor.u32 %v969_v39, %v780_v38  ;;  %v788_v44 = vld [vmem:[%s1260_s20 + $0x20] sm:$0xf] }
  0x25   : > { %v785_v43 = vor.u32 %v968_v40, %v782_v41  ;;  %v971_v45 = vld [vmem:[%s1260_s20 + $0x24] sm:$0xf0]  ;;  %v970_v46 = vld [vmem:[%s1260_s20 + $0x24] sm:$0xf]  ;;  %v790_v47 = vld [vmem:[%s1260_s20 + $0x28] sm:$0xf0] }
  0x26   : > { %479 = vmatpush.bf16.msra.mxu0 %v845_v16  ;;  %v789_v48 = vor.u32 %v971_v45, %v788_v44  ;;  %v793_v49 = vor.u32 %v970_v46, %v790_v47  ;;  %v796_v50 = vld [vmem:[%s1260_s20 + $0x30] sm:$0xf]  ;;  %v973_v51 = vld [vmem:[%s1260_s20 + $0x34] sm:$0xf0]  ;;  %v972_v52 = vld [vmem:[%s1260_s20 + $0x34] sm:$0xf] }
  0x27   : > { %528 = vmatpush.bf16.msra.mxu1 %v909_v18  ;;  %577 = vmatpush.bf16.msra.mxu2 %v849_v19  ;;  %v798_v53 = vld [vmem:[%s1260_s20 + $0x38] sm:$0xf0]  ;;  %v797_v54 = vor.u32 %v973_v51, %v796_v50  ;;  %v804_v56 = vld [vmem:[%s1260_s20 + $0x40] sm:$0xf]  ;;  %v975_v57 = vld [vmem:[%s1260_s20 + $0x44] sm:$0xf0] }
  0x28   : > { %626 = vmatpush.bf16.msra.mxu3 %v913_v22  ;;  %v801_v55 = vor.u32 %v972_v52, %v798_v53  ;;  %v974_v58 = vld [vmem:[%s1260_s20 + $0x44] sm:$0xf]  ;;  %v806_v59 = vld [vmem:[%s1260_s20 + $0x48] sm:$0xf0]  ;;  %v805_v60 = vor.u32 %v975_v57, %v804_v56  ;;  %v812_v62 = vld [vmem:[%s1260_s20 + $0x50] sm:$0xf] }
  0x29   : > { %v809_v61 = vor.u32 %v974_v58, %v806_v59  ;;  %v977_v63 = vld [vmem:[%s1260_s20 + $0x54] sm:$0xf0]  ;;  %v976_v0 = vld [vmem:[%s1260_s20 + $0x54] sm:$0xf]  ;;  %v814_v1 = vld [vmem:[%s1260_s20 + $0x58] sm:$0xf0] }
  0x2a   : > { %480 = vmatpush.bf16.msra.mxu0 %v837_v28  ;;  %v813_v2 = vor.u32 %v977_v63, %v812_v62  ;;  %v817_v3 = vor.u32 %v976_v0, %v814_v1  ;;  %v820_v4 = vld [vmem:[%s1260_s20 + $0x60] sm:$0xf]  ;;  %v979_v5 = vld [vmem:[%s1260_s20 + $0x64] sm:$0xf0]  ;;  %v978_v6 = vld [vmem:[%s1260_s20 + $0x64] sm:$0xf] }
  0x2b   : > { %529 = vmatpush.bf16.msra.mxu1 %v901_v29  ;;  %578 = vmatpush.bf16.msra.mxu2 %v841_v30  ;;  %v822_v7 = vld [vmem:[%s1260_s20 + $0x68] sm:$0xf0]  ;;  %v821_v8 = vor.u32 %v979_v5, %v820_v4  ;;  %v828_v10 = vld [vmem:[%s1260_s20 + $0x70] sm:$0xf]  ;;  %v981_v11 = vld [vmem:[%s1260_s20 + $0x74] sm:$0xf0] }
  0x2c   : > { %627 = vmatpush.bf16.msra.mxu3 %v905_v34  ;;  %v825_v9 = vor.u32 %v978_v6, %v822_v7  ;;  %v980_v12 = vld [vmem:[%s1260_s20 + $0x74] sm:$0xf]  ;;  %v830_v13 = vld [vmem:[%s1260_s20 + $0x78] sm:$0xf0]  ;;  %v829_v14 = vor.u32 %v981_v11, %v828_v10  ;;  %v227_v16 = vld [vmem:[%s1361_s2] sm:$0x3] }
  0x2d   : > { %481 = vmatmul.bf16.vlgmr.msra.gmra.mxu0 %v773_v36  ;;  %v833_v15 = vor.u32 %v980_v12, %v830_v13  ;;  %v1297_v17 = vperm.slane %v227_v16, 0  ;;  %v1300_v21 = vperm.slane %v227_v16, 1 }
  0x2e   : > { %530 = vmatmul.bf16.vlgmr.msra.gmra.mxu1 %v777_v37  ;;  %579 = vmatmul.bf16.vlgmr.msra.gmra.mxu2 %v773_v36 }
  0x2f   : > { %628 = vmatmul.bf16.vlgmr.msra.gmra.mxu3 %v777_v37 }
  0x3d   : > { %486 = vmatmul.bf16.gmra.mxu0 %v781_v42 }
  0x3e   : > { %535 = vmatmul.bf16.gmra.mxu1 %v785_v43  ;;  %584 = vmatmul.bf16.gmra.mxu2 %v781_v42 }
  0x3f   : > { %633 = vmatmul.bf16.gmra.mxu3 %v785_v43 }
  0x4d   : > { %491 = vmatmul.bf16.gmra.mxu0 %v789_v48 }
  0x4e   : > { %540 = vmatmul.bf16.gmra.mxu1 %v793_v49  ;;  %589 = vmatmul.bf16.gmra.mxu2 %v789_v48 }
  0x4f   : > { %638 = vmatmul.bf16.gmra.mxu3 %v793_v49 }
  0x5d   : > { %496 = vmatmul.bf16.gmra.mxu0 %v797_v54 }
  0x5e   : > { %545 = vmatmul.bf16.gmra.mxu1 %v801_v55  ;;  %594 = vmatmul.bf16.gmra.mxu2 %v797_v54 }
  0x5f   : > { %643 = vmatmul.bf16.gmra.mxu3 %v801_v55 }
  0x6d   : > { %501 = vmatmul.bf16.gmra.mxu0 %v805_v60 }
  0x6e   : > { %550 = vmatmul.bf16.gmra.mxu1 %v809_v61  ;;  %599 = vmatmul.bf16.gmra.mxu2 %v805_v60 }
  0x6f   : > { %648 = vmatmul.bf16.gmra.mxu3 %v809_v61 }
  0x7d   : > { %506 = vmatmul.bf16.gmra.mxu0 %v813_v2 }
  0x7e   : > { %555 = vmatmul.bf16.gmra.mxu1 %v817_v3  ;;  %604 = vmatmul.bf16.gmra.mxu2 %v813_v2 }
  0x7f   : > { %653 = vmatmul.bf16.gmra.mxu3 %v817_v3 }
  0x8d   : > { %511 = vmatmul.bf16.gmra.mxu0 %v821_v8 }
  0x8e   : > { %560 = vmatmul.bf16.gmra.mxu1 %v825_v9  ;;  %609 = vmatmul.bf16.gmra.mxu2 %v821_v8 }
  0x8f   : > { %658 = vmatmul.bf16.gmra.mxu3 %v825_v9 }
  0x9d   : > { %516 = vmatmul.bf16.gmra.mxu0 %v829_v14 }
  0x9e   : > { %565 = vmatmul.bf16.gmra.mxu1 %v833_v15  ;;  %614 = vmatmul.bf16.gmra.mxu2 %v829_v14 }
  0x9f   : > { %663 = vmatmul.bf16.gmra.mxu3 %v833_v15 }
  0xaa   : > { %v482_v18 = vpop.f32.mrf.mxu0 }
  0xab   : > { %v531_v19 = vpop.f32.mrf.mxu1  ;;  %v483_v20 = vadd.f32 %v482_v18, %v1297_v17 }
  0xad   : > { %v532_v23 = vadd.f32 %v531_v19, %v483_v20 }
  0xb1   : > { %v580_v22 = vpop.f32.mrf.mxu2 }
  0xb2   : > { %v581_v24 = vadd.f32 %v580_v22, %v1300_v21  ;;  %v629_v25 = vpop.f32.mrf.mxu3  ;;  %v484_v26 = vpop.f32.mrf.mxu0 }
  0xb3   : > { %v533_v27 = vpop.f32.mrf.mxu1  ;;  %v485_v30 = vadd.f32 %v484_v26, %v1297_v17 }
  0xb4   : > { %v630_v28 = vadd.f32 %v629_v25, %v581_v24 }
  0xb5   : > { %v534_v36 = vadd.f32 %v533_v27, %v485_v30 }
  0xb6   : > { %v669_v29 = vpack.c.bf16 %v630_v28, %v532_v23 }
  0xb8   : > { %685 = vst [vmem:[%s1308_s26] sm:$0xff] %v669_v29 }
  0xb9   : > { %v582_v31 = vpop.f32.mrf.mxu2 }
  0xba   : > { %v583_v32 = vadd.f32 %v582_v31, %v1300_v21  ;;  %v631_v33 = vpop.f32.mrf.mxu3  ;;  %v487_v34 = vpop.f32.mrf.mxu0 }
  0xbb   : > { %v536_v35 = vpop.f32.mrf.mxu1  ;;  %v488_v39 = vadd.f32 %v487_v34, %v1297_v17 }
  0xbc   : > { %v632_v37 = vadd.f32 %v631_v33, %v583_v32 }
  0xbd   : > { %v537_v41 = vadd.f32 %v536_v35, %v488_v39 }
  0xbe   : > { %v670_v38 = vpack.c.bf16 %v632_v37, %v534_v36 }
  0xc0   : > { %686 = vst [vmem:[%s1308_s26 + $0x8] sm:$0xff] %v670_v38 }
  0xc1   : > { %v585_v40 = vpop.f32.mrf.mxu2 }
  0xc2   : > { %v586_v42 = vadd.f32 %v585_v40, %v1300_v21  ;;  %v634_v43 = vpop.f32.mrf.mxu3  ;;  %v489_v44 = vpop.f32.mrf.mxu0 }
  0xc3   : > { %v538_v45 = vpop.f32.mrf.mxu1  ;;  %v490_v48 = vadd.f32 %v489_v44, %v1297_v17 }
  0xc4   : > { %v635_v46 = vadd.f32 %v634_v43, %v586_v42 }
  0xc5   : > { %v539_v54 = vadd.f32 %v538_v45, %v490_v48 }
  0xc6   : > { %v671_v47 = vpack.c.bf16 %v635_v46, %v537_v41 }
  0xc8   : > { %687 = vst [vmem:[%s1308_s26 + $0x10] sm:$0xff] %v671_v47 }
  0xc9   : > { %v587_v49 = vpop.f32.mrf.mxu2 }
  0xca   : > { %v588_v50 = vadd.f32 %v587_v49, %v1300_v21  ;;  %v636_v51 = vpop.f32.mrf.mxu3  ;;  %v492_v52 = vpop.f32.mrf.mxu0 }
  0xcb   : > { %v541_v53 = vpop.f32.mrf.mxu1  ;;  %v493_v57 = vadd.f32 %v492_v52, %v1297_v17 }
  0xcc   : > { %v637_v55 = vadd.f32 %v636_v51, %v588_v50 }
  0xcd   : > { %v542_v59 = vadd.f32 %v541_v53, %v493_v57 }
  0xce   : > { %v672_v56 = vpack.c.bf16 %v637_v55, %v539_v54 }
  0xd0   : > { %688 = vst [vmem:[%s1308_s26 + $0x18] sm:$0xff] %v672_v56 }
  0xd1   : > { %v590_v58 = vpop.f32.mrf.mxu2 }
  0xd2   : > { %v591_v60 = vadd.f32 %v590_v58, %v1300_v21  ;;  %v639_v61 = vpop.f32.mrf.mxu3  ;;  %v494_v62 = vpop.f32.mrf.mxu0 }
  0xd3   : > { %v543_v63 = vpop.f32.mrf.mxu1  ;;  %v495_v2 = vadd.f32 %v494_v62, %v1297_v17 }
  0xd4   : > { %v640_v0 = vadd.f32 %v639_v61, %v591_v60 }
  0xd5   : > { %v544_v8 = vadd.f32 %v543_v63, %v495_v2 }
  0xd6   : > { %v673_v1 = vpack.c.bf16 %v640_v0, %v542_v59 }
  0xd8   : > { %689 = vst [vmem:[%s1308_s26 + $0x20] sm:$0xff] %v673_v1 }
  0xd9   : > { %v592_v3 = vpop.f32.mrf.mxu2 }
  0xda   : > { %v593_v4 = vadd.f32 %v592_v3, %v1300_v21  ;;  %v641_v5 = vpop.f32.mrf.mxu3  ;;  %v497_v6 = vpop.f32.mrf.mxu0 }
  0xdb   : > { %v546_v7 = vpop.f32.mrf.mxu1  ;;  %v498_v11 = vadd.f32 %v497_v6, %v1297_v17 }
  0xdc   : > { %v642_v9 = vadd.f32 %v641_v5, %v593_v4 }
  0xdd   : > { %v547_v13 = vadd.f32 %v546_v7, %v498_v11 }
  0xde   : > { %v674_v10 = vpack.c.bf16 %v642_v9, %v544_v8 }
  0xe0   : > { %690 = vst [vmem:[%s1308_s26 + $0x28] sm:$0xff] %v674_v10 }
  0xe1   : > { %v595_v12 = vpop.f32.mrf.mxu2 }
  0xe2   : > { %v596_v14 = vadd.f32 %v595_v12, %v1300_v21  ;;  %v644_v15 = vpop.f32.mrf.mxu3  ;;  %v499_v16 = vpop.f32.mrf.mxu0 }
  0xe3   : > { %v548_v18 = vpop.f32.mrf.mxu1  ;;  %v500_v22 = vadd.f32 %v499_v16, %v1297_v17 }
  0xe4   : > { %v645_v19 = vadd.f32 %v644_v15, %v596_v14 }
  0xe5   : > { %v549_v28 = vadd.f32 %v548_v18, %v500_v22 }
  0xe6   : > { %v675_v20 = vpack.c.bf16 %v645_v19, %v547_v13 }
  0xe8   : > { %691 = vst [vmem:[%s1308_s26 + $0x30] sm:$0xff] %v675_v20 }
  0xe9   : > { %v597_v23 = vpop.f32.mrf.mxu2 }
  0xea   : > { %v598_v24 = vadd.f32 %v597_v23, %v1300_v21  ;;  %v646_v25 = vpop.f32.mrf.mxu3  ;;  %v502_v26 = vpop.f32.mrf.mxu0 }
  0xeb   : > { %v551_v27 = vpop.f32.mrf.mxu1  ;;  %v503_v31 = vadd.f32 %v502_v26, %v1297_v17 }
  0xec   : > { %v647_v29 = vadd.f32 %v646_v25, %v598_v24 }
  0xed   : > { %v552_v33 = vadd.f32 %v551_v27, %v503_v31 }
  0xee   : > { %v676_v30 = vpack.c.bf16 %v647_v29, %v549_v28 }
  0xf0   : > { %692 = vst [vmem:[%s1308_s26 + $0x38] sm:$0xff] %v676_v30 }
  0xf1   : > { %v600_v32 = vpop.f32.mrf.mxu2 }
  0xf2   : > { %v601_v34 = vadd.f32 %v600_v32, %v1300_v21  ;;  %v649_v35 = vpop.f32.mrf.mxu3  ;;  %v504_v36 = vpop.f32.mrf.mxu0 }
  0xf3   : > { %v553_v37 = vpop.f32.mrf.mxu1  ;;  %v505_v40 = vadd.f32 %v504_v36, %v1297_v17 }
  0xf4   : > { %v650_v38 = vadd.f32 %v649_v35, %v601_v34 }
  0xf5   : > { %v554_v46 = vadd.f32 %v553_v37, %v505_v40 }
  0xf6   : > { %v677_v39 = vpack.c.bf16 %v650_v38, %v552_v33 }
  0xf8   : > { %693 = vst [vmem:[%s1308_s26 + $0x40] sm:$0xff] %v677_v39 }
  0xf9   : > { %v602_v41 = vpop.f32.mrf.mxu2 }
  0xfa   : > { %v603_v42 = vadd.f32 %v602_v41, %v1300_v21  ;;  %v651_v43 = vpop.f32.mrf.mxu3  ;;  %v507_v44 = vpop.f32.mrf.mxu0 }
  0xfb   : > { %v556_v45 = vpop.f32.mrf.mxu1  ;;  %v508_v49 = vadd.f32 %v507_v44, %v1297_v17 }
  0xfc   : > { %v652_v47 = vadd.f32 %v651_v43, %v603_v42 }
  0xfd   : > { %v557_v51 = vadd.f32 %v556_v45, %v508_v49 }
  0xfe   : > { %v678_v48 = vpack.c.bf16 %v652_v47, %v554_v46 }
 0x100   : > { %694 = vst [vmem:[%s1308_s26 + $0x48] sm:$0xff] %v678_v48 }
 0x101   : > { %v605_v50 = vpop.f32.mrf.mxu2 }
 0x102   : > { %v606_v52 = vadd.f32 %v605_v50, %v1300_v21  ;;  %v654_v53 = vpop.f32.mrf.mxu3  ;;  %v509_v54 = vpop.f32.mrf.mxu0 }
 0x103   : > { %v558_v55 = vpop.f32.mrf.mxu1  ;;  %v510_v58 = vadd.f32 %v509_v54, %v1297_v17 }
 0x104   : > { %v655_v56 = vadd.f32 %v654_v53, %v606_v52 }
 0x105   : > { %v559_v63 = vadd.f32 %v558_v55, %v510_v58 }
 0x106   : > { %v679_v57 = vpack.c.bf16 %v655_v56, %v557_v51 }
 0x108   : > { %695 = vst [vmem:[%s1308_s26 + $0x50] sm:$0xff] %v679_v57 }
 0x109   : > { %v607_v59 = vpop.f32.mrf.mxu2 }
 0x10a   : > { %v608_v60 = vadd.f32 %v607_v59, %v1300_v21  ;;  %v656_v61 = vpop.f32.mrf.mxu3  ;;  %v512_v62 = vpop.f32.mrf.mxu0 }
 0x10b   : > { %v561_v1 = vpop.f32.mrf.mxu1  ;;  %v513_v3 = vadd.f32 %v512_v62, %v1297_v17 }
 0x10c   : > { %v657_v0 = vadd.f32 %v656_v61, %v608_v60 }
 0x10d   : > { %v562_v5 = vadd.f32 %v561_v1, %v513_v3 }
 0x10e   : > { %v680_v2 = vpack.c.bf16 %v657_v0, %v559_v63 }
 0x110   : > { %696 = vst [vmem:[%s1308_s26 + $0x58] sm:$0xff] %v680_v2 }
 0x111   : > { %v610_v4 = vpop.f32.mrf.mxu2 }
 0x112   : > { %v611_v6 = vadd.f32 %v610_v4, %v1300_v21  ;;  %v659_v7 = vpop.f32.mrf.mxu3  ;;  %v514_v8 = vpop.f32.mrf.mxu0 }
 0x113   : > { %v563_v11 = vpop.f32.mrf.mxu1  ;;  %v515_v12 = vadd.f32 %v514_v8, %v1297_v17 }
 0x114   : > { %v660_v9 = vadd.f32 %v659_v7, %v611_v6 }
 0x115   : > { %v564_v18 = vadd.f32 %v563_v11, %v515_v12 }
 0x116   : > { %v681_v10 = vpack.c.bf16 %v660_v9, %v562_v5 }
 0x118   : > { %697 = vst [vmem:[%s1308_s26 + $0x60] sm:$0xff] %v681_v10 }
 0x119   : > { %v612_v13 = vpop.f32.mrf.mxu2 }
 0x11a   : > { %v613_v14 = vadd.f32 %v612_v13, %v1300_v21  ;;  %v661_v15 = vpop.f32.mrf.mxu3  ;;  %v517_v16 = vpop.f32.mrf.mxu0 }
 0x11b   : > { %v518_v22 = vadd.f32 %v517_v16, %v1297_v17  ;;  %v566_v23 = vpop.f32.mrf.mxu1 }
 0x11c   : > { %v662_v19 = vadd.f32 %v661_v15, %v613_v14 }
 0x11d   : > { %v567_v25 = vadd.f32 %v566_v23, %v518_v22 }
 0x11e   : > { %v682_v20 = vpack.c.bf16 %v662_v19, %v564_v18 }
 0x120   : > { %698 = vst [vmem:[%s1308_s26 + $0x68] sm:$0xff] %v682_v20 }
 0x121   : > { %v615_v24 = vpop.f32.mrf.mxu2 }
 0x122   : > { %v616_v26 = vadd.f32 %v615_v24, %v1300_v21  ;;  %v664_v27 = vpop.f32.mrf.mxu3  ;;  %v519_v29 = vpop.f32.mrf.mxu0 }
 0x123   : > { %v520_v31 = vadd.f32 %v519_v29, %v1297_v17  ;;  %v568_v34 = vpop.f32.mrf.mxu1 }
 0x124   : > { %v665_v28 = vadd.f32 %v664_v27, %v616_v26 }
 0x125   : > { %v569_v36 = vadd.f32 %v568_v34, %v520_v31 }
 0x126   : > { %v683_v30 = vpack.c.bf16 %v665_v28, %v567_v25 }
 0x128   : > { %699 = vst [vmem:[%s1308_s26 + $0x70] sm:$0xff] %v683_v30 }
 0x129   : > { %v617_v32 = vpop.f32.mrf.mxu2 }
 0x12a   : > { %v618_v33 = vadd.f32 %v617_v32, %v1300_v21  ;;  %v666_v35 = vpop.f32.mrf.mxu3 }
 0x12c   : > { %v667_v37 = vadd.f32 %v666_v35, %v618_v33 }
 0x12e   : > { %v684_v38 = vpack.c.bf16 %v667_v37, %v569_v36 }
 0x130   : > { %700 = vst [vmem:[%s1308_s26 + $0x78] sm:$0xff] %v684_v38 }
 0x131 PF: > { %s13_s12 = sadd.s32 1, %s1028_s12  }
 0x132   : > { %p10_p4 = scmp.ge.s32.totalorder %s13_s12, 4  }
 0x134   :  { %12 = sbr.rel (!%p10_p4) target bundleno = 1 (0x1), region = 62 }

// kernel: drug_interaction_transformer_forward.25
= control target key start
LH: loop header
LB: loop body
LE: loop exit
PB: predicated region body
PF: predicated region fallthrough
CT: control target
= control target key end

     0   :  { %s1344_s15 = smov 0   ;;  %s1346_s16 = smov 0   ;;  %s1573_s0 = inlined_call_operand.vmem [shape: bf16[2,2,128,128], index: 0, kind: input, shape index: {}]   ;;  %s1574_s1 = inlined_call_operand.vmem [shape: bf16[2,2,128,128], index: 1, kind: input, shape index: {}]   ;;  %s1575_s2 = inlined_call_operand.vmem [shape: bf16[2,2,128,128], index: 2, kind: input, shape index: {}]   ;;  %s1576_s3 = inlined_call_operand.vmem [shape: f32[2,1,128], index: 3, kind: input, shape index: {}]   ;;  %s1577_s4 = inlined_call_operand.vmem [shape: bf16[2,2,128,128], index: 4, kind: output, shape index: {}]  }
   0x1   :  { %s1348_s17 = smov 0   ;;  %s1350_s18 = smov 0  }
   0x2   :  { %s1352_s19 = smov 0  }
   0x3 LB: > { %s23_s20 = sadd.s32 1, %s1309_s17  ;;  %s26_s21 = sadd.s32 1, %s1313_s18  ;;  %s1317_s19 = sphi %s1352_s19, %s14_s19   ;;  %s1313_s18 = sphi %s1350_s18, %s1581_s18   ;;  %s1309_s17 = sphi %s1348_s17, %s1580_s17   ;;  %s1305_s16 = sphi %s1346_s16, %s1579_s16   ;;  %s1301_s15 = sphi %s1344_s15, %s1578_s15  }
   0x4   : > { %p24_p0 = scmp.ge.s32.totalorder %s23_s20, 2  ;;  %p976_p1 = scmp.ge.s32.totalorder %s1317_s19, 1 }
   0x5   : > { %p222_p2 = scmp.lt.s32.totalorder %s1317_s19, 5 }
   0x6   : > { %s1583_s20 = smov (%p24_p0, %s23_s20), 0  ;;  %s1585_s21 = smov (!%p24_p0, %s26_s21), %s1313_s18 }
   0x7   : > { %p223_p3 = pnand %p976_p1, %p222_p2  ;;  %p28_p4 = scmp.ge.s32.totalorder %s1585_s21, 2 }
   0x8   : > { %p277_p5 = scmp.lt.s32.totalorder (!%p223_p3), %s1305_s16, 1  ;;  %p279_p6 = scmp.lt.s32.totalorder (!%p223_p3), %s1301_s15, 1 }
   0x9   : > { %s1587_s21 = smov (%p28_p4, %s1585_s21), 0  ;;  %226 = sbr.rel (%p223_p3) target bundleno = 748 (0x2ec), region = 36 }
   0xe   : > { %s1589_s16 = smov (!%p277_p5, %s1305_s16), 1  ;;  %s1591_s15 = smov (!%p279_p6, %s1301_s15), 1 }
   0xf   : > { %s978_s22 = sshll.u32 %s1589_s16, 5  ;;  %s306_s25 = scalar_lea.vmem %s1576_s3, %s1589_s16 }
  0x10   : > { %s977_s26 = sshll.u32 %s1591_s15, 4  ;;  %v1396_v16 = vld [vmem:[%s306_s25] ss:$0 sm:$0xff] }
  0x11   : > { %s283_s27 = sadd.s32 %s978_s22, %s977_s26 }
  0x12   : > { %s1381_s28 = sshll.u32 %s283_s27, 2 }
  0x13   : > { %s294_s5 = scalar_lea.vmem %s1574_s1, %s1381_s28  ;;  %s285_s8 = scalar_lea.vmem %s1573_s0, %s1381_s28 }
  0x14   : > { %v1102_v0 = vld [vmem:[%s294_s5 + $0x38] sm:$0xff]  ;;  %v1101_v1 = vld [vmem:[%s294_s5 + $0x30] sm:$0xff]  ;;  %v1100_v2 = vld [vmem:[%s294_s5 + $0x28] sm:$0xff]  ;;  %s1484_s13 = scalar_lea.vmem %s1575_s2, %s1381_s28  ;;  %s1548_s16 = scalar_lea.vmem %s1577_s4, %s1381_s28 }
  0x15   : > { %460 = vmatpush.bf16.xpose.msra.mxu0 %v1102_v0  ;;  %1158 = vmatpush.bf16.xpose.msra.mxu2 %v1102_v0  ;;  %v1099_v3 = vld [vmem:[%s294_s5 + $0x20] sm:$0xff]  ;;  %v1098_v4 = vld [vmem:[%s294_s5 + $0x18] sm:$0xff]  ;;  %v1097_v5 = vld [vmem:[%s294_s5 + $0x10] sm:$0xff] }
  0x16   : > { %v1096_v6 = vld [vmem:[%s294_s5 + $0x8] sm:$0xff]  ;;  %v1095_v7 = vld [vmem:[%s294_s5] sm:$0xff]  ;;  %v1090_v9 = vld [vmem:[%s285_s8 + $0x18] sm:$0xff] }
  0x17   : > { %v1087_v8 = vld [vmem:[%s285_s8] sm:$0xff]  ;;  %v1088_v10 = vld [vmem:[%s285_s8 + $0x8] sm:$0xff]  ;;  %v1089_v12 = vld [vmem:[%s285_s8 + $0x10] sm:$0xff] }
  0x18   : > { %v1091_v11 = vld [vmem:[%s285_s8 + $0x20] sm:$0xff]  ;;  %v1092_v13 = vld [vmem:[%s285_s8 + $0x28] sm:$0xff]  ;;  %v1093_v14 = vld [vmem:[%s285_s8 + $0x30] sm:$0xff] }
  0x19   : > { %v1094_v15 = vld [vmem:[%s285_s8 + $0x38] sm:$0xff] }
  0x1d   : > { %461 = vmatpush.bf16.xpose.msra.mxu0 %v1101_v1  ;;  %1159 = vmatpush.bf16.xpose.msra.mxu2 %v1101_v1 }
  0x25   : > { %462 = vmatpush.bf16.xpose.msra.mxu0 %v1100_v2  ;;  %1160 = vmatpush.bf16.xpose.msra.mxu2 %v1100_v2 }
  0x2d   : > { %463 = vmatpush.bf16.xpose.msra.mxu0 %v1099_v3  ;;  %1161 = vmatpush.bf16.xpose.msra.mxu2 %v1099_v3 }
  0x35   : > { %464 = vmatpush.bf16.xpose.msra.mxu0 %v1098_v4  ;;  %1162 = vmatpush.bf16.xpose.msra.mxu2 %v1098_v4 }
  0x3d   : > { %465 = vmatpush.bf16.xpose.msra.mxu0 %v1097_v5  ;;  %1163 = vmatpush.bf16.xpose.msra.mxu2 %v1097_v5 }
  0x45   : > { %466 = vmatpush.bf16.xpose.msra.mxu0 %v1096_v6  ;;  %1164 = vmatpush.bf16.xpose.msra.mxu2 %v1096_v6 }
  0x4d   : > { %467 = vmatpush.bf16.xpose.msra.mxu0 %v1095_v7  ;;  %1165 = vmatpush.bf16.xpose.msra.mxu2 %v1095_v7 }
  0x54   : > { %468 = vmatmul.bf16.vlgmr.msra.gmra.mxu0 %v1087_v8  ;;  %483 = vmatmul.bf16.vlgmr.msra.gmra.mxu2 %v1090_v9 }
  0x64   : > { %473 = vmatmul.bf16.gmra.mxu0 %v1088_v10  ;;  %488 = vmatmul.bf16.gmra.mxu2 %v1091_v11 }
  0x74   : > { %478 = vmatmul.bf16.gmra.mxu0 %v1089_v12  ;;  %493 = vmatmul.bf16.gmra.mxu2 %v1092_v13 }
  0x84   : > { %498 = vmatmul.bf16.gmra.mxu2 %v1093_v14 }
  0x94   : > { %503 = vmatmul.bf16.gmra.mxu2 %v1094_v15 }
  0xd1   : > { %v469_v17 = vpop.f32.mrf.mxu0 }
  0xd2   : > { %v509_v18 = vmul.f32 0.088388346, %v469_v17 }
  0xd4   : > { %v529_v19 = vadd.f32 %v1396_v16, %v509_v18 }
  0xd6   : > { %545 = vmax.xlane.f32.xlu0 %v529_v19 }
  0xd7   : > { %v484_v20 = vpop.f32.mrf.mxu2 }
  0xd8   : > { %v515_v42 = vmul.f32 0.088388346, %v484_v20 }
  0xd9   : > { %v471_v21 = vpop.f32.mrf.mxu0 }
  0xda   : > { %v510_v22 = vmul.f32 0.088388346, %v471_v21  ;;  %v1421_v46 = vadd.f32 %v1396_v16, %v515_v42 }
  0xdc   : > { %v530_v23 = vadd.f32 %v1396_v16, %v510_v22 }
  0xde   : > { %547 = vmax.xlane.f32.xlu0 %v530_v23 }
  0xdf   : > { %v486_v24 = vpop.f32.mrf.mxu2 }
  0xe0   : > { %v516_v50 = vmul.f32 0.088388346, %v486_v24 }
  0xe1   : > { %v474_v25 = vpop.f32.mrf.mxu0 }
  0xe2   : > { %v511_v26 = vmul.f32 0.088388346, %v474_v25  ;;  %v1430_v53 = vadd.f32 %v1396_v16, %v516_v50 }
  0xe4   : > { %v531_v27 = vadd.f32 %v1396_v16, %v511_v26 }
  0xe6   : > { %549 = vmax.xlane.f32.xlu1 %v531_v27 }
  0xe7   : > { %v489_v28 = vpop.f32.mrf.mxu2 }
  0xe8   : > { %v517_v10 = vmul.f32 0.088388346, %v489_v28 }
  0xe9   : > { %v476_v29 = vpop.f32.mrf.mxu0 }
  0xea   : > { %v512_v30 = vmul.f32 0.088388346, %v476_v29  ;;  %v1457_v13 = vadd.f32 %v1396_v16, %v517_v10 }
  0xec   : > { %v1402_v31 = vadd.f32 %v1396_v16, %v512_v30 }
  0xee   : > { %551 = vmax.xlane.f32.xlu1 %v1402_v31 }
  0xef   : > { %v491_v32 = vpop.f32.mrf.mxu2 }
  0xf0   : > { %v518_v58 = vmul.f32 0.088388346, %v491_v32 }
  0xf1   : > { %v479_v33 = vpop.f32.mrf.mxu0 }
  0xf2   : > { %v513_v34 = vmul.f32 0.088388346, %v479_v33  ;;  %v1442_v59 = vadd.f32 %v1396_v16, %v518_v58 }
  0xf4   : > { %v1406_v35 = vadd.f32 %v1396_v16, %v513_v34 }
  0xf6   : > { %553 = vmax.xlane.f32.xlu0 %v1406_v35 }
  0xf7   : > { %v494_v36 = vpop.f32.mrf.mxu2 }
  0xf8   : > { %v519_v37 = vmul.f32 0.088388346, %v494_v36 }
  0xf9   : > { %v481_v38 = vpop.f32.mrf.mxu0 }
  0xfa   : > { %v514_v39 = vmul.f32 0.088388346, %v481_v38  ;;  %v1410_v40 = vadd.f32 %v1396_v16, %v519_v37 }
  0xfc   : > { %565 = vmax.xlane.f32.xlu2 %v1410_v40  ;;  %v1414_v41 = vadd.f32 %v1396_v16, %v514_v39  ;;  %v1110_v39 = vld [vmem:[%s1484_s13 + $0x38] sm:$0xff] }
  0xfd   : > { %745 = vmatpush.bf16.msra.mxu1 %v1110_v39  ;;  %1166 = vmatpush.bf16.msra.mxu3 %v1110_v39 }
  0xfe   : > { %555 = vmax.xlane.f32.xlu1 %v1414_v41 }
  0xff   : > { %v496_v43 = vpop.f32.mrf.mxu2 }
 0x100   : > { %v520_v44 = vmul.f32 0.088388346, %v496_v43 }
 0x102   : > { %v1418_v45 = vadd.f32 %v1396_v16, %v520_v44 }
 0x104   : > { %567 = vmax.xlane.f32.xlu2 %v1418_v45 }
 0x106   : > { %557 = vmax.xlane.f32.xlu1 %v1421_v46 }
 0x107   : > { %v499_v47 = vpop.f32.mrf.mxu2 }
 0x108   : > { %v521_v48 = vmul.f32 0.088388346, %v499_v47 }
 0x10a   : > { %v1426_v49 = vadd.f32 %v1396_v16, %v521_v48 }
 0x10c   : > { %569 = vmax.xlane.f32.xlu2 %v1426_v49 }
 0x10f   : > { %v501_v51 = vpop.f32.mrf.mxu2 }
 0x110   : > { %v522_v52 = vmul.f32 0.088388346, %v501_v51 }
 0x112   : > { %v1433_v54 = vadd.f32 %v1396_v16, %v522_v52 }
 0x114   : > { %559 = vmax.xlane.f32.xlu2 %v1430_v53  ;;  %571 = vmax.xlane.f32.xlu0 %v1433_v54 }
 0x117   : > { %v504_v55 = vpop.f32.mrf.mxu2 }
 0x118   : > { %v523_v56 = vmul.f32 0.088388346, %v504_v55 }
 0x11a   : > { %v1438_v57 = vadd.f32 %v1396_v16, %v523_v56 }
 0x11c   : > { %573 = vmax.xlane.f32.xlu2 %v1438_v57 }
 0x11f   : > { %v506_v3 = vpop.f32.mrf.mxu2 }
 0x120   : > { %v524_v4 = vmul.f32 0.088388346, %v506_v3 }
 0x122   : > { %v1449_v7 = vadd.f32 %v1396_v16, %v524_v4 }
 0x124   : > { %563 = vmax.xlane.f32.xlu2 %v1442_v59 }
 0x149   : > { %v546_v60 = vpop.xlane.xlu0 %545 }
 0x14a   : > { %v577_v61 = vsub.f32 %v529_v19, %v546_v60 }
 0x14c   : > { %v593_v62 = vmul.f32 1.442695, %v577_v61  ;;  %v1107_v61 = vld [vmem:[%s1484_s13 + $0x20] sm:$0xff] }
 0x14e   : > { %1215 = vpow2.f32 %v593_v62  ;;  %v1106_v62 = vld [vmem:[%s1484_s13 + $0x18] sm:$0xff] }
 0x151   : > { %v548_v63 = vpop.xlane.xlu0 %547 }
 0x152   : > { %v578_v0 = vsub.f32 %v530_v23, %v548_v63  ;;  %v1105_v63 = vld [vmem:[%s1484_s13 + $0x10] sm:$0xff] }
 0x154   : > { %v1445_v1 = vpop.eup %1215  ;;  %v595_v2 = vmul.f32 1.442695, %v578_v0  ;;  %v1103_v0 = vld [vmem:[%s1484_s13] sm:$0xff] }
 0x155   : > { %625 = vadd.xlane.f32.xlu0 %v1445_v1 }
 0x156   : > { %1217 = vpow2.f32 %v595_v2 }
 0x159   : > { %v550_v5 = vpop.xlane.xlu1 %549 }
 0x15a   : > { %v579_v6 = vsub.f32 %v531_v27, %v550_v5 }
 0x15c   : > { %v1451_v8 = vpop.eup %1217  ;;  %v597_v9 = vmul.f32 1.442695, %v579_v6 }
 0x15d   : > { %575 = vmax.xlane.f32.xlu0 %v1449_v7  ;;  %627 = vadd.xlane.f32.xlu1 %v1451_v8 }
 0x15e   : > { %1219 = vpow2.f32 %v597_v9 }
 0x161   : > { %v552_v11 = vpop.xlane.xlu1 %551 }
 0x162   : > { %v580_v12 = vsub.f32 %v1402_v31, %v552_v11 }
 0x164   : > { %v1459_v14 = vpop.eup %1219  ;;  %v599_v15 = vmul.f32 1.442695, %v580_v12 }
 0x165   : > { %629 = vadd.xlane.f32.xlu0 %v1459_v14  ;;  %561 = vmax.xlane.f32.xlu1 %v1457_v13 }
 0x166   : > { %1221 = vpow2.f32 %v599_v15 }
 0x169   : > { %v554_v17 = vpop.xlane.xlu0 %553 }
 0x16a   : > { %v581_v18 = vsub.f32 %v1406_v35, %v554_v17 }
 0x16c   : > { %v1464_v19 = vpop.eup %1221  ;;  %v601_v20 = vmul.f32 1.442695, %v581_v18 }
 0x16d   : > { %631 = vadd.xlane.f32.xlu1 %v1464_v19 }
 0x16e   : > { %1223 = vpow2.f32 %v601_v20 }
 0x16f   : > { %v566_v21 = vpop.xlane.xlu2 %565 }
 0x170   : > { %v587_v16 = vsub.f32 %v1410_v40, %v566_v21  ;;  %v1109_v40 = vld [vmem:[%s1484_s13 + $0x30] sm:$0xff] }
 0x171   : > { %v556_v22 = vpop.xlane.xlu1 %555  ;;  %746 = vmatpush.bf16.msra.mxu1 %v1109_v40  ;;  %1167 = vmatpush.bf16.msra.mxu3 %v1109_v40 }
 0x172   : > { %v613_v23 = vmul.f32 1.442695, %v587_v16  ;;  %v582_v24 = vsub.f32 %v1414_v41, %v556_v22 }
 0x174   : > { %v1469_v25 = vpop.eup %1223  ;;  %1225 = vpow2.f32 %v613_v23  ;;  %v603_v26 = vmul.f32 1.442695, %v582_v24 }
 0x175   : > { %633 = vadd.xlane.f32.xlu1 %v1469_v25 }
 0x176   : > { %1227 = vpow2.f32 %v603_v26 }
 0x177   : > { %v568_v27 = vpop.xlane.xlu2 %567 }
 0x178   : > { %v588_v28 = vsub.f32 %v1418_v45, %v568_v27 }
 0x179   : > { %v558_v29 = vpop.xlane.xlu1 %557 }
 0x17a   : > { %v1473_v30 = vpop.eup %1225  ;;  %v615_v31 = vmul.f32 1.442695, %v588_v28  ;;  %v583_v32 = vsub.f32 %v1421_v46, %v558_v29 }
 0x17b   : > { %645 = vadd.xlane.f32.xlu2 %v1473_v30 }
 0x17c   : > { %1229 = vpow2.f32 %v615_v31  ;;  %v605_v33 = vmul.f32 1.442695, %v583_v32  ;;  %v1478_v36 = vpop.eup %1227 }
 0x17e   : > { %1231 = vpow2.f32 %v605_v33 }
 0x17f   : > { %v570_v34 = vpop.xlane.xlu2 %569 }
 0x180   : > { %v589_v35 = vsub.f32 %v1426_v49, %v570_v34  ;;  %v1108_v49 = vld [vmem:[%s1484_s13 + $0x28] sm:$0xff] }
 0x181   : > { %747 = vmatpush.bf16.msra.mxu1 %v1108_v49  ;;  %1168 = vmatpush.bf16.msra.mxu3 %v1108_v49 }
 0x182   : > { %v1486_v37 = vpop.eup %1229  ;;  %v617_v38 = vmul.f32 1.442695, %v589_v35 }
 0x183   : > { %647 = vadd.xlane.f32.xlu0 %v1486_v37  ;;  %635 = vadd.xlane.f32.xlu2 %v1478_v36 }
 0x184   : > { %1233 = vpow2.f32 %v617_v38  ;;  %v1494_v45 = vpop.eup %1231 }
 0x185   : > { %748 = vmatpush.bf16.msra.mxu1 %v1107_v61  ;;  %1169 = vmatpush.bf16.msra.mxu3 %v1107_v61 }
 0x187   : > { %v560_v41 = vpop.xlane.xlu2 %559  ;;  %v572_v42 = vpop.xlane.xlu0 %571 }
 0x188   : > { %v584_v43 = vsub.f32 %v1430_v53, %v560_v41  ;;  %v590_v44 = vsub.f32 %v1433_v54, %v572_v42 }
 0x189   : > { %749 = vmatpush.bf16.msra.mxu1 %v1106_v62  ;;  %1170 = vmatpush.bf16.msra.mxu3 %v1106_v62 }
 0x18a   : > { %v1496_v46 = vpop.eup %1233  ;;  %v607_v47 = vmul.f32 1.442695, %v584_v43  ;;  %v619_v48 = vmul.f32 1.442695, %v590_v44 }
 0x18b   : > { %649 = vadd.xlane.f32.xlu0 %v1496_v46  ;;  %637 = vadd.xlane.f32.xlu2 %v1494_v45 }
 0x18c   : > { %1235 = vpow2.f32 %v607_v47 }
 0x18d   : > { %1237 = vpow2.f32 %v619_v48  ;;  %750 = vmatpush.bf16.msra.mxu1 %v1105_v63  ;;  %1171 = vmatpush.bf16.msra.mxu3 %v1105_v63 }
 0x18f   : > { %v574_v50 = vpop.xlane.xlu2 %573 }
 0x190   : > { %v591_v51 = vsub.f32 %v1438_v57, %v574_v50 }
 0x192   : > { %v1502_v52 = vpop.eup %1235  ;;  %v621_v53 = vmul.f32 1.442695, %v591_v51 }
 0x193   : > { %v1504_v54 = vpop.eup %1237  ;;  %639 = vadd.xlane.f32.xlu0 %v1502_v52 }
 0x194   : > { %1239 = vpow2.f32 %v621_v53  ;;  %651 = vadd.xlane.f32.xlu1 %v1504_v54 }
 0x197   : > { %v564_v55 = vpop.xlane.xlu2 %563 }
 0x198   : > { %v586_v56 = vsub.f32 %v1442_v59, %v564_v55  ;;  %v1104_v59 = vld [vmem:[%s1484_s13 + $0x8] sm:$0xff] }
 0x199   : > { %751 = vmatpush.bf16.msra.mxu1 %v1104_v59  ;;  %1172 = vmatpush.bf16.msra.mxu3 %v1104_v59 }
 0x19a   : > { %v1509_v58 = vpop.eup %1239  ;;  %v611_v60 = vmul.f32 1.442695, %v586_v56 }
 0x19c   : > { %1241 = vpow2.f32 %v611_v60  ;;  %653 = vadd.xlane.f32.xlu1 %v1509_v58 }
 0x19d   : > { %752 = vmatpush.bf16.msra.mxu1 %v1103_v0  ;;  %1173 = vmatpush.bf16.msra.mxu3 %v1103_v0 }
 0x1a2   : > { %v1512_v57 = vpop.eup %1241 }
 0x1a4   : > { %643 = vadd.xlane.f32.xlu1 %v1512_v57 }
 0x1c8   : > { %v626_v2 = vpop.xlane.xlu0 %625 }
 0x1c9   : > { %1243 = vrcp.f32 %v626_v2 }
 0x1cf   : > { %v1244_v9 = vpop.eup %1243 }
 0x1d0   : > { %v576_v3 = vpop.xlane.xlu0 %575  ;;  %v628_v4 = vpop.xlane.xlu1 %627  ;;  %v673_v12 = vmul.f32 %v1244_v9, %v1445_v1 }
 0x1d1   : > { %v592_v5 = vsub.f32 %v1449_v7, %v576_v3  ;;  %1245 = vrcp.f32 %v628_v4 }
 0x1d3   : > { %v623_v6 = vmul.f32 1.442695, %v592_v5 }
 0x1d5   : > { %1247 = vpow2.f32 %v623_v6 }
 0x1d7   : > { %v1246_v10 = vpop.eup %1245 }
 0x1d8   : > { %v562_v11 = vpop.xlane.xlu1 %561  ;;  %v674_v15 = vmul.f32 %v1246_v10, %v1451_v8  ;;  %v630_v16 = vpop.xlane.xlu0 %629 }
 0x1d9   : > { %v585_v17 = vsub.f32 %v1457_v13, %v562_v11 }
 0x1da   : > { %v689_v18 = vpack.c.bf16 %v674_v15, %v673_v12 }
 0x1db   : > { %v1524_v20 = vpop.eup %1247  ;;  %v609_v21 = vmul.f32 1.442695, %v585_v17 }
 0x1dc   : > { %655 = vadd.xlane.f32.xlu2 %v1524_v20  ;;  %753 = vmatmul.bf16.vlgmr.msra.gmra.mxu1 %v689_v18 }
 0x1dd   : > { %1249 = vpow2.f32 %v609_v21 }
 0x1de   : > { %1251 = vrcp.f32 %v630_v16 }
 0x1e0   : > { %v632_v7 = vpop.xlane.xlu1 %631 }
 0x1e1   : > { %1253 = vrcp.f32 %v632_v7 }
 0x1e3   : > { %v1527_v22 = vpop.eup %1249 }
 0x1e4   : > { %641 = vadd.xlane.f32.xlu0 %v1527_v22  ;;  %v1252_v1 = vpop.eup %1251 }
 0x1e5   : > { %v675_v13 = vmul.f32 %v1252_v1, %v1459_v14 }
 0x1e7   : > { %v1254_v8 = vpop.eup %1253 }
 0x1e8   : > { %v676_v23 = vmul.f32 %v1254_v8, %v1464_v19  ;;  %v634_v27 = vpop.xlane.xlu1 %633 }
 0x1ea   : > { %v690_v24 = vpack.c.bf16 %v676_v23, %v675_v13 }
 0x1ec   : > { %758 = vmatmul.bf16.gmra.mxu1 %v690_v24 }
 0x1ee   : > { %v646_v26 = vpop.xlane.xlu2 %645 }
 0x1ef   : > { %1255 = vrcp.f32 %v646_v26 }
 0x1f0   : > { %1257 = vrcp.f32 %v634_v27 }
 0x1f5   : > { %v1256_v31 = vpop.eup %1255 }
 0x1f6   : > { %v648_v28 = vpop.xlane.xlu0 %647  ;;  %v636_v29 = vpop.xlane.xlu2 %635  ;;  %v683_v38 = vmul.f32 %v1256_v31, %v1473_v30 }
 0x1f7   : > { %1259 = vrcp.f32 %v648_v28  ;;  %v1258_v32 = vpop.eup %1257 }
 0x1f8   : > { %1261 = vrcp.f32 %v636_v29  ;;  %v677_v19 = vmul.f32 %v1258_v32, %v1469_v25 }
 0x1fd   : > { %v1260_v33 = vpop.eup %1259 }
 0x1fe   : > { %v1262_v34 = vpop.eup %1261  ;;  %v650_v35 = vpop.xlane.xlu0 %649  ;;  %v684_v14 = vmul.f32 %v1260_v33, %v1486_v37 }
 0x1ff   : > { %v678_v39 = vmul.f32 %v1262_v34, %v1478_v36  ;;  %v638_v42 = vpop.xlane.xlu2 %637 }
 0x200   : > { %v694_v40 = vpack.c.bf16 %v684_v14, %v683_v38  ;;  %1263 = vrcp.f32 %v638_v42 }
 0x201   : > { %v691_v41 = vpack.c.bf16 %v678_v39, %v677_v19  ;;  %1265 = vrcp.f32 %v650_v35 }
 0x202   : > { %778 = vmatmul.bf16.vlgmr.msra.gmra.mxu3 %v694_v40 }
 0x203   : > { %763 = vmatmul.bf16.gmra.mxu1 %v691_v41 }
 0x206   : > { %v640_v43 = vpop.xlane.xlu0 %639  ;;  %v1264_v47 = vpop.eup %1263 }
 0x207   : > { %1267 = vrcp.f32 %v640_v43  ;;  %v652_v44 = vpop.xlane.xlu1 %651  ;;  %v1266_v48 = vpop.eup %1265  ;;  %v679_v37 = vmul.f32 %v1264_v47, %v1494_v45 }
 0x208   : > { %1269 = vrcp.f32 %v652_v44  ;;  %v685_v36 = vmul.f32 %v1266_v48, %v1496_v46 }
 0x20d   : > { %v1268_v30 = vpop.eup %1267 }
 0x20e   : > { %v1270_v49 = vpop.eup %1269  ;;  %v680_v25 = vmul.f32 %v1268_v30, %v1502_v52 }
 0x20f   : > { %v686_v50 = vmul.f32 %v1270_v49, %v1504_v54  ;;  %v654_v55 = vpop.xlane.xlu1 %653 }
 0x210   : > { %v692_v51 = vpack.c.bf16 %v680_v25, %v679_v37  ;;  %1271 = vrcp.f32 %v654_v55 }
 0x211   : > { %v695_v53 = vpack.c.bf16 %v686_v50, %v685_v36 }
 0x213   : > { %768 = vmatmul.bf16.gmra.mxu1 %v692_v51  ;;  %783 = vmatmul.bf16.gmra.mxu3 %v695_v53 }
 0x216   : > { %v1272_v61 = vpop.eup %1271 }
 0x217   : > { %v644_v60 = vpop.xlane.xlu1 %643  ;;  %v687_v52 = vmul.f32 %v1272_v61, %v1509_v58 }
 0x24f   : > { %v656_v56 = vpop.xlane.xlu2 %655 }
 0x250   : > { %1273 = vrcp.f32 %v656_v56 }
 0x251   : > { %1275 = vrcp.f32 %v644_v60 }
 0x256   : > { %v1274_v62 = vpop.eup %1273 }
 0x257   : > { %v642_v45 = vpop.xlane.xlu0 %641  ;;  %v688_v46 = vmul.f32 %v1274_v62, %v1524_v20  ;;  %v1276_v59 = vpop.eup %1275 }
 0x258   : > { %1277 = vrcp.f32 %v642_v45  ;;  %v682_v3 = vmul.f32 %v1276_v59, %v1512_v57 }
 0x259   : > { %v754_v54 = vpop.f32.mrf.mxu1  ;;  %v696_v63 = vpack.c.bf16 %v688_v46, %v687_v52 }
 0x25b   : > { %788 = vmatmul.bf16.gmra.mxu3 %v696_v63 }
 0x25e   : > { %v1278_v0 = vpop.eup %1277 }
 0x25f   : > { %v681_v2 = vmul.f32 %v1278_v0, %v1527_v22 }
 0x261   : > { %v756_v58 = vpop.f32.mrf.mxu1  ;;  %v693_v4 = vpack.c.bf16 %v682_v3, %v681_v2 }
 0x262   : > { %v1114_v5 = vpack.c.bf16 %v756_v58, %v754_v54 }
 0x263   : > { %773 = vmatmul.bf16.gmra.mxu1 %v693_v4 }
 0x264   : > { %1115 = vst [vmem:[%s1548_s16] sm:$0xff] %v1114_v5  }
 0x269   : > { %v759_v6 = vpop.f32.mrf.mxu1 }
 0x271   : > { %v761_v9 = vpop.f32.mrf.mxu1 }
 0x272   : > { %v1119_v10 = vpack.c.bf16 %v761_v9, %v759_v6 }
 0x274   : > { %1151 = vst [vmem:[%s1548_s16 + $0x8] sm:$0xff] %v1119_v10  }
 0x280   : > { %v764_v57 = vpop.f32.mrf.mxu1 }
 0x285   : > { %v779_v11 = vpop.f32.mrf.mxu3 }
 0x288   : > { %v766_v12 = vpop.f32.mrf.mxu1 }
 0x289   : > { %v1124_v15 = vpack.c.bf16 %v766_v12, %v764_v57 }
 0x28b   : > { %1152 = vst [vmem:[%s1548_s16 + $0x10] sm:$0xff] %v1124_v15  }
 0x28d   : > { %v781_v17 = vpop.f32.mrf.mxu3 }
 0x28e   : > { %v1139_v18 = vpack.c.bf16 %v781_v17, %v779_v11 }
 0x290   : > { %1155 = vst [vmem:[%s1548_s16 + $0x28] sm:$0xff] %v1139_v18   ;;  %v769_v20 = vpop.f32.mrf.mxu1 }
 0x296   : > { %v784_v21 = vpop.f32.mrf.mxu3 }
 0x298   : > { %v771_v16 = vpop.f32.mrf.mxu1 }
 0x299   : > { %v1129_v7 = vpack.c.bf16 %v771_v16, %v769_v20 }
 0x29b   : > { %1153 = vst [vmem:[%s1548_s16 + $0x18] sm:$0xff] %v1129_v7  }
 0x29e   : > { %v786_v22 = vpop.f32.mrf.mxu3 }
 0x29f   : > { %v1144_v1 = vpack.c.bf16 %v786_v22, %v784_v21 }
 0x2a1   : > { %1156 = vst [vmem:[%s1548_s16 + $0x30] sm:$0xff] %v1144_v1  }
 0x2de   : > { %v789_v8 = vpop.f32.mrf.mxu3 }
 0x2e0   : > { %v774_v13 = vpop.f32.mrf.mxu1 }
 0x2e6   : > { %v791_v23 = vpop.f32.mrf.mxu3 }
 0x2e7   : > { %v1149_v24 = vpack.c.bf16 %v791_v23, %v789_v8 }
 0x2e8   : > { %v776_v26 = vpop.f32.mrf.mxu1 }
 0x2e9   : > { %1157 = vst [vmem:[%s1548_s16 + $0x38] sm:$0xff] %v1149_v24   ;;  %v1134_v27 = vpack.c.bf16 %v776_v26, %v774_v13 }
 0x2eb   : > { %1154 = vst [vmem:[%s1548_s16 + $0x20] sm:$0xff] %v1134_v27  }
 0x2ec PF: > { %s14_s19 = sadd.s32 1, %s1317_s19   ;;  %s1578_s15 = smov %s1309_s17 }
 0x2ed   : > { %p11_p7 = scmp.ge.s32.totalorder %s14_s19, 6   ;;  %s1579_s16 = smov %s1313_s18 }
 0x2ee   : > { %s1580_s17 = smov %s1583_s20  ;;  %s1581_s18 = smov %s1587_s21 }
 0x2ef   :  { %13 = sbr.rel (!%p11_p7) target bundleno = 3 (0x3), region = 75 }

// kernel: drug_interaction_transformer_forward.27
= control target key start
LH: loop header
LB: loop body
LE: loop exit
PB: predicated region body
PF: predicated region fallthrough
CT: control target
= control target key end

     0   :  { %s1040_s15 = smov 0   ;;  %s1683_s0 = inlined_call_operand.vmem [shape: bf16[256,256], index: 0, kind: input, shape index: {}]   ;;  %s1684_s1 = inlined_call_operand.vmem [shape: bf16[256,256], index: 1, kind: input, shape index: {}]   ;;  %s1685_s2 = inlined_call_operand.vmem [shape: f32[1,256], index: 2, kind: input, shape index: {}]   ;;  %s1686_s3 = inlined_call_operand.vmem [shape: f32[1,256], index: 3, kind: input, shape index: {}]   ;;  %s1687_s4 = inlined_call_operand.vmem [shape: bf16[256,256], index: 4, kind: output, shape index: {}]  }
   0x1 LB: > { %s944_s16 = sadd.s32 4294967295, %s1012_s15   ;;  %p948_p0 = scmp.ge.s32.totalorder %s1012_s15, 1  ;;  %s1012_s15 = sphi %s1040_s15, %s14_s15  }
   0x2   : > { %p176_p1 = scmp.lt.s32.totalorder %s1012_s15, 3 }
   0x4   : > { %p177_p2 = pnand %p948_p0, %p176_p1 }
   0x5   : > { %s949_s17 = sshll.u32 (!%p177_p2), %s944_s16, 4 }
   0x6   : > { %180 = sbr.rel (%p177_p2) target bundleno = 354 (0x162), region = 36  ;;  %p211_p3 = scmp.lt.s32.totalorder (!%p177_p2), %s949_s17, 31 }
   0xb   : > { %s1689_s17 = smov (!%p211_p3, %s949_s17), 31 }
   0xc   : > { %s1048_s18 = sshll.u32 %s1689_s17, 3 }
   0xd   : > { %s1054_s21 = scalar_lea.vmem %s1683_s0, %s1048_s18  ;;  %s1060_s24 = scalar_lea.vmem %s1684_s1, %s1048_s18 }
   0xe   : > { %v235_v0 = vld [vmem:[%s1054_s21 + $0x20] sm:$0xff]  ;;  %v233_v2 = vld [vmem:[%s1054_s21 + $0x10] sm:$0xff]  ;;  %v236_v14 = vld [vmem:[%s1054_s21 + $0x28] sm:$0xff]  ;;  %s1438_s5 = scalar_lea.vmem %s1687_s4, %s1048_s18 }
   0xf   : > { %v283_v1 = vld [vmem:[%s1060_s24 + $0x20] sm:$0xff]  ;;  %v255_v3 = vunpack.c.l.bf16 %v235_v0  ;;  %v256_v4 = vunpack.c.h.bf16 %v235_v0  ;;  %v281_v7 = vld [vmem:[%s1060_s24 + $0x10] sm:$0xff]  ;;  %v251_v10 = vunpack.c.l.bf16 %v233_v2  ;;  %v252_v11 = vunpack.c.h.bf16 %v233_v2  ;;  %v284_v15 = vld [vmem:[%s1060_s24 + $0x28] sm:$0xff] }
  0x10   : > { %v303_v5 = vunpack.c.l.bf16 %v283_v1  ;;  %v304_v6 = vunpack.c.h.bf16 %v283_v1  ;;  %v231_v8 = vld [vmem:[%s1054_s21] sm:$0xff]  ;;  %v299_v12 = vunpack.c.l.bf16 %v281_v7  ;;  %v300_v13 = vunpack.c.h.bf16 %v281_v7  ;;  %v234_v24 = vld [vmem:[%s1054_s21 + $0x18] sm:$0xff]  ;;  %v232_v30 = vld [vmem:[%s1054_s21 + $0x8] sm:$0xff] }
  0x11   : > { %v279_v9 = vld [vmem:[%s1060_s24] sm:$0xff]  ;;  %v247_v18 = vunpack.c.l.bf16 %v231_v8  ;;  %v248_v19 = vunpack.c.h.bf16 %v231_v8  ;;  %v282_v25 = vld [vmem:[%s1060_s24 + $0x18] sm:$0xff]  ;;  %v257_v27 = vunpack.c.l.bf16 %v236_v14  ;;  %v258_v28 = vunpack.c.h.bf16 %v236_v14  ;;  %v280_v35 = vld [vmem:[%s1060_s24 + $0x8] sm:$0xff] }
  0x12   : > { %v1070_v16 = vadd.f32 %v303_v5, %v255_v3  ;;  %v1072_v17 = vadd.f32 %v304_v6, %v256_v4  ;;  %v1074_v20 = vadd.f32 %v299_v12, %v251_v10  ;;  %v1076_v21 = vadd.f32 %v300_v13, %v252_v11  ;;  %v239_v40 = vld [vmem:[%s1054_s21 + $0x40] sm:$0xff]  ;;  %v237_v54 = vld [vmem:[%s1054_s21 + $0x30] sm:$0xff]  ;;  %v238_v61 = vld [vmem:[%s1054_s21 + $0x38] sm:$0xff] }
  0x13   : > { %v295_v22 = vunpack.c.l.bf16 %v279_v9  ;;  %v296_v23 = vunpack.c.h.bf16 %v279_v9  ;;  %v305_v29 = vunpack.c.l.bf16 %v284_v15  ;;  %v306_v34 = vunpack.c.h.bf16 %v284_v15  ;;  %v287_v45 = vld [vmem:[%s1060_s24 + $0x40] sm:$0xff]  ;;  %v285_v55 = vld [vmem:[%s1060_s24 + $0x30] sm:$0xff]  ;;  %v286_v0 = vld [vmem:[%s1060_s24 + $0x38] sm:$0xff] }
  0x14   : > { %v371_v26 = vadd.f32 %v1072_v17, %v1070_v16  ;;  %v365_v31 = vadd.f32 %v1076_v21, %v1074_v20  ;;  %v253_v37 = vunpack.c.l.bf16 %v234_v24  ;;  %v254_v38 = vunpack.c.h.bf16 %v234_v24  ;;  %v242_v4 = vld [vmem:[%s1054_s21 + $0x58] sm:$0xff] }
  0x15   : > { %v1085_v32 = vadd.f32 %v295_v22, %v247_v18  ;;  %v1087_v33 = vadd.f32 %v296_v23, %v248_v19  ;;  %v1090_v36 = vadd.f32 %v305_v29, %v257_v27  ;;  %v301_v39 = vunpack.c.l.bf16 %v282_v25  ;;  %v290_v5 = vld [vmem:[%s1060_s24 + $0x58] sm:$0xff]  ;;  %v240_v18 = vld [vmem:[%s1054_s21 + $0x48] sm:$0xff]  ;;  %v289_v27 = vld [vmem:[%s1060_s24 + $0x50] sm:$0xff] }
  0x16   : > { %372 = vadd.xlane.f32.xlu2 %v371_v26  ;;  %366 = vadd.xlane.f32.xlu1 %v365_v31  ;;  %v1095_v42 = vadd.f32 %v306_v34, %v258_v28  ;;  %v302_v43 = vunpack.c.h.bf16 %v282_v25  ;;  %v249_v44 = vunpack.c.l.bf16 %v232_v30  ;;  %v250_v47 = vunpack.c.h.bf16 %v232_v30  ;;  %v288_v19 = vld [vmem:[%s1060_s24 + $0x48] sm:$0xff]  ;;  %v241_v26 = vld [vmem:[%s1054_s21 + $0x50] sm:$0xff] }
  0x17   : > { %v359_v41 = vadd.f32 %v1087_v33, %v1085_v32  ;;  %v1098_v46 = vadd.f32 %v301_v39, %v253_v37  ;;  %v297_v48 = vunpack.c.l.bf16 %v280_v35  ;;  %v298_v49 = vunpack.c.h.bf16 %v280_v35 }
  0x18   : > { %v374_v50 = vadd.f32 %v1095_v42, %v1090_v36  ;;  %v1102_v51 = vadd.f32 %v302_v43, %v254_v38  ;;  %v263_v52 = vunpack.c.l.bf16 %v239_v40  ;;  %v264_v53 = vunpack.c.h.bf16 %v239_v40 }
  0x19   : > { %360 = vadd.xlane.f32.xlu0 %v359_v41  ;;  %v1106_v56 = vadd.f32 %v297_v48, %v249_v44  ;;  %v1108_v57 = vadd.f32 %v298_v49, %v250_v47  ;;  %v311_v58 = vunpack.c.l.bf16 %v287_v45  ;;  %v312_v59 = vunpack.c.h.bf16 %v287_v45  ;;  %v245_v45 = vld [vmem:[%s1054_s21 + $0x70] sm:$0xff] }
  0x1a   : > { %v368_v60 = vadd.f32 %v1102_v51, %v1098_v46  ;;  %v259_v62 = vunpack.c.l.bf16 %v237_v54  ;;  %v307_v63 = vunpack.c.l.bf16 %v285_v55  ;;  %v260_v2 = vunpack.c.h.bf16 %v237_v54  ;;  %v293_v47 = vld [vmem:[%s1060_s24 + $0x70] sm:$0xff]  ;;  %v292_v54 = vld [vmem:[%s1060_s24 + $0x68] sm:$0xff] }
  0x1b   : > { %v362_v1 = vadd.f32 %v1108_v57, %v1106_v56  ;;  %v308_v3 = vunpack.c.h.bf16 %v285_v55  ;;  %v1118_v6 = vadd.f32 %v311_v58, %v263_v52  ;;  %v1120_v7 = vadd.f32 %v312_v59, %v264_v53 }
  0x1c   : > { %v261_v8 = vunpack.c.l.bf16 %v238_v61  ;;  %v262_v9 = vunpack.c.h.bf16 %v238_v61  ;;  %v309_v10 = vunpack.c.l.bf16 %v286_v0  ;;  %v310_v11 = vunpack.c.h.bf16 %v286_v0 }
  0x1d   : > { %v1122_v12 = vadd.f32 %v307_v63, %v259_v62  ;;  %v269_v13 = vunpack.c.l.bf16 %v242_v4  ;;  %v270_v14 = vunpack.c.h.bf16 %v242_v4  ;;  %v317_v15 = vunpack.c.l.bf16 %v290_v5  ;;  %v243_v62 = vld [vmem:[%s1054_s21 + $0x60] sm:$0xff] }
  0x1e   : > { %375 = vadd.xlane.f32.xlu2 %v374_v50  ;;  %369 = vadd.xlane.f32.xlu1 %v368_v60  ;;  %v1126_v22 = vadd.f32 %v308_v3, %v260_v2  ;;  %v318_v23 = vunpack.c.h.bf16 %v290_v5  ;;  %v1128_v24 = vadd.f32 %v309_v10, %v261_v8  ;;  %v1130_v25 = vadd.f32 %v310_v11, %v262_v9  ;;  %v244_v50 = vld [vmem:[%s1054_s21 + $0x68] sm:$0xff]  ;;  %v291_v63 = vld [vmem:[%s1060_s24 + $0x60] sm:$0xff] }
  0x1f   : > { %v383_v28 = vadd.f32 %v1120_v7, %v1118_v6  ;;  %v265_v30 = vunpack.c.l.bf16 %v240_v18  ;;  %v266_v31 = vunpack.c.h.bf16 %v240_v18  ;;  %v313_v34 = vunpack.c.l.bf16 %v288_v19 }
  0x20   : > { %v380_v29 = vadd.f32 %v1130_v25, %v1128_v24  ;;  %v314_v35 = vunpack.c.h.bf16 %v288_v19  ;;  %v267_v37 = vunpack.c.l.bf16 %v241_v26  ;;  %v268_v38 = vunpack.c.h.bf16 %v241_v26  ;;  %v246_v26 = vld [vmem:[%s1054_s21 + $0x78] sm:$0xff] }
  0x21   : > { %363 = vadd.xlane.f32.xlu0 %v362_v1  ;;  %v315_v39 = vunpack.c.l.bf16 %v289_v27  ;;  %v377_v40 = vadd.f32 %v1126_v22, %v1122_v12  ;;  %v1140_v41 = vadd.f32 %v317_v15, %v269_v13  ;;  %v1142_v43 = vadd.f32 %v318_v23, %v270_v14 }
  0x22   : > { %v316_v44 = vunpack.c.h.bf16 %v289_v27  ;;  %v1151_v52 = vadd.f32 %v313_v34, %v265_v30  ;;  %v1153_v53 = vadd.f32 %v314_v35, %v266_v31  ;;  %v275_v58 = vunpack.c.l.bf16 %v245_v45 }
  0x23   : > { %v1146_v48 = vadd.f32 %v315_v39, %v267_v37  ;;  %v392_v55 = vadd.f32 %v1142_v43, %v1140_v41  ;;  %v276_v59 = vunpack.c.h.bf16 %v245_v45  ;;  %v323_v60 = vunpack.c.l.bf16 %v293_v47 }
  0x24   : > { %v1148_v49 = vadd.f32 %v316_v44, %v268_v38  ;;  %v324_v61 = vunpack.c.h.bf16 %v293_v47  ;;  %v273_v0 = vunpack.c.l.bf16 %v244_v50  ;;  %v274_v2 = vunpack.c.h.bf16 %v244_v50 }
  0x25   : > { %v321_v3 = vunpack.c.l.bf16 %v292_v54  ;;  %v322_v4 = vunpack.c.h.bf16 %v292_v54  ;;  %v386_v5 = vadd.f32 %v1153_v53, %v1151_v52  ;;  %v271_v8 = vunpack.c.l.bf16 %v243_v62 }
  0x26   : > { %384 = vadd.xlane.f32.xlu2 %v383_v28  ;;  %381 = vadd.xlane.f32.xlu1 %v380_v29  ;;  %v389_v1 = vadd.f32 %v1148_v49, %v1146_v48  ;;  %v272_v9 = vunpack.c.h.bf16 %v243_v62  ;;  %v319_v10 = vunpack.c.l.bf16 %v291_v63  ;;  %v320_v11 = vunpack.c.h.bf16 %v291_v63  ;;  %v294_v28 = vld [vmem:[%s1060_s24 + $0x78] sm:$0xff] }
  0x27   : > { %v1164_v13 = vadd.f32 %v323_v60, %v275_v58  ;;  %v1166_v14 = vadd.f32 %v324_v61, %v276_v59  ;;  %v1168_v15 = vadd.f32 %v321_v3, %v273_v0  ;;  %v1170_v18 = vadd.f32 %v322_v4, %v274_v2 }
  0x28   : > { %v1172_v19 = vadd.f32 %v319_v10, %v271_v8  ;;  %v1174_v23 = vadd.f32 %v320_v11, %v272_v9  ;;  %v277_v30 = vunpack.c.l.bf16 %v246_v26  ;;  %v278_v34 = vunpack.c.h.bf16 %v246_v26 }
  0x29   : > { %378 = vadd.xlane.f32.xlu0 %v377_v40  ;;  %v401_v27 = vadd.f32 %v1166_v14, %v1164_v13  ;;  %v398_v29 = vadd.f32 %v1170_v18, %v1168_v15  ;;  %v325_v35 = vunpack.c.l.bf16 %v294_v28  ;;  %v326_v37 = vunpack.c.h.bf16 %v294_v28 }
  0x2a   : > { %v395_v31 = vadd.f32 %v1174_v23, %v1172_v19  ;;  %v1014_v44 = vmov 256.0  }
  0x2b   : > { %v1184_v38 = vadd.f32 %v325_v35, %v277_v30  ;;  %v1186_v39 = vadd.f32 %v326_v37, %v278_v34  ;;  %972 = vrcp.f32 %v1014_v44 }
  0x2d   : > { %v404_v40 = vadd.f32 %v1186_v39, %v1184_v38 }
  0x2e   : > { %393 = vadd.xlane.f32.xlu2 %v392_v55  ;;  %390 = vadd.xlane.f32.xlu1 %v389_v1 }
  0x31   : > { %387 = vadd.xlane.f32.xlu0 %v386_v5  ;;  %v973_v45 = vpop.eup %972 }
  0x32   : > { %v408_v47 = vmul.f32 256.0, %v973_v45  ;;  %vm412_vm0 = vweird.f32 %v973_v45 }
  0x34   : > { %v409_v50 = vsub.f32 1.0, %v408_v47 }
  0x36   : > { %402 = vadd.xlane.f32.xlu2 %v401_v27  ;;  %399 = vadd.xlane.f32.xlu1 %v398_v29  ;;  %v410_v54 = vmul.f32 %v973_v45, %v409_v50 }
  0x38   : > { %v411_v55 = vadd.f32 %v973_v45, %v410_v54 }
  0x39   : > { %396 = vadd.xlane.f32.xlu0 %v395_v31 }
  0x3a   : > { %v1190_v58 = vsel %vm412_vm0, %v973_v45, %v411_v55 }
  0x41   : > { %405 = vadd.xlane.f32.xlu0 %v404_v40 }
  0x89   : > { %v373_v59 = vpop.xlane.xlu2 %372  ;;  %v367_v60 = vpop.xlane.xlu1 %366 }
  0x8a   : > { %v416_v61 = vmul.f32 %v1190_v58, %v367_v60  ;;  %v418_v34 = vmul.f32 %v1190_v58, %v373_v59 }
  0x8c   : > { %v361_v62 = vpop.xlane.xlu0 %360  ;;  %v1194_v63 = vsub.f32 %v1074_v20, %v416_v61  ;;  %v1197_v0 = vsub.f32 %v1076_v21, %v416_v61  ;;  %v1253_v55 = vsub.f32 %v1072_v17, %v418_v34 }
  0x8d   : > { %v414_v1 = vmul.f32 %v1190_v58, %v361_v62 }
  0x8e   : > { %v466_v4 = vmul.f32 %v1194_v63, %v1194_v63  ;;  %v467_v5 = vmul.f32 %v1197_v0, %v1197_v0 }
  0x8f   : > { %v1201_v2 = vsub.f32 %v1085_v32, %v414_v1  ;;  %v1204_v3 = vsub.f32 %v1087_v33, %v414_v1 }
  0x90   : > { %v500_v20 = vadd.f32 %v467_v5, %v466_v4 }
  0x91   : > { %v376_v8 = vpop.xlane.xlu2 %375  ;;  %v462_v21 = vmul.f32 %v1201_v2, %v1201_v2  ;;  %v463_v9 = vmul.f32 %v1204_v3, %v1204_v3  ;;  %v370_v10 = vpop.xlane.xlu1 %369 }
  0x92   : > { %v419_v32 = vmul.f32 %v1190_v58, %v376_v8  ;;  %v417_v33 = vmul.f32 %v1190_v58, %v370_v10  ;;  %501 = vadd.xlane.f32.xlu0 %v500_v20  ;;  %v471_v8 = vmul.f32 %v1253_v55, %v1253_v55 }
  0x93   : > { %v494_v11 = vadd.f32 %v463_v9, %v462_v21 }
  0x94   : > { %v1217_v26 = vsub.f32 %v1090_v36, %v419_v32  ;;  %v1220_v27 = vsub.f32 %v1095_v42, %v419_v32  ;;  %v364_v28 = vpop.xlane.xlu0 %363  ;;  %v1223_v29 = vsub.f32 %v1098_v46, %v417_v33  ;;  %v1226_v30 = vsub.f32 %v1102_v51, %v417_v33 }
  0x95   : > { %v415_v31 = vmul.f32 %v1190_v58, %v364_v28  ;;  %495 = vadd.xlane.f32.xlu1 %v494_v11 }
  0x96   : > { %v472_v35 = vmul.f32 %v1217_v26, %v1217_v26  ;;  %v473_v36 = vmul.f32 %v1220_v27, %v1220_v27  ;;  %v468_v51 = vmul.f32 %v1223_v29, %v1223_v29  ;;  %v469_v37 = vmul.f32 %v1226_v30, %v1226_v30 }
  0x97   : > { %v1235_v42 = vsub.f32 %v1106_v56, %v415_v31  ;;  %v1238_v46 = vsub.f32 %v1108_v57, %v415_v31  ;;  %v1250_v57 = vsub.f32 %v1070_v16, %v418_v34 }
  0x98   : > { %v509_v40 = vadd.f32 %v473_v36, %v472_v35  ;;  %v503_v45 = vadd.f32 %v469_v37, %v468_v51 }
  0x99   : > { %v385_v44 = vpop.xlane.xlu2 %384  ;;  %v464_v47 = vmul.f32 %v1235_v42, %v1235_v42  ;;  %v465_v50 = vmul.f32 %v1238_v46, %v1238_v46  ;;  %v382_v54 = vpop.xlane.xlu1 %381 }
  0x9a   : > { %v422_v56 = vmul.f32 %v1190_v58, %v385_v44  ;;  %510 = vadd.xlane.f32.xlu0 %v509_v40  ;;  %v421_v4 = vmul.f32 %v1190_v58, %v382_v54 }
  0x9b   : > { %v497_v59 = vadd.f32 %v465_v50, %v464_v47 }
  0x9c   : > { %v1256_v60 = vsub.f32 %v1118_v6, %v422_v56  ;;  %v1259_v61 = vsub.f32 %v1120_v7, %v422_v56  ;;  %v379_v62 = vpop.xlane.xlu0 %378  ;;  %v470_v7 = vmul.f32 %v1250_v57, %v1250_v57  ;;  %v1278_v9 = vsub.f32 %v1128_v24, %v421_v4 }
  0x9d   : > { %v420_v1 = vmul.f32 %v1190_v58, %v379_v62  ;;  %504 = vadd.xlane.f32.xlu1 %v503_v45  ;;  %498 = vadd.xlane.f32.xlu2 %v497_v59  ;;  %v1281_v32 = vsub.f32 %v1130_v25, %v421_v4 }
  0x9e   : > { %v478_v16 = vmul.f32 %v1256_v60, %v1256_v60  ;;  %v479_v17 = vmul.f32 %v1259_v61, %v1259_v61  ;;  %v506_v11 = vadd.f32 %v471_v8, %v470_v7  ;;  %v476_v36 = vmul.f32 %v1278_v9, %v1278_v9 }
  0x9f   : > { %v1268_v5 = vsub.f32 %v1122_v12, %v420_v1  ;;  %v1271_v6 = vsub.f32 %v1126_v22, %v420_v1  ;;  %v477_v51 = vmul.f32 %v1281_v32, %v1281_v32 }
  0xa0   : > { %v518_v20 = vadd.f32 %v479_v17, %v478_v16 }
  0xa1   : > { %v394_v21 = vpop.xlane.xlu2 %393  ;;  %v474_v12 = vmul.f32 %v1268_v5, %v1268_v5  ;;  %v475_v22 = vmul.f32 %v1271_v6, %v1271_v6  ;;  %v391_v33 = vpop.xlane.xlu1 %390  ;;  %v515_v56 = vadd.f32 %v477_v51, %v476_v36 }
  0xa2   : > { %v425_v10 = vmul.f32 %v1190_v58, %v394_v21  ;;  %519 = vadd.xlane.f32.xlu0 %v518_v20  ;;  %v424_v34 = vmul.f32 %v1190_v58, %v391_v33 }
  0xa3   : > { %v512_v28 = vadd.f32 %v475_v22, %v474_v12 }
  0xa4   : > { %v1289_v31 = vsub.f32 %v1140_v41, %v425_v10  ;;  %v1292_v24 = vsub.f32 %v1142_v43, %v425_v10  ;;  %v388_v25 = vpop.xlane.xlu0 %387  ;;  %v1311_v44 = vsub.f32 %v1146_v48, %v424_v34  ;;  %v1314_v45 = vsub.f32 %v1148_v49, %v424_v34 }
  0xa5   : > { %v423_v35 = vmul.f32 %v1190_v58, %v388_v25  ;;  %507 = vadd.xlane.f32.xlu2 %v506_v11  ;;  %513 = vadd.xlane.f32.xlu1 %v512_v28 }
  0xa6   : > { %v484_v41 = vmul.f32 %v1289_v31, %v1289_v31  ;;  %v485_v43 = vmul.f32 %v1292_v24, %v1292_v24  ;;  %v482_v4 = vmul.f32 %v1311_v44, %v1311_v44  ;;  %v483_v16 = vmul.f32 %v1314_v45, %v1314_v45 }
  0xa7   : > { %v1305_v37 = vsub.f32 %v1151_v52, %v423_v35  ;;  %v1308_v40 = vsub.f32 %v1153_v53, %v423_v35 }
  0xa8   : > { %v527_v47 = vadd.f32 %v485_v43, %v484_v41  ;;  %v524_v12 = vadd.f32 %v483_v16, %v482_v4 }
  0xa9   : > { %v403_v50 = vpop.xlane.xlu2 %402  ;;  %v480_v54 = vmul.f32 %v1305_v37, %v1305_v37  ;;  %v481_v59 = vmul.f32 %v1308_v40, %v1308_v40  ;;  %v400_v62 = vpop.xlane.xlu1 %399 }
  0xaa   : > { %v428_v52 = vmul.f32 %v1190_v58, %v403_v50  ;;  %528 = vadd.xlane.f32.xlu0 %v527_v47  ;;  %v427_v7 = vmul.f32 %v1190_v58, %v400_v62 }
  0xab   : > { %v521_v53 = vadd.f32 %v481_v59, %v480_v54 }
  0xac   : > { %v1322_v48 = vsub.f32 %v1164_v13, %v428_v52  ;;  %v1325_v49 = vsub.f32 %v1166_v14, %v428_v52  ;;  %v397_v1 = vpop.xlane.xlu0 %396  ;;  %v1344_v22 = vsub.f32 %v1168_v15, %v427_v7  ;;  %v1347_v10 = vsub.f32 %v1170_v18, %v427_v7 }
  0xad   : > { %v426_v17 = vmul.f32 %v1190_v58, %v397_v1  ;;  %516 = vadd.xlane.f32.xlu2 %v515_v56  ;;  %522 = vadd.xlane.f32.xlu1 %v521_v53 }
  0xae   : > { %v490_v13 = vmul.f32 %v1322_v48, %v1322_v48  ;;  %v491_v14 = vmul.f32 %v1325_v49, %v1325_v49  ;;  %v488_v15 = vmul.f32 %v1344_v22, %v1344_v22  ;;  %v489_v18 = vmul.f32 %v1347_v10, %v1347_v10 }
  0xaf   : > { %v1338_v8 = vsub.f32 %v1172_v19, %v426_v17  ;;  %v1341_v20 = vsub.f32 %v1174_v23, %v426_v17 }
  0xb0   : > { %v536_v21 = vadd.f32 %v491_v14, %v490_v13  ;;  %v533_v35 = vadd.f32 %v489_v18, %v488_v15 }
  0xb1   : > { %v486_v33 = vmul.f32 %v1338_v8, %v1338_v8  ;;  %v487_v11 = vmul.f32 %v1341_v20, %v1341_v20 }
  0xb2   : > { %537 = vadd.xlane.f32.xlu0 %v536_v21  ;;  %v766_v21 = vld [vmem:[%s1685_s2] sm:$0x3] }
  0xb3   : > { %v530_v19 = vadd.f32 %v487_v11, %v486_v33  ;;  %v1388_v15 = vperm.slane %v766_v21, 0  ;;  %v1390_v18 = vperm.slane %v766_v21, 1 }
  0xb4   : > { %v406_v28 = vpop.xlane.xlu0 %405 }
  0xb5   : > { %v429_v23 = vmul.f32 %v1190_v58, %v406_v28  ;;  %525 = vadd.xlane.f32.xlu2 %v524_v12  ;;  %531 = vadd.xlane.f32.xlu1 %v530_v19  ;;  %v804_v12 = vld [vmem:[%s1686_s3] sm:$0x3] }
  0xb7   : > { %v1359_v25 = vsub.f32 %v1184_v38, %v429_v23  ;;  %v1362_v34 = vsub.f32 %v1186_v39, %v429_v23 }
  0xb9   : > { %v492_v36 = vmul.f32 %v1359_v25, %v1359_v25  ;;  %v493_v51 = vmul.f32 %v1362_v34, %v1362_v34 }
  0xbb   : > { %v539_v41 = vadd.f32 %v493_v51, %v492_v36  ;;  %v1395_v51 = vperm.slane %v804_v12, 1 }
  0xbd   : > { %534 = vadd.xlane.f32.xlu2 %v533_v35  ;;  %540 = vadd.xlane.f32.xlu1 %v539_v41  ;;  %v1392_v35 = vperm.slane %v804_v12, 0 }
 0x105   : > { %v502_v43 = vpop.xlane.xlu0 %501 }
 0x106   : > { %v544_v47 = vmul.f32 %v502_v43, %v1190_v58 }
 0x108   : > { %v496_v50 = vpop.xlane.xlu1 %495  ;;  %v560_v56 = vadd.f32 1e-12, %v544_v47 }
 0x109   : > { %v542_v38 = vmul.f32 %v496_v50, %v1190_v58 }
 0x10a   : > { %974 = vrsqrt.f32 %v560_v56  ;;  %vm600_vm2 = vweird.f32 %v560_v56 }
 0x10b   : > { %v558_v54 = vadd.f32 1e-12, %v542_v38 }
 0x10d   : > { %976 = vrsqrt.f32 %v558_v54  ;;  %v511_v39 = vpop.xlane.xlu0 %510  ;;  %vm580_vm4 = vweird.f32 %v558_v54 }
 0x10e   : > { %v547_v59 = vmul.f32 %v511_v39, %v1190_v58 }
 0x110   : > { %v505_v52 = vpop.xlane.xlu1 %504  ;;  %v499_v62 = vpop.xlane.xlu2 %498  ;;  %v1373_v16 = vadd.f32 1e-12, %v547_v59 }
 0x111   : > { %v975_v53 = vpop.eup %974  ;;  %v545_v1 = vmul.f32 %v505_v52, %v1190_v58  ;;  %v543_v4 = vmul.f32 %v499_v62, %v1190_v58 }
 0x112   : > { %v595_v17 = vmul.f32 %v975_v53, %v560_v56  ;;  %978 = vrsqrt.f32 %v1373_v16  ;;  %vm601_vm1 = vweird.f32 %v975_v53  ;;  %vm630_vm6 = vweird.f32 %v1373_v16 }
 0x113   : > { %v977_v7 = vpop.eup %976  ;;  %v1375_v13 = vadd.f32 1e-12, %v545_v1  ;;  %v1377_v14 = vadd.f32 1e-12, %v543_v4  ;;  %vm602_vm5 = vmor %vm600_vm2, %vm601_vm1 }
 0x114   : > { %v575_v33 = vmul.f32 %v977_v7, %v558_v54  ;;  %v596_v11 = vmul.f32 %v975_v53, %v595_v17  ;;  %vm581_vm3 = vweird.f32 %v977_v7 }
 0x115   : > { %980 = vrsqrt.f32 %v1375_v13  ;;  %v520_v23 = vpop.xlane.xlu0 %519  ;;  %vm610_vm7 = vweird.f32 %v1375_v13  ;;  %vm582_vm9 = vmor %vm580_vm4, %vm581_vm3  ;;  %vm590_vm14 = vweird.f32 %v1377_v14 }
 0x116   : > { %v576_v19 = vmul.f32 %v977_v7, %v575_v33  ;;  %v597_v28 = vmul.f32 0.5, %v596_v11  ;;  %982 = vrsqrt.f32 %v1377_v14  ;;  %v550_v36 = vmul.f32 %v520_v23, %v1190_v58 }
 0x118   : > { %v577_v41 = vmul.f32 0.5, %v576_v19  ;;  %v598_v43 = vsub.f32 1.5, %v597_v28  ;;  %v508_v47 = vpop.xlane.xlu2 %507  ;;  %v514_v50 = vpop.xlane.xlu1 %513  ;;  %v1401_v52 = vadd.f32 1e-12, %v550_v36 }
 0x119   : > { %v1397_v38 = vpop.eup %978  ;;  %v546_v39 = vmul.f32 %v508_v47, %v1190_v58  ;;  %v548_v59 = vmul.f32 %v514_v50, %v1190_v58 }
 0x11a   : > { %v578_v62 = vsub.f32 1.5, %v577_v41  ;;  %v599_v1 = vmul.f32 %v975_v53, %v598_v43  ;;  %v625_v4 = vmul.f32 %v1397_v38, %v1373_v16  ;;  %984 = vrsqrt.f32 %v1401_v52 }
 0x11b   : > { %v981_v17 = vpop.eup %980  ;;  %v1406_v21 = vadd.f32 1e-12, %v546_v39  ;;  %vm631_vm8 = vweird.f32 %v1397_v38  ;;  %v1419_v23 = vadd.f32 1e-12, %v548_v59  ;;  %vm660_vm1 = vweird.f32 %v1401_v52 }
 0x11c   : > { %v1409_v56 = vpop.eup %982  ;;  %v579_v12 = vmul.f32 %v977_v7, %v578_v62  ;;  %v603_v33 = vsel %vm602_vm5, %v975_v53, %v599_v1  ;;  %v605_v11 = vmul.f32 %v981_v17, %v1375_v13  ;;  %v626_v53 = vmul.f32 %v1397_v38, %v625_v4  ;;  %vm632_vm12 = vmor %vm630_vm6, %vm631_vm8 }
 0x11d   : > { %v738_v54 = vmul.f32 %v603_v33, %v1194_v63  ;;  %v739_v19 = vmul.f32 %v603_v33, %v1197_v0  ;;  %v585_v28 = vmul.f32 %v1409_v56, %v1377_v14  ;;  %986 = vrsqrt.f32 %v1406_v21 }
 0x11e   : > { %v583_v36 = vsel %vm582_vm9, %v977_v7, %v579_v12  ;;  %v606_v41 = vmul.f32 %v981_v17, %v605_v11  ;;  %vm611_vm10 = vweird.f32 %v981_v17  ;;  %v627_v59 = vmul.f32 0.5, %v626_v53 }
 0x11f   : > { %v734_v43 = vmul.f32 %v583_v36, %v1201_v2  ;;  %v735_v47 = vmul.f32 %v583_v36, %v1204_v3  ;;  %v776_v63 = vmul.f32 %v1388_v15, %v738_v54  ;;  %v777_v0 = vmul.f32 %v1390_v18, %v739_v19  ;;  %vm612_vm13 = vmor %vm610_vm7, %vm611_vm10 }
 0x120   : > { %v607_v50 = vmul.f32 0.5, %v606_v41  ;;  %v586_v39 = vmul.f32 %v1409_v56, %v585_v28  ;;  %v1428_v7 = vpop.eup %984  ;;  %v628_v33 = vsub.f32 1.5, %v627_v59  ;;  %988 = vrsqrt.f32 %v1419_v23 }
 0x121   : > { %v772_v62 = vmul.f32 %v1388_v15, %v734_v43  ;;  %v773_v1 = vmul.f32 %v1390_v18, %v735_v47  ;;  %v814_v4 = vadd.f32 %v1392_v35, %v776_v63  ;;  %v815_v2 = vadd.f32 %v1395_v51, %v777_v0  ;;  %v517_v47 = vpop.xlane.xlu2 %516 }
 0x122   : > { %v608_v3 = vsub.f32 1.5, %v607_v50  ;;  %v587_v12 = vmul.f32 0.5, %v586_v39  ;;  %vm591_vm11 = vweird.f32 %v1409_v56  ;;  %v629_v53 = vmul.f32 %v1397_v38, %v628_v33 }
 0x123   : > { %v810_v11 = vadd.f32 %v1392_v35, %v772_v62  ;;  %v811_v54 = vadd.f32 %v1395_v51, %v773_v1  ;;  %v844_v19 = vpack.c.bf16 %v815_v2, %v814_v4  ;;  %v1444_v28 = vpop.eup %986  ;;  %v655_v43 = vmul.f32 %v1428_v7, %v1401_v52  ;;  %vm592_vm2 = vmor %vm590_vm14, %vm591_vm11  ;;  %v523_v1 = vpop.xlane.xlu1 %522 }
 0x124   : > { %v609_v36 = vmul.f32 %v981_v17, %v608_v3  ;;  %v588_v41 = vsub.f32 1.5, %v587_v12  ;;  %v615_v0 = vmul.f32 %v1444_v28, %v1406_v21  ;;  %vm621_vm15 = vweird.f32 %v1444_v28 }
 0x125   : > { %v842_v63 = vpack.c.bf16 %v811_v54, %v810_v11  ;;  %860 = vst [vmem:[%s1438_s5 + $0x10] sm:$0xff] %v844_v19  ;;  %v633_v39 = vsel %vm632_vm12, %v1397_v38, %v629_v53  ;;  %vm620_vm0 = vweird.f32 %v1406_v21  ;;  %v656_v59 = vmul.f32 %v1428_v7, %v655_v43 }
 0x126   : > { %v613_v16 = vsel %vm612_vm13, %v981_v17, %v609_v36  ;;  %v589_v50 = vmul.f32 %v1409_v56, %v588_v41  ;;  %v744_v17 = vmul.f32 %v633_v39, %v1217_v26  ;;  %v745_v62 = vmul.f32 %v633_v39, %v1220_v27  ;;  %v989_v38 = vpop.eup %988  ;;  %vm622_vm5 = vmor %vm620_vm0, %vm621_vm15 }
 0x127   : > { %858 = vst [vmem:[%s1438_s5] sm:$0xff] %v842_v63  ;;  %v740_v13 = vmul.f32 %v613_v16, %v1223_v29  ;;  %v741_v14 = vmul.f32 %v613_v16, %v1226_v30  ;;  %v616_v2 = vmul.f32 %v1444_v28, %v615_v0  ;;  %v657_v3 = vmul.f32 0.5, %v656_v59  ;;  %v529_v63 = vpop.xlane.xlu0 %528 }
 0x128   : > { %v593_v4 = vsel %vm592_vm2, %v1409_v56, %v589_v50  ;;  %v549_v12 = vmul.f32 %v517_v47, %v1190_v58  ;;  %v782_v26 = vmul.f32 %v1388_v15, %v744_v17  ;;  %v783_v27 = vmul.f32 %v1390_v18, %v745_v62 }
 0x129   : > { %v778_v29 = vmul.f32 %v1388_v15, %v740_v13  ;;  %v779_v30 = vmul.f32 %v1390_v18, %v741_v14  ;;  %v736_v33 = vmul.f32 %v593_v4, %v1235_v42  ;;  %v737_v11 = vmul.f32 %v593_v4, %v1238_v46  ;;  %v526_v17 = vpop.xlane.xlu2 %525 }
 0x12a   : > { %v617_v54 = vmul.f32 0.5, %v616_v2  ;;  %v635_v56 = vmul.f32 %v989_v38, %v1419_v23  ;;  %vm640_vm3 = vweird.f32 %v1419_v23  ;;  %v820_v46 = vadd.f32 %v1392_v35, %v782_v26 }
 0x12b   : > { %v816_v19 = vadd.f32 %v1392_v35, %v778_v29  ;;  %v817_v36 = vadd.f32 %v1395_v51, %v779_v30  ;;  %v774_v41 = vmul.f32 %v1388_v15, %v736_v33  ;;  %v775_v42 = vmul.f32 %v1390_v18, %v737_v11 }
 0x12c   : > { %v821_v53 = vadd.f32 %v1395_v51, %v783_v27  ;;  %v618_v43 = vsub.f32 1.5, %v617_v54  ;;  %v636_v47 = vmul.f32 %v989_v38, %v635_v56  ;;  %vm661_vm4 = vweird.f32 %v1428_v7 }
 0x12d   : > { %v845_v0 = vpack.c.bf16 %v817_v36, %v816_v19  ;;  %v812_v16 = vadd.f32 %v1392_v35, %v774_v41  ;;  %v813_v50 = vadd.f32 %v1395_v51, %v775_v42  ;;  %v658_v14 = vsub.f32 1.5, %v657_v3  ;;  %vm662_vm7 = vmor %vm660_vm1, %vm661_vm4 }
 0x12e   : > { %v847_v39 = vpack.c.bf16 %v821_v53, %v820_v46  ;;  %v619_v59 = vmul.f32 %v1444_v28, %v618_v43  ;;  %v637_v13 = vmul.f32 0.5, %v636_v47  ;;  %v1499_v4 = vadd.f32 1e-12, %v549_v12 }
 0x12f   : > { %861 = vst [vmem:[%s1438_s5 + $0x18] sm:$0xff] %v845_v0  ;;  %v843_v62 = vpack.c.bf16 %v813_v50, %v812_v16  ;;  %v551_v2 = vmul.f32 %v523_v1, %v1190_v58  ;;  %v553_v29 = vmul.f32 %v529_v63, %v1190_v58  ;;  %vm641_vm6 = vweird.f32 %v989_v38  ;;  %v532_v1 = vpop.xlane.xlu1 %531 }
 0x130   : > { %863 = vst [vmem:[%s1438_s5 + $0x28] sm:$0xff] %v847_v39  ;;  %v623_v30 = vsel %vm622_vm5, %v1444_v28, %v619_v59  ;;  %v638_v33 = vsub.f32 1.5, %v637_v13  ;;  %v659_v3 = vmul.f32 %v1428_v7, %v658_v14  ;;  %990 = vrsqrt.f32 %v1499_v4  ;;  %vm642_vm8 = vmor %vm640_vm3, %vm641_vm6 }
 0x131   : > { %859 = vst [vmem:[%s1438_s5 + $0x8] sm:$0xff] %v843_v62  ;;  %v742_v11 = vmul.f32 %v623_v30, %v1250_v57  ;;  %v743_v26 = vmul.f32 %v623_v30, %v1253_v55  ;;  %v552_v21 = vmul.f32 %v526_v17, %v1190_v58  ;;  %v1516_v27 = vadd.f32 1e-12, %v551_v2  ;;  %v535_v16 = vpop.xlane.xlu2 %534 }
 0x132   : > { %v639_v28 = vmul.f32 %v989_v38, %v638_v33  ;;  %v663_v12 = vsel %vm662_vm7, %v1428_v7, %v659_v3  ;;  %v1518_v54 = vadd.f32 1e-12, %v553_v29  ;;  %v554_v47 = vmul.f32 %v532_v1, %v1190_v58 }
 0x133   : > { %v780_v57 = vmul.f32 %v1388_v15, %v742_v11  ;;  %v781_v55 = vmul.f32 %v1390_v18, %v743_v26  ;;  %v750_v52 = vmul.f32 %v663_v12, %v1256_v60  ;;  %v751_v56 = vmul.f32 %v663_v12, %v1259_v61 }
 0x134   : > { %v643_v19 = vsel %vm642_vm8, %v989_v38, %v639_v28  ;;  %992 = vrsqrt.f32 %v1516_v27  ;;  %v1535_v60 = vadd.f32 1e-12, %v552_v21  ;;  %v1547_v17 = vadd.f32 1e-12, %v554_v47 }
 0x135   : > { %v818_v7 = vadd.f32 %v1392_v35, %v780_v57  ;;  %v819_v36 = vadd.f32 %v1395_v51, %v781_v55  ;;  %v746_v41 = vmul.f32 %v643_v19, %v1268_v5  ;;  %v747_v42 = vmul.f32 %v643_v19, %v1271_v6  ;;  %v538_v5 = vpop.xlane.xlu0 %537 }
 0x136   : > { %v788_v46 = vmul.f32 %v1388_v15, %v750_v52  ;;  %v789_v23 = vmul.f32 %v1390_v18, %v751_v56  ;;  %994 = vrsqrt.f32 %v1518_v54  ;;  %v991_v61 = vpop.eup %990  ;;  %v556_v62 = vmul.f32 %v538_v5, %v1190_v58 }
 0x137   : > { %v846_v38 = vpack.c.bf16 %v819_v36, %v818_v7  ;;  %v784_v53 = vmul.f32 %v1388_v15, %v746_v41  ;;  %v785_v43 = vmul.f32 %v1390_v18, %v747_v42  ;;  %v645_v0 = vmul.f32 %v991_v61, %v1499_v4  ;;  %v541_v33 = vpop.xlane.xlu1 %540 }
 0x138   : > { %v826_v63 = vadd.f32 %v1392_v35, %v788_v46  ;;  %v827_v6 = vadd.f32 %v1395_v51, %v789_v23  ;;  %996 = vrsqrt.f32 %v1535_v60  ;;  %v555_v30 = vmul.f32 %v535_v16, %v1190_v58 }
 0x139   : > { %862 = vst [vmem:[%s1438_s5 + $0x20] sm:$0xff] %v846_v38  ;;  %v822_v50 = vadd.f32 %v1392_v35, %v784_v53  ;;  %v823_v39 = vadd.f32 %v1395_v51, %v785_v43  ;;  %v646_v14 = vmul.f32 %v991_v61, %v645_v0  ;;  %998 = vrsqrt.f32 %v1547_v17 }
 0x13a   : > { %v993_v59 = vpop.eup %992  ;;  %v850_v13 = vpack.c.bf16 %v827_v6, %v826_v63  ;;  %v1554_v26 = vadd.f32 1e-12, %v556_v62  ;;  %vm651_vm9 = vweird.f32 %v991_v61  ;;  %v1559_v12 = vadd.f32 1e-12, %v555_v30 }
 0x13b   : > { %v848_v2 = vpack.c.bf16 %v823_v39, %v822_v50  ;;  %v665_v29 = vmul.f32 %v993_v59, %v1516_v27  ;;  %v647_v11 = vmul.f32 0.5, %v646_v14  ;;  %v557_v57 = vmul.f32 %v541_v33, %v1190_v58 }
 0x13c   : > { %v995_v3 = vpop.eup %994  ;;  %866 = vst [vmem:[%s1438_s5 + $0x40] sm:$0xff] %v850_v13  ;;  %1000 = vrsqrt.f32 %v1554_v26  ;;  %vm650_vm10 = vweird.f32 %v1499_v4  ;;  %vm670_vm11 = vweird.f32 %v1516_v27  ;;  %vm690_vm12 = vweird.f32 %v1518_v54 }
 0x13d   : > { %864 = vst [vmem:[%s1438_s5 + $0x30] sm:$0xff] %v848_v2  ;;  %v666_v21 = vmul.f32 %v993_v59, %v665_v29  ;;  %v685_v1 = vmul.f32 %v995_v3, %v1518_v54  ;;  %v648_v28 = vsub.f32 1.5, %v647_v11  ;;  %v1566_v36 = vadd.f32 1e-12, %v557_v57  ;;  %vm652_vm13 = vmor %vm650_vm10, %vm651_vm9 }
 0x13e   : > { %v997_v55 = vpop.eup %996  ;;  %vm671_vm14 = vweird.f32 %v993_v59  ;;  %vm691_vm15 = vweird.f32 %v995_v3  ;;  %vm680_vm0 = vweird.f32 %v1535_v60  ;;  %1002 = vrsqrt.f32 %v1559_v12 }
 0x13f   : > { %v667_v52 = vmul.f32 0.5, %v666_v21  ;;  %v686_v56 = vmul.f32 %v995_v3, %v685_v1  ;;  %v649_v19 = vmul.f32 %v991_v61, %v648_v28  ;;  %v675_v7 = vmul.f32 %v997_v55, %v1535_v60  ;;  %v1570_v58 = vpop.eup %998  ;;  %vm672_vm2 = vmor %vm670_vm11, %vm671_vm14 }
 0x140   : > { %vm681_vm1 = vweird.f32 %v997_v55  ;;  %v695_v63 = vmul.f32 %v1570_v58, %v1547_v17  ;;  %vm701_vm3 = vweird.f32 %v1570_v58  ;;  %1004 = vrsqrt.f32 %v1566_v36  ;;  %vm692_vm6 = vmor %vm690_vm12, %vm691_vm15 }
 0x141   : > { %v668_v41 = vsub.f32 1.5, %v667_v52  ;;  %v687_v42 = vmul.f32 0.5, %v686_v56  ;;  %v653_v4 = vsel %vm652_vm13, %v991_v61, %v649_v19  ;;  %v676_v46 = vmul.f32 %v997_v55, %v675_v7  ;;  %vm682_vm7 = vmor %vm680_vm0, %vm681_vm1 }
 0x142   : > { %v748_v23 = vmul.f32 %v653_v4, %v1278_v9  ;;  %v749_v38 = vmul.f32 %v653_v4, %v1281_v32  ;;  %v1575_v47 = vpop.eup %1000  ;;  %vm700_vm4 = vweird.f32 %v1547_v17  ;;  %vm720_vm5 = vweird.f32 %v1554_v26 }
 0x143   : > { %v669_v53 = vmul.f32 %v993_v59, %v668_v41  ;;  %v688_v43 = vsub.f32 1.5, %v687_v42  ;;  %v677_v5 = vmul.f32 0.5, %v676_v46  ;;  %v696_v50 = vmul.f32 %v1570_v58, %v695_v63  ;;  %vm702_vm9 = vmor %vm700_vm4, %vm701_vm3 }
 0x144   : > { %v786_v61 = vmul.f32 %v1388_v15, %v748_v23  ;;  %v787_v9 = vmul.f32 %v1390_v18, %v749_v38  ;;  %v715_v14 = vmul.f32 %v1575_v47, %v1554_v26  ;;  %v1597_v62 = vpop.eup %1002  ;;  %vm721_vm8 = vweird.f32 %v1575_v47 }
 0x145   : > { %v673_v32 = vsel %vm672_vm2, %v993_v59, %v669_v53  ;;  %v689_v6 = vmul.f32 %v995_v3, %v688_v43  ;;  %v678_v16 = vsub.f32 1.5, %v677_v5  ;;  %v697_v33 = vmul.f32 0.5, %v696_v50  ;;  %vm722_vm10 = vmor %vm720_vm5, %vm721_vm8 }
 0x146   : > { %v752_v27 = vmul.f32 %v673_v32, %v1305_v37  ;;  %v753_v0 = vmul.f32 %v673_v32, %v1308_v40  ;;  %v824_v39 = vadd.f32 %v1392_v35, %v786_v61  ;;  %v825_v59 = vadd.f32 %v1395_v51, %v787_v9 }
 0x147   : > { %v693_v13 = vsel %vm692_vm6, %v995_v3, %v689_v6  ;;  %v679_v30 = vmul.f32 %v997_v55, %v678_v16  ;;  %v716_v11 = vmul.f32 %v1575_v47, %v715_v14  ;;  %v1604_v3 = vpop.eup %1004  ;;  %vm711_vm11 = vweird.f32 %v1597_v62 }
 0x148   : > { %v790_v37 = vmul.f32 %v1388_v15, %v752_v27  ;;  %v791_v40 = vmul.f32 %v1390_v18, %v753_v0  ;;  %v756_v54 = vmul.f32 %v693_v13, %v1289_v31  ;;  %v757_v2 = vmul.f32 %v693_v13, %v1292_v24 }
 0x149   : > { %v849_v29 = vpack.c.bf16 %v825_v59, %v824_v39  ;;  %v683_v31 = vsel %vm682_vm7, %v997_v55, %v679_v30  ;;  %v698_v24 = vsub.f32 1.5, %v697_v33  ;;  %v717_v52 = vmul.f32 0.5, %v716_v11 }
 0x14a   : > { %v828_v21 = vadd.f32 %v1392_v35, %v790_v37  ;;  %v829_v1 = vadd.f32 %v1395_v51, %v791_v40  ;;  %v794_v28 = vmul.f32 %v1388_v15, %v756_v54  ;;  %v795_v57 = vmul.f32 %v1390_v18, %v757_v2 }
 0x14b   : > { %865 = vst [vmem:[%s1438_s5 + $0x38] sm:$0xff] %v849_v29  ;;  %v754_v41 = vmul.f32 %v683_v31, %v1311_v44  ;;  %v755_v42 = vmul.f32 %v683_v31, %v1314_v45  ;;  %v699_v4 = vmul.f32 %v1570_v58, %v698_v24  ;;  %v718_v60 = vsub.f32 1.5, %v717_v52 }
 0x14c   : > { %v851_v56 = vpack.c.bf16 %v829_v1, %v828_v21  ;;  %v832_v19 = vadd.f32 %v1392_v35, %v794_v28  ;;  %v833_v7 = vadd.f32 %v1395_v51, %v795_v57  ;;  %v705_v55 = vmul.f32 %v1597_v62, %v1559_v12 }
 0x14d   : > { %v792_v23 = vmul.f32 %v1388_v15, %v754_v41  ;;  %v725_v44 = vmul.f32 %v1604_v3, %v1566_v36  ;;  %v793_v45 = vmul.f32 %v1390_v18, %v755_v42  ;;  %v703_v38 = vsel %vm702_vm9, %v1570_v58, %v699_v4 }
 0x14e   : > { %867 = vst [vmem:[%s1438_s5 + $0x48] sm:$0xff] %v851_v56  ;;  %v853_v46 = vpack.c.bf16 %v833_v7, %v832_v19  ;;  %v719_v53 = vmul.f32 %v1575_v47, %v718_v60  ;;  %v706_v43 = vmul.f32 %v1597_v62, %v705_v55  ;;  %v758_v63 = vmul.f32 %v703_v38, %v1338_v8 }
 0x14f   : > { %v830_v5 = vadd.f32 %v1392_v35, %v792_v23  ;;  %v759_v61 = vmul.f32 %v703_v38, %v1341_v20  ;;  %v726_v17 = vmul.f32 %v1604_v3, %v725_v44  ;;  %v831_v58 = vadd.f32 %v1395_v51, %v793_v45 }
 0x150   : > { %869 = vst [vmem:[%s1438_s5 + $0x58] sm:$0xff] %v853_v46  ;;  %v723_v9 = vsel %vm722_vm10, %v1575_v47, %v719_v53  ;;  %v707_v32 = vmul.f32 0.5, %v706_v43  ;;  %v796_v6 = vmul.f32 %v1388_v15, %v758_v63  ;;  %vm710_vm12 = vweird.f32 %v1559_v12 }
 0x151   : > { %v797_v27 = vmul.f32 %v1390_v18, %v759_v61  ;;  %v762_v8 = vmul.f32 %v723_v9, %v1322_v48  ;;  %v763_v20 = vmul.f32 %v723_v9, %v1325_v49  ;;  %v852_v0 = vpack.c.bf16 %v831_v58, %v830_v5  ;;  %vm712_vm14 = vmor %vm710_vm12, %vm711_vm11 }
 0x152   : > { %v708_v16 = vsub.f32 1.5, %v707_v32  ;;  %v727_v26 = vmul.f32 0.5, %v726_v17  ;;  %v834_v50 = vadd.f32 %v1392_v35, %v796_v6  ;;  %vm731_vm13 = vweird.f32 %v1604_v3 }
 0x153   : > { %v835_v39 = vadd.f32 %v1395_v51, %v797_v27  ;;  %v800_v47 = vmul.f32 %v1388_v15, %v762_v8  ;;  %v801_v59 = vmul.f32 %v1390_v18, %v763_v20  ;;  %868 = vst [vmem:[%s1438_s5 + $0x50] sm:$0xff] %v852_v0  ;;  %vm730_vm15 = vweird.f32 %v1566_v36 }
 0x154   : > { %v709_v13 = vmul.f32 %v1597_v62, %v708_v16  ;;  %v728_v48 = vsub.f32 1.5, %v727_v26  ;;  %vm732_vm0 = vmor %vm730_vm15, %vm731_vm13 }
 0x155   : > { %v854_v49 = vpack.c.bf16 %v835_v39, %v834_v50  ;;  %v838_v14 = vadd.f32 %v1392_v35, %v800_v47  ;;  %v839_v37 = vadd.f32 %v1395_v51, %v801_v59 }
 0x156   : > { %v713_v40 = vsel %vm712_vm14, %v1597_v62, %v709_v13  ;;  %v729_v54 = vmul.f32 %v1604_v3, %v728_v48 }
 0x157   : > { %870 = vst [vmem:[%s1438_s5 + $0x60] sm:$0xff] %v854_v49  ;;  %v856_v2 = vpack.c.bf16 %v839_v37, %v838_v14  ;;  %v760_v12 = vmul.f32 %v713_v40, %v1344_v22  ;;  %v761_v29 = vmul.f32 %v713_v40, %v1347_v10 }
 0x158   : > { %v733_v30 = vsel %vm732_vm0, %v1604_v3, %v729_v54 }
 0x159   : > { %872 = vst [vmem:[%s1438_s5 + $0x70] sm:$0xff] %v856_v2  ;;  %v798_v33 = vmul.f32 %v1388_v15, %v760_v12  ;;  %v799_v62 = vmul.f32 %v1390_v18, %v761_v29  ;;  %v764_v11 = vmul.f32 %v733_v30, %v1359_v25  ;;  %v765_v36 = vmul.f32 %v733_v30, %v1362_v34 }
 0x15b   : > { %v836_v21 = vadd.f32 %v1392_v35, %v798_v33  ;;  %v837_v22 = vadd.f32 %v1395_v51, %v799_v62  ;;  %v802_v1 = vmul.f32 %v1388_v15, %v764_v11  ;;  %v803_v10 = vmul.f32 %v1390_v18, %v765_v36 }
 0x15d   : > { %v855_v28 = vpack.c.bf16 %v837_v22, %v836_v21  ;;  %v840_v3 = vadd.f32 %v1392_v35, %v802_v1  ;;  %v841_v57 = vadd.f32 %v1395_v51, %v803_v10 }
 0x15f   : > { %871 = vst [vmem:[%s1438_s5 + $0x68] sm:$0xff] %v855_v28  ;;  %v857_v31 = vpack.c.bf16 %v841_v57, %v840_v3 }
 0x161   : > { %873 = vst [vmem:[%s1438_s5 + $0x78] sm:$0xff] %v857_v31 }
 0x162 PF: > { %s14_s15 = sadd.s32 1, %s1012_s15  }
 0x163   : > { %p11_p4 = scmp.ge.s32.totalorder %s14_s15, 4  }
 0x165   :  { %13 = sbr.rel (!%p11_p4) target bundleno = 1 (0x1), region = 69 }

// kernel: drug_interaction_transformer_forward.40
= control target key start
LH: loop header
LB: loop body
LE: loop exit
PB: predicated region body
PF: predicated region fallthrough
CT: control target
= control target key end

     0   :  { %vm276_vm0 = vcmask 1040384   ;;  %s671_s1 = inlined_call_operand.vmem [shape: bf16[256,256], index: 1, kind: input, shape index: {}]   ;;  %s672_s0 = inlined_call_operand.vmem [shape: bf16[2,256], index: 0, kind: input, shape index: {}]   ;;  %s673_s2 = inlined_call_operand.vmem [shape: f32[1,256], index: 2, kind: input, shape index: {}]   ;;  %s674_s3 = inlined_call_operand.vmem [shape: bf16[2,256], index: 3, kind: output, shape index: {}]  }
   0x1   :  { %v344_v0 = vld [vmem:[%s671_s1 + $0x70] sm:$0xf]  ;;  %v429_v1 = vld [vmem:[%s671_s1 + $0x74] sm:$0xf0]  ;;  %v428_v5 = vld [vmem:[%s671_s1 + $0x74] sm:$0xf] }
   0x2   :  { %v408_v2 = vld [vmem:[%s671_s1 + $0xf0] sm:$0xf]  ;;  %v345_v3 = vor.u32 %v429_v1, %v344_v0  ;;  %v445_v4 = vld [vmem:[%s671_s1 + $0xf4] sm:$0xf0]  ;;  %v346_v6 = vld [vmem:[%s671_s1 + $0x78] sm:$0xf0] }
   0x3   :  { %v409_v7 = vor.u32 %v445_v4, %v408_v2  ;;  %v349_v8 = vor.u32 %v428_v5, %v346_v6  ;;  %v444_v9 = vld [vmem:[%s671_s1 + $0xf4] sm:$0xf]  ;;  %v410_v10 = vld [vmem:[%s671_s1 + $0xf8] sm:$0xf0]  ;;  %v336_v11 = vld [vmem:[%s671_s1 + $0x60] sm:$0xf] }
   0x4   :  { %219 = vmatpush.bf16.msra.mxu0 %v345_v3  ;;  %v413_v12 = vor.u32 %v444_v9, %v410_v10  ;;  %v427_v13 = vld [vmem:[%s671_s1 + $0x64] sm:$0xf0]  ;;  %v400_v14 = vld [vmem:[%s671_s1 + $0xe0] sm:$0xf]  ;;  %v426_v18 = vld [vmem:[%s671_s1 + $0x64] sm:$0xf] }
   0x5   :  { %v443_v15 = vld [vmem:[%s671_s1 + $0xe4] sm:$0xf0]  ;;  %232 = vmatpush.bf16.msra.mxu1 %v409_v7  ;;  %245 = vmatpush.bf16.msra.mxu2 %v349_v8  ;;  %v337_v16 = vor.u32 %v427_v13, %v336_v11  ;;  %v338_v19 = vld [vmem:[%s671_s1 + $0x68] sm:$0xf0]  ;;  %v442_v20 = vld [vmem:[%s671_s1 + $0xe4] sm:$0xf] }
   0x6   :  { %v401_v17 = vor.u32 %v443_v15, %v400_v14  ;;  %258 = vmatpush.bf16.msra.mxu3 %v413_v12  ;;  %v341_v21 = vor.u32 %v426_v18, %v338_v19  ;;  %v402_v22 = vld [vmem:[%s671_s1 + $0xe8] sm:$0xf0]  ;;  %v328_v23 = vld [vmem:[%s671_s1 + $0x50] sm:$0xf]  ;;  %v425_v24 = vld [vmem:[%s671_s1 + $0x54] sm:$0xf0] }
   0x7   :  { %v405_v25 = vor.u32 %v442_v20, %v402_v22  ;;  %v392_v26 = vld [vmem:[%s671_s1 + $0xd0] sm:$0xf]  ;;  %v441_v27 = vld [vmem:[%s671_s1 + $0xd4] sm:$0xf0]  ;;  %v424_v28 = vld [vmem:[%s671_s1 + $0x54] sm:$0xf]  ;;  %v329_v29 = vor.u32 %v425_v24, %v328_v23 }
   0x8   :  { %220 = vmatpush.bf16.msra.mxu0 %v337_v16  ;;  %v330_v30 = vld [vmem:[%s671_s1 + $0x58] sm:$0xf0]  ;;  %v440_v31 = vld [vmem:[%s671_s1 + $0xd4] sm:$0xf]  ;;  %v393_v33 = vor.u32 %v441_v27, %v392_v26  ;;  %v320_v35 = vld [vmem:[%s671_s1 + $0x40] sm:$0xf] }
   0x9   :  { %v394_v32 = vld [vmem:[%s671_s1 + $0xd8] sm:$0xf0]  ;;  %233 = vmatpush.bf16.msra.mxu1 %v401_v17  ;;  %246 = vmatpush.bf16.msra.mxu2 %v341_v21  ;;  %v333_v34 = vor.u32 %v424_v28, %v330_v30  ;;  %v423_v36 = vld [vmem:[%s671_s1 + $0x44] sm:$0xf0]  ;;  %v384_v37 = vld [vmem:[%s671_s1 + $0xc0] sm:$0xf] }
   0xa   :  { %259 = vmatpush.bf16.msra.mxu3 %v405_v25  ;;  %v397_v38 = vor.u32 %v440_v31, %v394_v32  ;;  %v439_v39 = vld [vmem:[%s671_s1 + $0xc4] sm:$0xf0]  ;;  %v422_v40 = vld [vmem:[%s671_s1 + $0x44] sm:$0xf]  ;;  %v322_v41 = vld [vmem:[%s671_s1 + $0x48] sm:$0xf0]  ;;  %v321_v44 = vor.u32 %v423_v36, %v320_v35 }
   0xb   :  { %v438_v42 = vld [vmem:[%s671_s1 + $0xc4] sm:$0xf]  ;;  %v386_v43 = vld [vmem:[%s671_s1 + $0xc8] sm:$0xf0]  ;;  %v385_v45 = vor.u32 %v439_v39, %v384_v37  ;;  %v325_v46 = vor.u32 %v422_v40, %v322_v41  ;;  %v312_v47 = vld [vmem:[%s671_s1 + $0x30] sm:$0xf] }
   0xc   :  { %221 = vmatpush.bf16.msra.mxu0 %v329_v29  ;;  %v421_v48 = vld [vmem:[%s671_s1 + $0x34] sm:$0xf0]  ;;  %v376_v49 = vld [vmem:[%s671_s1 + $0xb0] sm:$0xf]  ;;  %v389_v50 = vor.u32 %v438_v42, %v386_v43  ;;  %v420_v52 = vld [vmem:[%s671_s1 + $0x34] sm:$0xf] }
   0xd   :  { %234 = vmatpush.bf16.msra.mxu1 %v393_v33  ;;  %247 = vmatpush.bf16.msra.mxu2 %v333_v34  ;;  %v437_v51 = vld [vmem:[%s671_s1 + $0xb4] sm:$0xf0]  ;;  %v314_v53 = vld [vmem:[%s671_s1 + $0x38] sm:$0xf0]  ;;  %v436_v54 = vld [vmem:[%s671_s1 + $0xb4] sm:$0xf]  ;;  %v313_v56 = vor.u32 %v421_v48, %v312_v47 }
   0xe   :  { %260 = vmatpush.bf16.msra.mxu3 %v397_v38  ;;  %v378_v55 = vld [vmem:[%s671_s1 + $0xb8] sm:$0xf0]  ;;  %v377_v57 = vor.u32 %v437_v51, %v376_v49  ;;  %v317_v58 = vor.u32 %v420_v52, %v314_v53  ;;  %v304_v59 = vld [vmem:[%s671_s1 + $0x20] sm:$0xf]  ;;  %v419_v60 = vld [vmem:[%s671_s1 + $0x24] sm:$0xf0] }
   0xf   :  { %v368_v61 = vld [vmem:[%s671_s1 + $0xa0] sm:$0xf]  ;;  %v381_v62 = vor.u32 %v436_v54, %v378_v55  ;;  %v435_v63 = vld [vmem:[%s671_s1 + $0xa4] sm:$0xf0]  ;;  %v418_v0 = vld [vmem:[%s671_s1 + $0x24] sm:$0xf]  ;;  %v305_v4 = vor.u32 %v419_v60, %v304_v59 }
  0x10   :  { %222 = vmatpush.bf16.msra.mxu0 %v321_v44  ;;  %v306_v1 = vld [vmem:[%s671_s1 + $0x28] sm:$0xf0]  ;;  %v434_v2 = vld [vmem:[%s671_s1 + $0xa4] sm:$0xf]  ;;  %v296_v5 = vld [vmem:[%s671_s1 + $0x10] sm:$0xf]  ;;  %v369_v6 = vor.u32 %v435_v63, %v368_v61 }
  0x11   :  { %235 = vmatpush.bf16.msra.mxu1 %v385_v45  ;;  %248 = vmatpush.bf16.msra.mxu2 %v325_v46  ;;  %v370_v3 = vld [vmem:[%s671_s1 + $0xa8] sm:$0xf0]  ;;  %v309_v7 = vor.u32 %v418_v0, %v306_v1  ;;  %v417_v8 = vld [vmem:[%s671_s1 + $0x14] sm:$0xf0]  ;;  %v360_v9 = vld [vmem:[%s671_s1 + $0x90] sm:$0xf] }
  0x12   :  { %261 = vmatpush.bf16.msra.mxu3 %v389_v50  ;;  %v433_v10 = vld [vmem:[%s671_s1 + $0x94] sm:$0xf0]  ;;  %v373_v11 = vor.u32 %v434_v2, %v370_v3  ;;  %v416_v12 = vld [vmem:[%s671_s1 + $0x14] sm:$0xf]  ;;  %v298_v13 = vld [vmem:[%s671_s1 + $0x18] sm:$0xf0]  ;;  %v297_v17 = vor.u32 %v417_v8, %v296_v5 }
  0x13   :  { %v14_v14 = vld [vmem:[%s672_s0] sm:$0x3]  ;;  %v432_v15 = vld [vmem:[%s671_s1 + $0x94] sm:$0xf]  ;;  %v362_v16 = vld [vmem:[%s671_s1 + $0x98] sm:$0xf0]  ;;  %v361_v18 = vor.u32 %v433_v10, %v360_v9  ;;  %v301_v19 = vor.u32 %v416_v12, %v298_v13 }
  0x14   :  { %223 = vmatpush.bf16.msra.mxu0 %v313_v56  ;;  %54 = vst [vmem:[#allocation1] ss:$9 sm:$0xff] %v14_v14  ;;  %v288_v20 = vld [vmem:[%s671_s1] sm:$0xf]  ;;  %v415_v21 = vld [vmem:[%s671_s1 + $0x4] sm:$0xf0]  ;;  %v365_v23 = vor.u32 %v432_v15, %v362_v16 }
  0x15   :  { %236 = vmatpush.bf16.msra.mxu1 %v377_v57  ;;  %249 = vmatpush.bf16.msra.mxu2 %v317_v58  ;;  %v352_v22 = vld [vmem:[%s671_s1 + $0x80] sm:$0xf]  ;;  %v431_v24 = vld [vmem:[%s671_s1 + $0x84] sm:$0xf0]  ;;  %v414_v25 = vld [vmem:[%s671_s1 + $0x4] sm:$0xf]  ;;  %v289_v29 = vor.u32 %v415_v21, %v288_v20 }
  0x16   :  { %262 = vmatpush.bf16.msra.mxu3 %v381_v62  ;;  %v290_v26 = vld [vmem:[%s671_s1 + $0x8] sm:$0xf0]  ;;  %v430_v27 = vld [vmem:[%s671_s1 + $0x84] sm:$0xf]  ;;  %v353_v30 = vor.u32 %v431_v24, %v352_v22  ;;  %v47_v35 = vld [vmem:[%s673_s2] sm:$0x3] }
  0x17   :  { %v354_v28 = vld [vmem:[%s671_s1 + $0x88] sm:$0xf0]  ;;  %v293_v31 = vor.u32 %v414_v25, %v290_v26  ;;  %v49_v36 = vperm.slane %v47_v35, 0  ;;  %v50_v40 = vperm.slane %v47_v35, 1 }
  0x18   :  { %224 = vmatpush.bf16.msra.mxu0 %v305_v4  ;;  %v357_v32 = vor.u32 %v430_v27, %v354_v28 }
  0x19   :  { %237 = vmatpush.bf16.msra.mxu1 %v369_v6  ;;  %250 = vmatpush.bf16.msra.mxu2 %v309_v7 }
  0x1a   :  { %263 = vmatpush.bf16.msra.mxu3 %v373_v11 }
  0x1b   :  { %v55_v33 = vld [vmem:[#allocation1] sm:$0xff]  ;;  %v56_v34 = vld [vmem:[#allocation1 + $0x9] sm:$0xff] }
  0x1c   :  { %225 = vmatpush.bf16.msra.mxu0 %v297_v17 }
  0x1d   :  { %238 = vmatpush.bf16.msra.mxu1 %v361_v18  ;;  %251 = vmatpush.bf16.msra.mxu2 %v301_v19 }
  0x1e   :  { %264 = vmatpush.bf16.msra.mxu3 %v365_v23 }
  0x20   :  { %226 = vmatpush.bf16.msra.mxu0 %v289_v29 }
  0x21   :  { %239 = vmatpush.bf16.msra.mxu1 %v353_v30  ;;  %252 = vmatpush.bf16.msra.mxu2 %v293_v31 }
  0x22   :  { %265 = vmatpush.bf16.msra.mxu3 %v357_v32 }
  0x23   :  { %227 = vmatmul.bf16.vlgmr.msra.gmra.mxu0 %v55_v33 }
  0x24   :  { %240 = vmatmul.bf16.vlgmr.msra.gmra.mxu1 %v56_v34  ;;  %253 = vmatmul.bf16.vlgmr.msra.gmra.mxu2 %v55_v33 }
  0x25   :  { %266 = vmatmul.bf16.vlgmr.msra.gmra.mxu3 %v56_v34 }
  0xa0   :  { %v228_v37 = vpop.f32.mrf.mxu0 }
  0xa1   :  { %v241_v38 = vpop.f32.mrf.mxu1  ;;  %v229_v39 = vadd.f32 %v228_v37, %v49_v36 }
  0xa3   :  { %v242_v41 = vadd.f32 %v241_v38, %v229_v39 }
  0xa5   :  { %446 = vtanh.f32 %v242_v41 }
  0xa7   :  { %v254_v42 = vpop.f32.mrf.mxu2 }
  0xa8   :  { %v255_v43 = vadd.f32 %v254_v42, %v50_v40  ;;  %v267_v44 = vpop.f32.mrf.mxu3  ;;  %v230_v45 = vpop.f32.mrf.mxu0 }
  0xa9   :  { %v243_v46 = vpop.f32.mrf.mxu1 }
  0xaa   :  { %v268_v47 = vadd.f32 %v267_v44, %v255_v43 }
  0xab   :  { %v447_v49 = vpop.eup %446 }
  0xac   :  { %448 = vtanh.f32 %v268_v47 }
  0xaf   :  { %v256_v48 = vpop.f32.mrf.mxu2 }
  0xb0   :  { %v269_v50 = vpop.f32.mrf.mxu3 }
  0xb2   :  { %v449_v51 = vpop.eup %448 }
  0xb3   :  { %v273_v52 = vpack.c.bf16 %v449_v51, %v447_v49 }
  0xb5   :  { %v275_v53 = vrot.slane %v273_v52, 3 }
  0xb7   :  { %v279_v54 = vsel %vm276_vm0, %v273_v52, %v275_v53 }
  0xb8   :  { %281 = vst [vmem:[%s674_s3] sm:$0x3] %v279_v54 }

// kernel: drug_interaction_transformer_forward.28
= control target key start
LH: loop header
LB: loop body
LE: loop exit
PB: predicated region body
PF: predicated region fallthrough
CT: control target
= control target key end

     0   :  { %s2338_s12 = smov 0   ;;  %s3410_s0 = inlined_call_operand.vmem [shape: bf16[256,256], index: 0, kind: input, shape index: {}]   ;;  %s3411_s1 = inlined_call_operand.vmem [shape: bf16[256,512], index: 1, kind: input, shape index: {}]   ;;  %s3412_s2 = inlined_call_operand.vmem [shape: f32[1,512], index: 2, kind: input, shape index: {}]   ;;  %s3413_s3 = inlined_call_operand.vmem [shape: bf16[256,512], index: 3, kind: output, shape index: {}]  }
   0x1 LB: > { %s1759_s13 = sadd.s32 4294967295, %s2316_s12   ;;  %p1763_p0 = scmp.ge.s32.totalorder %s2316_s12, 1  ;;  %s2316_s12 = sphi %s2338_s12, %s13_s12  }
   0x2   : > { %p139_p1 = scmp.lt.s32.totalorder %s2316_s12, 3 }
   0x4   : > { %p140_p2 = pnand %p1763_p0, %p139_p1 }
   0x5   : > { %s1764_s22 = sshll.u32 (!%p140_p2), %s1759_s13, 4 }
   0x6   : > { %143 = sbr.rel (%p140_p2) target bundleno = 454 (0x1c6), region = 32  ;;  %p166_p3 = scmp.lt.s32.totalorder (!%p140_p2), %s1764_s22, 31 }
   0xb   : > { %v1948_v0 = vld [vmem:[%s3411_s1 + $0xe0] sm:$0xf]  ;;  %v2140_v1 = vld [vmem:[%s3411_s1 + $0xec] sm:$0xf0]  ;;  %v2138_v5 = vld [vmem:[%s3411_s1 + $0xe4] sm:$0xf] }
   0xc   : > { %v2076_v2 = vld [vmem:[%s3411_s1 + $0x1e0] sm:$0xf]  ;;  %v1949_v3 = vor.u32 %v2140_v1, %v1948_v0  ;;  %v2172_v4 = vld [vmem:[%s3411_s1 + $0x1ec] sm:$0xf0]  ;;  %v1950_v6 = vld [vmem:[%s3411_s1 + $0xf0] sm:$0xf0] }
   0xd   : > { %v2077_v7 = vor.u32 %v2172_v4, %v2076_v2  ;;  %v1953_v8 = vor.u32 %v2138_v5, %v1950_v6  ;;  %v2170_v9 = vld [vmem:[%s3411_s1 + $0x1e4] sm:$0xf]  ;;  %v2078_v10 = vld [vmem:[%s3411_s1 + $0x1f0] sm:$0xf0]  ;;  %v1932_v11 = vld [vmem:[%s3411_s1 + $0xc0] sm:$0xf] }
   0xe   : > { %669 = vmatpush.bf16.msra.mxu0 %v1949_v3  ;;  %v2081_v12 = vor.u32 %v2170_v9, %v2078_v10  ;;  %v2136_v13 = vld [vmem:[%s3411_s1 + $0xcc] sm:$0xf0]  ;;  %v2060_v14 = vld [vmem:[%s3411_s1 + $0x1c0] sm:$0xf]  ;;  %v2134_v18 = vld [vmem:[%s3411_s1 + $0xc4] sm:$0xf] }
   0xf   : > { %v2168_v15 = vld [vmem:[%s3411_s1 + $0x1cc] sm:$0xf0]  ;;  %718 = vmatpush.bf16.msra.mxu1 %v2077_v7  ;;  %767 = vmatpush.bf16.msra.mxu2 %v1953_v8  ;;  %v1933_v16 = vor.u32 %v2136_v13, %v1932_v11  ;;  %v1934_v19 = vld [vmem:[%s3411_s1 + $0xd0] sm:$0xf0]  ;;  %v2166_v20 = vld [vmem:[%s3411_s1 + $0x1c4] sm:$0xf] }
  0x10   : > { %v2061_v17 = vor.u32 %v2168_v15, %v2060_v14  ;;  %816 = vmatpush.bf16.msra.mxu3 %v2081_v12  ;;  %v1937_v21 = vor.u32 %v2134_v18, %v1934_v19  ;;  %v2062_v22 = vld [vmem:[%s3411_s1 + $0x1d0] sm:$0xf0]  ;;  %v1916_v23 = vld [vmem:[%s3411_s1 + $0xa0] sm:$0xf]  ;;  %v2132_v24 = vld [vmem:[%s3411_s1 + $0xac] sm:$0xf0] }
  0x11   : > { %v2065_v25 = vor.u32 %v2166_v20, %v2062_v22  ;;  %v2044_v26 = vld [vmem:[%s3411_s1 + $0x1a0] sm:$0xf]  ;;  %v2164_v27 = vld [vmem:[%s3411_s1 + $0x1ac] sm:$0xf0]  ;;  %v2130_v28 = vld [vmem:[%s3411_s1 + $0xa4] sm:$0xf]  ;;  %v1917_v29 = vor.u32 %v2132_v24, %v1916_v23 }
  0x12   : > { %670 = vmatpush.bf16.msra.mxu0 %v1933_v16  ;;  %v1918_v30 = vld [vmem:[%s3411_s1 + $0xb0] sm:$0xf0]  ;;  %v2162_v31 = vld [vmem:[%s3411_s1 + $0x1a4] sm:$0xf]  ;;  %v2045_v33 = vor.u32 %v2164_v27, %v2044_v26  ;;  %v1900_v35 = vld [vmem:[%s3411_s1 + $0x80] sm:$0xf] }
  0x13   : > { %v2046_v32 = vld [vmem:[%s3411_s1 + $0x1b0] sm:$0xf0]  ;;  %719 = vmatpush.bf16.msra.mxu1 %v2061_v17  ;;  %768 = vmatpush.bf16.msra.mxu2 %v1937_v21  ;;  %v1921_v34 = vor.u32 %v2130_v28, %v1918_v30  ;;  %v2128_v36 = vld [vmem:[%s3411_s1 + $0x8c] sm:$0xf0]  ;;  %v2028_v37 = vld [vmem:[%s3411_s1 + $0x180] sm:$0xf] }
  0x14   : > { %817 = vmatpush.bf16.msra.mxu3 %v2065_v25  ;;  %v2049_v38 = vor.u32 %v2162_v31, %v2046_v32  ;;  %v2160_v39 = vld [vmem:[%s3411_s1 + $0x18c] sm:$0xf0]  ;;  %v2126_v40 = vld [vmem:[%s3411_s1 + $0x84] sm:$0xf]  ;;  %v1902_v41 = vld [vmem:[%s3411_s1 + $0x90] sm:$0xf0]  ;;  %v1901_v44 = vor.u32 %v2128_v36, %v1900_v35 }
  0x15   : > { %v2158_v42 = vld [vmem:[%s3411_s1 + $0x184] sm:$0xf]  ;;  %v2030_v43 = vld [vmem:[%s3411_s1 + $0x190] sm:$0xf0]  ;;  %v2029_v45 = vor.u32 %v2160_v39, %v2028_v37  ;;  %v1905_v46 = vor.u32 %v2126_v40, %v1902_v41  ;;  %v1884_v47 = vld [vmem:[%s3411_s1 + $0x60] sm:$0xf] }
  0x16   : > { %671 = vmatpush.bf16.msra.mxu0 %v1917_v29  ;;  %v2124_v48 = vld [vmem:[%s3411_s1 + $0x6c] sm:$0xf0]  ;;  %v2012_v49 = vld [vmem:[%s3411_s1 + $0x160] sm:$0xf]  ;;  %v2033_v50 = vor.u32 %v2158_v42, %v2030_v43  ;;  %v2122_v52 = vld [vmem:[%s3411_s1 + $0x64] sm:$0xf] }
  0x17   : > { %720 = vmatpush.bf16.msra.mxu1 %v2045_v33  ;;  %769 = vmatpush.bf16.msra.mxu2 %v1921_v34  ;;  %v2156_v51 = vld [vmem:[%s3411_s1 + $0x16c] sm:$0xf0]  ;;  %v1886_v53 = vld [vmem:[%s3411_s1 + $0x70] sm:$0xf0]  ;;  %v2154_v54 = vld [vmem:[%s3411_s1 + $0x164] sm:$0xf]  ;;  %v1885_v56 = vor.u32 %v2124_v48, %v1884_v47 }
  0x18   : > { %818 = vmatpush.bf16.msra.mxu3 %v2049_v38  ;;  %v2014_v55 = vld [vmem:[%s3411_s1 + $0x170] sm:$0xf0]  ;;  %v2013_v57 = vor.u32 %v2156_v51, %v2012_v49  ;;  %v1889_v58 = vor.u32 %v2122_v52, %v1886_v53  ;;  %v1868_v59 = vld [vmem:[%s3411_s1 + $0x40] sm:$0xf]  ;;  %v2120_v60 = vld [vmem:[%s3411_s1 + $0x4c] sm:$0xf0] }
  0x19   : > { %v1996_v61 = vld [vmem:[%s3411_s1 + $0x140] sm:$0xf]  ;;  %v2017_v62 = vor.u32 %v2154_v54, %v2014_v55  ;;  %v2152_v63 = vld [vmem:[%s3411_s1 + $0x14c] sm:$0xf0]  ;;  %v2118_v0 = vld [vmem:[%s3411_s1 + $0x44] sm:$0xf]  ;;  %v1869_v4 = vor.u32 %v2120_v60, %v1868_v59 }
  0x1a   : > { %672 = vmatpush.bf16.msra.mxu0 %v1901_v44  ;;  %v1870_v1 = vld [vmem:[%s3411_s1 + $0x50] sm:$0xf0]  ;;  %v2150_v2 = vld [vmem:[%s3411_s1 + $0x144] sm:$0xf]  ;;  %v1852_v5 = vld [vmem:[%s3411_s1 + $0x20] sm:$0xf]  ;;  %v1997_v6 = vor.u32 %v2152_v63, %v1996_v61 }
  0x1b   : > { %721 = vmatpush.bf16.msra.mxu1 %v2029_v45  ;;  %770 = vmatpush.bf16.msra.mxu2 %v1905_v46  ;;  %v1998_v3 = vld [vmem:[%s3411_s1 + $0x150] sm:$0xf0]  ;;  %v1873_v7 = vor.u32 %v2118_v0, %v1870_v1  ;;  %v2116_v8 = vld [vmem:[%s3411_s1 + $0x2c] sm:$0xf0]  ;;  %v1980_v9 = vld [vmem:[%s3411_s1 + $0x120] sm:$0xf] }
  0x1c   : > { %819 = vmatpush.bf16.msra.mxu3 %v2033_v50  ;;  %v2148_v10 = vld [vmem:[%s3411_s1 + $0x12c] sm:$0xf0]  ;;  %v2001_v11 = vor.u32 %v2150_v2, %v1998_v3  ;;  %v2114_v12 = vld [vmem:[%s3411_s1 + $0x24] sm:$0xf]  ;;  %v1854_v13 = vld [vmem:[%s3411_s1 + $0x30] sm:$0xf0]  ;;  %v1853_v16 = vor.u32 %v2116_v8, %v1852_v5 }
  0x1d   : > { %v2146_v14 = vld [vmem:[%s3411_s1 + $0x124] sm:$0xf]  ;;  %v1982_v15 = vld [vmem:[%s3411_s1 + $0x130] sm:$0xf0]  ;;  %v1836_v17 = vld [vmem:[%s3411_s1] sm:$0xf]  ;;  %v1981_v20 = vor.u32 %v2148_v10, %v1980_v9  ;;  %v1857_v21 = vor.u32 %v2114_v12, %v1854_v13 }
  0x1e   : > { %673 = vmatpush.bf16.msra.mxu0 %v1885_v56  ;;  %v2112_v18 = vld [vmem:[%s3411_s1 + $0xc] sm:$0xf0]  ;;  %v1964_v19 = vld [vmem:[%s3411_s1 + $0x100] sm:$0xf]  ;;  %v2110_v23 = vld [vmem:[%s3411_s1 + $0x4] sm:$0xf]  ;;  %v1985_v24 = vor.u32 %v2146_v14, %v1982_v15 }
  0x1f   : > { %722 = vmatpush.bf16.msra.mxu1 %v2013_v57  ;;  %771 = vmatpush.bf16.msra.mxu2 %v1889_v58  ;;  %v2144_v22 = vld [vmem:[%s3411_s1 + $0x10c] sm:$0xf0]  ;;  %s3415_s22 = smov (!%p166_p3, %s1764_s22), 31  ;;  %v1838_v25 = vld [vmem:[%s3411_s1 + $0x10] sm:$0xf0]  ;;  %v1837_v30 = vor.u32 %v2112_v18, %v1836_v17 }
  0x20   : > { %820 = vmatpush.bf16.msra.mxu3 %v2017_v62  ;;  %v2142_v26 = vld [vmem:[%s3411_s1 + $0x104] sm:$0xf]  ;;  %v1966_v27 = vld [vmem:[%s3411_s1 + $0x110] sm:$0xf0]  ;;  %s2092_s17 = sshll.u32 %s3415_s22, 3  ;;  %v1965_v34 = vor.u32 %v2144_v22, %v1964_v19  ;;  %v1841_v35 = vor.u32 %v2110_v23, %v1838_v25 }
  0x21   : > { %v2139_v28 = vld [vmem:[%s3411_s1 + $0xec] sm:$0xf]  ;;  %v1958_v29 = vld [vmem:[%s3411_s1 + $0xf8] sm:$0xf0]  ;;  %s2552_s25 = scalar_lea.vmem %s3410_s0, %s2092_s17  ;;  %v1956_v33 = vld [vmem:[%s3411_s1 + $0xe8] sm:$0xf]  ;;  %v1969_v39 = vor.u32 %v2142_v26, %v1966_v27 }
  0x22   : > { %674 = vmatpush.bf16.msra.mxu0 %v1869_v4  ;;  %v2171_v31 = vld [vmem:[%s3411_s1 + $0x1ec] sm:$0xf]  ;;  %v2086_v32 = vld [vmem:[%s3411_s1 + $0x1f8] sm:$0xf0]  ;;  %v1772_v36 = vld [vmem:[%s2552_s25] sm:$0xf]  ;;  %v1961_v41 = vor.u32 %v2139_v28, %v1958_v29 }
  0x23   : > { %723 = vmatpush.bf16.msra.mxu1 %v1997_v6  ;;  %772 = vmatpush.bf16.msra.mxu2 %v1873_v7  ;;  %v2095_v37 = vld [vmem:[%s2552_s25 + $0x4] sm:$0xf0]  ;;  %v2094_v38 = vld [vmem:[%s2552_s25 + $0x4] sm:$0xf]  ;;  %v1774_v40 = vld [vmem:[%s2552_s25 + $0x8] sm:$0xf0]  ;;  %v2089_v45 = vor.u32 %v2171_v31, %v2086_v32 }
  0x24   : > { %821 = vmatpush.bf16.msra.mxu3 %v2001_v11  ;;  %v2141_v42 = vld [vmem:[%s3411_s1 + $0xf4] sm:$0xf0]  ;;  %v2084_v43 = vld [vmem:[%s3411_s1 + $0x1e8] sm:$0xf]  ;;  %v2573_v44 = vor.u32 %v2095_v37, %v1772_v36  ;;  %v2135_v47 = vld [vmem:[%s3411_s1 + $0xcc] sm:$0xf]  ;;  %v2584_v49 = vor.u32 %v2094_v38, %v1774_v40 }
  0x25   : > { %v2173_v46 = vld [vmem:[%s3411_s1 + $0x1f4] sm:$0xf0]  ;;  %v1942_v48 = vld [vmem:[%s3411_s1 + $0xd8] sm:$0xf0]  ;;  %v2167_v50 = vld [vmem:[%s3411_s1 + $0x1cc] sm:$0xf]  ;;  %v1957_v52 = vor.u32 %v2141_v42, %v1956_v33 }
  0x26   : > { %675 = vmatpush.bf16.msra.mxu0 %v1853_v16  ;;  %v2070_v51 = vld [vmem:[%s3411_s1 + $0x1d8] sm:$0xf0]  ;;  %v2085_v53 = vor.u32 %v2173_v46, %v2084_v43  ;;  %v1945_v54 = vor.u32 %v2135_v47, %v1942_v48  ;;  %v1940_v55 = vld [vmem:[%s3411_s1 + $0xc8] sm:$0xf]  ;;  %v2137_v56 = vld [vmem:[%s3411_s1 + $0xd4] sm:$0xf0] }
  0x27   : > { %724 = vmatpush.bf16.msra.mxu1 %v1981_v20  ;;  %773 = vmatpush.bf16.msra.mxu2 %v1857_v21  ;;  %v2073_v57 = vor.u32 %v2167_v50, %v2070_v51  ;;  %v2068_v58 = vld [vmem:[%s3411_s1 + $0x1c8] sm:$0xf]  ;;  %v2169_v59 = vld [vmem:[%s3411_s1 + $0x1d4] sm:$0xf0]  ;;  %v1941_v60 = vor.u32 %v2137_v56, %v1940_v55  ;;  %v2131_v61 = vld [vmem:[%s3411_s1 + $0xac] sm:$0xf] }
  0x28   : > { %822 = vmatpush.bf16.msra.mxu3 %v1985_v24  ;;  %v1926_v62 = vld [vmem:[%s3411_s1 + $0xb8] sm:$0xf0]  ;;  %v2163_v63 = vld [vmem:[%s3411_s1 + $0x1ac] sm:$0xf]  ;;  %v2069_v0 = vor.u32 %v2169_v59, %v2068_v58  ;;  %v1924_v3 = vld [vmem:[%s3411_s1 + $0xa8] sm:$0xf] }
  0x29   : > { %v1929_v1 = vor.u32 %v2131_v61, %v1926_v62  ;;  %v2054_v2 = vld [vmem:[%s3411_s1 + $0x1b8] sm:$0xf0]  ;;  %v2133_v4 = vld [vmem:[%s3411_s1 + $0xb4] sm:$0xf0]  ;;  %v2052_v6 = vld [vmem:[%s3411_s1 + $0x1a8] sm:$0xf] }
  0x2a   : > { %676 = vmatpush.bf16.msra.mxu0 %v1837_v30  ;;  %v2057_v5 = vor.u32 %v2163_v63, %v2054_v2  ;;  %v2165_v7 = vld [vmem:[%s3411_s1 + $0x1b4] sm:$0xf0]  ;;  %v1925_v8 = vor.u32 %v2133_v4, %v1924_v3  ;;  %v1780_v10 = vld [vmem:[%s2552_s25 + $0x10] sm:$0xf]  ;;  %v2096_v12 = vld [vmem:[%s2552_s25 + $0x14] sm:$0xf] }
  0x2b   : > { %725 = vmatpush.bf16.msra.mxu1 %v1965_v34  ;;  %774 = vmatpush.bf16.msra.mxu2 %v1841_v35  ;;  %v2053_v9 = vor.u32 %v2165_v7, %v2052_v6  ;;  %v2097_v11 = vld [vmem:[%s2552_s25 + $0x14] sm:$0xf0]  ;;  %v1782_v13 = vld [vmem:[%s2552_s25 + $0x18] sm:$0xf0]  ;;  %v2127_v16 = vld [vmem:[%s3411_s1 + $0x8c] sm:$0xf] }
  0x2c   : > { %823 = vmatpush.bf16.msra.mxu3 %v1969_v39  ;;  %v2636_v14 = vor.u32 %v2097_v11, %v1780_v10  ;;  %v2638_v15 = vor.u32 %v2096_v12, %v1782_v13  ;;  %v1910_v17 = vld [vmem:[%s3411_s1 + $0x98] sm:$0xf0]  ;;  %v2159_v18 = vld [vmem:[%s3411_s1 + $0x18c] sm:$0xf]  ;;  %v1908_v21 = vld [vmem:[%s3411_s1 + $0x88] sm:$0xf] }
  0x2d   : > { %677 = vmatmul.bf16.vlgmr.msra.gmra.mxu0 %v2573_v44  ;;  %v1913_v19 = vor.u32 %v2127_v16, %v1910_v17  ;;  %v2038_v20 = vld [vmem:[%s3411_s1 + $0x198] sm:$0xf0]  ;;  %v2129_v22 = vld [vmem:[%s3411_s1 + $0x94] sm:$0xf0]  ;;  %v2036_v25 = vld [vmem:[%s3411_s1 + $0x188] sm:$0xf] }
  0x2e   : > { %726 = vmatmul.bf16.vlgmr.msra.gmra.mxu1 %v2584_v49  ;;  %775 = vmatmul.bf16.vlgmr.msra.gmra.mxu2 %v2573_v44  ;;  %v2041_v23 = vor.u32 %v2159_v18, %v2038_v20  ;;  %v1909_v24 = vor.u32 %v2129_v22, %v1908_v21  ;;  %v2161_v26 = vld [vmem:[%s3411_s1 + $0x194] sm:$0xf0]  ;;  %v1788_v28 = vld [vmem:[%s2552_s25 + $0x20] sm:$0xf]  ;;  %v2099_v29 = vld [vmem:[%s2552_s25 + $0x24] sm:$0xf0] }
  0x2f   : > { %963 = vmatpush.bf16.msrb.mxu2 %v1961_v41  ;;  %824 = vmatmul.bf16.vlgmr.msra.gmra.mxu3 %v2584_v49  ;;  %v2037_v27 = vor.u32 %v2161_v26, %v2036_v25  ;;  %v2098_v30 = vld [vmem:[%s2552_s25 + $0x24] sm:$0xf]  ;;  %v1790_v31 = vld [vmem:[%s2552_s25 + $0x28] sm:$0xf0]  ;;  %v2672_v32 = vor.u32 %v2099_v29, %v1788_v28  ;;  %v1894_v35 = vld [vmem:[%s3411_s1 + $0x78] sm:$0xf0] }
  0x30   : > { %1012 = vmatpush.bf16.msrb.mxu3 %v2089_v45  ;;  %865 = vmatpush.bf16.msrb.mxu0 %v1957_v52  ;;  %v2674_v33 = vor.u32 %v2098_v30, %v1790_v31  ;;  %v2123_v34 = vld [vmem:[%s3411_s1 + $0x6c] sm:$0xf]  ;;  %v2022_v38 = vld [vmem:[%s3411_s1 + $0x178] sm:$0xf0]  ;;  %v1892_v39 = vld [vmem:[%s3411_s1 + $0x68] sm:$0xf] }
  0x31   : > { %914 = vmatpush.bf16.msrb.mxu1 %v2085_v53  ;;  %v2155_v36 = vld [vmem:[%s3411_s1 + $0x16c] sm:$0xf]  ;;  %v1897_v37 = vor.u32 %v2123_v34, %v1894_v35  ;;  %v2125_v40 = vld [vmem:[%s3411_s1 + $0x74] sm:$0xf0]  ;;  %v2020_v43 = vld [vmem:[%s3411_s1 + $0x168] sm:$0xf] }
  0x32   : > { %v2025_v41 = vor.u32 %v2155_v36, %v2022_v38  ;;  %v1893_v42 = vor.u32 %v2125_v40, %v1892_v39  ;;  %v2157_v45 = vld [vmem:[%s3411_s1 + $0x174] sm:$0xf0]  ;;  %v1796_v47 = vld [vmem:[%s2552_s25 + $0x30] sm:$0xf]  ;;  %v2100_v50 = vld [vmem:[%s2552_s25 + $0x34] sm:$0xf] }
  0x33   : > { %964 = vmatpush.bf16.msrb.mxu2 %v1945_v54  ;;  %v2021_v46 = vor.u32 %v2157_v45, %v2020_v43  ;;  %v2101_v48 = vld [vmem:[%s2552_s25 + $0x34] sm:$0xf0]  ;;  %v1798_v51 = vld [vmem:[%s2552_s25 + $0x38] sm:$0xf0]  ;;  %v2119_v54 = vld [vmem:[%s3411_s1 + $0x4c] sm:$0xf] }
  0x34   : > { %1013 = vmatpush.bf16.msrb.mxu3 %v2073_v57  ;;  %866 = vmatpush.bf16.msrb.mxu0 %v1941_v60  ;;  %v2708_v52 = vor.u32 %v2101_v48, %v1796_v47  ;;  %v2710_v53 = vor.u32 %v2100_v50, %v1798_v51  ;;  %v1878_v55 = vld [vmem:[%s3411_s1 + $0x58] sm:$0xf0]  ;;  %v2151_v56 = vld [vmem:[%s3411_s1 + $0x14c] sm:$0xf]  ;;  %v1876_v59 = vld [vmem:[%s3411_s1 + $0x48] sm:$0xf] }
  0x35   : > { %915 = vmatpush.bf16.msrb.mxu1 %v2069_v0  ;;  %v1881_v57 = vor.u32 %v2119_v54, %v1878_v55  ;;  %v2006_v58 = vld [vmem:[%s3411_s1 + $0x158] sm:$0xf0]  ;;  %v2121_v60 = vld [vmem:[%s3411_s1 + $0x54] sm:$0xf0]  ;;  %v2004_v63 = vld [vmem:[%s3411_s1 + $0x148] sm:$0xf] }
  0x36   : > { %v2009_v61 = vor.u32 %v2151_v56, %v2006_v58  ;;  %v1877_v62 = vor.u32 %v2121_v60, %v1876_v59  ;;  %v2153_v0 = vld [vmem:[%s3411_s1 + $0x154] sm:$0xf0]  ;;  %v1804_v2 = vld [vmem:[%s2552_s25 + $0x40] sm:$0xf]  ;;  %v2103_v3 = vld [vmem:[%s2552_s25 + $0x44] sm:$0xf0] }
  0x37   : > { %965 = vmatpush.bf16.msrb.mxu2 %v1929_v1  ;;  %v2005_v1 = vor.u32 %v2153_v0, %v2004_v63  ;;  %v2102_v4 = vld [vmem:[%s2552_s25 + $0x44] sm:$0xf]  ;;  %v2744_v6 = vor.u32 %v2103_v3, %v1804_v2  ;;  %v2147_v10 = vld [vmem:[%s3411_s1 + $0x12c] sm:$0xf]  ;;  %v1990_v12 = vld [vmem:[%s3411_s1 + $0x138] sm:$0xf0] }
  0x38   : > { %1014 = vmatpush.bf16.msrb.mxu3 %v2057_v5  ;;  %867 = vmatpush.bf16.msrb.mxu0 %v1925_v8  ;;  %v1806_v5 = vld [vmem:[%s2552_s25 + $0x48] sm:$0xf0]  ;;  %v1860_v13 = vld [vmem:[%s3411_s1 + $0x28] sm:$0xf]  ;;  %v2117_v16 = vld [vmem:[%s3411_s1 + $0x34] sm:$0xf0]  ;;  %v1993_v17 = vor.u32 %v2147_v10, %v1990_v12 }
  0x39   : > { %916 = vmatpush.bf16.msrb.mxu1 %v2053_v9  ;;  %v2746_v7 = vor.u32 %v2102_v4, %v1806_v5  ;;  %v2115_v8 = vld [vmem:[%s3411_s1 + $0x2c] sm:$0xf]  ;;  %v1862_v9 = vld [vmem:[%s3411_s1 + $0x38] sm:$0xf0]  ;;  %v1861_v18 = vor.u32 %v2117_v16, %v1860_v13  ;;  %v2149_v20 = vld [vmem:[%s3411_s1 + $0x134] sm:$0xf0] }
  0x3a   : > { %v1865_v11 = vor.u32 %v2115_v8, %v1862_v9  ;;  %v1812_v22 = vld [vmem:[%s2552_s25 + $0x50] sm:$0xf]  ;;  %v1814_v25 = vld [vmem:[%s2552_s25 + $0x58] sm:$0xf0]  ;;  %v2111_v28 = vld [vmem:[%s3411_s1 + $0xc] sm:$0xf] }
  0x3b   : > { %966 = vmatpush.bf16.msrb.mxu2 %v1913_v19  ;;  %v1988_v19 = vld [vmem:[%s3411_s1 + $0x128] sm:$0xf]  ;;  %v1846_v29 = vld [vmem:[%s3411_s1 + $0x18] sm:$0xf0]  ;;  %v2143_v30 = vld [vmem:[%s3411_s1 + $0x10c] sm:$0xf] }
  0x3c   : > { %1015 = vmatpush.bf16.msrb.mxu3 %v2041_v23  ;;  %868 = vmatpush.bf16.msrb.mxu0 %v1909_v24  ;;  %v1989_v21 = vor.u32 %v2149_v20, %v1988_v19  ;;  %v2105_v23 = vld [vmem:[%s2552_s25 + $0x54] sm:$0xf0]  ;;  %v2104_v24 = vld [vmem:[%s2552_s25 + $0x54] sm:$0xf]  ;;  %v1849_v31 = vor.u32 %v2111_v28, %v1846_v29  ;;  %v1974_v34 = vld [vmem:[%s3411_s1 + $0x118] sm:$0xf0] }
  0x3d   : > { %682 = vmatmul.bf16.gmra.mxu0 %v2636_v14  ;;  %917 = vmatpush.bf16.msrb.mxu1 %v2037_v27  ;;  %v2780_v26 = vor.u32 %v2105_v23, %v1812_v22  ;;  %v2782_v27 = vor.u32 %v2104_v24, %v1814_v25  ;;  %v1844_v35 = vld [vmem:[%s3411_s1 + $0x8] sm:$0xf]  ;;  %v2113_v36 = vld [vmem:[%s3411_s1 + $0x14] sm:$0xf0]  ;;  %v2106_v45 = vld [vmem:[%s2552_s25 + $0x64] sm:$0xf] }
  0x3e   : > { %731 = vmatmul.bf16.gmra.mxu1 %v2638_v15  ;;  %780 = vmatmul.bf16.gmra.mxu2 %v2636_v14  ;;  %v1845_v38 = vor.u32 %v2113_v36, %v1844_v35  ;;  %v1972_v39 = vld [vmem:[%s3411_s1 + $0x108] sm:$0xf]  ;;  %v2145_v40 = vld [vmem:[%s3411_s1 + $0x114] sm:$0xf0]  ;;  %v1828_v50 = vld [vmem:[%s2552_s25 + $0x70] sm:$0xf] }
  0x3f   : > { %829 = vmatmul.bf16.gmra.mxu3 %v2638_v15  ;;  %967 = vmatpush.bf16.msrb.mxu2 %v1897_v37  ;;  %v1977_v37 = vor.u32 %v2143_v30, %v1974_v34  ;;  %v2107_v43 = vld [vmem:[%s2552_s25 + $0x64] sm:$0xf0]  ;;  %v2109_v51 = vld [vmem:[%s2552_s25 + $0x74] sm:$0xf0]  ;;  %v2108_v54 = vld [vmem:[%s2552_s25 + $0x74] sm:$0xf] }
  0x40   : > { %1016 = vmatpush.bf16.msrb.mxu3 %v2025_v41  ;;  %869 = vmatpush.bf16.msrb.mxu0 %v1893_v42  ;;  %v1973_v41 = vor.u32 %v2145_v40, %v1972_v39  ;;  %v1820_v42 = vld [vmem:[%s2552_s25 + $0x60] sm:$0xf]  ;;  %v1830_v55 = vld [vmem:[%s2552_s25 + $0x78] sm:$0xf0]  ;;  %v2828_v56 = vor.u32 %v2109_v51, %v1828_v50 }
  0x41   : > { %918 = vmatpush.bf16.msrb.mxu1 %v2021_v46  ;;  %v1822_v46 = vld [vmem:[%s2552_s25 + $0x68] sm:$0xf0]  ;;  %v2816_v47 = vor.u32 %v2107_v43, %v1820_v42  ;;  %v2839_v58 = vld [vmem:[%s3412_s2] sm:$0xf]  ;;  %s2093_s25 = sshll.u32 %s3415_s22, 4 }
  0x42   : > { %v2818_v48 = vor.u32 %v2106_v45, %v1822_v46  ;;  %v2842_v59 = vperm.slane %v2839_v58, 0  ;;  %v2851_v0 = vperm.slane %v2839_v58, 1  ;;  %s2899_s22 = scalar_lea.vmem %s3413_s3, %s2093_s25 }
  0x43   : > { %968 = vmatpush.bf16.msrb.mxu2 %v1881_v57  ;;  %v2830_v57 = vor.u32 %v2108_v54, %v1830_v55 }
  0x44   : > { %1017 = vmatpush.bf16.msrb.mxu3 %v2009_v61  ;;  %870 = vmatpush.bf16.msrb.mxu0 %v1877_v62 }
  0x45   : > { %919 = vmatpush.bf16.msrb.mxu1 %v2005_v1 }
  0x47   : > { %969 = vmatpush.bf16.msrb.mxu2 %v1865_v11 }
  0x48   : > { %1018 = vmatpush.bf16.msrb.mxu3 %v1993_v17  ;;  %871 = vmatpush.bf16.msrb.mxu0 %v1861_v18 }
  0x49   : > { %920 = vmatpush.bf16.msrb.mxu1 %v1989_v21 }
  0x4b   : > { %970 = vmatpush.bf16.msrb.mxu2 %v1849_v31 }
  0x4c   : > { %1019 = vmatpush.bf16.msrb.mxu3 %v1977_v37  ;;  %872 = vmatpush.bf16.msrb.mxu0 %v1845_v38 }
  0x4d   : > { %687 = vmatmul.bf16.gmra.mxu0 %v2672_v32  ;;  %921 = vmatpush.bf16.msrb.mxu1 %v1973_v41 }
  0x4e   : > { %736 = vmatmul.bf16.gmra.mxu1 %v2674_v33  ;;  %785 = vmatmul.bf16.gmra.mxu2 %v2672_v32 }
  0x4f   : > { %834 = vmatmul.bf16.gmra.mxu3 %v2674_v33 }
  0x5d   : > { %692 = vmatmul.bf16.gmra.mxu0 %v2708_v52 }
  0x5e   : > { %741 = vmatmul.bf16.gmra.mxu1 %v2710_v53  ;;  %790 = vmatmul.bf16.gmra.mxu2 %v2708_v52 }
  0x5f   : > { %839 = vmatmul.bf16.gmra.mxu3 %v2710_v53 }
  0x6d   : > { %697 = vmatmul.bf16.gmra.mxu0 %v2744_v6 }
  0x6e   : > { %746 = vmatmul.bf16.gmra.mxu1 %v2746_v7  ;;  %795 = vmatmul.bf16.gmra.mxu2 %v2744_v6 }
  0x6f   : > { %844 = vmatmul.bf16.gmra.mxu3 %v2746_v7 }
  0x7d   : > { %702 = vmatmul.bf16.gmra.mxu0 %v2780_v26 }
  0x7e   : > { %751 = vmatmul.bf16.gmra.mxu1 %v2782_v27  ;;  %800 = vmatmul.bf16.gmra.mxu2 %v2780_v26 }
  0x7f   : > { %849 = vmatmul.bf16.gmra.mxu3 %v2782_v27 }
  0x8d   : > { %707 = vmatmul.bf16.gmra.mxu0 %v2816_v47 }
  0x8e   : > { %756 = vmatmul.bf16.gmra.mxu1 %v2818_v48  ;;  %805 = vmatmul.bf16.gmra.mxu2 %v2816_v47 }
  0x8f   : > { %854 = vmatmul.bf16.gmra.mxu3 %v2818_v48 }
  0x9d   : > { %712 = vmatmul.bf16.gmra.mxu0 %v2828_v56 }
  0x9e   : > { %761 = vmatmul.bf16.gmra.mxu1 %v2830_v57  ;;  %810 = vmatmul.bf16.gmra.mxu2 %v2828_v56 }
  0x9f   : > { %859 = vmatmul.bf16.gmra.mxu3 %v2830_v57 }
  0xaa   : > { %v678_v60 = vpop.f32.mrf.mxu0 }
  0xab   : > { %v679_v61 = vadd.f32 %v678_v60, %v2842_v59  ;;  %v727_v62 = vpop.f32.mrf.mxu1 }
  0xad   : > { %v2845_v63 = vadd.f32 %v727_v62, %v679_v61  ;;  %873 = vmatmul.bf16.vlgmr.msrb.gmra.mxu0 %v2573_v44 }
  0xae   : > { %922 = vmatmul.bf16.vlgmr.msrb.gmra.mxu1 %v2584_v49  ;;  %971 = vmatmul.bf16.vlgmr.msrb.gmra.mxu2 %v2573_v44 }
  0xaf   : > { %v1125_v1 = vmul.f32 0.044715, %v2845_v63  ;;  %1020 = vmatmul.bf16.vlgmr.msrb.gmra.mxu3 %v2584_v49 }
  0xb1   : > { %v1189_v2 = vmul.f32 %v1125_v1, %v2845_v63  ;;  %v776_v3 = vpop.f32.mrf.mxu2 }
  0xb2   : > { %v777_v4 = vadd.f32 %v776_v3, %v2851_v0  ;;  %v825_v5 = vpop.f32.mrf.mxu3  ;;  %v680_v8 = vpop.f32.mrf.mxu0 }
  0xb3   : > { %v1253_v9 = vmul.f32 %v1189_v2, %v2845_v63  ;;  %v681_v10 = vadd.f32 %v680_v8, %v2842_v59  ;;  %v729_v11 = vpop.f32.mrf.mxu1 }
  0xb4   : > { %v826_v44 = vadd.f32 %v825_v5, %v777_v4  ;;  %v1061_v5 = vmul.f32 0.5, %v2845_v63 }
  0xb5   : > { %v1317_v12 = vadd.f32 %v1253_v9, %v2845_v63  ;;  %v2860_v13 = vadd.f32 %v729_v11, %v681_v10 }
  0xb6   : > { %v1126_v16 = vmul.f32 0.044715, %v826_v44  ;;  %v1062_v8 = vmul.f32 0.5, %v826_v44 }
  0xb7   : > { %v1129_v49 = vmul.f32 0.044715, %v2860_v13  ;;  %v1381_v17 = vmul.f32 0.7978846, %v1317_v12 }
  0xb8   : > { %v1190_v18 = vmul.f32 %v1126_v16, %v826_v44 }
  0xb9   : > { %v1193_v19 = vmul.f32 %v1129_v49, %v2860_v13  ;;  %v778_v20 = vpop.f32.mrf.mxu2  ;;  %2182 = vtanh.f32 %v1381_v17 }
  0xba   : > { %v1254_v21 = vmul.f32 %v1190_v18, %v826_v44  ;;  %v779_v22 = vadd.f32 %v778_v20, %v2851_v0  ;;  %v827_v23 = vpop.f32.mrf.mxu3  ;;  %v683_v24 = vpop.f32.mrf.mxu0 }
  0xbb   : > { %v1257_v25 = vmul.f32 %v1193_v19, %v2860_v13  ;;  %v684_v28 = vadd.f32 %v683_v24, %v2842_v59  ;;  %v732_v29 = vpop.f32.mrf.mxu1 }
  0xbc   : > { %v1318_v30 = vadd.f32 %v1254_v21, %v826_v44  ;;  %v2867_v31 = vadd.f32 %v827_v23, %v779_v22 }
  0xbd   : > { %v1321_v34 = vadd.f32 %v1257_v25, %v2860_v13  ;;  %v2870_v35 = vadd.f32 %v732_v29, %v684_v28  ;;  %878 = vmatmul.bf16.gmra.mxu0 %v2636_v14 }
  0xbe   : > { %v1382_v36 = vmul.f32 0.7978846, %v1318_v30  ;;  %v1130_v37 = vmul.f32 0.044715, %v2867_v31  ;;  %927 = vmatmul.bf16.gmra.mxu1 %v2638_v15  ;;  %976 = vmatmul.bf16.gmra.mxu2 %v2636_v14 }
  0xbf   : > { %v1133_v38 = vmul.f32 0.044715, %v2870_v35  ;;  %1025 = vmatmul.bf16.gmra.mxu3 %v2638_v15  ;;  %v1385_v39 = vmul.f32 0.7978846, %v1321_v34  ;;  %v2183_v43 = vpop.eup %2182 }
  0xc0   : > { %2184 = vtanh.f32 %v1382_v36  ;;  %v1194_v40 = vmul.f32 %v1130_v37, %v2867_v31  ;;  %v1509_v61 = vadd.f32 1.0, %v2183_v43 }
  0xc1   : > { %v1197_v41 = vmul.f32 %v1133_v38, %v2870_v35  ;;  %v781_v42 = vpop.f32.mrf.mxu2  ;;  %2186 = vtanh.f32 %v1385_v39 }
  0xc2   : > { %v1258_v45 = vmul.f32 %v1194_v40, %v2867_v31  ;;  %v782_v46 = vadd.f32 %v781_v42, %v2851_v0  ;;  %v830_v50 = vpop.f32.mrf.mxu3  ;;  %v685_v51 = vpop.f32.mrf.mxu0  ;;  %v1573_v16 = vmul.f32 %v1509_v61, %v1061_v5  ;;  %v1065_v40 = vmul.f32 0.5, %v2860_v13 }
  0xc3   : > { %v1261_v14 = vmul.f32 %v1197_v41, %v2870_v35  ;;  %v686_v54 = vadd.f32 %v685_v51, %v2842_v59  ;;  %v734_v15 = vpop.f32.mrf.mxu1  ;;  %v1066_v41 = vmul.f32 0.5, %v2867_v31 }
  0xc4   : > { %v1322_v55 = vadd.f32 %v1258_v45, %v2867_v31  ;;  %v2885_v60 = vadd.f32 %v830_v50, %v782_v46 }
  0xc5   : > { %v1325_v62 = vadd.f32 %v1261_v14, %v2870_v35  ;;  %v2888_v1 = vadd.f32 %v734_v15, %v686_v54 }
  0xc6   : > { %v2185_v2 = vpop.eup %2184  ;;  %v1386_v3 = vmul.f32 0.7978846, %v1322_v55  ;;  %v1134_v4 = vmul.f32 0.044715, %v2885_v60 }
  0xc7   : > { %v1510_v9 = vadd.f32 1.0, %v2185_v2  ;;  %v1137_v10 = vmul.f32 0.044715, %v2888_v1  ;;  %v1389_v11 = vmul.f32 0.7978846, %v1325_v62  ;;  %v2187_v19 = vpop.eup %2186 }
  0xc8   : > { %2188 = vtanh.f32 %v1386_v3  ;;  %v1198_v12 = vmul.f32 %v1134_v4, %v2885_v60  ;;  %v1513_v30 = vadd.f32 1.0, %v2187_v19 }
  0xc9   : > { %v1574_v49 = vmul.f32 %v1510_v9, %v1062_v8  ;;  %v1201_v17 = vmul.f32 %v1137_v10, %v2888_v1  ;;  %v783_v18 = vpop.f32.mrf.mxu2  ;;  %2190 = vtanh.f32 %v1389_v11 }
  0xca   : > { %v1262_v63 = vmul.f32 %v1198_v12, %v2885_v60  ;;  %v784_v44 = vadd.f32 %v783_v18, %v2851_v0  ;;  %v832_v20 = vpop.f32.mrf.mxu3  ;;  %v688_v21 = vpop.f32.mrf.mxu0  ;;  %v1577_v50 = vmul.f32 %v1513_v30, %v1065_v40 }
  0xcb   : > { %v1637_v22 = vpack.c.bf16 %v1574_v49, %v1573_v16  ;;  %v1265_v23 = vmul.f32 %v1201_v17, %v2888_v1  ;;  %v689_v24 = vadd.f32 %v688_v21, %v2842_v59  ;;  %v737_v25 = vpop.f32.mrf.mxu1  ;;  %v1069_v16 = vmul.f32 0.5, %v2870_v35 }
  0xcc   : > { %v1326_v28 = vadd.f32 %v1262_v63, %v2885_v60  ;;  %v2906_v29 = vadd.f32 %v832_v20, %v784_v44  ;;  %v1070_v49 = vmul.f32 0.5, %v2885_v60 }
  0xcd   : > { %1669 = vst [vmem:[%s2899_s22] sm:$0xff] %v1637_v22  ;;  %v1329_v34 = vadd.f32 %v1265_v23, %v2888_v1  ;;  %v2910_v36 = vadd.f32 %v737_v25, %v689_v24  ;;  %883 = vmatmul.bf16.gmra.mxu0 %v2672_v32 }
  0xce   : > { %v2189_v37 = vpop.eup %2188  ;;  %v1390_v38 = vmul.f32 0.7978846, %v1326_v28  ;;  %v1138_v39 = vmul.f32 0.044715, %v2906_v29  ;;  %932 = vmatmul.bf16.gmra.mxu1 %v2674_v33  ;;  %981 = vmatmul.bf16.gmra.mxu2 %v2672_v32 }
  0xcf   : > { %v1514_v42 = vadd.f32 1.0, %v2189_v37  ;;  %v1141_v43 = vmul.f32 0.044715, %v2910_v36  ;;  %1030 = vmatmul.bf16.gmra.mxu3 %v2674_v33  ;;  %v1393_v45 = vmul.f32 0.7978846, %v1329_v34  ;;  %v2191_v32 = vpop.eup %2190 }
  0xd0   : > { %2192 = vtanh.f32 %v1390_v38  ;;  %v1202_v46 = vmul.f32 %v1138_v39, %v2906_v29  ;;  %v1517_v5 = vadd.f32 1.0, %v2191_v32 }
  0xd1   : > { %v1578_v51 = vmul.f32 %v1514_v42, %v1066_v41  ;;  %v1205_v14 = vmul.f32 %v1141_v43, %v2910_v36  ;;  %v786_v54 = vpop.f32.mrf.mxu2  ;;  %2194 = vtanh.f32 %v1393_v45 }
  0xd2   : > { %v1266_v13 = vmul.f32 %v1202_v46, %v2906_v29  ;;  %v787_v31 = vadd.f32 %v786_v54, %v2851_v0  ;;  %v835_v15 = vpop.f32.mrf.mxu3  ;;  %v690_v55 = vpop.f32.mrf.mxu0  ;;  %v1581_v44 = vmul.f32 %v1517_v5, %v1069_v16 }
  0xd3   : > { %v1639_v61 = vpack.c.bf16 %v1578_v51, %v1577_v50  ;;  %v1269_v33 = vmul.f32 %v1205_v14, %v2910_v36  ;;  %v691_v62 = vadd.f32 %v690_v55, %v2842_v59  ;;  %v739_v2 = vpop.f32.mrf.mxu1  ;;  %v1073_v50 = vmul.f32 0.5, %v2888_v1 }
  0xd4   : > { %v1330_v3 = vadd.f32 %v1266_v13, %v2906_v29  ;;  %v2927_v4 = vadd.f32 %v835_v15, %v787_v31  ;;  %v1074_v51 = vmul.f32 0.5, %v2906_v29 }
  0xd5   : > { %1671 = vst [vmem:[%s2899_s22 + $0x10] sm:$0xff] %v1639_v61  ;;  %v1333_v8 = vadd.f32 %v1269_v33, %v2910_v36  ;;  %v2931_v9 = vadd.f32 %v739_v2, %v691_v62 }
  0xd6   : > { %v2193_v10 = vpop.eup %2192  ;;  %v1394_v11 = vmul.f32 0.7978846, %v1330_v3  ;;  %v1142_v12 = vmul.f32 0.044715, %v2927_v4 }
  0xd7   : > { %v1518_v17 = vadd.f32 1.0, %v2193_v10  ;;  %v1145_v18 = vmul.f32 0.044715, %v2931_v9  ;;  %v1397_v19 = vmul.f32 0.7978846, %v1333_v8  ;;  %v2195_v23 = vpop.eup %2194 }
  0xd8   : > { %2196 = vtanh.f32 %v1394_v11  ;;  %v1206_v63 = vmul.f32 %v1142_v12, %v2927_v4  ;;  %v1521_v40 = vadd.f32 1.0, %v2195_v23 }
  0xd9   : > { %v1582_v20 = vmul.f32 %v1518_v17, %v1070_v49  ;;  %v1209_v21 = vmul.f32 %v1145_v18, %v2931_v9  ;;  %v788_v22 = vpop.f32.mrf.mxu2  ;;  %2198 = vtanh.f32 %v1397_v19  ;;  %v1077_v19 = vmul.f32 0.5, %v2910_v36 }
  0xda   : > { %v1270_v24 = vmul.f32 %v1206_v63, %v2927_v4  ;;  %v789_v35 = vadd.f32 %v788_v22, %v2851_v0  ;;  %v837_v25 = vpop.f32.mrf.mxu3  ;;  %v693_v60 = vpop.f32.mrf.mxu0  ;;  %v1585_v31 = vmul.f32 %v1521_v40, %v1073_v50  ;;  %v1078_v63 = vmul.f32 0.5, %v2927_v4 }
  0xdb   : > { %v1641_v28 = vpack.c.bf16 %v1582_v20, %v1581_v44  ;;  %v1273_v30 = vmul.f32 %v1209_v21, %v2931_v9  ;;  %v694_v34 = vadd.f32 %v693_v60, %v2842_v59  ;;  %v742_v37 = vpop.f32.mrf.mxu1 }
  0xdc   : > { %v1334_v38 = vadd.f32 %v1270_v24, %v2927_v4  ;;  %v2944_v39 = vadd.f32 %v837_v25, %v789_v35 }
  0xdd   : > { %1673 = vst [vmem:[%s2899_s22 + $0x20] sm:$0xff] %v1641_v28  ;;  %v1337_v41 = vadd.f32 %v1273_v30, %v2931_v9  ;;  %v2948_v42 = vadd.f32 %v742_v37, %v694_v34  ;;  %888 = vmatmul.bf16.gmra.mxu0 %v2708_v52 }
  0xde   : > { %v2197_v43 = vpop.eup %2196  ;;  %v1398_v45 = vmul.f32 0.7978846, %v1334_v38  ;;  %v1146_v46 = vmul.f32 0.044715, %v2944_v39  ;;  %937 = vmatmul.bf16.gmra.mxu1 %v2710_v53  ;;  %986 = vmatmul.bf16.gmra.mxu2 %v2708_v52 }
  0xdf   : > { %v1522_v14 = vadd.f32 1.0, %v2197_v43  ;;  %v1149_v54 = vmul.f32 0.044715, %v2948_v42  ;;  %1035 = vmatmul.bf16.gmra.mxu3 %v2710_v53  ;;  %v1401_v32 = vmul.f32 0.7978846, %v1337_v41  ;;  %v2199_v52 = vpop.eup %2198 }
  0xe0   : > { %2200 = vtanh.f32 %v1398_v45  ;;  %v1210_v13 = vmul.f32 %v1146_v46, %v2944_v39  ;;  %v1525_v11 = vadd.f32 1.0, %v2199_v52 }
  0xe1   : > { %v1586_v15 = vmul.f32 %v1522_v14, %v1074_v51  ;;  %v1213_v55 = vmul.f32 %v1149_v54, %v2948_v42  ;;  %v791_v61 = vpop.f32.mrf.mxu2  ;;  %2202 = vtanh.f32 %v1401_v32  ;;  %v1081_v32 = vmul.f32 0.5, %v2931_v9 }
  0xe2   : > { %v1274_v1 = vmul.f32 %v1210_v13, %v2944_v39  ;;  %v792_v29 = vadd.f32 %v791_v61, %v2851_v0  ;;  %v840_v33 = vpop.f32.mrf.mxu3  ;;  %v695_v62 = vpop.f32.mrf.mxu0  ;;  %v1589_v23 = vmul.f32 %v1525_v11, %v1077_v19  ;;  %v1082_v13 = vmul.f32 0.5, %v2944_v39 }
  0xe3   : > { %v1643_v2 = vpack.c.bf16 %v1586_v15, %v1585_v31  ;;  %v1277_v53 = vmul.f32 %v1213_v55, %v2948_v42  ;;  %v696_v3 = vadd.f32 %v695_v62, %v2842_v59  ;;  %v744_v5 = vpop.f32.mrf.mxu1 }
  0xe4   : > { %v1338_v8 = vadd.f32 %v1274_v1, %v2944_v39  ;;  %v2965_v10 = vadd.f32 %v840_v33, %v792_v29 }
  0xe5   : > { %1675 = vst [vmem:[%s2899_s22 + $0x30] sm:$0xff] %v1643_v2  ;;  %v1341_v12 = vadd.f32 %v1277_v53, %v2948_v42  ;;  %v2969_v16 = vadd.f32 %v744_v5, %v696_v3 }
  0xe6   : > { %v2201_v49 = vpop.eup %2200  ;;  %v1402_v17 = vmul.f32 0.7978846, %v1338_v8  ;;  %v1150_v18 = vmul.f32 0.044715, %v2965_v10 }
  0xe7   : > { %v1526_v44 = vadd.f32 1.0, %v2201_v49  ;;  %v1153_v20 = vmul.f32 0.044715, %v2969_v16  ;;  %v1405_v21 = vmul.f32 0.7978846, %v1341_v12  ;;  %v2203_v60 = vpop.eup %2202 }
  0xe8   : > { %2204 = vtanh.f32 %v1402_v17  ;;  %v1214_v22 = vmul.f32 %v1150_v18, %v2965_v10  ;;  %v1529_v45 = vadd.f32 1.0, %v2203_v60 }
  0xe9   : > { %v1590_v24 = vmul.f32 %v1526_v44, %v1078_v63  ;;  %v1217_v35 = vmul.f32 %v1153_v20, %v2969_v16  ;;  %v793_v25 = vpop.f32.mrf.mxu2  ;;  %2206 = vtanh.f32 %v1405_v21  ;;  %v1085_v44 = vmul.f32 0.5, %v2948_v42 }
  0xea   : > { %v1278_v28 = vmul.f32 %v1214_v22, %v2965_v10  ;;  %v794_v36 = vadd.f32 %v793_v25, %v2851_v0  ;;  %v842_v30 = vpop.f32.mrf.mxu3  ;;  %v698_v4 = vpop.f32.mrf.mxu0  ;;  %v1593_v52 = vmul.f32 %v1529_v45, %v1081_v32  ;;  %v1086_v20 = vmul.f32 0.5, %v2965_v10 }
  0xeb   : > { %v1645_v34 = vpack.c.bf16 %v1590_v24, %v1589_v23  ;;  %v1281_v37 = vmul.f32 %v1217_v35, %v2969_v16  ;;  %v699_v38 = vadd.f32 %v698_v4, %v2842_v59  ;;  %v747_v40 = vpop.f32.mrf.mxu1 }
  0xec   : > { %v1342_v41 = vadd.f32 %v1278_v28, %v2965_v10  ;;  %v2982_v43 = vadd.f32 %v842_v30, %v794_v36 }
  0xed   : > { %1677 = vst [vmem:[%s2899_s22 + $0x40] sm:$0xff] %v1645_v34  ;;  %v1345_v46 = vadd.f32 %v1281_v37, %v2969_v16  ;;  %v2986_v50 = vadd.f32 %v747_v40, %v699_v38  ;;  %893 = vmatmul.bf16.gmra.mxu0 %v2744_v6 }
  0xee   : > { %v2205_v51 = vpop.eup %2204  ;;  %v1406_v14 = vmul.f32 0.7978846, %v1342_v41  ;;  %v1154_v54 = vmul.f32 0.044715, %v2982_v43  ;;  %942 = vmatmul.bf16.gmra.mxu1 %v2746_v7  ;;  %991 = vmatmul.bf16.gmra.mxu2 %v2744_v6 }
  0xef   : > { %v1530_v31 = vadd.f32 1.0, %v2205_v51  ;;  %v1157_v15 = vmul.f32 0.044715, %v2986_v50  ;;  %1040 = vmatmul.bf16.gmra.mxu3 %v2746_v7  ;;  %v1409_v55 = vmul.f32 0.7978846, %v1345_v46  ;;  %v2207_v6 = vpop.eup %2206 }
  0xf0   : > { %2208 = vtanh.f32 %v1406_v14  ;;  %v1218_v61 = vmul.f32 %v1154_v54, %v2982_v43  ;;  %v1533_v12 = vadd.f32 1.0, %v2207_v6 }
  0xf1   : > { %v1594_v1 = vmul.f32 %v1530_v31, %v1082_v13  ;;  %v1221_v29 = vmul.f32 %v1157_v15, %v2986_v50  ;;  %v796_v33 = vpop.f32.mrf.mxu2  ;;  %2210 = vtanh.f32 %v1409_v55  ;;  %v1089_v31 = vmul.f32 0.5, %v2969_v16 }
  0xf2   : > { %v1282_v9 = vmul.f32 %v1218_v61, %v2982_v43  ;;  %v797_v39 = vadd.f32 %v796_v33, %v2851_v0  ;;  %v845_v62 = vpop.f32.mrf.mxu3  ;;  %v700_v2 = vpop.f32.mrf.mxu0  ;;  %v1597_v35 = vmul.f32 %v1533_v12, %v1085_v44  ;;  %v1090_v15 = vmul.f32 0.5, %v2982_v43 }
  0xf3   : > { %v1647_v53 = vpack.c.bf16 %v1594_v1, %v1593_v52  ;;  %v1285_v7 = vmul.f32 %v1221_v29, %v2986_v50  ;;  %v701_v3 = vadd.f32 %v700_v2, %v2842_v59  ;;  %v749_v5 = vpop.f32.mrf.mxu1  ;;  %v1093_v44 = vmul.f32 0.5, %v2986_v50 }
  0xf4   : > { %v1346_v8 = vadd.f32 %v1282_v9, %v2982_v43  ;;  %v3003_v11 = vadd.f32 %v845_v62, %v797_v39 }
  0xf5   : > { %1679 = vst [vmem:[%s2899_s22 + $0x50] sm:$0xff] %v1647_v53  ;;  %v1349_v49 = vadd.f32 %v1285_v7, %v2986_v50  ;;  %v3007_v17 = vadd.f32 %v749_v5, %v701_v3 }
  0xf6   : > { %v2209_v18 = vpop.eup %2208  ;;  %v1410_v19 = vmul.f32 0.7978846, %v1346_v8  ;;  %v1158_v63 = vmul.f32 0.044715, %v3003_v11 }
  0xf7   : > { %v1534_v21 = vadd.f32 1.0, %v2209_v18  ;;  %v1161_v22 = vmul.f32 0.044715, %v3007_v17  ;;  %v1413_v23 = vmul.f32 0.7978846, %v1349_v49  ;;  %v2211_v36 = vpop.eup %2210 }
  0xf8   : > { %2212 = vtanh.f32 %v1410_v19  ;;  %v1222_v24 = vmul.f32 %v1158_v63, %v3003_v11  ;;  %v1537_v46 = vadd.f32 1.0, %v2211_v36 }
  0xf9   : > { %v1598_v25 = vmul.f32 %v1534_v21, %v1086_v20  ;;  %v1225_v60 = vmul.f32 %v1161_v22, %v3007_v17  ;;  %v798_v28 = vpop.f32.mrf.mxu2  ;;  %2214 = vtanh.f32 %v1413_v23  ;;  %v1094_v20 = vmul.f32 0.5, %v3003_v11 }
  0xfa   : > { %v1286_v30 = vmul.f32 %v1222_v24, %v3003_v11  ;;  %v799_v42 = vadd.f32 %v798_v28, %v2851_v0  ;;  %v847_v4 = vpop.f32.mrf.mxu3  ;;  %v703_v10 = vpop.f32.mrf.mxu0  ;;  %v1601_v29 = vmul.f32 %v1537_v46, %v1089_v31  ;;  %v1097_v31 = vmul.f32 0.5, %v3007_v17 }
  0xfb   : > { %v1649_v34 = vpack.c.bf16 %v1598_v25, %v1597_v35  ;;  %v1289_v37 = vmul.f32 %v1225_v60, %v3007_v17  ;;  %v704_v38 = vadd.f32 %v703_v10, %v2842_v59  ;;  %v752_v40 = vpop.f32.mrf.mxu1 }
  0xfc   : > { %v1350_v41 = vadd.f32 %v1286_v30, %v3003_v11  ;;  %v3020_v45 = vadd.f32 %v847_v4, %v799_v42 }
  0xfd   : > { %1681 = vst [vmem:[%s2899_s22 + $0x60] sm:$0xff] %v1649_v34  ;;  %v1353_v51 = vadd.f32 %v1289_v37, %v3007_v17  ;;  %v3024_v14 = vadd.f32 %v752_v40, %v704_v38  ;;  %898 = vmatmul.bf16.gmra.mxu0 %v2780_v26 }
  0xfe   : > { %v2213_v54 = vpop.eup %2212  ;;  %v1414_v32 = vmul.f32 0.7978846, %v1350_v41  ;;  %v1162_v13 = vmul.f32 0.044715, %v3020_v45  ;;  %947 = vmatmul.bf16.gmra.mxu1 %v2782_v27  ;;  %996 = vmatmul.bf16.gmra.mxu2 %v2780_v26 }
  0xff   : > { %v1538_v55 = vadd.f32 1.0, %v2213_v54  ;;  %v1165_v61 = vmul.f32 0.044715, %v3024_v14  ;;  %1045 = vmatmul.bf16.gmra.mxu3 %v2782_v27  ;;  %v1417_v52 = vmul.f32 0.7978846, %v1353_v51  ;;  %v2215_v26 = vpop.eup %2214 }
 0x100   : > { %2216 = vtanh.f32 %v1414_v32  ;;  %v1226_v1 = vmul.f32 %v1162_v13, %v3020_v45  ;;  %v1541_v8 = vadd.f32 1.0, %v2215_v26 }
 0x101   : > { %v1602_v33 = vmul.f32 %v1538_v55, %v1090_v15  ;;  %v1229_v6 = vmul.f32 %v1165_v61, %v3024_v14  ;;  %v801_v9 = vpop.f32.mrf.mxu2  ;;  %2218 = vtanh.f32 %v1417_v52  ;;  %v1098_v15 = vmul.f32 0.5, %v3020_v45 }
 0x102   : > { %v1290_v16 = vmul.f32 %v1226_v1, %v3020_v45  ;;  %v802_v43 = vadd.f32 %v801_v9, %v2851_v0  ;;  %v850_v39 = vpop.f32.mrf.mxu3  ;;  %v705_v62 = vpop.f32.mrf.mxu0  ;;  %v1605_v35 = vmul.f32 %v1541_v8, %v1093_v44 }
 0x103   : > { %v1651_v2 = vpack.c.bf16 %v1602_v33, %v1601_v29  ;;  %v1293_v27 = vmul.f32 %v1229_v6, %v3024_v14  ;;  %v706_v53 = vadd.f32 %v705_v62, %v2842_v59  ;;  %v754_v7 = vpop.f32.mrf.mxu1 }
 0x104   : > { %v1354_v3 = vadd.f32 %v1290_v16, %v3020_v45  ;;  %v3041_v5 = vadd.f32 %v850_v39, %v802_v43 }
 0x105   : > { %1683 = vst [vmem:[%s2899_s22 + $0x70] sm:$0xff] %v1651_v2  ;;  %v1357_v12 = vadd.f32 %v1293_v27, %v3024_v14  ;;  %v3045_v49 = vadd.f32 %v754_v7, %v706_v53 }
 0x106   : > { %v2217_v18 = vpop.eup %2216  ;;  %v1418_v19 = vmul.f32 0.7978846, %v1354_v3  ;;  %v1166_v63 = vmul.f32 0.044715, %v3041_v5 }
 0x107   : > { %v1542_v21 = vadd.f32 1.0, %v2217_v18  ;;  %v1169_v22 = vmul.f32 0.044715, %v3045_v49  ;;  %v1421_v23 = vmul.f32 0.7978846, %v1357_v12  ;;  %v2219_v36 = vpop.eup %2218 }
 0x108   : > { %2220 = vtanh.f32 %v1418_v19  ;;  %v1230_v24 = vmul.f32 %v1166_v63, %v3041_v5  ;;  %v1545_v41 = vadd.f32 1.0, %v2219_v36  ;;  %v1101_v19 = vmul.f32 0.5, %v3024_v14 }
 0x109   : > { %v1606_v25 = vmul.f32 %v1542_v21, %v1094_v20  ;;  %v1233_v60 = vmul.f32 %v1169_v22, %v3045_v49  ;;  %v803_v28 = vpop.f32.mrf.mxu2  ;;  %2222 = vtanh.f32 %v1421_v23  ;;  %v1102_v63 = vmul.f32 0.5, %v3041_v5 }
 0x10a   : > { %v1294_v30 = vmul.f32 %v1230_v24, %v3041_v5  ;;  %v804_v50 = vadd.f32 %v803_v28, %v2851_v0  ;;  %v852_v42 = vpop.f32.mrf.mxu3  ;;  %v708_v11 = vpop.f32.mrf.mxu0  ;;  %v1609_v29 = vmul.f32 %v1545_v41, %v1097_v31 }
 0x10b   : > { %v1653_v4 = vpack.c.bf16 %v1606_v25, %v1605_v35  ;;  %v1297_v10 = vmul.f32 %v1233_v60, %v3045_v49  ;;  %v709_v34 = vadd.f32 %v708_v11, %v2842_v59  ;;  %v757_v37 = vpop.f32.mrf.mxu1 }
 0x10c   : > { %v1358_v38 = vadd.f32 %v1294_v30, %v3041_v5  ;;  %v3058_v40 = vadd.f32 %v852_v42, %v804_v50 }
 0x10d   : > { %1685 = vst [vmem:[%s2899_s22 + $0x80] sm:$0xff] %v1653_v4  ;;  %v1361_v46 = vadd.f32 %v1297_v10, %v3045_v49  ;;  %v3062_v51 = vadd.f32 %v757_v37, %v709_v34  ;;  %903 = vmatmul.bf16.gmra.mxu0 %v2816_v47 }
 0x10e   : > { %v2221_v54 = vpop.eup %2220  ;;  %v1422_v32 = vmul.f32 0.7978846, %v1358_v38  ;;  %v1170_v13 = vmul.f32 0.044715, %v3058_v40  ;;  %952 = vmatmul.bf16.gmra.mxu1 %v2818_v48  ;;  %1001 = vmatmul.bf16.gmra.mxu2 %v2816_v47 }
 0x10f   : > { %v1546_v55 = vadd.f32 1.0, %v2221_v54  ;;  %v1173_v61 = vmul.f32 0.044715, %v3062_v51  ;;  %1050 = vmatmul.bf16.gmra.mxu3 %v2818_v48  ;;  %v1425_v52 = vmul.f32 0.7978846, %v1361_v46  ;;  %v2223_v47 = vpop.eup %2222 }
 0x110   : > { %2224 = vtanh.f32 %v1422_v32  ;;  %v1234_v1 = vmul.f32 %v1170_v13, %v3058_v40  ;;  %v1549_v53 = vadd.f32 1.0, %v2223_v47  ;;  %v1105_v32 = vmul.f32 0.5, %v3045_v49 }
 0x111   : > { %v1610_v33 = vmul.f32 %v1546_v55, %v1098_v15  ;;  %v1237_v6 = vmul.f32 %v1173_v61, %v3062_v51  ;;  %v806_v9 = vpop.f32.mrf.mxu2  ;;  %2226 = vtanh.f32 %v1425_v52  ;;  %v1106_v13 = vmul.f32 0.5, %v3058_v40 }
 0x112   : > { %v1298_v17 = vmul.f32 %v1234_v1, %v3058_v40  ;;  %v807_v45 = vadd.f32 %v806_v9, %v2851_v0  ;;  %v855_v26 = vpop.f32.mrf.mxu3  ;;  %v710_v16 = vpop.f32.mrf.mxu0  ;;  %v1613_v23 = vmul.f32 %v1549_v53, %v1101_v19 }
 0x113   : > { %v1655_v43 = vpack.c.bf16 %v1610_v33, %v1609_v29  ;;  %v1301_v48 = vmul.f32 %v1237_v6, %v3062_v51  ;;  %v711_v39 = vadd.f32 %v710_v16, %v2842_v59  ;;  %v759_v62 = vpop.f32.mrf.mxu1 }
 0x114   : > { %v1362_v2 = vadd.f32 %v1298_v17, %v3058_v40  ;;  %v3079_v27 = vadd.f32 %v855_v26, %v807_v45 }
 0x115   : > { %1687 = vst [vmem:[%s2899_s22 + $0x90] sm:$0xff] %v1655_v43  ;;  %v1365_v7 = vadd.f32 %v1301_v48, %v3062_v51  ;;  %v3083_v3 = vadd.f32 %v759_v62, %v711_v39 }
 0x116   : > { %v2225_v8 = vpop.eup %2224  ;;  %v1426_v12 = vmul.f32 0.7978846, %v1362_v2  ;;  %v1174_v18 = vmul.f32 0.044715, %v3079_v27 }
 0x117   : > { %v1550_v44 = vadd.f32 1.0, %v2225_v8  ;;  %v1177_v20 = vmul.f32 0.044715, %v3083_v3  ;;  %v1429_v21 = vmul.f32 0.7978846, %v1365_v7  ;;  %v2227_v60 = vpop.eup %2226  ;;  %v3125_v7 = vperm.slane %v2839_v58, 2 }
 0x118   : > { %2228 = vtanh.f32 %v1426_v12  ;;  %v1238_v22 = vmul.f32 %v1174_v18, %v3079_v27  ;;  %v1553_v34 = vadd.f32 1.0, %v2227_v60  ;;  %v1110_v8 = vmul.f32 0.5, %v3079_v27 }
 0x119   : > { %v1614_v24 = vmul.f32 %v1550_v44, %v1102_v63  ;;  %v1241_v35 = vmul.f32 %v1177_v20, %v3083_v3  ;;  %v808_v25 = vpop.f32.mrf.mxu2  ;;  %2230 = vtanh.f32 %v1429_v21 }
 0x11a   : > { %v1302_v28 = vmul.f32 %v1238_v22, %v3079_v27  ;;  %v809_v14 = vadd.f32 %v808_v25, %v2851_v0  ;;  %v857_v36 = vpop.f32.mrf.mxu3  ;;  %v713_v5 = vpop.f32.mrf.mxu0  ;;  %v1617_v52 = vmul.f32 %v1553_v34, %v1105_v32  ;;  %v3145_v34 = vperm.slane %v2839_v58, 3 }
 0x11b   : > { %v1657_v30 = vpack.c.bf16 %v1614_v24, %v1613_v23  ;;  %v1305_v50 = vmul.f32 %v1241_v35, %v3083_v3  ;;  %v714_v42 = vadd.f32 %v713_v5, %v2842_v59  ;;  %v762_v11 = vpop.f32.mrf.mxu1 }
 0x11c   : > { %v1366_v4 = vadd.f32 %v1302_v28, %v3079_v27  ;;  %v3096_v10 = vadd.f32 %v857_v36, %v809_v14 }
 0x11d   : > { %1689 = vst [vmem:[%s2899_s22 + $0xa0] sm:$0xff] %v1657_v30  ;;  %v1369_v37 = vadd.f32 %v1305_v50, %v3083_v3  ;;  %v3100_v38 = vadd.f32 %v762_v11, %v714_v42  ;;  %908 = vmatmul.bf16.gmra.mxu0 %v2828_v56 }
 0x11e   : > { %v2229_v41 = vpop.eup %2228  ;;  %v1430_v46 = vmul.f32 0.7978846, %v1366_v4  ;;  %v1178_v54 = vmul.f32 0.044715, %v3096_v10  ;;  %957 = vmatmul.bf16.gmra.mxu1 %v2830_v57  ;;  %1006 = vmatmul.bf16.gmra.mxu2 %v2828_v56 }
 0x11f   : > { %v1554_v31 = vadd.f32 1.0, %v2229_v41  ;;  %v1181_v15 = vmul.f32 0.044715, %v3100_v38  ;;  %1055 = vmatmul.bf16.gmra.mxu3 %v2830_v57  ;;  %v1433_v55 = vmul.f32 0.7978846, %v1369_v37  ;;  %v2231_v56 = vpop.eup %2230  ;;  %v1113_v37 = vmul.f32 0.5, %v3083_v3 }
 0x120   : > { %2232 = vtanh.f32 %v1430_v46  ;;  %v1242_v61 = vmul.f32 %v1178_v54, %v3096_v10  ;;  %v1557_v43 = vadd.f32 1.0, %v2231_v56  ;;  %v1114_v41 = vmul.f32 0.5, %v3096_v10 }
 0x121   : > { %v1618_v1 = vmul.f32 %v1554_v31, %v1106_v13  ;;  %v1245_v29 = vmul.f32 %v1181_v15, %v3100_v38  ;;  %v811_v33 = vpop.f32.mrf.mxu2  ;;  %2234 = vtanh.f32 %v1433_v55 }
 0x122   : > { %v1306_v49 = vmul.f32 %v1242_v61, %v3096_v10  ;;  %v812_v40 = vadd.f32 %v811_v33, %v2851_v0  ;;  %v860_v6 = vpop.f32.mrf.mxu3  ;;  %v715_v9 = vpop.f32.mrf.mxu0 }
 0x123   : > { %v1659_v47 = vpack.c.bf16 %v1618_v1, %v1617_v52  ;;  %v1309_v57 = vmul.f32 %v1245_v29, %v3100_v38  ;;  %v716_v17 = vadd.f32 %v715_v9, %v2842_v59  ;;  %v764_v45 = vpop.f32.mrf.mxu1  ;;  %v1109_v59 = vmul.f32 0.5, %v3062_v51 }
 0x124   : > { %v1370_v26 = vadd.f32 %v1306_v49, %v3096_v10  ;;  %v3117_v16 = vadd.f32 %v860_v6, %v812_v40 }
 0x125   : > { %1691 = vst [vmem:[%s2899_s22 + $0xb0] sm:$0xff] %v1659_v47  ;;  %v1373_v48 = vadd.f32 %v1309_v57, %v3100_v38  ;;  %v3121_v39 = vadd.f32 %v764_v45, %v716_v17  ;;  %v1621_v44 = vmul.f32 %v1557_v43, %v1109_v59  ;;  %v1117_v43 = vmul.f32 0.5, %v3100_v38 }
 0x126   : > { %v2233_v62 = vpop.eup %2232  ;;  %v1434_v2 = vmul.f32 0.7978846, %v1370_v26  ;;  %v1182_v53 = vmul.f32 0.044715, %v3117_v16 }
 0x127   : > { %v1558_v12 = vadd.f32 1.0, %v2233_v62  ;;  %v1185_v18 = vmul.f32 0.044715, %v3121_v39  ;;  %v1437_v19 = vmul.f32 0.7978846, %v1373_v48  ;;  %v2235_v23 = vpop.eup %2234  ;;  %v1118_v48 = vmul.f32 0.5, %v3117_v16 }
 0x128   : > { %2236 = vtanh.f32 %v1434_v2  ;;  %v1246_v63 = vmul.f32 %v1182_v53, %v3117_v16  ;;  %v1561_v30 = vadd.f32 1.0, %v2235_v23 }
 0x129   : > { %v1622_v20 = vmul.f32 %v1558_v12, %v1110_v8  ;;  %v1249_v21 = vmul.f32 %v1185_v18, %v3121_v39  ;;  %v813_v22 = vpop.f32.mrf.mxu2  ;;  %2238 = vtanh.f32 %v1437_v19 }
 0x12a   : > { %v1310_v24 = vmul.f32 %v1246_v63, %v3117_v16  ;;  %v814_v51 = vadd.f32 %v813_v22, %v2851_v0  ;;  %v862_v35 = vpop.f32.mrf.mxu3  ;;  %v874_v27 = vpop.f32.mrf.mxu0  ;;  %v1625_v31 = vmul.f32 %v1561_v30, %v1113_v37  ;;  %v1121_v30 = vmul.f32 0.5, %v3121_v39 }
 0x12b   : > { %v1661_v25 = vpack.c.bf16 %v1622_v20, %v1621_v44  ;;  %v1313_v60 = vmul.f32 %v1249_v21, %v3121_v39  ;;  %v875_v28 = vadd.f32 %v874_v27, %v3125_v7  ;;  %v923_v14 = vpop.f32.mrf.mxu1 }
 0x12c   : > { %v1374_v36 = vadd.f32 %v1310_v24, %v3117_v16  ;;  %v3137_v5 = vadd.f32 %v862_v35, %v814_v51 }
 0x12d   : > { %1693 = vst [vmem:[%s2899_s22 + $0xc0] sm:$0xff] %v1661_v25  ;;  %v1377_v50 = vadd.f32 %v1313_v60, %v3121_v39  ;;  %v3141_v42 = vadd.f32 %v923_v14, %v875_v28 }
 0x12e   : > { %v2237_v0 = vpop.eup %2236  ;;  %v1438_v11 = vmul.f32 0.7978846, %v1374_v36  ;;  %v1186_v4 = vmul.f32 0.044715, %v3137_v5 }
 0x12f   : > { %v1562_v46 = vadd.f32 1.0, %v2237_v0  ;;  %v1127_v54 = vmul.f32 0.044715, %v3141_v42  ;;  %v1441_v32 = vmul.f32 0.7978846, %v1377_v50  ;;  %v2239_v52 = vpop.eup %2238  ;;  %v1122_v50 = vmul.f32 0.5, %v3137_v5 }
 0x130   : > { %2240 = vtanh.f32 %v1438_v11  ;;  %v1250_v13 = vmul.f32 %v1186_v4, %v3137_v5  ;;  %v1565_v9 = vadd.f32 1.0, %v2239_v52 }
 0x131   : > { %v1626_v15 = vmul.f32 %v1562_v46, %v1114_v41  ;;  %v1191_v55 = vmul.f32 %v1127_v54, %v3141_v42  ;;  %v972_v61 = vpop.f32.mrf.mxu2  ;;  %2242 = vtanh.f32 %v1441_v32 }
 0x132   : > { %v1314_v58 = vmul.f32 %v1250_v13, %v3137_v5  ;;  %v973_v3 = vadd.f32 %v972_v61, %v3145_v34  ;;  %v1021_v1 = vpop.f32.mrf.mxu3  ;;  %v876_v10 = vpop.f32.mrf.mxu0  ;;  %v1629_v8 = vmul.f32 %v1565_v9, %v1117_v43  ;;  %v1063_v9 = vmul.f32 0.5, %v3141_v42 }
 0x133   : > { %v1663_v29 = vpack.c.bf16 %v1626_v15, %v1625_v31  ;;  %v1255_v33 = vmul.f32 %v1191_v55, %v3141_v42  ;;  %v877_v56 = vadd.f32 %v876_v10, %v3125_v7  ;;  %v925_v49 = vpop.f32.mrf.mxu1 }
 0x134   : > { %v1378_v40 = vadd.f32 %v1314_v58, %v3137_v5  ;;  %v3157_v6 = vadd.f32 %v1021_v1, %v973_v3 }
 0x135   : > { %1695 = vst [vmem:[%s2899_s22 + $0xd0] sm:$0xff] %v1663_v29  ;;  %v1319_v47 = vadd.f32 %v1255_v33, %v3141_v42  ;;  %v3161_v57 = vadd.f32 %v925_v49, %v877_v56 }
 0x136   : > { %v2241_v17 = vpop.eup %2240  ;;  %v1442_v45 = vmul.f32 0.7978846, %v1378_v40  ;;  %v1128_v26 = vmul.f32 0.044715, %v3157_v6 }
 0x137   : > { %v1566_v62 = vadd.f32 1.0, %v2241_v17  ;;  %v1131_v2 = vmul.f32 0.044715, %v3161_v57  ;;  %v1383_v53 = vmul.f32 0.7978846, %v1319_v47  ;;  %v2243_v63 = vpop.eup %2242  ;;  %v1064_v47 = vmul.f32 0.5, %v3157_v6 }
 0x138   : > { %2244 = vtanh.f32 %v1442_v45  ;;  %v1192_v59 = vmul.f32 %v1128_v26, %v3157_v6  ;;  %v1569_v27 = vadd.f32 1.0, %v2243_v63 }
 0x139   : > { %v1630_v12 = vmul.f32 %v1566_v62, %v1118_v48  ;;  %v1195_v18 = vmul.f32 %v1131_v2, %v3161_v57  ;;  %v974_v19 = vpop.f32.mrf.mxu2  ;;  %2246 = vtanh.f32 %v1383_v53 }
 0x13a   : > { %v1256_v44 = vmul.f32 %v1192_v59, %v3157_v6  ;;  %v975_v38 = vadd.f32 %v974_v19, %v3145_v34  ;;  %v1023_v20 = vpop.f32.mrf.mxu3  ;;  %v879_v16 = vpop.f32.mrf.mxu0  ;;  %v1633_v41 = vmul.f32 %v1569_v27, %v1121_v30  ;;  %v1067_v27 = vmul.f32 0.5, %v3161_v57 }
 0x13b   : > { %v1665_v21 = vpack.c.bf16 %v1630_v12, %v1629_v8  ;;  %v1259_v22 = vmul.f32 %v1195_v18, %v3161_v57  ;;  %v880_v23 = vadd.f32 %v879_v16, %v3125_v7  ;;  %v928_v24 = vpop.f32.mrf.mxu1 }
 0x13c   : > { %v1320_v51 = vadd.f32 %v1256_v44, %v3157_v6  ;;  %v3174_v35 = vadd.f32 %v1023_v20, %v975_v38 }
 0x13d   : > { %1697 = vst [vmem:[%s2899_s22 + $0xe0] sm:$0xff] %v1665_v21  ;;  %v1323_v25 = vadd.f32 %v1259_v22, %v3161_v57  ;;  %v3178_v60 = vadd.f32 %v928_v24, %v880_v23 }
 0x13e   : > { %v2245_v28 = vpop.eup %2244  ;;  %v1384_v14 = vmul.f32 0.7978846, %v1320_v51  ;;  %v1132_v36 = vmul.f32 0.044715, %v3174_v35 }
 0x13f   : > { %v1570_v0 = vadd.f32 1.0, %v2245_v28  ;;  %v1135_v11 = vmul.f32 0.044715, %v3178_v60  ;;  %v1387_v4 = vmul.f32 0.7978846, %v1323_v25  ;;  %v2247_v13 = vpop.eup %2246  ;;  %v1068_v25 = vmul.f32 0.5, %v3174_v35 }
 0x140   : > { %2248 = vtanh.f32 %v1384_v14  ;;  %v1196_v37 = vmul.f32 %v1132_v36, %v3174_v35  ;;  %v1511_v10 = vadd.f32 1.0, %v2247_v13 }
 0x141   : > { %v1634_v46 = vmul.f32 %v1570_v0, %v1122_v50  ;;  %v1199_v54 = vmul.f32 %v1135_v11, %v3178_v60  ;;  %v977_v32 = vpop.f32.mrf.mxu2  ;;  %2250 = vtanh.f32 %v1387_v4 }
 0x142   : > { %v1260_v31 = vmul.f32 %v1196_v37, %v3174_v35  ;;  %v978_v39 = vadd.f32 %v977_v32, %v3145_v34  ;;  %v1026_v15 = vpop.f32.mrf.mxu3  ;;  %v881_v5 = vpop.f32.mrf.mxu0  ;;  %v1575_v48 = vmul.f32 %v1511_v10, %v1063_v9  ;;  %v1071_v10 = vmul.f32 0.5, %v3178_v60 }
 0x143   : > { %v1667_v55 = vpack.c.bf16 %v1634_v46, %v1633_v41  ;;  %v1263_v61 = vmul.f32 %v1199_v54, %v3178_v60  ;;  %v882_v52 = vadd.f32 %v881_v5, %v3125_v7  ;;  %v930_v58 = vpop.f32.mrf.mxu1 }
 0x144   : > { %v1324_v3 = vadd.f32 %v1260_v31, %v3174_v35  ;;  %v3191_v1 = vadd.f32 %v1026_v15, %v978_v39 }
 0x145   : > { %1699 = vst [vmem:[%s2899_s22 + $0xf0] sm:$0xff] %v1667_v55  ;;  %v1327_v29 = vadd.f32 %v1263_v61, %v3178_v60  ;;  %v3195_v33 = vadd.f32 %v930_v58, %v882_v52 }
 0x146   : > { %v2249_v56 = vpop.eup %2248  ;;  %v1388_v49 = vmul.f32 0.7978846, %v1324_v3  ;;  %v1136_v40 = vmul.f32 0.044715, %v3191_v1 }
 0x147   : > { %v1512_v17 = vadd.f32 1.0, %v2249_v56  ;;  %v1139_v45 = vmul.f32 0.044715, %v3195_v33  ;;  %v1391_v26 = vmul.f32 0.7978846, %v1327_v29  ;;  %v2251_v59 = vpop.eup %2250  ;;  %v1072_v29 = vmul.f32 0.5, %v3191_v1 }
 0x148   : > { %2252 = vtanh.f32 %v1388_v49  ;;  %v1200_v43 = vmul.f32 %v1136_v40, %v3191_v1  ;;  %v1515_v16 = vadd.f32 1.0, %v2251_v59 }
 0x149   : > { %v1576_v62 = vmul.f32 %v1512_v17, %v1064_v47  ;;  %v1203_v2 = vmul.f32 %v1139_v45, %v3195_v33  ;;  %v979_v53 = vpop.f32.mrf.mxu2  ;;  %2254 = vtanh.f32 %v1391_v26 }
 0x14a   : > { %v1264_v8 = vmul.f32 %v1200_v43, %v3191_v1  ;;  %v980_v42 = vadd.f32 %v979_v53, %v3145_v34  ;;  %v1028_v12 = vpop.f32.mrf.mxu3  ;;  %v884_v6 = vpop.f32.mrf.mxu0  ;;  %v1579_v50 = vmul.f32 %v1515_v16, %v1067_v27  ;;  %v1075_v16 = vmul.f32 0.5, %v3195_v33 }
 0x14b   : > { %v1638_v18 = vpack.c.bf16 %v1576_v62, %v1575_v48  ;;  %v1267_v19 = vmul.f32 %v1203_v2, %v3195_v33  ;;  %v885_v63 = vadd.f32 %v884_v6, %v3125_v7  ;;  %v933_v44 = vpop.f32.mrf.mxu1 }
 0x14c   : > { %v1328_v38 = vadd.f32 %v1264_v8, %v3191_v1  ;;  %v3208_v20 = vadd.f32 %v1028_v12, %v980_v42 }
 0x14d   : > { %1670 = vst [vmem:[%s2899_s22 + $0x8] sm:$0xff] %v1638_v18  ;;  %v1331_v21 = vadd.f32 %v1267_v19, %v3195_v33  ;;  %v3212_v22 = vadd.f32 %v933_v44, %v885_v63 }
 0x14e   : > { %v2253_v23 = vpop.eup %2252  ;;  %v1392_v24 = vmul.f32 0.7978846, %v1328_v38  ;;  %v1140_v51 = vmul.f32 0.044715, %v3208_v20 }
 0x14f   : > { %v1516_v28 = vadd.f32 1.0, %v2253_v23  ;;  %v1143_v14 = vmul.f32 0.044715, %v3212_v22  ;;  %v1395_v36 = vmul.f32 0.7978846, %v1331_v21  ;;  %v2255_v37 = vpop.eup %2254  ;;  %v1076_v21 = vmul.f32 0.5, %v3208_v20 }
 0x150   : > { %2256 = vtanh.f32 %v1392_v24  ;;  %v1204_v30 = vmul.f32 %v1140_v51, %v3208_v20  ;;  %v1519_v5 = vadd.f32 1.0, %v2255_v37 }
 0x151   : > { %v1580_v0 = vmul.f32 %v1516_v28, %v1068_v25  ;;  %v1207_v11 = vmul.f32 %v1143_v14, %v3212_v22  ;;  %v982_v4 = vpop.f32.mrf.mxu2  ;;  %2258 = vtanh.f32 %v1395_v36 }
 0x152   : > { %v1268_v41 = vmul.f32 %v1204_v30, %v3208_v20  ;;  %v983_v57 = vadd.f32 %v982_v4, %v3145_v34  ;;  %v1031_v46 = vpop.f32.mrf.mxu3  ;;  %v886_v35 = vpop.f32.mrf.mxu0  ;;  %v1583_v47 = vmul.f32 %v1519_v5, %v1071_v10  ;;  %v1079_v5 = vmul.f32 0.5, %v3212_v22 }
 0x153   : > { %v1640_v54 = vpack.c.bf16 %v1580_v0, %v1579_v50  ;;  %v1271_v32 = vmul.f32 %v1207_v11, %v3212_v22  ;;  %v887_v13 = vadd.f32 %v886_v35, %v3125_v7  ;;  %v935_v31 = vpop.f32.mrf.mxu1 }
 0x154   : > { %v1332_v39 = vadd.f32 %v1268_v41, %v3208_v20  ;;  %v3225_v15 = vadd.f32 %v1031_v46, %v983_v57 }
 0x155   : > { %1672 = vst [vmem:[%s2899_s22 + $0x18] sm:$0xff] %v1640_v54  ;;  %v1335_v55 = vadd.f32 %v1271_v32, %v3212_v22  ;;  %v3229_v61 = vadd.f32 %v935_v31, %v887_v13 }
 0x156   : > { %v2257_v52 = vpop.eup %2256  ;;  %v1396_v58 = vmul.f32 0.7978846, %v1332_v39  ;;  %v1144_v3 = vmul.f32 0.044715, %v3225_v15 }
 0x157   : > { %v1520_v56 = vadd.f32 1.0, %v2257_v52  ;;  %v1147_v49 = vmul.f32 0.044715, %v3229_v61  ;;  %v1399_v40 = vmul.f32 0.7978846, %v1335_v55  ;;  %v2259_v43 = vpop.eup %2258  ;;  %v1080_v55 = vmul.f32 0.5, %v3225_v15 }
 0x158   : > { %2260 = vtanh.f32 %v1396_v58  ;;  %v1208_v9 = vmul.f32 %v1144_v3, %v3225_v15  ;;  %v1523_v6 = vadd.f32 1.0, %v2259_v43 }
 0x159   : > { %v1584_v17 = vmul.f32 %v1520_v56, %v1072_v29  ;;  %v1211_v45 = vmul.f32 %v1147_v49, %v3229_v61  ;;  %v984_v26 = vpop.f32.mrf.mxu2  ;;  %2262 = vtanh.f32 %v1399_v40 }
 0x15a   : > { %v1272_v48 = vmul.f32 %v1208_v9, %v3225_v15  ;;  %v985_v60 = vadd.f32 %v984_v26, %v3145_v34  ;;  %v1033_v62 = vpop.f32.mrf.mxu3  ;;  %v889_v1 = vpop.f32.mrf.mxu0  ;;  %v1587_v25 = vmul.f32 %v1523_v6, %v1075_v16  ;;  %v1083_v6 = vmul.f32 0.5, %v3229_v61 }
 0x15b   : > { %v1642_v2 = vpack.c.bf16 %v1584_v17, %v1583_v47  ;;  %v1275_v53 = vmul.f32 %v1211_v45, %v3229_v61  ;;  %v890_v59 = vadd.f32 %v889_v1, %v3125_v7  ;;  %v938_v8 = vpop.f32.mrf.mxu1 }
 0x15c   : > { %v1336_v42 = vadd.f32 %v1272_v48, %v3225_v15  ;;  %v3242_v12 = vadd.f32 %v1033_v62, %v985_v60 }
 0x15d   : > { %1674 = vst [vmem:[%s2899_s22 + $0x28] sm:$0xff] %v1642_v2  ;;  %v1339_v18 = vadd.f32 %v1275_v53, %v3229_v61  ;;  %v3246_v19 = vadd.f32 %v938_v8, %v890_v59 }
 0x15e   : > { %v2261_v63 = vpop.eup %2260  ;;  %v1400_v44 = vmul.f32 0.7978846, %v1336_v42  ;;  %v1148_v38 = vmul.f32 0.044715, %v3242_v12 }
 0x15f   : > { %v1524_v23 = vadd.f32 1.0, %v2261_v63  ;;  %v1151_v24 = vmul.f32 0.044715, %v3246_v19  ;;  %v1403_v51 = vmul.f32 0.7978846, %v1339_v18  ;;  %v2263_v30 = vpop.eup %2262  ;;  %v1084_v18 = vmul.f32 0.5, %v3242_v12 }
 0x160   : > { %2264 = vtanh.f32 %v1400_v44  ;;  %v1212_v27 = vmul.f32 %v1148_v38, %v3242_v12  ;;  %v1527_v35 = vadd.f32 1.0, %v2263_v30 }
 0x161   : > { %v1588_v28 = vmul.f32 %v1524_v23, %v1076_v21  ;;  %v1215_v14 = vmul.f32 %v1151_v24, %v3246_v19  ;;  %v987_v36 = vpop.f32.mrf.mxu2  ;;  %2266 = vtanh.f32 %v1403_v51 }
 0x162   : > { %v1276_v50 = vmul.f32 %v1212_v27, %v3242_v12  ;;  %v988_v33 = vadd.f32 %v987_v36, %v3145_v34  ;;  %v1036_v0 = vpop.f32.mrf.mxu3  ;;  %v891_v20 = vpop.f32.mrf.mxu0  ;;  %v1591_v29 = vmul.f32 %v1527_v35, %v1079_v5  ;;  %v1087_v35 = vmul.f32 0.5, %v3246_v19 }
 0x163   : > { %v1644_v11 = vpack.c.bf16 %v1588_v28, %v1587_v25  ;;  %v1279_v4 = vmul.f32 %v1215_v14, %v3246_v19  ;;  %v892_v37 = vadd.f32 %v891_v20, %v3125_v7  ;;  %v940_v41 = vpop.f32.mrf.mxu1 }
 0x164   : > { %v1340_v57 = vadd.f32 %v1276_v50, %v3242_v12  ;;  %v3259_v46 = vadd.f32 %v1036_v0, %v988_v33 }
 0x165   : > { %1676 = vst [vmem:[%s2899_s22 + $0x38] sm:$0xff] %v1644_v11  ;;  %v1343_v54 = vadd.f32 %v1279_v4, %v3246_v19  ;;  %v3263_v32 = vadd.f32 %v940_v41, %v892_v37 }
 0x166   : > { %v2265_v13 = vpop.eup %2264  ;;  %v1404_v31 = vmul.f32 0.7978846, %v1340_v57  ;;  %v1152_v39 = vmul.f32 0.044715, %v3259_v46 }
 0x167   : > { %v1528_v52 = vadd.f32 1.0, %v2265_v13  ;;  %v1155_v58 = vmul.f32 0.044715, %v3263_v32  ;;  %v1407_v3 = vmul.f32 0.7978846, %v1343_v54  ;;  %v2267_v9 = vpop.eup %2266  ;;  %v1088_v54 = vmul.f32 0.5, %v3259_v46 }
 0x168   : > { %2268 = vtanh.f32 %v1404_v31  ;;  %v1216_v10 = vmul.f32 %v1152_v39, %v3259_v46  ;;  %v1531_v1 = vadd.f32 1.0, %v2267_v9 }
 0x169   : > { %v1592_v56 = vmul.f32 %v1528_v52, %v1080_v55  ;;  %v1219_v49 = vmul.f32 %v1155_v58, %v3263_v32  ;;  %v989_v40 = vpop.f32.mrf.mxu2  ;;  %2270 = vtanh.f32 %v1407_v3 }
 0x16a   : > { %v1280_v47 = vmul.f32 %v1216_v10, %v3259_v46  ;;  %v990_v22 = vadd.f32 %v989_v40, %v3145_v34  ;;  %v1038_v17 = vpop.f32.mrf.mxu3  ;;  %v894_v15 = vpop.f32.mrf.mxu0  ;;  %v1595_v21 = vmul.f32 %v1531_v1, %v1083_v6  ;;  %v1091_v1 = vmul.f32 0.5, %v3263_v32 }
 0x16b   : > { %v1646_v45 = vpack.c.bf16 %v1592_v56, %v1591_v29  ;;  %v1283_v26 = vmul.f32 %v1219_v49, %v3263_v32  ;;  %v895_v43 = vadd.f32 %v894_v15, %v3125_v7  ;;  %v943_v48 = vpop.f32.mrf.mxu1 }
 0x16c   : > { %v1344_v60 = vadd.f32 %v1280_v47, %v3259_v46  ;;  %v3276_v62 = vadd.f32 %v1038_v17, %v990_v22 }
 0x16d   : > { %1678 = vst [vmem:[%s2899_s22 + $0x48] sm:$0xff] %v1646_v45  ;;  %v1347_v2 = vadd.f32 %v1283_v26, %v3263_v32  ;;  %v3280_v53 = vadd.f32 %v943_v48, %v895_v43 }
 0x16e   : > { %v2269_v59 = vpop.eup %2268  ;;  %v1408_v8 = vmul.f32 0.7978846, %v1344_v60  ;;  %v1156_v42 = vmul.f32 0.044715, %v3276_v62 }
 0x16f   : > { %v1532_v63 = vadd.f32 1.0, %v2269_v59  ;;  %v1159_v44 = vmul.f32 0.044715, %v3280_v53  ;;  %v1411_v38 = vmul.f32 0.7978846, %v1347_v2  ;;  %v2271_v27 = vpop.eup %2270  ;;  %v1092_v2 = vmul.f32 0.5, %v3276_v62 }
 0x170   : > { %2272 = vtanh.f32 %v1408_v8  ;;  %v1220_v16 = vmul.f32 %v1156_v42, %v3276_v62  ;;  %v1535_v20 = vadd.f32 1.0, %v2271_v27 }
 0x171   : > { %v1596_v23 = vmul.f32 %v1532_v63, %v1084_v18  ;;  %v1223_v24 = vmul.f32 %v1159_v44, %v3280_v53  ;;  %v992_v51 = vpop.f32.mrf.mxu2  ;;  %2274 = vtanh.f32 %v1411_v38 }
 0x172   : > { %v1284_v25 = vmul.f32 %v1220_v16, %v3276_v62  ;;  %v993_v61 = vadd.f32 %v992_v51, %v3145_v34  ;;  %v1041_v28 = vpop.f32.mrf.mxu3  ;;  %v896_v12 = vpop.f32.mrf.mxu0  ;;  %v1599_v55 = vmul.f32 %v1535_v20, %v1087_v35  ;;  %v1095_v20 = vmul.f32 0.5, %v3280_v53 }
 0x173   : > { %v1648_v14 = vpack.c.bf16 %v1596_v23, %v1595_v21  ;;  %v1287_v36 = vmul.f32 %v1223_v24, %v3280_v53  ;;  %v897_v30 = vadd.f32 %v896_v12, %v3125_v7  ;;  %v945_v50 = vpop.f32.mrf.mxu1 }
 0x174   : > { %v1348_v33 = vadd.f32 %v1284_v25, %v3276_v62  ;;  %v3293_v0 = vadd.f32 %v1041_v28, %v993_v61 }
 0x175   : > { %1680 = vst [vmem:[%s2899_s22 + $0x58] sm:$0xff] %v1648_v14  ;;  %v1351_v11 = vadd.f32 %v1287_v36, %v3280_v53  ;;  %v3297_v4 = vadd.f32 %v945_v50, %v897_v30 }
 0x176   : > { %v2273_v37 = vpop.eup %2272  ;;  %v1412_v41 = vmul.f32 0.7978846, %v1348_v33  ;;  %v1160_v57 = vmul.f32 0.044715, %v3293_v0 }
 0x177   : > { %v1536_v13 = vadd.f32 1.0, %v2273_v37  ;;  %v1163_v31 = vmul.f32 0.044715, %v3297_v4  ;;  %v1415_v39 = vmul.f32 0.7978846, %v1351_v11  ;;  %v2275_v10 = vpop.eup %2274  ;;  %v1096_v11 = vmul.f32 0.5, %v3293_v0 }
 0x178   : > { %2276 = vtanh.f32 %v1412_v41  ;;  %v1224_v5 = vmul.f32 %v1160_v57, %v3293_v0  ;;  %v1539_v15 = vadd.f32 1.0, %v2275_v10 }
 0x179   : > { %v1600_v52 = vmul.f32 %v1536_v13, %v1088_v54  ;;  %v1227_v58 = vmul.f32 %v1163_v31, %v3297_v4  ;;  %v994_v3 = vpop.f32.mrf.mxu2  ;;  %2278 = vtanh.f32 %v1415_v39 }
 0x17a   : > { %v1288_v29 = vmul.f32 %v1224_v5, %v3293_v0  ;;  %v995_v19 = vadd.f32 %v994_v3, %v3145_v34  ;;  %v1043_v56 = vpop.f32.mrf.mxu3  ;;  %v899_v46 = vpop.f32.mrf.mxu0  ;;  %v1603_v18 = vmul.f32 %v1539_v15, %v1091_v1  ;;  %v1099_v15 = vmul.f32 0.5, %v3297_v4 }
 0x17b   : > { %v1650_v49 = vpack.c.bf16 %v1600_v52, %v1599_v55  ;;  %v1291_v40 = vmul.f32 %v1227_v58, %v3297_v4  ;;  %v900_v9 = vadd.f32 %v899_v46, %v3125_v7  ;;  %v948_v47 = vpop.f32.mrf.mxu1 }
 0x17c   : > { %v1352_v22 = vadd.f32 %v1288_v29, %v3293_v0  ;;  %v3310_v17 = vadd.f32 %v1043_v56, %v995_v19 }
 0x17d   : > { %1682 = vst [vmem:[%s2899_s22 + $0x68] sm:$0xff] %v1650_v49  ;;  %v1355_v45 = vadd.f32 %v1291_v40, %v3297_v4  ;;  %v3314_v26 = vadd.f32 %v948_v47, %v900_v9 }
 0x17e   : > { %v2277_v43 = vpop.eup %2276  ;;  %v1416_v48 = vmul.f32 0.7978846, %v1352_v22  ;;  %v1164_v60 = vmul.f32 0.044715, %v3310_v17 }
 0x17f   : > { %v1540_v59 = vadd.f32 1.0, %v2277_v43  ;;  %v1167_v8 = vmul.f32 0.044715, %v3314_v26  ;;  %v1419_v42 = vmul.f32 0.7978846, %v1355_v45  ;;  %v2279_v16 = vpop.eup %2278  ;;  %v1100_v45 = vmul.f32 0.5, %v3310_v17 }
 0x180   : > { %2280 = vtanh.f32 %v1416_v48  ;;  %v1228_v6 = vmul.f32 %v1164_v60, %v3310_v17  ;;  %v1543_v12 = vadd.f32 1.0, %v2279_v16 }
 0x181   : > { %v1604_v63 = vmul.f32 %v1540_v59, %v1092_v2  ;;  %v1231_v44 = vmul.f32 %v1167_v8, %v3314_v26  ;;  %v997_v38 = vpop.f32.mrf.mxu2  ;;  %2282 = vtanh.f32 %v1419_v42 }
 0x182   : > { %v1292_v21 = vmul.f32 %v1228_v6, %v3310_v17  ;;  %v998_v32 = vadd.f32 %v997_v38, %v3145_v34  ;;  %v1046_v23 = vpop.f32.mrf.mxu3  ;;  %v901_v62 = vpop.f32.mrf.mxu0  ;;  %v1607_v54 = vmul.f32 %v1543_v12, %v1095_v20  ;;  %v1103_v12 = vmul.f32 0.5, %v3314_v26 }
 0x183   : > { %v1652_v24 = vpack.c.bf16 %v1604_v63, %v1603_v18  ;;  %v1295_v51 = vmul.f32 %v1231_v44, %v3314_v26  ;;  %v902_v27 = vadd.f32 %v901_v62, %v3125_v7  ;;  %v950_v25 = vpop.f32.mrf.mxu1 }
 0x184   : > { %v1356_v61 = vadd.f32 %v1292_v21, %v3310_v17  ;;  %v3327_v28 = vadd.f32 %v1046_v23, %v998_v32 }
 0x185   : > { %1684 = vst [vmem:[%s2899_s22 + $0x78] sm:$0xff] %v1652_v24  ;;  %v1359_v14 = vadd.f32 %v1295_v51, %v3314_v26  ;;  %v3331_v36 = vadd.f32 %v950_v25, %v902_v27 }
 0x186   : > { %v2281_v30 = vpop.eup %2280  ;;  %v1420_v50 = vmul.f32 0.7978846, %v1356_v61  ;;  %v1168_v33 = vmul.f32 0.044715, %v3327_v28 }
 0x187   : > { %v1544_v37 = vadd.f32 1.0, %v2281_v30  ;;  %v1171_v41 = vmul.f32 0.044715, %v3331_v36  ;;  %v1423_v57 = vmul.f32 0.7978846, %v1359_v14  ;;  %v2283_v5 = vpop.eup %2282  ;;  %v1104_v14 = vmul.f32 0.5, %v3327_v28 }
 0x188   : > { %2284 = vtanh.f32 %v1420_v50  ;;  %v1232_v35 = vmul.f32 %v1168_v33, %v3327_v28  ;;  %v1547_v46 = vadd.f32 1.0, %v2283_v5 }
 0x189   : > { %v1608_v13 = vmul.f32 %v1544_v37, %v1096_v11  ;;  %v1235_v31 = vmul.f32 %v1171_v41, %v3331_v36  ;;  %v999_v39 = vpop.f32.mrf.mxu2  ;;  %2286 = vtanh.f32 %v1423_v57 }
 0x18a   : > { %v1296_v55 = vmul.f32 %v1232_v35, %v3327_v28  ;;  %v1000_v53 = vadd.f32 %v999_v39, %v3145_v34  ;;  %v1048_v52 = vpop.f32.mrf.mxu3  ;;  %v904_v0 = vpop.f32.mrf.mxu0  ;;  %v1611_v2 = vmul.f32 %v1547_v46, %v1099_v15  ;;  %v1107_v46 = vmul.f32 0.5, %v3331_v36 }
 0x18b   : > { %v1654_v58 = vpack.c.bf16 %v1608_v13, %v1607_v54  ;;  %v1299_v3 = vmul.f32 %v1235_v31, %v3331_v36  ;;  %v905_v10 = vadd.f32 %v904_v0, %v3125_v7  ;;  %v953_v29 = vpop.f32.mrf.mxu1 }
 0x18c   : > { %v1360_v19 = vadd.f32 %v1296_v55, %v3327_v28  ;;  %v3344_v56 = vadd.f32 %v1048_v52, %v1000_v53 }
 0x18d   : > { %1686 = vst [vmem:[%s2899_s22 + $0x88] sm:$0xff] %v1654_v58  ;;  %v1363_v49 = vadd.f32 %v1299_v3, %v3331_v36  ;;  %v3348_v40 = vadd.f32 %v953_v29, %v905_v10 }
 0x18e   : > { %v2285_v9 = vpop.eup %2284  ;;  %v1424_v47 = vmul.f32 0.7978846, %v1360_v19  ;;  %v1172_v22 = vmul.f32 0.044715, %v3344_v56 }
 0x18f   : > { %v1548_v43 = vadd.f32 1.0, %v2285_v9  ;;  %v1175_v48 = vmul.f32 0.044715, %v3348_v40  ;;  %v1427_v60 = vmul.f32 0.7978846, %v1363_v49  ;;  %v2287_v6 = vpop.eup %2286  ;;  %v1108_v49 = vmul.f32 0.5, %v3344_v56 }
 0x190   : > { %2288 = vtanh.f32 %v1424_v47  ;;  %v1236_v1 = vmul.f32 %v1172_v22, %v3344_v56  ;;  %v1551_v62 = vadd.f32 1.0, %v2287_v6 }
 0x191   : > { %v1612_v59 = vmul.f32 %v1548_v43, %v1100_v45  ;;  %v1239_v8 = vmul.f32 %v1175_v48, %v3348_v40  ;;  %v1002_v42 = vpop.f32.mrf.mxu2  ;;  %2290 = vtanh.f32 %v1427_v60 }
 0x192   : > { %v1300_v18 = vmul.f32 %v1236_v1, %v3344_v56  ;;  %v1003_v4 = vadd.f32 %v1002_v42, %v3145_v34  ;;  %v1051_v63 = vpop.f32.mrf.mxu3  ;;  %v906_v17 = vpop.f32.mrf.mxu0  ;;  %v1615_v11 = vmul.f32 %v1551_v62, %v1103_v12  ;;  %v1111_v62 = vmul.f32 0.5, %v3348_v40 }
 0x193   : > { %v1656_v44 = vpack.c.bf16 %v1612_v59, %v1611_v2  ;;  %v1303_v38 = vmul.f32 %v1239_v8, %v3348_v40  ;;  %v907_v16 = vadd.f32 %v906_v17, %v3125_v7  ;;  %v955_v21 = vpop.f32.mrf.mxu1 }
 0x194   : > { %v1364_v32 = vadd.f32 %v1300_v18, %v3344_v56  ;;  %v3361_v23 = vadd.f32 %v1051_v63, %v1003_v4 }
 0x195   : > { %1688 = vst [vmem:[%s2899_s22 + $0x98] sm:$0xff] %v1656_v44  ;;  %v1367_v24 = vadd.f32 %v1303_v38, %v3348_v40  ;;  %v3365_v51 = vadd.f32 %v955_v21, %v907_v16 }
 0x196   : > { %v2289_v27 = vpop.eup %2288  ;;  %v1428_v25 = vmul.f32 0.7978846, %v1364_v32  ;;  %v1176_v61 = vmul.f32 0.044715, %v3361_v23 }
 0x197   : > { %v1552_v30 = vadd.f32 1.0, %v2289_v27  ;;  %v1179_v50 = vmul.f32 0.044715, %v3365_v51  ;;  %v1431_v33 = vmul.f32 0.7978846, %v1367_v24  ;;  %v2291_v35 = vpop.eup %2290  ;;  %v1112_v24 = vmul.f32 0.5, %v3361_v23 }
 0x198   : > { %2292 = vtanh.f32 %v1428_v25  ;;  %v1240_v20 = vmul.f32 %v1176_v61, %v3361_v23  ;;  %v1555_v0 = vadd.f32 1.0, %v2291_v35 }
 0x199   : > { %v1616_v37 = vmul.f32 %v1552_v30, %v1104_v14  ;;  %v1243_v41 = vmul.f32 %v1179_v50, %v3365_v51  ;;  %v1004_v57 = vpop.f32.mrf.mxu2  ;;  %2294 = vtanh.f32 %v1431_v33 }
 0x19a   : > { %v1304_v54 = vmul.f32 %v1240_v20, %v3361_v23  ;;  %v1005_v26 = vadd.f32 %v1004_v57, %v3145_v34  ;;  %v1053_v13 = vpop.f32.mrf.mxu3  ;;  %v909_v28 = vpop.f32.mrf.mxu0  ;;  %v1619_v45 = vmul.f32 %v1555_v0, %v1107_v46 }
 0x19b   : > { %v1658_v31 = vpack.c.bf16 %v1616_v37, %v1615_v11  ;;  %v1307_v39 = vmul.f32 %v1243_v41, %v3365_v51  ;;  %v910_v5 = vadd.f32 %v909_v28, %v3125_v7  ;;  %v958_v55 = vpop.f32.mrf.mxu1 }
 0x19c   : > { %v1368_v53 = vadd.f32 %v1304_v54, %v3361_v23  ;;  %v3378_v52 = vadd.f32 %v1053_v13, %v1005_v26 }
 0x19d   : > { %1690 = vst [vmem:[%s2899_s22 + $0xa8] sm:$0xff] %v1658_v31  ;;  %v1371_v58 = vadd.f32 %v1307_v39, %v3365_v51  ;;  %v3382_v3 = vadd.f32 %v958_v55, %v910_v5  ;;  %v1115_v31 = vmul.f32 0.5, %v3365_v51 }
 0x19e   : > { %v2293_v10 = vpop.eup %2292  ;;  %v1432_v29 = vmul.f32 0.7978846, %v1368_v53  ;;  %v1180_v19 = vmul.f32 0.044715, %v3378_v52  ;;  %v1116_v39 = vmul.f32 0.5, %v3378_v52 }
 0x19f   : > { %v1556_v9 = vadd.f32 1.0, %v2293_v10  ;;  %v1183_v47 = vmul.f32 0.044715, %v3382_v3  ;;  %v1435_v22 = vmul.f32 0.7978846, %v1371_v58  ;;  %v2295_v1 = vpop.eup %2294  ;;  %v1119_v51 = vmul.f32 0.5, %v3382_v3 }
 0x1a0   : > { %2296 = vtanh.f32 %v1432_v29  ;;  %v1244_v15 = vmul.f32 %v1180_v19, %v3378_v52  ;;  %v1559_v17 = vadd.f32 1.0, %v2295_v1 }
 0x1a1   : > { %v1620_v43 = vmul.f32 %v1556_v9, %v1108_v49  ;;  %v1247_v48 = vmul.f32 %v1183_v47, %v3382_v3  ;;  %v1007_v60 = vpop.f32.mrf.mxu2  ;;  %2298 = vtanh.f32 %v1435_v22 }
 0x1a2   : > { %v1308_v2 = vmul.f32 %v1244_v15, %v3378_v52  ;;  %v1008_v36 = vadd.f32 %v1007_v60, %v3145_v34  ;;  %v1056_v59 = vpop.f32.mrf.mxu3  ;;  %v911_v56 = vpop.f32.mrf.mxu0  ;;  %v1623_v12 = vmul.f32 %v1559_v17, %v1111_v62 }
 0x1a3   : > { %v1660_v8 = vpack.c.bf16 %v1620_v43, %v1619_v45  ;;  %v1311_v42 = vmul.f32 %v1247_v48, %v3382_v3  ;;  %v912_v6 = vadd.f32 %v911_v56, %v3125_v7  ;;  %v960_v63 = vpop.f32.mrf.mxu1 }
 0x1a4   : > { %v1372_v18 = vadd.f32 %v1308_v2, %v3378_v52  ;;  %v1057_v4 = vadd.f32 %v1056_v59, %v1008_v36 }
 0x1a5   : > { %1692 = vst [vmem:[%s2899_s22 + $0xb8] sm:$0xff] %v1660_v8  ;;  %v1375_v44 = vadd.f32 %v1311_v42, %v3382_v3  ;;  %v961_v38 = vadd.f32 %v960_v63, %v912_v6 }
 0x1a6   : > { %v2297_v16 = vpop.eup %2296  ;;  %v1436_v21 = vmul.f32 0.7978846, %v1372_v18  ;;  %v1184_v32 = vmul.f32 0.044715, %v1057_v4  ;;  %v1120_v47 = vmul.f32 0.5, %v1057_v4 }
 0x1a7   : > { %v1560_v27 = vadd.f32 1.0, %v2297_v16  ;;  %v1187_v25 = vmul.f32 0.044715, %v961_v38  ;;  %v1439_v7 = vmul.f32 0.7978846, %v1375_v44  ;;  %v2299_v33 = vpop.eup %2298  ;;  %v1123_v1 = vmul.f32 0.5, %v961_v38 }
 0x1a8   : > { %2300 = vtanh.f32 %v1436_v21  ;;  %v1248_v61 = vmul.f32 %v1184_v32, %v1057_v4  ;;  %v1563_v35 = vadd.f32 1.0, %v2299_v33 }
 0x1a9   : > { %v1624_v14 = vmul.f32 %v1560_v27, %v1112_v24  ;;  %v1251_v30 = vmul.f32 %v1187_v25, %v961_v38  ;;  %v1009_v50 = vpop.f32.mrf.mxu2  ;;  %2302 = vtanh.f32 %v1439_v7 }
 0x1aa   : > { %v1312_v20 = vmul.f32 %v1248_v61, %v1057_v4  ;;  %v1010_v11 = vadd.f32 %v1009_v50, %v3145_v34  ;;  %v1058_v57 = vpop.f32.mrf.mxu3  ;;  %v1627_v53 = vmul.f32 %v1563_v35, %v1115_v31 }
 0x1ab   : > { %v1662_v37 = vpack.c.bf16 %v1624_v14, %v1623_v12  ;;  %v1315_v41 = vmul.f32 %v1251_v30, %v961_v38 }
 0x1ac   : > { %v1376_v40 = vadd.f32 %v1312_v20, %v1057_v4  ;;  %v1059_v23 = vadd.f32 %v1058_v57, %v1010_v11 }
 0x1ad   : > { %1694 = vst [vmem:[%s2899_s22 + $0xc8] sm:$0xff] %v1662_v37  ;;  %v1379_v54 = vadd.f32 %v1315_v41, %v961_v38 }
 0x1ae   : > { %v2301_v26 = vpop.eup %2300  ;;  %v1440_v13 = vmul.f32 0.7978846, %v1376_v40  ;;  %v1188_v28 = vmul.f32 0.044715, %v1059_v23  ;;  %v1124_v2 = vmul.f32 0.5, %v1059_v23 }
 0x1af   : > { %v1564_v5 = vadd.f32 1.0, %v2301_v26  ;;  %v1443_v34 = vmul.f32 0.7978846, %v1379_v54  ;;  %v2303_v58 = vpop.eup %2302 }
 0x1b0   : > { %2304 = vtanh.f32 %v1440_v13  ;;  %v1252_v55 = vmul.f32 %v1188_v28, %v1059_v23  ;;  %v1567_v46 = vadd.f32 1.0, %v2303_v58 }
 0x1b1   : > { %v1628_v0 = vmul.f32 %v1564_v5, %v1116_v39  ;;  %2306 = vtanh.f32 %v1443_v34 }
 0x1b2   : > { %v1316_v10 = vmul.f32 %v1252_v55, %v1059_v23  ;;  %v1631_v22 = vmul.f32 %v1567_v46, %v1119_v51 }
 0x1b3   : > { %v1664_v29 = vpack.c.bf16 %v1628_v0, %v1627_v53 }
 0x1b4   : > { %v1380_v19 = vadd.f32 %v1316_v10, %v1059_v23 }
 0x1b5   : > { %1696 = vst [vmem:[%s2899_s22 + $0xd8] sm:$0xff] %v1664_v29 }
 0x1b6   : > { %v2305_v49 = vpop.eup %2304  ;;  %v1444_v9 = vmul.f32 0.7978846, %v1380_v19 }
 0x1b7   : > { %v1568_v52 = vadd.f32 1.0, %v2305_v49  ;;  %v2307_v45 = vpop.eup %2306 }
 0x1b8   : > { %2308 = vtanh.f32 %v1444_v9  ;;  %v1571_v48 = vadd.f32 1.0, %v2307_v45 }
 0x1b9   : > { %v1632_v15 = vmul.f32 %v1568_v52, %v1120_v47 }
 0x1ba   : > { %v1635_v59 = vmul.f32 %v1571_v48, %v1123_v1 }
 0x1bb   : > { %v1666_v43 = vpack.c.bf16 %v1632_v15, %v1631_v22 }
 0x1bd   : > { %1698 = vst [vmem:[%s2899_s22 + $0xe8] sm:$0xff] %v1666_v43 }
 0x1be   : > { %v2309_v60 = vpop.eup %2308 }
 0x1bf   : > { %v1572_v36 = vadd.f32 1.0, %v2309_v60 }
 0x1c1   : > { %v1636_v56 = vmul.f32 %v1572_v36, %v1124_v2 }
 0x1c3   : > { %v1668_v8 = vpack.c.bf16 %v1636_v56, %v1635_v59 }
 0x1c5   : > { %1700 = vst [vmem:[%s2899_s22 + $0xf8] sm:$0xff] %v1668_v8 }
 0x1c6 PF: > { %s13_s12 = sadd.s32 1, %s2316_s12  }
 0x1c7   : > { %p10_p4 = scmp.ge.s32.totalorder %s13_s12, 4  }
 0x1c9   :  { %12 = sbr.rel (!%p10_p4) target bundleno = 1 (0x1), region = 62 }

// kernel: drug_interaction_transformer_forward.29
= control target key start
LH: loop header
LB: loop body
LE: loop exit
PB: predicated region body
PF: predicated region fallthrough
CT: control target
= control target key end

     0   :  { %s1774_s12 = smov 0   ;;  %s2484_s0 = inlined_call_operand.vmem [shape: bf16[256,512], index: 0, kind: input, shape index: {}]   ;;  %s2485_s1 = inlined_call_operand.vmem [shape: bf16[512,256], index: 1, kind: input, shape index: {}]   ;;  %s2486_s2 = inlined_call_operand.vmem [shape: f32[1,256], index: 2, kind: input, shape index: {}]   ;;  %s2487_s3 = inlined_call_operand.vmem [shape: bf16[256,256], index: 3, kind: output, shape index: {}]  }
   0x1 LB: > { %s1243_s13 = sadd.s32 4294967295, %s1752_s12   ;;  %p1247_p0 = scmp.ge.s32.totalorder %s1752_s12, 1  ;;  %s1752_s12 = sphi %s1774_s12, %s13_s12  }
   0x2   : > { %p139_p1 = scmp.lt.s32.totalorder %s1752_s12, 3 }
   0x4   : > { %p140_p2 = pnand %p1247_p0, %p139_p1 }
   0x5   : > { %s1248_s22 = sshll.u32 (!%p140_p2), %s1243_s13, 4 }
   0x6   : > { %143 = sbr.rel (%p140_p2) target bundleno = 434 (0x1b2), region = 32  ;;  %p166_p3 = scmp.lt.s32.totalorder (!%p140_p2), %s1248_s22, 31 }
   0xb   : > { %v1440_v0 = vld [vmem:[%s2485_s1 + $0x70] sm:$0xf]  ;;  %v1689_v1 = vld [vmem:[%s2485_s1 + $0x74] sm:$0xf0]  ;;  %v1432_v11 = vld [vmem:[%s2485_s1 + $0x60] sm:$0xf] }
   0xc   : > { %v1504_v2 = vld [vmem:[%s2485_s1 + $0xf0] sm:$0xf]  ;;  %v1441_v3 = vor.u32 %v1689_v1, %v1440_v0  ;;  %v1705_v4 = vld [vmem:[%s2485_s1 + $0xf4] sm:$0xf0]  ;;  %v1687_v13 = vld [vmem:[%s2485_s1 + $0x64] sm:$0xf0] }
   0xd   : > { %v1568_v5 = vld [vmem:[%s2485_s1 + $0x170] sm:$0xf]  ;;  %v1721_v6 = vld [vmem:[%s2485_s1 + $0x174] sm:$0xf0]  ;;  %v1505_v7 = vor.u32 %v1705_v4, %v1504_v2  ;;  %v1496_v14 = vld [vmem:[%s2485_s1 + $0xe0] sm:$0xf]  ;;  %v1433_v16 = vor.u32 %v1687_v13, %v1432_v11 }
   0xe   : > { %v1569_v8 = vor.u32 %v1721_v6, %v1568_v5  ;;  %v1632_v9 = vld [vmem:[%s2485_s1 + $0x1f0] sm:$0xf]  ;;  %v1737_v10 = vld [vmem:[%s2485_s1 + $0x1f4] sm:$0xf0]  ;;  %761 = vmatpush.bf16.msra.mxu0 %v1441_v3  ;;  %v1703_v15 = vld [vmem:[%s2485_s1 + $0xe4] sm:$0xf0] }
   0xf   : > { %v1633_v12 = vor.u32 %v1737_v10, %v1632_v9  ;;  %810 = vmatpush.bf16.msra.mxu1 %v1505_v7  ;;  %v1497_v17 = vor.u32 %v1703_v15, %v1496_v14  ;;  %v1560_v18 = vld [vmem:[%s2485_s1 + $0x160] sm:$0xf]  ;;  %v1719_v19 = vld [vmem:[%s2485_s1 + $0x164] sm:$0xf0]  ;;  %v1424_v23 = vld [vmem:[%s2485_s1 + $0x50] sm:$0xf] }
  0x10   : > { %859 = vmatpush.bf16.msra.mxu2 %v1569_v8  ;;  %v1624_v20 = vld [vmem:[%s2485_s1 + $0x1e0] sm:$0xf]  ;;  %v1561_v21 = vor.u32 %v1719_v19, %v1560_v18  ;;  %v1735_v22 = vld [vmem:[%s2485_s1 + $0x1e4] sm:$0xf0]  ;;  %v1685_v24 = vld [vmem:[%s2485_s1 + $0x54] sm:$0xf0] }
  0x11   : > { %908 = vmatpush.bf16.msra.mxu3 %v1633_v12  ;;  %v1625_v25 = vor.u32 %v1735_v22, %v1624_v20  ;;  %v1488_v26 = vld [vmem:[%s2485_s1 + $0xd0] sm:$0xf]  ;;  %v1701_v27 = vld [vmem:[%s2485_s1 + $0xd4] sm:$0xf0]  ;;  %v1425_v29 = vor.u32 %v1685_v24, %v1424_v23  ;;  %v1416_v35 = vld [vmem:[%s2485_s1 + $0x40] sm:$0xf] }
  0x12   : > { %v1552_v28 = vld [vmem:[%s2485_s1 + $0x150] sm:$0xf]  ;;  %762 = vmatpush.bf16.msra.mxu0 %v1433_v16  ;;  %v1717_v30 = vld [vmem:[%s2485_s1 + $0x154] sm:$0xf0]  ;;  %v1489_v33 = vor.u32 %v1701_v27, %v1488_v26  ;;  %v1683_v36 = vld [vmem:[%s2485_s1 + $0x44] sm:$0xf0] }
  0x13   : > { %v1616_v31 = vld [vmem:[%s2485_s1 + $0x1d0] sm:$0xf]  ;;  %v1733_v32 = vld [vmem:[%s2485_s1 + $0x1d4] sm:$0xf0]  ;;  %811 = vmatpush.bf16.msra.mxu1 %v1497_v17  ;;  %v1553_v34 = vor.u32 %v1717_v30, %v1552_v28  ;;  %v1480_v37 = vld [vmem:[%s2485_s1 + $0xc0] sm:$0xf]  ;;  %v1417_v44 = vor.u32 %v1683_v36, %v1416_v35 }
  0x14   : > { %860 = vmatpush.bf16.msra.mxu2 %v1561_v21  ;;  %v1617_v38 = vor.u32 %v1733_v32, %v1616_v31  ;;  %v1699_v39 = vld [vmem:[%s2485_s1 + $0xc4] sm:$0xf0]  ;;  %v1544_v40 = vld [vmem:[%s2485_s1 + $0x140] sm:$0xf]  ;;  %v1408_v47 = vld [vmem:[%s2485_s1 + $0x30] sm:$0xf] }
  0x15   : > { %909 = vmatpush.bf16.msra.mxu3 %v1625_v25  ;;  %v1715_v41 = vld [vmem:[%s2485_s1 + $0x144] sm:$0xf0]  ;;  %v1608_v42 = vld [vmem:[%s2485_s1 + $0x1c0] sm:$0xf]  ;;  %v1481_v45 = vor.u32 %v1699_v39, %v1480_v37  ;;  %v1681_v48 = vld [vmem:[%s2485_s1 + $0x34] sm:$0xf0] }
  0x16   : > { %v1731_v43 = vld [vmem:[%s2485_s1 + $0x1c4] sm:$0xf0]  ;;  %763 = vmatpush.bf16.msra.mxu0 %v1425_v29  ;;  %v1545_v46 = vor.u32 %v1715_v41, %v1544_v40  ;;  %v1472_v49 = vld [vmem:[%s2485_s1 + $0xb0] sm:$0xf]  ;;  %v1697_v51 = vld [vmem:[%s2485_s1 + $0xb4] sm:$0xf0]  ;;  %v1409_v56 = vor.u32 %v1681_v48, %v1408_v47 }
  0x17   : > { %812 = vmatpush.bf16.msra.mxu1 %v1489_v33  ;;  %v1609_v50 = vor.u32 %v1731_v43, %v1608_v42  ;;  %v1536_v52 = vld [vmem:[%s2485_s1 + $0x130] sm:$0xf]  ;;  %v1713_v53 = vld [vmem:[%s2485_s1 + $0x134] sm:$0xf0]  ;;  %v1473_v57 = vor.u32 %v1697_v51, %v1472_v49  ;;  %v1400_v59 = vld [vmem:[%s2485_s1 + $0x20] sm:$0xf] }
  0x18   : > { %861 = vmatpush.bf16.msra.mxu2 %v1553_v34  ;;  %v1600_v54 = vld [vmem:[%s2485_s1 + $0x1b0] sm:$0xf]  ;;  %v1729_v55 = vld [vmem:[%s2485_s1 + $0x1b4] sm:$0xf0]  ;;  %v1537_v58 = vor.u32 %v1713_v53, %v1536_v52  ;;  %v1679_v60 = vld [vmem:[%s2485_s1 + $0x24] sm:$0xf0] }
  0x19   : > { %910 = vmatpush.bf16.msra.mxu3 %v1617_v38  ;;  %v1464_v61 = vld [vmem:[%s2485_s1 + $0xa0] sm:$0xf]  ;;  %v1601_v62 = vor.u32 %v1729_v55, %v1600_v54  ;;  %v1695_v63 = vld [vmem:[%s2485_s1 + $0xa4] sm:$0xf0]  ;;  %v1401_v4 = vor.u32 %v1679_v60, %v1400_v59  ;;  %v1392_v5 = vld [vmem:[%s2485_s1 + $0x10] sm:$0xf] }
  0x1a   : > { %764 = vmatpush.bf16.msra.mxu0 %v1417_v44  ;;  %v1528_v0 = vld [vmem:[%s2485_s1 + $0x120] sm:$0xf]  ;;  %v1711_v1 = vld [vmem:[%s2485_s1 + $0x124] sm:$0xf0]  ;;  %v1465_v6 = vor.u32 %v1695_v63, %v1464_v61  ;;  %v1677_v8 = vld [vmem:[%s2485_s1 + $0x14] sm:$0xf0] }
  0x1b   : > { %813 = vmatpush.bf16.msra.mxu1 %v1481_v45  ;;  %v1592_v2 = vld [vmem:[%s2485_s1 + $0x1a0] sm:$0xf]  ;;  %v1727_v3 = vld [vmem:[%s2485_s1 + $0x1a4] sm:$0xf0]  ;;  %v1529_v7 = vor.u32 %v1711_v1, %v1528_v0  ;;  %v1456_v9 = vld [vmem:[%s2485_s1 + $0x90] sm:$0xf]  ;;  %v1393_v16 = vor.u32 %v1677_v8, %v1392_v5 }
  0x1c   : > { %862 = vmatpush.bf16.msra.mxu2 %v1545_v46  ;;  %v1693_v10 = vld [vmem:[%s2485_s1 + $0x94] sm:$0xf0]  ;;  %v1593_v11 = vor.u32 %v1727_v3, %v1592_v2  ;;  %v1520_v12 = vld [vmem:[%s2485_s1 + $0x110] sm:$0xf]  ;;  %v1384_v17 = vld [vmem:[%s2485_s1] sm:$0xf] }
  0x1d   : > { %911 = vmatpush.bf16.msra.mxu3 %v1609_v50  ;;  %v1709_v13 = vld [vmem:[%s2485_s1 + $0x114] sm:$0xf0]  ;;  %v1584_v14 = vld [vmem:[%s2485_s1 + $0x190] sm:$0xf]  ;;  %v1675_v18 = vld [vmem:[%s2485_s1 + $0x4] sm:$0xf0]  ;;  %v1457_v20 = vor.u32 %v1693_v10, %v1456_v9 }
  0x1e   : > { %765 = vmatpush.bf16.msra.mxu0 %v1409_v56  ;;  %v1725_v15 = vld [vmem:[%s2485_s1 + $0x194] sm:$0xf0]  ;;  %v1448_v19 = vld [vmem:[%s2485_s1 + $0x80] sm:$0xf]  ;;  %v1521_v21 = vor.u32 %v1709_v13, %v1520_v12  ;;  %v1691_v22 = vld [vmem:[%s2485_s1 + $0x84] sm:$0xf0]  ;;  %v1385_v30 = vor.u32 %v1675_v18, %v1384_v17 }
  0x1f   : > { %814 = vmatpush.bf16.msra.mxu1 %v1473_v57  ;;  %v1512_v23 = vld [vmem:[%s2485_s1 + $0x100] sm:$0xf]  ;;  %s2489_s22 = smov (!%p166_p3, %s1248_s22), 31  ;;  %v1585_v24 = vor.u32 %v1725_v15, %v1584_v14  ;;  %v1707_v25 = vld [vmem:[%s2485_s1 + $0x104] sm:$0xf0]  ;;  %v1449_v35 = vor.u32 %v1691_v22, %v1448_v19 }
  0x20   : > { %863 = vmatpush.bf16.msra.mxu2 %v1537_v58  ;;  %v1576_v26 = vld [vmem:[%s2485_s1 + $0x180] sm:$0xf]  ;;  %v1723_v27 = vld [vmem:[%s2485_s1 + $0x184] sm:$0xf0]  ;;  %s1640_s17 = sshll.u32 %s2489_s22, 4  ;;  %v1513_v36 = vor.u32 %v1707_v25, %v1512_v23 }
  0x21   : > { %912 = vmatpush.bf16.msra.mxu3 %v1601_v62  ;;  %v1720_v28 = vld [vmem:[%s2485_s1 + $0x174] sm:$0xf]  ;;  %v1570_v29 = vld [vmem:[%s2485_s1 + $0x178] sm:$0xf0]  ;;  %s1988_s25 = scalar_lea.vmem %s2484_s0, %s1640_s17  ;;  %v1718_v42 = vld [vmem:[%s2485_s1 + $0x164] sm:$0xf]  ;;  %v1577_v43 = vor.u32 %v1723_v27, %v1576_v26 }
  0x22   : > { %766 = vmatpush.bf16.msra.mxu0 %v1401_v4  ;;  %v1688_v31 = vld [vmem:[%s2485_s1 + $0x74] sm:$0xf]  ;;  %v1442_v32 = vld [vmem:[%s2485_s1 + $0x78] sm:$0xf0]  ;;  %v1256_v37 = vld [vmem:[%s1988_s25] sm:$0xf]  ;;  %v1573_v47 = vor.u32 %v1720_v28, %v1570_v29 }
  0x23   : > { %815 = vmatpush.bf16.msra.mxu1 %v1465_v6  ;;  %v1736_v33 = vld [vmem:[%s2485_s1 + $0x1f4] sm:$0xf]  ;;  %v1634_v34 = vld [vmem:[%s2485_s1 + $0x1f8] sm:$0xf0]  ;;  %v1644_v38 = vld [vmem:[%s1988_s25 + $0xc] sm:$0xf0]  ;;  %v1445_v58 = vor.u32 %v1688_v31, %v1442_v32 }
  0x24   : > { %864 = vmatpush.bf16.msra.mxu2 %v1529_v7  ;;  %v1642_v39 = vld [vmem:[%s1988_s25 + $0x4] sm:$0xf]  ;;  %v1704_v40 = vld [vmem:[%s2485_s1 + $0xf4] sm:$0xf]  ;;  %v1506_v41 = vld [vmem:[%s2485_s1 + $0xf8] sm:$0xf0]  ;;  %v2017_v48 = vor.u32 %v1644_v38, %v1256_v37  ;;  %v1637_v51 = vor.u32 %v1736_v33, %v1634_v34 }
  0x25   : > { %913 = vmatpush.bf16.msra.mxu3 %v1593_v11  ;;  %v1258_v44 = vld [vmem:[%s1988_s25 + $0x10] sm:$0xf0]  ;;  %v1264_v45 = vld [vmem:[%s1988_s25 + $0x8] sm:$0xf]  ;;  %v1645_v46 = vld [vmem:[%s1988_s25 + $0x14] sm:$0xf0]  ;;  %v1509_v59 = vor.u32 %v1704_v40, %v1506_v41 }
  0x26   : > { %767 = vmatpush.bf16.msra.mxu0 %v1393_v16  ;;  %v1643_v49 = vld [vmem:[%s1988_s25 + $0xc] sm:$0xf]  ;;  %v1266_v50 = vld [vmem:[%s1988_s25 + $0x18] sm:$0xf0]  ;;  %v2024_v53 = vor.u32 %v1642_v39, %v1258_v44  ;;  %v2026_v54 = vor.u32 %v1645_v46, %v1264_v45  ;;  %v1734_v55 = vld [vmem:[%s2485_s1 + $0x1e4] sm:$0xf] }
  0x27   : > { %816 = vmatpush.bf16.msra.mxu1 %v1457_v20  ;;  %v1562_v52 = vld [vmem:[%s2485_s1 + $0x168] sm:$0xf0]  ;;  %v2034_v57 = vor.u32 %v1643_v49, %v1266_v50  ;;  %v1686_v61 = vld [vmem:[%s2485_s1 + $0x64] sm:$0xf]  ;;  %v1716_v3 = vld [vmem:[%s2485_s1 + $0x154] sm:$0xf] }
  0x28   : > { %865 = vmatpush.bf16.msra.mxu2 %v1521_v21  ;;  %v1626_v56 = vld [vmem:[%s2485_s1 + $0x1e8] sm:$0xf0]  ;;  %v1565_v60 = vor.u32 %v1718_v42, %v1562_v52  ;;  %v1702_v0 = vld [vmem:[%s2485_s1 + $0xe4] sm:$0xf]  ;;  %v1554_v4 = vld [vmem:[%s2485_s1 + $0x158] sm:$0xf0] }
  0x29   : > { %914 = vmatpush.bf16.msra.mxu3 %v1585_v24  ;;  %v1434_v62 = vld [vmem:[%s2485_s1 + $0x68] sm:$0xf0]  ;;  %v1629_v63 = vor.u32 %v1734_v55, %v1626_v56  ;;  %v1684_v5 = vld [vmem:[%s2485_s1 + $0x54] sm:$0xf]  ;;  %v1557_v7 = vor.u32 %v1716_v3, %v1554_v4  ;;  %v1426_v8 = vld [vmem:[%s2485_s1 + $0x58] sm:$0xf0] }
  0x2a   : > { %768 = vmatpush.bf16.msra.mxu0 %v1385_v30  ;;  %v1498_v1 = vld [vmem:[%s2485_s1 + $0xe8] sm:$0xf0]  ;;  %v1437_v2 = vor.u32 %v1686_v61, %v1434_v62  ;;  %v1732_v9 = vld [vmem:[%s2485_s1 + $0x1d4] sm:$0xf]  ;;  %v1618_v10 = vld [vmem:[%s2485_s1 + $0x1d8] sm:$0xf0]  ;;  %v1429_v14 = vor.u32 %v1684_v5, %v1426_v8 }
  0x2b   : > { %817 = vmatpush.bf16.msra.mxu1 %v1449_v35  ;;  %v1501_v6 = vor.u32 %v1702_v0, %v1498_v1  ;;  %v1621_v11 = vor.u32 %v1732_v9, %v1618_v10  ;;  %v1700_v12 = vld [vmem:[%s2485_s1 + $0xd4] sm:$0xf]  ;;  %v1490_v13 = vld [vmem:[%s2485_s1 + $0xd8] sm:$0xf0]  ;;  %v1272_v16 = vld [vmem:[%s1988_s25 + $0x20] sm:$0xf] }
  0x2c   : > { %866 = vmatpush.bf16.msra.mxu2 %v1513_v36  ;;  %v1493_v15 = vor.u32 %v1700_v12, %v1490_v13  ;;  %v1648_v17 = vld [vmem:[%s1988_s25 + $0x2c] sm:$0xf0]  ;;  %v1646_v18 = vld [vmem:[%s1988_s25 + $0x24] sm:$0xf]  ;;  %v1274_v19 = vld [vmem:[%s1988_s25 + $0x30] sm:$0xf0] }
  0x2d   : > { %915 = vmatpush.bf16.msra.mxu3 %v1577_v43  ;;  %769 = vmatmul.bf16.vlgmr.msra.gmra.mxu0 %v2017_v48  ;;  %v1280_v20 = vld [vmem:[%s1988_s25 + $0x28] sm:$0xf]  ;;  %v1649_v21 = vld [vmem:[%s1988_s25 + $0x34] sm:$0xf0]  ;;  %v1647_v22 = vld [vmem:[%s1988_s25 + $0x2c] sm:$0xf]  ;;  %v2084_v24 = vor.u32 %v1648_v17, %v1272_v16  ;;  %v2086_v25 = vor.u32 %v1646_v18, %v1274_v19 }
  0x2e   : > { %818 = vmatmul.bf16.vlgmr.msra.gmra.mxu1 %v2024_v53  ;;  %957 = vmatpush.bf16.msrb.mxu0 %v1445_v58  ;;  %v1282_v23 = vld [vmem:[%s1988_s25 + $0x38] sm:$0xf0]  ;;  %v2088_v26 = vor.u32 %v1649_v21, %v1280_v20  ;;  %v1714_v28 = vld [vmem:[%s2485_s1 + $0x144] sm:$0xf]  ;;  %v1546_v29 = vld [vmem:[%s2485_s1 + $0x148] sm:$0xf0] }
  0x2f   : > { %867 = vmatmul.bf16.vlgmr.msra.gmra.mxu2 %v2026_v54  ;;  %1006 = vmatpush.bf16.msrb.mxu1 %v1509_v59  ;;  %v2090_v27 = vor.u32 %v1647_v22, %v1282_v23  ;;  %v1682_v30 = vld [vmem:[%s2485_s1 + $0x44] sm:$0xf]  ;;  %v1549_v31 = vor.u32 %v1714_v28, %v1546_v29  ;;  %v1418_v32 = vld [vmem:[%s2485_s1 + $0x48] sm:$0xf0]  ;;  %v1288_v40 = vld [vmem:[%s1988_s25 + $0x40] sm:$0xf] }
  0x30   : > { %1055 = vmatpush.bf16.msrb.mxu2 %v1573_v47  ;;  %916 = vmatmul.bf16.vlgmr.msra.gmra.mxu3 %v2034_v57  ;;  %v1730_v33 = vld [vmem:[%s2485_s1 + $0x1c4] sm:$0xf]  ;;  %v1610_v34 = vld [vmem:[%s2485_s1 + $0x1c8] sm:$0xf0]  ;;  %v1421_v35 = vor.u32 %v1682_v30, %v1418_v32  ;;  %v1652_v41 = vld [vmem:[%s1988_s25 + $0x4c] sm:$0xf0] }
  0x31   : > { %1104 = vmatpush.bf16.msrb.mxu3 %v1637_v51  ;;  %v1613_v36 = vor.u32 %v1730_v33, %v1610_v34  ;;  %v1698_v37 = vld [vmem:[%s2485_s1 + $0xc4] sm:$0xf]  ;;  %v1482_v38 = vld [vmem:[%s2485_s1 + $0xc8] sm:$0xf0]  ;;  %v1290_v43 = vld [vmem:[%s1988_s25 + $0x50] sm:$0xf0]  ;;  %v2128_v49 = vor.u32 %v1652_v41, %v1288_v40 }
  0x32   : > { %958 = vmatpush.bf16.msrb.mxu0 %v1437_v2  ;;  %v1485_v39 = vor.u32 %v1698_v37, %v1482_v38  ;;  %v1650_v42 = vld [vmem:[%s1988_s25 + $0x44] sm:$0xf]  ;;  %v1296_v44 = vld [vmem:[%s1988_s25 + $0x48] sm:$0xf]  ;;  %v1653_v45 = vld [vmem:[%s1988_s25 + $0x54] sm:$0xf0] }
  0x33   : > { %1007 = vmatpush.bf16.msrb.mxu1 %v1501_v6  ;;  %v1651_v46 = vld [vmem:[%s1988_s25 + $0x4c] sm:$0xf]  ;;  %v1298_v47 = vld [vmem:[%s1988_s25 + $0x58] sm:$0xf0]  ;;  %v2130_v50 = vor.u32 %v1650_v42, %v1290_v43  ;;  %v2132_v51 = vor.u32 %v1653_v45, %v1296_v44  ;;  %v1712_v55 = vld [vmem:[%s2485_s1 + $0x134] sm:$0xf] }
  0x34   : > { %1056 = vmatpush.bf16.msrb.mxu2 %v1565_v60  ;;  %v2134_v52 = vor.u32 %v1651_v46, %v1298_v47  ;;  %v1538_v56 = vld [vmem:[%s2485_s1 + $0x138] sm:$0xf0]  ;;  %v1680_v58 = vld [vmem:[%s2485_s1 + $0x34] sm:$0xf]  ;;  %v1304_v4 = vld [vmem:[%s1988_s25 + $0x60] sm:$0xf] }
  0x35   : > { %1105 = vmatpush.bf16.msrb.mxu3 %v1629_v63  ;;  %v1541_v59 = vor.u32 %v1712_v55, %v1538_v56  ;;  %v1410_v60 = vld [vmem:[%s2485_s1 + $0x38] sm:$0xf0]  ;;  %v1728_v61 = vld [vmem:[%s2485_s1 + $0x1b4] sm:$0xf]  ;;  %v1656_v5 = vld [vmem:[%s1988_s25 + $0x6c] sm:$0xf0] }
  0x36   : > { %959 = vmatpush.bf16.msrb.mxu0 %v1429_v14  ;;  %v1602_v62 = vld [vmem:[%s2485_s1 + $0x1b8] sm:$0xf0]  ;;  %v1413_v63 = vor.u32 %v1680_v58, %v1410_v60  ;;  %v1696_v1 = vld [vmem:[%s2485_s1 + $0xb4] sm:$0xf]  ;;  %v1654_v6 = vld [vmem:[%s1988_s25 + $0x64] sm:$0xf]  ;;  %v2172_v12 = vor.u32 %v1656_v5, %v1304_v4 }
  0x37   : > { %1008 = vmatpush.bf16.msrb.mxu1 %v1493_v15  ;;  %v1605_v0 = vor.u32 %v1728_v61, %v1602_v62  ;;  %v1474_v2 = vld [vmem:[%s2485_s1 + $0xb8] sm:$0xf0]  ;;  %v1312_v8 = vld [vmem:[%s1988_s25 + $0x68] sm:$0xf]  ;;  %v1657_v9 = vld [vmem:[%s1988_s25 + $0x74] sm:$0xf0] }
  0x38   : > { %1057 = vmatpush.bf16.msrb.mxu2 %v1557_v7  ;;  %v1477_v3 = vor.u32 %v1696_v1, %v1474_v2  ;;  %v1306_v7 = vld [vmem:[%s1988_s25 + $0x70] sm:$0xf0]  ;;  %v1655_v10 = vld [vmem:[%s1988_s25 + $0x6c] sm:$0xf]  ;;  %v2176_v14 = vor.u32 %v1657_v9, %v1312_v8  ;;  %v1710_v16 = vld [vmem:[%s2485_s1 + $0x124] sm:$0xf] }
  0x39   : > { %1106 = vmatpush.bf16.msrb.mxu3 %v1621_v11  ;;  %v1314_v11 = vld [vmem:[%s1988_s25 + $0x78] sm:$0xf0]  ;;  %v2174_v13 = vor.u32 %v1654_v6, %v1306_v7  ;;  %v1530_v17 = vld [vmem:[%s2485_s1 + $0x128] sm:$0xf0]  ;;  %v1678_v18 = vld [vmem:[%s2485_s1 + $0x24] sm:$0xf] }
  0x3a   : > { %960 = vmatpush.bf16.msrb.mxu0 %v1421_v35  ;;  %v2178_v15 = vor.u32 %v1655_v10, %v1314_v11  ;;  %v1533_v19 = vor.u32 %v1710_v16, %v1530_v17  ;;  %v1402_v20 = vld [vmem:[%s2485_s1 + $0x28] sm:$0xf0]  ;;  %v1726_v21 = vld [vmem:[%s2485_s1 + $0x1a4] sm:$0xf]  ;;  %v1320_v32 = vld [vmem:[%s1988_s25 + $0x80] sm:$0xf] }
  0x3b   : > { %1009 = vmatpush.bf16.msrb.mxu1 %v1485_v39  ;;  %v1594_v22 = vld [vmem:[%s2485_s1 + $0x1a8] sm:$0xf0]  ;;  %v1405_v23 = vor.u32 %v1678_v18, %v1402_v20  ;;  %v1694_v29 = vld [vmem:[%s2485_s1 + $0xa4] sm:$0xf]  ;;  %v1660_v33 = vld [vmem:[%s1988_s25 + $0x8c] sm:$0xf0] }
  0x3c   : > { %1058 = vmatpush.bf16.msrb.mxu2 %v1549_v31  ;;  %v1597_v28 = vor.u32 %v1726_v21, %v1594_v22  ;;  %v1466_v30 = vld [vmem:[%s2485_s1 + $0xa8] sm:$0xf0]  ;;  %v1658_v34 = vld [vmem:[%s1988_s25 + $0x84] sm:$0xf]  ;;  %v1322_v35 = vld [vmem:[%s1988_s25 + $0x90] sm:$0xf0]  ;;  %v2216_v40 = vor.u32 %v1660_v33, %v1320_v32 }
  0x3d   : > { %774 = vmatmul.bf16.gmra.mxu0 %v2084_v24  ;;  %1107 = vmatpush.bf16.msrb.mxu3 %v1613_v36  ;;  %v1469_v31 = vor.u32 %v1694_v29, %v1466_v30  ;;  %v1328_v36 = vld [vmem:[%s1988_s25 + $0x88] sm:$0xf]  ;;  %v1661_v37 = vld [vmem:[%s1988_s25 + $0x94] sm:$0xf0]  ;;  %v1659_v38 = vld [vmem:[%s1988_s25 + $0x8c] sm:$0xf]  ;;  %v2218_v41 = vor.u32 %v1658_v34, %v1322_v35 }
  0x3e   : > { %823 = vmatmul.bf16.gmra.mxu1 %v2086_v25  ;;  %961 = vmatpush.bf16.msrb.mxu0 %v1413_v63  ;;  %v1330_v39 = vld [vmem:[%s1988_s25 + $0x98] sm:$0xf0]  ;;  %v2220_v42 = vor.u32 %v1661_v37, %v1328_v36  ;;  %v1708_v44 = vld [vmem:[%s2485_s1 + $0x114] sm:$0xf]  ;;  %v1664_v1 = vld [vmem:[%s1988_s25 + $0xac] sm:$0xf0] }
  0x3f   : > { %872 = vmatmul.bf16.gmra.mxu2 %v2088_v26  ;;  %1010 = vmatpush.bf16.msrb.mxu1 %v1477_v3  ;;  %v2222_v43 = vor.u32 %v1659_v38, %v1330_v39  ;;  %v1522_v45 = vld [vmem:[%s2485_s1 + $0x118] sm:$0xf0]  ;;  %v1676_v46 = vld [vmem:[%s2485_s1 + $0x14] sm:$0xf]  ;;  %v1662_v2 = vld [vmem:[%s1988_s25 + $0xa4] sm:$0xf] }
  0x40   : > { %921 = vmatmul.bf16.gmra.mxu3 %v2090_v27  ;;  %1059 = vmatpush.bf16.msrb.mxu2 %v1541_v59  ;;  %v1525_v47 = vor.u32 %v1708_v44, %v1522_v45  ;;  %v1394_v55 = vld [vmem:[%s2485_s1 + $0x18] sm:$0xf0]  ;;  %v1724_v56 = vld [vmem:[%s2485_s1 + $0x194] sm:$0xf]  ;;  %v1344_v4 = vld [vmem:[%s1988_s25 + $0xa8] sm:$0xf] }
  0x41   : > { %1108 = vmatpush.bf16.msrb.mxu3 %v1605_v0  ;;  %v1586_v58 = vld [vmem:[%s2485_s1 + $0x198] sm:$0xf0]  ;;  %v1397_v59 = vor.u32 %v1676_v46, %v1394_v55  ;;  %v1692_v61 = vld [vmem:[%s2485_s1 + $0x94] sm:$0xf]  ;;  %v1336_v0 = vld [vmem:[%s1988_s25 + $0xa0] sm:$0xf] }
  0x42   : > { %962 = vmatpush.bf16.msrb.mxu0 %v1405_v23  ;;  %v1589_v60 = vor.u32 %v1724_v56, %v1586_v58  ;;  %v1458_v62 = vld [vmem:[%s2485_s1 + $0x98] sm:$0xf0]  ;;  %v1338_v3 = vld [vmem:[%s1988_s25 + $0xb0] sm:$0xf0]  ;;  %v1665_v5 = vld [vmem:[%s1988_s25 + $0xb4] sm:$0xf0]  ;;  %v2260_v8 = vor.u32 %v1664_v1, %v1336_v0 }
  0x43   : > { %1011 = vmatpush.bf16.msrb.mxu1 %v1469_v31  ;;  %v1461_v63 = vor.u32 %v1692_v61, %v1458_v62  ;;  %v1663_v6 = vld [vmem:[%s1988_s25 + $0xac] sm:$0xf]  ;;  %v1346_v7 = vld [vmem:[%s1988_s25 + $0xb8] sm:$0xf0]  ;;  %v2262_v9 = vor.u32 %v1662_v2, %v1338_v3  ;;  %v2264_v10 = vor.u32 %v1665_v5, %v1344_v4  ;;  %v1706_v16 = vld [vmem:[%s2485_s1 + $0x104] sm:$0xf] }
  0x44   : > { %1060 = vmatpush.bf16.msrb.mxu2 %v1533_v19  ;;  %v2266_v11 = vor.u32 %v1663_v6, %v1346_v7  ;;  %v1514_v17 = vld [vmem:[%s2485_s1 + $0x108] sm:$0xf0]  ;;  %v1674_v18 = vld [vmem:[%s2485_s1 + $0x4] sm:$0xf]  ;;  %v1352_v32 = vld [vmem:[%s1988_s25 + $0xc0] sm:$0xf] }
  0x45   : > { %1109 = vmatpush.bf16.msrb.mxu3 %v1597_v28  ;;  %v1517_v19 = vor.u32 %v1706_v16, %v1514_v17  ;;  %v1386_v20 = vld [vmem:[%s2485_s1 + $0x8] sm:$0xf0]  ;;  %v1722_v21 = vld [vmem:[%s2485_s1 + $0x184] sm:$0xf]  ;;  %v1668_v33 = vld [vmem:[%s1988_s25 + $0xcc] sm:$0xf0] }
  0x46   : > { %963 = vmatpush.bf16.msrb.mxu0 %v1397_v59  ;;  %v1578_v22 = vld [vmem:[%s2485_s1 + $0x188] sm:$0xf0]  ;;  %v1389_v23 = vor.u32 %v1674_v18, %v1386_v20  ;;  %v1690_v29 = vld [vmem:[%s2485_s1 + $0x84] sm:$0xf]  ;;  %v1354_v35 = vld [vmem:[%s1988_s25 + $0xd0] sm:$0xf0]  ;;  %v2304_v44 = vor.u32 %v1668_v33, %v1352_v32 }
  0x47   : > { %1012 = vmatpush.bf16.msrb.mxu1 %v1461_v63  ;;  %v1581_v28 = vor.u32 %v1722_v21, %v1578_v22  ;;  %v1450_v30 = vld [vmem:[%s2485_s1 + $0x88] sm:$0xf0]  ;;  %v1666_v34 = vld [vmem:[%s1988_s25 + $0xc4] sm:$0xf]  ;;  %v1360_v36 = vld [vmem:[%s1988_s25 + $0xc8] sm:$0xf] }
  0x48   : > { %1061 = vmatpush.bf16.msrb.mxu2 %v1525_v47  ;;  %v1453_v31 = vor.u32 %v1690_v29, %v1450_v30  ;;  %v1669_v37 = vld [vmem:[%s1988_s25 + $0xd4] sm:$0xf0]  ;;  %v1667_v38 = vld [vmem:[%s1988_s25 + $0xcc] sm:$0xf]  ;;  %v1362_v39 = vld [vmem:[%s1988_s25 + $0xd8] sm:$0xf0]  ;;  %v2306_v45 = vor.u32 %v1666_v34, %v1354_v35 }
  0x49   : > { %1110 = vmatpush.bf16.msrb.mxu3 %v1589_v60  ;;  %v2308_v46 = vor.u32 %v1669_v37, %v1360_v36  ;;  %v2310_v47 = vor.u32 %v1667_v38, %v1362_v39  ;;  %v1368_v55 = vld [vmem:[%s1988_s25 + $0xe0] sm:$0xf]  ;;  %v1672_v56 = vld [vmem:[%s1988_s25 + $0xec] sm:$0xf0]  ;;  %v1670_v58 = vld [vmem:[%s1988_s25 + $0xe4] sm:$0xf] }
  0x4a   : > { %964 = vmatpush.bf16.msrb.mxu0 %v1389_v23  ;;  %v1370_v59 = vld [vmem:[%s1988_s25 + $0xf0] sm:$0xf0]  ;;  %v1376_v60 = vld [vmem:[%s1988_s25 + $0xe8] sm:$0xf]  ;;  %v1673_v61 = vld [vmem:[%s1988_s25 + $0xf4] sm:$0xf0]  ;;  %v2324_v0 = vor.u32 %v1672_v56, %v1368_v55 }
  0x4b   : > { %1013 = vmatpush.bf16.msrb.mxu1 %v1453_v31  ;;  %v1671_v62 = vld [vmem:[%s1988_s25 + $0xec] sm:$0xf]  ;;  %v1378_v63 = vld [vmem:[%s1988_s25 + $0xf8] sm:$0xf0]  ;;  %v2326_v1 = vor.u32 %v1670_v58, %v1370_v59  ;;  %v2328_v2 = vor.u32 %v1673_v61, %v1376_v60  ;;  %v2339_v4 = vld [vmem:[%s2486_s2] sm:$0x3] }
  0x4c   : > { %1062 = vmatpush.bf16.msrb.mxu2 %v1517_v19  ;;  %v2330_v3 = vor.u32 %v1671_v62, %v1378_v63  ;;  %v2342_v5 = vperm.slane %v2339_v4, 0  ;;  %s1641_s25 = sshll.u32 %s2489_s22, 3 }
  0x4d   : > { %779 = vmatmul.bf16.gmra.mxu0 %v2128_v49  ;;  %1111 = vmatpush.bf16.msrb.mxu3 %v1581_v28  ;;  %s2433_s6 = scalar_lea.vmem %s2487_s3, %s1641_s25 }
  0x4e   : > { %828 = vmatmul.bf16.gmra.mxu1 %v2130_v50 }
  0x4f   : > { %877 = vmatmul.bf16.gmra.mxu2 %v2132_v51 }
  0x50   : > { %926 = vmatmul.bf16.gmra.mxu3 %v2134_v52 }
  0x5d   : > { %784 = vmatmul.bf16.gmra.mxu0 %v2172_v12 }
  0x5e   : > { %833 = vmatmul.bf16.gmra.mxu1 %v2174_v13 }
  0x5f   : > { %882 = vmatmul.bf16.gmra.mxu2 %v2176_v14 }
  0x60   : > { %931 = vmatmul.bf16.gmra.mxu3 %v2178_v15 }
  0x6d   : > { %789 = vmatmul.bf16.gmra.mxu0 %v2216_v40 }
  0x6e   : > { %838 = vmatmul.bf16.gmra.mxu1 %v2218_v41 }
  0x6f   : > { %887 = vmatmul.bf16.gmra.mxu2 %v2220_v42 }
  0x70   : > { %936 = vmatmul.bf16.gmra.mxu3 %v2222_v43 }
  0x7d   : > { %794 = vmatmul.bf16.gmra.mxu0 %v2260_v8 }
  0x7e   : > { %843 = vmatmul.bf16.gmra.mxu1 %v2262_v9 }
  0x7f   : > { %892 = vmatmul.bf16.gmra.mxu2 %v2264_v10 }
  0x80   : > { %941 = vmatmul.bf16.gmra.mxu3 %v2266_v11 }
  0x8d   : > { %799 = vmatmul.bf16.gmra.mxu0 %v2304_v44 }
  0x8e   : > { %848 = vmatmul.bf16.gmra.mxu1 %v2306_v45 }
  0x8f   : > { %897 = vmatmul.bf16.gmra.mxu2 %v2308_v46 }
  0x90   : > { %946 = vmatmul.bf16.gmra.mxu3 %v2310_v47 }
  0x9d   : > { %804 = vmatmul.bf16.gmra.mxu0 %v2324_v0 }
  0x9e   : > { %853 = vmatmul.bf16.gmra.mxu1 %v2326_v1 }
  0x9f   : > { %902 = vmatmul.bf16.gmra.mxu2 %v2328_v2 }
  0xa0   : > { %951 = vmatmul.bf16.gmra.mxu3 %v2330_v3 }
  0xaa   : > { %v770_v6 = vpop.f32.mrf.mxu0 }
  0xab   : > { %v771_v7 = vadd.f32 %v770_v6, %v2342_v5  ;;  %v819_v16 = vpop.f32.mrf.mxu1 }
  0xad   : > { %v820_v17 = vadd.f32 %v819_v16, %v771_v7  ;;  %965 = vmatmul.bf16.vlgmr.msrb.gmra.mxu0 %v2017_v48 }
  0xae   : > { %1014 = vmatmul.bf16.vlgmr.msrb.gmra.mxu1 %v2024_v53 }
  0xaf   : > { %1063 = vmatmul.bf16.vlgmr.msrb.gmra.mxu2 %v2026_v54 }
  0xb0   : > { %1112 = vmatmul.bf16.vlgmr.msrb.gmra.mxu3 %v2034_v57 }
  0xb2   : > { %v868_v18 = vpop.f32.mrf.mxu2  ;;  %v772_v21 = vpop.f32.mrf.mxu0 }
  0xb3   : > { %v869_v19 = vadd.f32 %v868_v18, %v820_v17  ;;  %v917_v20 = vpop.f32.mrf.mxu3  ;;  %v773_v22 = vadd.f32 %v772_v21, %v2342_v5  ;;  %v821_v23 = vpop.f32.mrf.mxu1 }
  0xb5   : > { %v2350_v28 = vadd.f32 %v917_v20, %v869_v19  ;;  %v822_v29 = vadd.f32 %v821_v23, %v773_v22 }
  0xba   : > { %v870_v30 = vpop.f32.mrf.mxu2  ;;  %v775_v48 = vpop.f32.mrf.mxu0 }
  0xbb   : > { %v871_v31 = vadd.f32 %v870_v30, %v822_v29  ;;  %v919_v32 = vpop.f32.mrf.mxu3  ;;  %v776_v53 = vadd.f32 %v775_v48, %v2342_v5  ;;  %v824_v33 = vpop.f32.mrf.mxu1 }
  0xbd   : > { %v2353_v54 = vadd.f32 %v919_v32, %v871_v31  ;;  %v825_v57 = vadd.f32 %v824_v33, %v776_v53  ;;  %970 = vmatmul.bf16.gmra.mxu0 %v2084_v24 }
  0xbe   : > { %1019 = vmatmul.bf16.gmra.mxu1 %v2086_v25 }
  0xbf   : > { %1068 = vmatmul.bf16.gmra.mxu2 %v2088_v26 }
  0xc0   : > { %1117 = vmatmul.bf16.gmra.mxu3 %v2090_v27 }
  0xc2   : > { %v873_v34 = vpop.f32.mrf.mxu2  ;;  %v777_v37 = vpop.f32.mrf.mxu0 }
  0xc3   : > { %v874_v35 = vadd.f32 %v873_v34, %v825_v57  ;;  %v922_v36 = vpop.f32.mrf.mxu3  ;;  %v778_v38 = vadd.f32 %v777_v37, %v2342_v5  ;;  %v826_v39 = vpop.f32.mrf.mxu1 }
  0xc5   : > { %v2360_v55 = vadd.f32 %v922_v36, %v874_v35  ;;  %v827_v56 = vadd.f32 %v826_v39, %v778_v38 }
  0xca   : > { %v875_v58 = vpop.f32.mrf.mxu2  ;;  %v780_v24 = vpop.f32.mrf.mxu0 }
  0xcb   : > { %v876_v59 = vadd.f32 %v875_v58, %v827_v56  ;;  %v924_v60 = vpop.f32.mrf.mxu3  ;;  %v781_v25 = vadd.f32 %v780_v24, %v2342_v5  ;;  %v829_v61 = vpop.f32.mrf.mxu1 }
  0xcd   : > { %v2363_v26 = vadd.f32 %v924_v60, %v876_v59  ;;  %v830_v27 = vadd.f32 %v829_v61, %v781_v25  ;;  %975 = vmatmul.bf16.gmra.mxu0 %v2128_v49 }
  0xce   : > { %1024 = vmatmul.bf16.gmra.mxu1 %v2130_v50 }
  0xcf   : > { %1073 = vmatmul.bf16.gmra.mxu2 %v2132_v51 }
  0xd0   : > { %1122 = vmatmul.bf16.gmra.mxu3 %v2134_v52 }
  0xd2   : > { %v878_v62 = vpop.f32.mrf.mxu2  ;;  %v782_v7 = vpop.f32.mrf.mxu0 }
  0xd3   : > { %v879_v63 = vadd.f32 %v878_v62, %v830_v27  ;;  %v927_v6 = vpop.f32.mrf.mxu3  ;;  %v783_v16 = vadd.f32 %v782_v7, %v2342_v5  ;;  %v831_v17 = vpop.f32.mrf.mxu1 }
  0xd5   : > { %v2370_v18 = vadd.f32 %v927_v6, %v879_v63  ;;  %v832_v19 = vadd.f32 %v831_v17, %v783_v16 }
  0xda   : > { %v880_v20 = vpop.f32.mrf.mxu2  ;;  %v785_v49 = vpop.f32.mrf.mxu0 }
  0xdb   : > { %v881_v21 = vadd.f32 %v880_v20, %v832_v19  ;;  %v929_v22 = vpop.f32.mrf.mxu3  ;;  %v786_v50 = vadd.f32 %v785_v49, %v2342_v5  ;;  %v834_v23 = vpop.f32.mrf.mxu1 }
  0xdd   : > { %v2373_v51 = vadd.f32 %v929_v22, %v881_v21  ;;  %v835_v52 = vadd.f32 %v834_v23, %v786_v50  ;;  %980 = vmatmul.bf16.gmra.mxu0 %v2172_v12 }
  0xde   : > { %1029 = vmatmul.bf16.gmra.mxu1 %v2174_v13 }
  0xdf   : > { %1078 = vmatmul.bf16.gmra.mxu2 %v2176_v14 }
  0xe0   : > { %1127 = vmatmul.bf16.gmra.mxu3 %v2178_v15 }
  0xe2   : > { %v883_v29 = vpop.f32.mrf.mxu2  ;;  %v787_v32 = vpop.f32.mrf.mxu0 }
  0xe3   : > { %v884_v30 = vadd.f32 %v883_v29, %v835_v52  ;;  %v932_v31 = vpop.f32.mrf.mxu3  ;;  %v788_v48 = vadd.f32 %v787_v32, %v2342_v5  ;;  %v836_v53 = vpop.f32.mrf.mxu1 }
  0xe5   : > { %v2380_v33 = vadd.f32 %v932_v31, %v884_v30  ;;  %v837_v57 = vadd.f32 %v836_v53, %v788_v48 }
  0xea   : > { %v885_v34 = vpop.f32.mrf.mxu2  ;;  %v790_v12 = vpop.f32.mrf.mxu0 }
  0xeb   : > { %v886_v35 = vadd.f32 %v885_v34, %v837_v57  ;;  %v934_v36 = vpop.f32.mrf.mxu3  ;;  %v791_v13 = vadd.f32 %v790_v12, %v2342_v5  ;;  %v839_v37 = vpop.f32.mrf.mxu1 }
  0xed   : > { %v2383_v14 = vadd.f32 %v934_v36, %v886_v35  ;;  %v840_v15 = vadd.f32 %v839_v37, %v791_v13  ;;  %985 = vmatmul.bf16.gmra.mxu0 %v2216_v40 }
  0xee   : > { %1034 = vmatmul.bf16.gmra.mxu1 %v2218_v41 }
  0xef   : > { %1083 = vmatmul.bf16.gmra.mxu2 %v2220_v42 }
  0xf0   : > { %1132 = vmatmul.bf16.gmra.mxu3 %v2222_v43 }
  0xf2   : > { %v888_v38 = vpop.f32.mrf.mxu2  ;;  %v792_v58 = vpop.f32.mrf.mxu0 }
  0xf3   : > { %v889_v39 = vadd.f32 %v888_v38, %v840_v15  ;;  %v937_v56 = vpop.f32.mrf.mxu3  ;;  %v793_v59 = vadd.f32 %v792_v58, %v2342_v5  ;;  %v841_v60 = vpop.f32.mrf.mxu1 }
  0xf5   : > { %v2390_v24 = vadd.f32 %v937_v56, %v889_v39  ;;  %v842_v25 = vadd.f32 %v841_v60, %v793_v59 }
  0xfa   : > { %v890_v61 = vpop.f32.mrf.mxu2  ;;  %v795_v40 = vpop.f32.mrf.mxu0 }
  0xfb   : > { %v891_v27 = vadd.f32 %v890_v61, %v842_v25  ;;  %v939_v62 = vpop.f32.mrf.mxu3  ;;  %v796_v41 = vadd.f32 %v795_v40, %v2342_v5  ;;  %v844_v63 = vpop.f32.mrf.mxu1  ;;  %v2423_v25 = vperm.slane %v2339_v4, 1 }
  0xfd   : > { %v2393_v42 = vadd.f32 %v939_v62, %v891_v27  ;;  %v845_v43 = vadd.f32 %v844_v63, %v796_v41  ;;  %990 = vmatmul.bf16.gmra.mxu0 %v2260_v8 }
  0xfe   : > { %1039 = vmatmul.bf16.gmra.mxu1 %v2262_v9 }
  0xff   : > { %1088 = vmatmul.bf16.gmra.mxu2 %v2264_v10 }
 0x100   : > { %1137 = vmatmul.bf16.gmra.mxu3 %v2266_v11 }
 0x102   : > { %v893_v6 = vpop.f32.mrf.mxu2  ;;  %v797_v17 = vpop.f32.mrf.mxu0 }
 0x103   : > { %v894_v7 = vadd.f32 %v893_v6, %v845_v43  ;;  %v942_v16 = vpop.f32.mrf.mxu3  ;;  %v798_v19 = vadd.f32 %v797_v17, %v2342_v5  ;;  %v846_v20 = vpop.f32.mrf.mxu1 }
 0x105   : > { %v2400_v21 = vadd.f32 %v942_v16, %v894_v7  ;;  %v847_v22 = vadd.f32 %v846_v20, %v798_v19 }
 0x10a   : > { %v895_v49 = vpop.f32.mrf.mxu2  ;;  %v800_v8 = vpop.f32.mrf.mxu0 }
 0x10b   : > { %v896_v50 = vadd.f32 %v895_v49, %v847_v22  ;;  %v944_v23 = vpop.f32.mrf.mxu3  ;;  %v801_v9 = vadd.f32 %v800_v8, %v2342_v5  ;;  %v849_v52 = vpop.f32.mrf.mxu1 }
 0x10d   : > { %v2403_v10 = vadd.f32 %v944_v23, %v896_v50  ;;  %v850_v11 = vadd.f32 %v849_v52, %v801_v9  ;;  %995 = vmatmul.bf16.gmra.mxu0 %v2304_v44 }
 0x10e   : > { %1044 = vmatmul.bf16.gmra.mxu1 %v2306_v45 }
 0x10f   : > { %1093 = vmatmul.bf16.gmra.mxu2 %v2308_v46 }
 0x110   : > { %1142 = vmatmul.bf16.gmra.mxu3 %v2310_v47 }
 0x112   : > { %v898_v29 = vpop.f32.mrf.mxu2  ;;  %v802_v32 = vpop.f32.mrf.mxu0 }
 0x113   : > { %v899_v30 = vadd.f32 %v898_v29, %v850_v11  ;;  %v947_v31 = vpop.f32.mrf.mxu3  ;;  %v803_v48 = vadd.f32 %v802_v32, %v2342_v5  ;;  %v851_v53 = vpop.f32.mrf.mxu1 }
 0x115   : > { %v2410_v57 = vadd.f32 %v947_v31, %v899_v30  ;;  %v852_v34 = vadd.f32 %v851_v53, %v803_v48 }
 0x11a   : > { %v900_v35 = vpop.f32.mrf.mxu2  ;;  %v805_v44 = vpop.f32.mrf.mxu0 }
 0x11b   : > { %v901_v36 = vadd.f32 %v900_v35, %v852_v34  ;;  %v949_v12 = vpop.f32.mrf.mxu3  ;;  %v806_v45 = vadd.f32 %v805_v44, %v2342_v5  ;;  %v854_v13 = vpop.f32.mrf.mxu1 }
 0x11d   : > { %v2413_v46 = vadd.f32 %v949_v12, %v901_v36  ;;  %v855_v47 = vadd.f32 %v854_v13, %v806_v45  ;;  %1000 = vmatmul.bf16.gmra.mxu0 %v2324_v0 }
 0x11e   : > { %1049 = vmatmul.bf16.gmra.mxu1 %v2326_v1 }
 0x11f   : > { %1098 = vmatmul.bf16.gmra.mxu2 %v2328_v2 }
 0x120   : > { %1147 = vmatmul.bf16.gmra.mxu3 %v2330_v3 }
 0x122   : > { %v903_v37 = vpop.f32.mrf.mxu2  ;;  %v807_v39 = vpop.f32.mrf.mxu0 }
 0x123   : > { %v904_v15 = vadd.f32 %v903_v37, %v855_v47  ;;  %v952_v38 = vpop.f32.mrf.mxu3  ;;  %v808_v56 = vadd.f32 %v807_v39, %v2342_v5  ;;  %v856_v58 = vpop.f32.mrf.mxu1 }
 0x125   : > { %v2420_v59 = vadd.f32 %v952_v38, %v904_v15  ;;  %v857_v60 = vadd.f32 %v856_v58, %v808_v56 }
 0x12a   : > { %v905_v0 = vpop.f32.mrf.mxu2  ;;  %v966_v2 = vpop.f32.mrf.mxu0 }
 0x12b   : > { %v906_v1 = vadd.f32 %v905_v0, %v857_v60  ;;  %v954_v61 = vpop.f32.mrf.mxu3  ;;  %v967_v3 = vadd.f32 %v966_v2, %v2423_v25  ;;  %v1015_v27 = vpop.f32.mrf.mxu1 }
 0x12d   : > { %v2426_v62 = vadd.f32 %v954_v61, %v906_v1  ;;  %v1016_v40 = vadd.f32 %v1015_v27, %v967_v3 }
 0x132   : > { %v1064_v41 = vpop.f32.mrf.mxu2  ;;  %v968_v43 = vpop.f32.mrf.mxu0 }
 0x133   : > { %v1065_v63 = vadd.f32 %v1064_v41, %v1016_v40  ;;  %v1113_v5 = vpop.f32.mrf.mxu3  ;;  %v1017_v6 = vpop.f32.mrf.mxu1  ;;  %v969_v4 = vadd.f32 %v968_v43, %v2423_v25 }
 0x135   : > { %v1114_v7 = vadd.f32 %v1113_v5, %v1065_v63  ;;  %v1018_v17 = vadd.f32 %v1017_v6, %v969_v4 }
 0x137   : > { %v1153_v16 = vpack.c.bf16 %v1114_v7, %v2350_v28 }
 0x139   : > { %1169 = vst [vmem:[%s2433_s6] sm:$0xff] %v1153_v16 }
 0x13a   : > { %v1066_v19 = vpop.f32.mrf.mxu2  ;;  %v971_v49 = vpop.f32.mrf.mxu0 }
 0x13b   : > { %v1067_v20 = vadd.f32 %v1066_v19, %v1018_v17  ;;  %v1115_v22 = vpop.f32.mrf.mxu3  ;;  %v972_v50 = vadd.f32 %v971_v49, %v2423_v25  ;;  %v1020_v23 = vpop.f32.mrf.mxu1 }
 0x13d   : > { %v1116_v8 = vadd.f32 %v1115_v22, %v1067_v20  ;;  %v1021_v52 = vadd.f32 %v1020_v23, %v972_v50 }
 0x13f   : > { %v1154_v9 = vpack.c.bf16 %v1116_v8, %v2353_v54 }
 0x141   : > { %1170 = vst [vmem:[%s2433_s6 + $0x8] sm:$0xff] %v1154_v9 }
 0x142   : > { %v1069_v11 = vpop.f32.mrf.mxu2  ;;  %v973_v31 = vpop.f32.mrf.mxu0 }
 0x143   : > { %v1070_v29 = vadd.f32 %v1069_v11, %v1021_v52  ;;  %v1118_v30 = vpop.f32.mrf.mxu3  ;;  %v1022_v28 = vpop.f32.mrf.mxu1  ;;  %v974_v48 = vadd.f32 %v973_v31, %v2423_v25 }
 0x145   : > { %v1119_v32 = vadd.f32 %v1118_v30, %v1070_v29  ;;  %v1023_v34 = vadd.f32 %v1022_v28, %v974_v48 }
 0x147   : > { %v1155_v53 = vpack.c.bf16 %v1119_v32, %v2360_v55 }
 0x149   : > { %1171 = vst [vmem:[%s2433_s6 + $0x10] sm:$0xff] %v1155_v53 }
 0x14a   : > { %v1071_v35 = vpop.f32.mrf.mxu2  ;;  %v976_v54 = vpop.f32.mrf.mxu0 }
 0x14b   : > { %v1072_v36 = vadd.f32 %v1071_v35, %v1023_v34  ;;  %v1120_v12 = vpop.f32.mrf.mxu3  ;;  %v977_v44 = vadd.f32 %v976_v54, %v2423_v25  ;;  %v1025_v45 = vpop.f32.mrf.mxu1 }
 0x14d   : > { %v1121_v13 = vadd.f32 %v1120_v12, %v1072_v36  ;;  %v1026_v37 = vadd.f32 %v1025_v45, %v977_v44 }
 0x14f   : > { %v1156_v47 = vpack.c.bf16 %v1121_v13, %v2363_v26 }
 0x151   : > { %1172 = vst [vmem:[%s2433_s6 + $0x18] sm:$0xff] %v1156_v47 }
 0x152   : > { %v1074_v15 = vpop.f32.mrf.mxu2  ;;  %v978_v56 = vpop.f32.mrf.mxu0 }
 0x153   : > { %v1075_v38 = vadd.f32 %v1074_v15, %v1026_v37  ;;  %v1123_v39 = vpop.f32.mrf.mxu3  ;;  %v1027_v55 = vpop.f32.mrf.mxu1  ;;  %v979_v60 = vadd.f32 %v978_v56, %v2423_v25 }
 0x155   : > { %v1124_v58 = vadd.f32 %v1123_v39, %v1075_v38  ;;  %v1028_v1 = vadd.f32 %v1027_v55, %v979_v60 }
 0x157   : > { %v1157_v0 = vpack.c.bf16 %v1124_v58, %v2370_v18 }
 0x159   : > { %1173 = vst [vmem:[%s2433_s6 + $0x20] sm:$0xff] %v1157_v0 }
 0x15a   : > { %v1076_v61 = vpop.f32.mrf.mxu2  ;;  %v981_v26 = vpop.f32.mrf.mxu0 }
 0x15b   : > { %v1077_v2 = vadd.f32 %v1076_v61, %v1028_v1  ;;  %v1125_v3 = vpop.f32.mrf.mxu3  ;;  %v982_v27 = vadd.f32 %v981_v26, %v2423_v25  ;;  %v1030_v40 = vpop.f32.mrf.mxu1 }
 0x15d   : > { %v1126_v41 = vadd.f32 %v1125_v3, %v1077_v2  ;;  %v1031_v5 = vadd.f32 %v1030_v40, %v982_v27 }
 0x15f   : > { %v1158_v63 = vpack.c.bf16 %v1126_v41, %v2373_v51 }
 0x161   : > { %1174 = vst [vmem:[%s2433_s6 + $0x28] sm:$0xff] %v1158_v63 }
 0x162   : > { %v1079_v43 = vpop.f32.mrf.mxu2  ;;  %v983_v4 = vpop.f32.mrf.mxu0 }
 0x163   : > { %v1080_v6 = vadd.f32 %v1079_v43, %v1031_v5  ;;  %v1128_v7 = vpop.f32.mrf.mxu3  ;;  %v1032_v18 = vpop.f32.mrf.mxu1  ;;  %v984_v17 = vadd.f32 %v983_v4, %v2423_v25 }
 0x165   : > { %v1129_v16 = vadd.f32 %v1128_v7, %v1080_v6  ;;  %v1033_v20 = vadd.f32 %v1032_v18, %v984_v17 }
 0x167   : > { %v1159_v19 = vpack.c.bf16 %v1129_v16, %v2380_v33 }
 0x169   : > { %1175 = vst [vmem:[%s2433_s6 + $0x30] sm:$0xff] %v1159_v19 }
 0x16a   : > { %v1081_v22 = vpop.f32.mrf.mxu2  ;;  %v986_v51 = vpop.f32.mrf.mxu0 }
 0x16b   : > { %v1082_v49 = vadd.f32 %v1081_v22, %v1033_v20  ;;  %v1130_v50 = vpop.f32.mrf.mxu3  ;;  %v987_v23 = vadd.f32 %v986_v51, %v2423_v25  ;;  %v1035_v8 = vpop.f32.mrf.mxu1 }
 0x16d   : > { %v1131_v9 = vadd.f32 %v1130_v50, %v1082_v49  ;;  %v1036_v11 = vadd.f32 %v1035_v8, %v987_v23 }
 0x16f   : > { %v1160_v52 = vpack.c.bf16 %v1131_v9, %v2383_v14 }
 0x171   : > { %1176 = vst [vmem:[%s2433_s6 + $0x38] sm:$0xff] %v1160_v52 }
 0x172   : > { %v1084_v29 = vpop.f32.mrf.mxu2  ;;  %v988_v28 = vpop.f32.mrf.mxu0 }
 0x173   : > { %v1085_v30 = vadd.f32 %v1084_v29, %v1036_v11  ;;  %v1133_v31 = vpop.f32.mrf.mxu3  ;;  %v1037_v33 = vpop.f32.mrf.mxu1  ;;  %v989_v48 = vadd.f32 %v988_v28, %v2423_v25 }
 0x175   : > { %v1134_v32 = vadd.f32 %v1133_v31, %v1085_v30  ;;  %v1038_v34 = vadd.f32 %v1037_v33, %v989_v48 }
 0x177   : > { %v1161_v53 = vpack.c.bf16 %v1134_v32, %v2390_v24 }
 0x179   : > { %1177 = vst [vmem:[%s2433_s6 + $0x40] sm:$0xff] %v1161_v53 }
 0x17a   : > { %v1086_v35 = vpop.f32.mrf.mxu2  ;;  %v991_v14 = vpop.f32.mrf.mxu0 }
 0x17b   : > { %v1087_v36 = vadd.f32 %v1086_v35, %v1038_v34  ;;  %v1135_v12 = vpop.f32.mrf.mxu3  ;;  %v992_v54 = vadd.f32 %v991_v14, %v2423_v25  ;;  %v1040_v44 = vpop.f32.mrf.mxu1 }
 0x17d   : > { %v1136_v45 = vadd.f32 %v1135_v12, %v1087_v36  ;;  %v1041_v47 = vadd.f32 %v1040_v44, %v992_v54 }
 0x17f   : > { %v1162_v13 = vpack.c.bf16 %v1136_v45, %v2393_v42 }
 0x181   : > { %1178 = vst [vmem:[%s2433_s6 + $0x48] sm:$0xff] %v1162_v13 }
 0x182   : > { %v1089_v37 = vpop.f32.mrf.mxu2  ;;  %v993_v39 = vpop.f32.mrf.mxu0 }
 0x183   : > { %v1090_v15 = vadd.f32 %v1089_v37, %v1041_v47  ;;  %v1138_v38 = vpop.f32.mrf.mxu3  ;;  %v1042_v24 = vpop.f32.mrf.mxu1  ;;  %v994_v55 = vadd.f32 %v993_v39, %v2423_v25 }
 0x185   : > { %v1139_v56 = vadd.f32 %v1138_v38, %v1090_v15  ;;  %v1043_v60 = vadd.f32 %v1042_v24, %v994_v55 }
 0x187   : > { %v1163_v58 = vpack.c.bf16 %v1139_v56, %v2400_v21 }
 0x189   : > { %1179 = vst [vmem:[%s2433_s6 + $0x50] sm:$0xff] %v1163_v58 }
 0x18a   : > { %v1091_v0 = vpop.f32.mrf.mxu2  ;;  %v996_v42 = vpop.f32.mrf.mxu0 }
 0x18b   : > { %v1092_v1 = vadd.f32 %v1091_v0, %v1043_v60  ;;  %v1140_v61 = vpop.f32.mrf.mxu3  ;;  %v997_v2 = vadd.f32 %v996_v42, %v2423_v25  ;;  %v1045_v3 = vpop.f32.mrf.mxu1 }
 0x18d   : > { %v1141_v26 = vadd.f32 %v1140_v61, %v1092_v1  ;;  %v1046_v40 = vadd.f32 %v1045_v3, %v997_v2 }
 0x18f   : > { %v1164_v27 = vpack.c.bf16 %v1141_v26, %v2403_v10 }
 0x191   : > { %1180 = vst [vmem:[%s2433_s6 + $0x58] sm:$0xff] %v1164_v27 }
 0x192   : > { %v1094_v41 = vpop.f32.mrf.mxu2  ;;  %v998_v43 = vpop.f32.mrf.mxu0 }
 0x193   : > { %v1095_v63 = vadd.f32 %v1094_v41, %v1046_v40  ;;  %v1143_v5 = vpop.f32.mrf.mxu3  ;;  %v1047_v21 = vpop.f32.mrf.mxu1  ;;  %v999_v7 = vadd.f32 %v998_v43, %v2423_v25 }
 0x195   : > { %v1144_v6 = vadd.f32 %v1143_v5, %v1095_v63  ;;  %v1048_v18 = vadd.f32 %v1047_v21, %v999_v7 }
 0x197   : > { %v1165_v4 = vpack.c.bf16 %v1144_v6, %v2410_v57 }
 0x199   : > { %1181 = vst [vmem:[%s2433_s6 + $0x60] sm:$0xff] %v1165_v4 }
 0x19a   : > { %v1096_v16 = vpop.f32.mrf.mxu2  ;;  %v1001_v10 = vpop.f32.mrf.mxu0 }
 0x19b   : > { %v1097_v17 = vadd.f32 %v1096_v16, %v1048_v18  ;;  %v1145_v19 = vpop.f32.mrf.mxu3  ;;  %v1002_v20 = vadd.f32 %v1001_v10, %v2423_v25  ;;  %v1050_v49 = vpop.f32.mrf.mxu1 }
 0x19d   : > { %v1146_v22 = vadd.f32 %v1145_v19, %v1097_v17  ;;  %v1051_v51 = vadd.f32 %v1050_v49, %v1002_v20 }
 0x19f   : > { %v1166_v50 = vpack.c.bf16 %v1146_v22, %v2413_v46 }
 0x1a1   : > { %1182 = vst [vmem:[%s2433_s6 + $0x68] sm:$0xff] %v1166_v50 }
 0x1a2   : > { %v1099_v23 = vpop.f32.mrf.mxu2  ;;  %v1003_v57 = vpop.f32.mrf.mxu0 }
 0x1a3   : > { %v1100_v8 = vadd.f32 %v1099_v23, %v1051_v51  ;;  %v1148_v9 = vpop.f32.mrf.mxu3  ;;  %v1004_v11 = vadd.f32 %v1003_v57, %v2423_v25  ;;  %v1052_v30 = vpop.f32.mrf.mxu1 }
 0x1a5   : > { %v1149_v52 = vadd.f32 %v1148_v9, %v1100_v8  ;;  %v1053_v31 = vadd.f32 %v1052_v30, %v1004_v11 }
 0x1a7   : > { %v1167_v29 = vpack.c.bf16 %v1149_v52, %v2420_v59 }
 0x1a9   : > { %1183 = vst [vmem:[%s2433_s6 + $0x70] sm:$0xff] %v1167_v29 }
 0x1aa   : > { %v1101_v28 = vpop.f32.mrf.mxu2 }
 0x1ab   : > { %v1102_v33 = vadd.f32 %v1101_v28, %v1053_v31  ;;  %v1150_v32 = vpop.f32.mrf.mxu3 }
 0x1ad   : > { %v1151_v48 = vadd.f32 %v1150_v32, %v1102_v33 }
 0x1af   : > { %v1168_v46 = vpack.c.bf16 %v1151_v48, %v2426_v62 }
 0x1b1   : > { %1184 = vst [vmem:[%s2433_s6 + $0x78] sm:$0xff] %v1168_v46 }
 0x1b2 PF: > { %s13_s12 = sadd.s32 1, %s1752_s12  }
 0x1b3   : > { %p10_p4 = scmp.ge.s32.totalorder %s13_s12, 4  }
 0x1b5   :  { %12 = sbr.rel (!%p10_p4) target bundleno = 1 (0x1), region = 62 }

// kernel: drug_interaction_transformer_forward.41
= control target key start
LH: loop header
LB: loop body
LE: loop exit
PB: predicated region body
PF: predicated region fallthrough
CT: control target
= control target key end

     0   :  { %s342_s1 = inlined_call_operand.vmem [shape: bf16[256,128], index: 1, kind: input, shape index: {}]   ;;  %s343_s0 = inlined_call_operand.vmem [shape: bf16[2,256], index: 0, kind: input, shape index: {}]   ;;  %s344_s2 = inlined_call_operand.vmem [shape: f32[1,128], index: 2, kind: input, shape index: {}]   ;;  %s345_s3 = inlined_call_operand.vmem [shape: f32[2,128], index: 3, kind: output, shape index: {}]  }
   0x1   :  { %v255_v0 = vld [vmem:[%s342_s1 + $0x38] sm:$0xff]  ;;  %v254_v2 = vld [vmem:[%s342_s1 + $0x30] sm:$0xff]  ;;  %v14_v4 = vld [vmem:[%s343_s0] sm:$0x3] }
   0x2   :  { %v263_v1 = vld [vmem:[%s342_s1 + $0x78] sm:$0xff]  ;;  %153 = vmatpush.bf16.msra.mxu0 %v255_v0  ;;  %v262_v3 = vld [vmem:[%s342_s1 + $0x70] sm:$0xff]  ;;  %v253_v5 = vld [vmem:[%s342_s1 + $0x28] sm:$0xff]  ;;  %52 = vst [vmem:[#allocation1] ss:$9 sm:$0xff] %v14_v4 }
   0x3   :  { %166 = vmatpush.bf16.msra.mxu1 %v263_v1  ;;  %v261_v6 = vld [vmem:[%s342_s1 + $0x68] sm:$0xff]  ;;  %v252_v7 = vld [vmem:[%s342_s1 + $0x20] sm:$0xff]  ;;  %v251_v9 = vld [vmem:[%s342_s1 + $0x18] sm:$0xff] }
   0x4   :  { %v260_v8 = vld [vmem:[%s342_s1 + $0x60] sm:$0xff]  ;;  %v259_v10 = vld [vmem:[%s342_s1 + $0x58] sm:$0xff]  ;;  %v250_v11 = vld [vmem:[%s342_s1 + $0x10] sm:$0xff] }
   0x5   :  { %v258_v12 = vld [vmem:[%s342_s1 + $0x50] sm:$0xff]  ;;  %v249_v13 = vld [vmem:[%s342_s1 + $0x8] sm:$0xff]  ;;  %v248_v15 = vld [vmem:[%s342_s1] sm:$0xff] }
   0x6   :  { %154 = vmatpush.bf16.msra.mxu0 %v254_v2  ;;  %v257_v14 = vld [vmem:[%s342_s1 + $0x48] sm:$0xff]  ;;  %v256_v16 = vld [vmem:[%s342_s1 + $0x40] sm:$0xff] }
   0x7   :  { %167 = vmatpush.bf16.msra.mxu1 %v262_v3  ;;  %v264_v19 = vld [vmem:[%s344_s2] ss:$0 sm:$0xff] }
   0x9   :  { %v53_v17 = vld [vmem:[#allocation1] sm:$0xff]  ;;  %v54_v18 = vld [vmem:[#allocation1 + $0x9] sm:$0xff] }
   0xa   :  { %155 = vmatpush.bf16.msra.mxu0 %v253_v5 }
   0xb   :  { %168 = vmatpush.bf16.msra.mxu1 %v261_v6 }
   0xe   :  { %156 = vmatpush.bf16.msra.mxu0 %v252_v7 }
   0xf   :  { %169 = vmatpush.bf16.msra.mxu1 %v260_v8 }
  0x12   :  { %157 = vmatpush.bf16.msra.mxu0 %v251_v9 }
  0x13   :  { %170 = vmatpush.bf16.msra.mxu1 %v259_v10 }
  0x16   :  { %158 = vmatpush.bf16.msra.mxu0 %v250_v11 }
  0x17   :  { %171 = vmatpush.bf16.msra.mxu1 %v258_v12 }
  0x1a   :  { %159 = vmatpush.bf16.msra.mxu0 %v249_v13 }
  0x1b   :  { %172 = vmatpush.bf16.msra.mxu1 %v257_v14 }
  0x1e   :  { %160 = vmatpush.bf16.msra.mxu0 %v248_v15 }
  0x1f   :  { %173 = vmatpush.bf16.msra.mxu1 %v256_v16 }
  0x21   :  { %161 = vmatmul.bf16.vlgmr.msra.gmra.mxu0 %v53_v17 }
  0x22   :  { %174 = vmatmul.bf16.vlgmr.msra.gmra.mxu1 %v54_v18 }
  0x9e   :  { %v162_v20 = vpop.f32.mrf.mxu0 }
  0x9f   :  { %v175_v21 = vpop.f32.mrf.mxu1  ;;  %v163_v22 = vadd.f32 %v264_v19, %v162_v20 }
  0xa1   :  { %v176_v23 = vadd.f32 %v175_v21, %v163_v22 }
  0xa3   :  { %179 = vst [vmem:[%s345_s3] sm:$0x3] %v176_v23 }
  0xa6   :  { %v164_v24 = vpop.f32.mrf.mxu0 }
  0xa7   :  { %v177_v25 = vpop.f32.mrf.mxu1 }

</bundles_post_ra>
